<compile_context>
chip_gen: v5e
topology: v5e:2x2
jax: 0.10.0
libtpu: 0.0.40
codegen_flags: <defaults>
</compile_context>

<pallas_src>
import functools

import jax
import jax.numpy as jnp
from jax import lax
from jax.experimental import pallas as pl
from jax.experimental.pallas import tpu as pltpu


def _residual_block_kernel(H, W, xp_ref, valid_ref, w1_ref, b1_ref, w2_ref,
                           b2_ref, wf1_ref, bf1_ref, wf2_ref, bf2_ref,
                           o_ref, pad2_ref):
    """Processes a block of bN samples (static Python loop over the block).

    xp_ref   : (bN, C, Lpad) f32  zero-padded input, flattened with row pitch P=W+2
    valid_ref: (1, H*P) f32       1.0 where lane j = h*P+w has w < W, else 0.0
    w1_ref, w2_ref : (9, C, C) f32 conv taps [k, c_out, c_in], BN scale folded in
    b1_ref, b2_ref : (C, 1) f32   folded BN biases
    wf1_ref (C, Cr), bf1_ref (1, Cr), wf2_ref (C, Cr), bf2_ref (C, 1) : SE MLP
    o_ref    : (bN, C, H*P) f32   "wide" output (wrapper crops 2 junk cols/row)
    pad2_ref : (C, Lpad) f32      scratch: zero-padded conv2 input
    """
    bN, C, Lpad = xp_ref.shape
    P = W + 2
    HP = H * P
    inv_hw = 1.0 / float(H * W)

    validf = valid_ref[...]                                      # (1, HP)

    # Zero the conv2 scratch.  Only its interior [P+1, P+1+HP) is written
    # below, so the halo stays zero for every sample.  Re-done every grid step
    # on purpose: the batch axis is "parallel" (sharded across v7x cores), so
    # this must NOT be gated on program_id.
    pad2_ref[...] = jnp.zeros_like(pad2_ref)

    def conv3x3(src, w_ref, b_ref):
        # src: (C, Lpad) zero-padded image.  3x3 conv at every padded row
        # position = nine accumulating (C,C) @ (C,HP) MXU matmuls whose RHS
        # are contiguous lane windows of src (no im2col, no per-shift reshape).
        acc = jnp.zeros((C, HP), jnp.float32)
        for kh in range(3):
            for kw in range(3):
                off = kh * P + kw
                acc = acc + jnp.dot(w_ref[kh * 3 + kw],
                                    src[:, off:off + HP],
                                    preferred_element_type=jnp.float32)
        return acc + b_ref[...]                                  # (C,1) bias bcast

    for b in range(bN):
        xb = xp_ref[b]                                           # (C, Lpad)

        # conv1 -> folded BN1 -> ReLU        (channels on sublanes, HP lanes)
        out1 = jnp.maximum(conv3x3(xb, w1_ref, b1_ref), 0.0)     # (C, HP)

        # Re-pad for conv2: one masked bulk copy into the scratch interior.
        # The wide junk lanes land exactly on padding positions -> masked to 0.
        pad2_ref[:, P + 1:P + 1 + HP] = out1 * validf
        out2 = conv3x3(pad2_ref[...], w2_ref, b2_ref)            # (C, HP)

        # SE: masked global average pool -> fc -> ReLU -> fc -> sigmoid.
        # The tiny MLP (Cr = C//16) is done with broadcast-mul + reductions
        # (no degenerate matmuls, no transposes).
        pooled = jnp.sum(out2 * validf, axis=1, keepdims=True) * inv_hw   # (C,1)
        hid = jnp.maximum(
            jnp.sum(wf1_ref[...] * pooled, axis=0, keepdims=True)
            + bf1_ref[...], 0.0)                                          # (1,Cr)
        gate = jax.nn.sigmoid(
            jnp.sum(wf2_ref[...] * hid, axis=1, keepdims=True)
            + bf2_ref[...])                                               # (C,1)

        # channel gate + residual + ReLU (residual read from the padded input
        # through the same contiguous wide window).
        res = xb[:, P + 1:P + 1 + HP]                                     # (C,HP)
        o_ref[b, :, :] = jnp.maximum(out2 * gate + res, 0.0)


@jax.jit
def residual_block_fwd(x, w1_oihw, s1, b1, w2_oihw, s2, b2,
                       w_se1, b_se1, w_se2, b_se2):
    """x: (N, C, H, W) f32 (NCHW, kept end-to-end).  w*: (C, C, 3, 3) OIHW.
    s*/b*: folded eval-mode BN scale/bias (C,).  SE Linear weights in PyTorch
    (out, in) layout: w_se1 (Cr, C), w_se2 (C, Cr)."""
    N, C, H, W = x.shape
    Cr = w_se1.shape[0]
    P = W + 2
    HP = H * P
    Lpad = (H + 3) * P      # one extra zero row keeps every conv window in-bounds

    # ---- parameter prep (wrapper-side layout plumbing, traced once) --------
    w1k = (jnp.transpose(w1_oihw, (2, 3, 0, 1)) * s1[None, None, :, None]
           ).reshape(9, C, C).astype(jnp.float32)
    w2k = (jnp.transpose(w2_oihw, (2, 3, 0, 1)) * s2[None, None, :, None]
           ).reshape(9, C, C).astype(jnp.float32)
    b1k = b1.reshape(C, 1)
    b2k = b2.reshape(C, 1)
    wf1t = w_se1.T                      # (C, Cr)
    bf1k = b_se1.reshape(1, Cr)
    wf2k = w_se2                        # (C, Cr)
    bf2k = b_se2.reshape(C, 1)

    # zero-padded, flattened input (row pitch P); also supplies the residual.
    xpf = jnp.pad(x, ((0, 0), (0, 0), (1, 2), (1, 1))).reshape(N, C, Lpad)

    # validity mask over the wide spatial axis (1 where w < W, 0 on junk cols).
    validf = jnp.tile(
        jnp.concatenate([jnp.ones((W,), jnp.float32),
                         jnp.zeros((2,), jnp.float32)]), H).reshape(1, HP)

    # ---- batch blocking: several samples per grid step ----------------------
    # TODO(synk): on v7x pick bN = N // 2 so the parallel axis spans both cores.
    bN = 1
    for cand in (8, 4, 2, 1):
        if N % cand == 0:
            bN = cand
            break

    def whole(shape):
        zeros = (0,) * len(shape)
        return pl.BlockSpec(shape, lambda n, _z=zeros: _z)

    out_wide = pl.pallas_call(
        functools.partial(_residual_block_kernel, H, W),
        out_shape=jax.ShapeDtypeStruct((N, C, HP), jnp.float32),
        grid=(N // bN,),
        in_specs=[
            pl.BlockSpec((bN, C, Lpad), lambda n: (n, 0, 0)),   # padded input
            whole((1, HP)),                                     # validity mask
            whole((9, C, C)), whole((C, 1)),                    # conv1 taps/bias
            whole((9, C, C)), whole((C, 1)),                    # conv2 taps/bias
            whole((C, Cr)), whole((1, Cr)),                     # SE fc1
            whole((C, Cr)), whole((C, 1)),                      # SE fc2
        ],
        out_specs=pl.BlockSpec((bN, C, HP), lambda n: (n, 0, 0)),
        scratch_shapes=[pltpu.VMEM((C, Lpad), jnp.float32)],    # conv2 padded input
        compiler_params=pltpu.CompilerParams(
            dimension_semantics=("parallel",)),
    )(xpf, validf, w1k, b1k, w2k, b2k, wf1t, bf1k, wf2k, bf2k)

    # crop the two junk columns per row (cheap XLA-side slice).
    return out_wide.reshape(N, C, H, P)[:, :, :, :W]


def reference_fwd(x, w1_oihw, s1, b1, w2_oihw, s2, b2, w_se1, b_se1, w_se2, b_se2):
    """Pure-JAX NCHW reference matching the PyTorch module (eval-mode BN)."""
    dn = ('NCHW', 'OIHW', 'NCHW')
    y = lax.conv_general_dilated(x, w1_oihw, (1, 1), 'SAME', dimension_numbers=dn)
    y = y * s1[None, :, None, None] + b1[None, :, None, None]
    y = jnp.maximum(y, 0.0)
    y = lax.conv_general_dilated(y, w2_oihw, (1, 1), 'SAME', dimension_numbers=dn)
    y = y * s2[None, :, None, None] + b2[None, :, None, None]
    g = jnp.mean(y, axis=(2, 3))                       # (N, C)
    g = jnp.maximum(g @ w_se1.T + b_se1, 0.0)
    g = jax.nn.sigmoid(g @ w_se2.T + b_se2)
    y = y * g[:, :, None, None]
    return jnp.maximum(y + x, 0.0)


if __name__ == "__main__":
    N, C, H, W = 2, 32, 16, 16      # channels=32 so SE reduction 16 -> hidden=2
    R = 16
    Cr = C // R

    key = jax.random.PRNGKey(0)
    keys = jax.random.split(key, 12)

    x = jax.random.normal(keys[0], (N, C, H, W), jnp.float32)

    # conv weights, PyTorch OIHW layout
    w1_oihw = jax.random.normal(keys[1], (C, C, 3, 3), jnp.float32) * 0.05
    w2_oihw = jax.random.normal(keys[2], (C, C, 3, 3), jnp.float32) * 0.05

    # BN parameters (inference mode: fold into scale/bias)
    def bn_fold(kg, kb, km, kv):
        gamma = 1.0 + 0.1 * jax.random.normal(kg, (C,), jnp.float32)
        beta = 0.1 * jax.random.normal(kb, (C,), jnp.float32)
        mean = 0.1 * jax.random.normal(km, (C,), jnp.float32)
        var = jnp.abs(jax.random.normal(kv, (C,), jnp.float32)) + 0.5
        scale = gamma / jnp.sqrt(var + 1e-5)
        bias = beta - mean * scale
        return scale, bias

    s1, b1 = bn_fold(keys[3], keys[4], keys[5], keys[6])
    s2, b2 = bn_fold(keys[7], keys[8], keys[9], keys[10])

    # SE MLP weights, PyTorch Linear (out, in) layout
    kf = jax.random.split(keys[11], 4)
    w_se1 = jax.random.normal(kf[0], (Cr, C), jnp.float32) * 0.2
    b_se1 = 0.1 * jax.random.normal(kf[1], (Cr,), jnp.float32)
    w_se2 = jax.random.normal(kf[2], (C, Cr), jnp.float32) * 0.2
    b_se2 = 0.1 * jax.random.normal(kf[3], (C,), jnp.float32)

    out = residual_block_fwd(x, w1_oihw, s1, b1, w2_oihw, s2, b2,
                             w_se1, b_se1, w_se2, b_se2)
    out = jax.block_until_ready(out)

    ref = reference_fwd(x, w1_oihw, s1, b1, w2_oihw, s2, b2,
                        w_se1, b_se1, w_se2, b_se2)
    ref = jax.block_until_ready(ref)

    assert out.shape == (N, C, H, W)
    max_diff = float(jnp.max(jnp.abs(out - ref)))
    assert jnp.allclose(out, ref, atol=2e-3, rtol=2e-3), max_diff
    print("KERNEL_OK")
</pallas_src>

<mosaic_0001>
module attributes {stable_mosaic.version = 11 : i64} {
  func.func @_residual_block_kernel(%arg0: i32, %arg1: memref<2x32x342xf32, #tpu.memory_space<vmem>>, %arg2: memref<1x288xf32, #tpu.memory_space<vmem>>, %arg3: memref<9x32x32xf32, #tpu.memory_space<vmem>>, %arg4: memref<32x1xf32, #tpu.memory_space<vmem>>, %arg5: memref<9x32x32xf32, #tpu.memory_space<vmem>>, %arg6: memref<32x1xf32, #tpu.memory_space<vmem>>, %arg7: memref<32x2xf32, #tpu.memory_space<vmem>>, %arg8: memref<1x2xf32, #tpu.memory_space<vmem>>, %arg9: memref<32x2xf32, #tpu.memory_space<vmem>>, %arg10: memref<32x1xf32, #tpu.memory_space<vmem>>, %arg11: memref<2x32x288xf32, #tpu.memory_space<vmem>>, %arg12: memref<32x342xf32, #tpu.memory_space<vmem>>) attributes {dimension_semantics = [#tpu.dimension_semantics<parallel>], iteration_bounds = array<i64: 1>, scalar_prefetch = 0 : i64, scratch_operands = 1 : i64, tpu.core_type = #tpu.core_type<tc>, window_params = [{transform_indices = @transform_0, window_bounds = array<i64: 2, 32, 342>}, {pipeline_mode = #tpu.pipeline_mode<synchronous>, transform_indices = @transform_1, window_bounds = array<i64: 1, 288>}, {pipeline_mode = #tpu.pipeline_mode<synchronous>, transform_indices = @transform_2, window_bounds = array<i64: 9, 32, 32>}, {pipeline_mode = #tpu.pipeline_mode<synchronous>, transform_indices = @transform_3, window_bounds = array<i64: 32, 1>}, {pipeline_mode = #tpu.pipeline_mode<synchronous>, transform_indices = @transform_4, window_bounds = array<i64: 9, 32, 32>}, {pipeline_mode = #tpu.pipeline_mode<synchronous>, transform_indices = @transform_5, window_bounds = array<i64: 32, 1>}, {pipeline_mode = #tpu.pipeline_mode<synchronous>, transform_indices = @transform_6, window_bounds = array<i64: 32, 2>}, {pipeline_mode = #tpu.pipeline_mode<synchronous>, transform_indices = @transform_7, window_bounds = array<i64: 1, 2>}, {pipeline_mode = #tpu.pipeline_mode<synchronous>, transform_indices = @transform_8, window_bounds = array<i64: 32, 2>}, {pipeline_mode = #tpu.pipeline_mode<synchronous>, transform_indices = @transform_9, window_bounds = array<i64: 32, 1>}, {transform_indices = @transform_10, window_bounds = array<i64: 2, 32, 288>}]} {
    %c0 = arith.constant 0 : index
    %c0_0 = arith.constant 0 : index
    %0 = vector.load %arg2[%c0, %c0_0] : memref<1x288xf32, #tpu.memory_space<vmem>>, vector<1x288xf32>
    %cst = arith.constant 0.000000e+00 : f32
    %1 = vector.broadcast %cst : f32 to vector<32x342xf32>
    %c0_1 = arith.constant 0 : index
    %c0_2 = arith.constant 0 : index
    %2 = vector.load %arg12[%c0_1, %c0_2] : memref<32x342xf32, #tpu.memory_space<vmem>>, vector<32x342xf32>
    tpu.vector_store %arg12[%c0_1, %c0_2], %1 {strides = array<i32>} : memref<32x342xf32, #tpu.memory_space<vmem>>, vector<32x342xf32>,
    %c0_3 = arith.constant 0 : index
    %c0_4 = arith.constant 0 : index
    %c0_5 = arith.constant 0 : index
    %3 = vector.load %arg1[%c0_3, %c0_4, %c0_5] : memref<2x32x342xf32, #tpu.memory_space<vmem>>, vector<1x32x342xf32>
    %4 = vector.shape_cast %3 : vector<1x32x342xf32> to vector<32x342xf32>
    %cst_6 = arith.constant 0.000000e+00 : f32
    %5 = vector.broadcast %cst_6 : f32 to vector<32x288xf32>
    %c0_7 = arith.constant 0 : index
    %c0_8 = arith.constant 0 : index
    %c0_9 = arith.constant 0 : index
    %6 = vector.load %arg3[%c0_7, %c0_8, %c0_9] : memref<9x32x32xf32, #tpu.memory_space<vmem>>, vector<1x32x32xf32>
    %7 = vector.shape_cast %6 : vector<1x32x32xf32> to vector<32x32xf32>
    %8 = vector.extract_strided_slice %4 {offsets = [0, 0], sizes = [32, 288], strides = [1, 1]} : vector<32x342xf32> to vector<32x288xf32>
    %cst_10 = arith.constant dense<0.000000e+00> : vector<32x288xf32>
    %9 = tpu.matmul %7, %8, %cst_10 {dimension_numbers = #tpu.dot_dimension_numbers<[1], [0], [0], [1], [0, 0, 1, 1], [], []>} : vector<32x32xf32>, vector<32x288xf32>, vector<32x288xf32> -> vector<32x288xf32>
    %10 = arith.addf %5, %9 : vector<32x288xf32>
    %c1 = arith.constant 1 : index
    %c0_11 = arith.constant 0 : index
    %c0_12 = arith.constant 0 : index
    %11 = vector.load %arg3[%c1, %c0_11, %c0_12] : memref<9x32x32xf32, #tpu.memory_space<vmem>>, vector<1x32x32xf32>
    %12 = vector.shape_cast %11 : vector<1x32x32xf32> to vector<32x32xf32>
    %13 = vector.extract_strided_slice %4 {offsets = [0, 1], sizes = [32, 288], strides = [1, 1]} : vector<32x342xf32> to vector<32x288xf32>
    %cst_13 = arith.constant dense<0.000000e+00> : vector<32x288xf32>
    %14 = tpu.matmul %12, %13, %cst_13 {dimension_numbers = #tpu.dot_dimension_numbers<[1], [0], [0], [1], [0, 0, 1, 1], [], []>} : vector<32x32xf32>, vector<32x288xf32>, vector<32x288xf32> -> vector<32x288xf32>
    %15 = arith.addf %10, %14 : vector<32x288xf32>
    %c2 = arith.constant 2 : index
    %c0_14 = arith.constant 0 : index
    %c0_15 = arith.constant 0 : index
    %16 = vector.load %arg3[%c2, %c0_14, %c0_15] : memref<9x32x32xf32, #tpu.memory_space<vmem>>, vector<1x32x32xf32>
    %17 = vector.shape_cast %16 : vector<1x32x32xf32> to vector<32x32xf32>
    %18 = vector.extract_strided_slice %4 {offsets = [0, 2], sizes = [32, 288], strides = [1, 1]} : vector<32x342xf32> to vector<32x288xf32>
    %cst_16 = arith.constant dense<0.000000e+00> : vector<32x288xf32>
    %19 = tpu.matmul %17, %18, %cst_16 {dimension_numbers = #tpu.dot_dimension_numbers<[1], [0], [0], [1], [0, 0, 1, 1], [], []>} : vector<32x32xf32>, vector<32x288xf32>, vector<32x288xf32> -> vector<32x288xf32>
    %20 = arith.addf %15, %19 : vector<32x288xf32>
    %c3 = arith.constant 3 : index
    %c0_17 = arith.constant 0 : index
    %c0_18 = arith.constant 0 : index
    %21 = vector.load %arg3[%c3, %c0_17, %c0_18] : memref<9x32x32xf32, #tpu.memory_space<vmem>>, vector<1x32x32xf32>
    %22 = vector.shape_cast %21 : vector<1x32x32xf32> to vector<32x32xf32>
    %23 = vector.extract_strided_slice %4 {offsets = [0, 18], sizes = [32, 288], strides = [1, 1]} : vector<32x342xf32> to vector<32x288xf32>
    %cst_19 = arith.constant dense<0.000000e+00> : vector<32x288xf32>
    %24 = tpu.matmul %22, %23, %cst_19 {dimension_numbers = #tpu.dot_dimension_numbers<[1], [0], [0], [1], [0, 0, 1, 1], [], []>} : vector<32x32xf32>, vector<32x288xf32>, vector<32x288xf32> -> vector<32x288xf32>
    %25 = arith.addf %20, %24 : vector<32x288xf32>
    %c4 = arith.constant 4 : index
    %c0_20 = arith.constant 0 : index
    %c0_21 = arith.constant 0 : index
    %26 = vector.load %arg3[%c4, %c0_20, %c0_21] : memref<9x32x32xf32, #tpu.memory_space<vmem>>, vector<1x32x32xf32>
    %27 = vector.shape_cast %26 : vector<1x32x32xf32> to vector<32x32xf32>
    %28 = vector.extract_strided_slice %4 {offsets = [0, 19], sizes = [32, 288], strides = [1, 1]} : vector<32x342xf32> to vector<32x288xf32>
    %cst_22 = arith.constant dense<0.000000e+00> : vector<32x288xf32>
    %29 = tpu.matmul %27, %28, %cst_22 {dimension_numbers = #tpu.dot_dimension_numbers<[1], [0], [0], [1], [0, 0, 1, 1], [], []>} : vector<32x32xf32>, vector<32x288xf32>, vector<32x288xf32> -> vector<32x288xf32>
    %30 = arith.addf %25, %29 : vector<32x288xf32>
    %c5 = arith.constant 5 : index
    %c0_23 = arith.constant 0 : index
    %c0_24 = arith.constant 0 : index
    %31 = vector.load %arg3[%c5, %c0_23, %c0_24] : memref<9x32x32xf32, #tpu.memory_space<vmem>>, vector<1x32x32xf32>
    %32 = vector.shape_cast %31 : vector<1x32x32xf32> to vector<32x32xf32>
    %33 = vector.extract_strided_slice %4 {offsets = [0, 20], sizes = [32, 288], strides = [1, 1]} : vector<32x342xf32> to vector<32x288xf32>
    %cst_25 = arith.constant dense<0.000000e+00> : vector<32x288xf32>
    %34 = tpu.matmul %32, %33, %cst_25 {dimension_numbers = #tpu.dot_dimension_numbers<[1], [0], [0], [1], [0, 0, 1, 1], [], []>} : vector<32x32xf32>, vector<32x288xf32>, vector<32x288xf32> -> vector<32x288xf32>
    %35 = arith.addf %30, %34 : vector<32x288xf32>
    %c6 = arith.constant 6 : index
    %c0_26 = arith.constant 0 : index
    %c0_27 = arith.constant 0 : index
    %36 = vector.load %arg3[%c6, %c0_26, %c0_27] : memref<9x32x32xf32, #tpu.memory_space<vmem>>, vector<1x32x32xf32>
    %37 = vector.shape_cast %36 : vector<1x32x32xf32> to vector<32x32xf32>
    %38 = vector.extract_strided_slice %4 {offsets = [0, 36], sizes = [32, 288], strides = [1, 1]} : vector<32x342xf32> to vector<32x288xf32>
    %cst_28 = arith.constant dense<0.000000e+00> : vector<32x288xf32>
    %39 = tpu.matmul %37, %38, %cst_28 {dimension_numbers = #tpu.dot_dimension_numbers<[1], [0], [0], [1], [0, 0, 1, 1], [], []>} : vector<32x32xf32>, vector<32x288xf32>, vector<32x288xf32> -> vector<32x288xf32>
    %40 = arith.addf %35, %39 : vector<32x288xf32>
    %c7 = arith.constant 7 : index
    %c0_29 = arith.constant 0 : index
    %c0_30 = arith.constant 0 : index
    %41 = vector.load %arg3[%c7, %c0_29, %c0_30] : memref<9x32x32xf32, #tpu.memory_space<vmem>>, vector<1x32x32xf32>
    %42 = vector.shape_cast %41 : vector<1x32x32xf32> to vector<32x32xf32>
    %43 = vector.extract_strided_slice %4 {offsets = [0, 37], sizes = [32, 288], strides = [1, 1]} : vector<32x342xf32> to vector<32x288xf32>
    %cst_31 = arith.constant dense<0.000000e+00> : vector<32x288xf32>
    %44 = tpu.matmul %42, %43, %cst_31 {dimension_numbers = #tpu.dot_dimension_numbers<[1], [0], [0], [1], [0, 0, 1, 1], [], []>} : vector<32x32xf32>, vector<32x288xf32>, vector<32x288xf32> -> vector<32x288xf32>
    %45 = arith.addf %40, %44 : vector<32x288xf32>
    %c8 = arith.constant 8 : index
    %c0_32 = arith.constant 0 : index
    %c0_33 = arith.constant 0 : index
    %46 = vector.load %arg3[%c8, %c0_32, %c0_33] : memref<9x32x32xf32, #tpu.memory_space<vmem>>, vector<1x32x32xf32>
    %47 = vector.shape_cast %46 : vector<1x32x32xf32> to vector<32x32xf32>
    %48 = vector.extract_strided_slice %4 {offsets = [0, 38], sizes = [32, 288], strides = [1, 1]} : vector<32x342xf32> to vector<32x288xf32>
    %cst_34 = arith.constant dense<0.000000e+00> : vector<32x288xf32>
    %49 = tpu.matmul %47, %48, %cst_34 {dimension_numbers = #tpu.dot_dimension_numbers<[1], [0], [0], [1], [0, 0, 1, 1], [], []>} : vector<32x32xf32>, vector<32x288xf32>, vector<32x288xf32> -> vector<32x288xf32>
    %50 = arith.addf %45, %49 : vector<32x288xf32>
    %c0_35 = arith.constant 0 : index
    %c0_36 = arith.constant 0 : index
    %51 = vector.load %arg4[%c0_35, %c0_36] : memref<32x1xf32, #tpu.memory_space<vmem>>, vector<32x1xf32>
    %52 = vector.broadcast %51 : vector<32x1xf32> to vector<32x288xf32>
    %53 = arith.addf %50, %52 : vector<32x288xf32>
    %cst_37 = arith.constant 0.000000e+00 : f32
    %54 = vector.broadcast %cst_37 : f32 to vector<32x288xf32>
    %55 = arith.maximumf %53, %54 : vector<32x288xf32>
    %56 = vector.broadcast %0 : vector<1x288xf32> to vector<32x288xf32>
    %57 = arith.mulf %55, %56 : vector<32x288xf32>
    %c0_38 = arith.constant 0 : index
    %c19 = arith.constant 19 : index
    %58 = vector.load %arg12[%c0_38, %c19] : memref<32x342xf32, #tpu.memory_space<vmem>>, vector<32x288xf32>
    tpu.vector_store %arg12[%c0_38, %c19], %57 {strides = array<i32>} : memref<32x342xf32, #tpu.memory_space<vmem>>, vector<32x288xf32>,
    %c0_39 = arith.constant 0 : index
    %c0_40 = arith.constant 0 : index
    %59 = vector.load %arg12[%c0_39, %c0_40] : memref<32x342xf32, #tpu.memory_space<vmem>>, vector<32x342xf32>
    %cst_41 = arith.constant 0.000000e+00 : f32
    %60 = vector.broadcast %cst_41 : f32 to vector<32x288xf32>
    %c0_42 = arith.constant 0 : index
    %c0_43 = arith.constant 0 : index
    %c0_44 = arith.constant 0 : index
    %61 = vector.load %arg5[%c0_42, %c0_43, %c0_44] : memref<9x32x32xf32, #tpu.memory_space<vmem>>, vector<1x32x32xf32>
    %62 = vector.shape_cast %61 : vector<1x32x32xf32> to vector<32x32xf32>
    %63 = vector.extract_strided_slice %59 {offsets = [0, 0], sizes = [32, 288], strides = [1, 1]} : vector<32x342xf32> to vector<32x288xf32>
    %cst_45 = arith.constant dense<0.000000e+00> : vector<32x288xf32>
    %64 = tpu.matmul %62, %63, %cst_45 {dimension_numbers = #tpu.dot_dimension_numbers<[1], [0], [0], [1], [0, 0, 1, 1], [], []>} : vector<32x32xf32>, vector<32x288xf32>, vector<32x288xf32> -> vector<32x288xf32>
    %65 = arith.addf %60, %64 : vector<32x288xf32>
    %c1_46 = arith.constant 1 : index
    %c0_47 = arith.constant 0 : index
    %c0_48 = arith.constant 0 : index
    %66 = vector.load %arg5[%c1_46, %c0_47, %c0_48] : memref<9x32x32xf32, #tpu.memory_space<vmem>>, vector<1x32x32xf32>
    %67 = vector.shape_cast %66 : vector<1x32x32xf32> to vector<32x32xf32>
    %68 = vector.extract_strided_slice %59 {offsets = [0, 1], sizes = [32, 288], strides = [1, 1]} : vector<32x342xf32> to vector<32x288xf32>
    %cst_49 = arith.constant dense<0.000000e+00> : vector<32x288xf32>
    %69 = tpu.matmul %67, %68, %cst_49 {dimension_numbers = #tpu.dot_dimension_numbers<[1], [0], [0], [1], [0, 0, 1, 1], [], []>} : vector<32x32xf32>, vector<32x288xf32>, vector<32x288xf32> -> vector<32x288xf32>
    %70 = arith.addf %65, %69 : vector<32x288xf32>
    %c2_50 = arith.constant 2 : index
    %c0_51 = arith.constant 0 : index
    %c0_52 = arith.constant 0 : index
    %71 = vector.load %arg5[%c2_50, %c0_51, %c0_52] : memref<9x32x32xf32, #tpu.memory_space<vmem>>, vector<1x32x32xf32>
    %72 = vector.shape_cast %71 : vector<1x32x32xf32> to vector<32x32xf32>
    %73 = vector.extract_strided_slice %59 {offsets = [0, 2], sizes = [32, 288], strides = [1, 1]} : vector<32x342xf32> to vector<32x288xf32>
    %cst_53 = arith.constant dense<0.000000e+00> : vector<32x288xf32>
    %74 = tpu.matmul %72, %73, %cst_53 {dimension_numbers = #tpu.dot_dimension_numbers<[1], [0], [0], [1], [0, 0, 1, 1], [], []>} : vector<32x32xf32>, vector<32x288xf32>, vector<32x288xf32> -> vector<32x288xf32>
    %75 = arith.addf %70, %74 : vector<32x288xf32>
    %c3_54 = arith.constant 3 : index
    %c0_55 = arith.constant 0 : index
    %c0_56 = arith.constant 0 : index
    %76 = vector.load %arg5[%c3_54, %c0_55, %c0_56] : memref<9x32x32xf32, #tpu.memory_space<vmem>>, vector<1x32x32xf32>
    %77 = vector.shape_cast %76 : vector<1x32x32xf32> to vector<32x32xf32>
    %78 = vector.extract_strided_slice %59 {offsets = [0, 18], sizes = [32, 288], strides = [1, 1]} : vector<32x342xf32> to vector<32x288xf32>
    %cst_57 = arith.constant dense<0.000000e+00> : vector<32x288xf32>
    %79 = tpu.matmul %77, %78, %cst_57 {dimension_numbers = #tpu.dot_dimension_numbers<[1], [0], [0], [1], [0, 0, 1, 1], [], []>} : vector<32x32xf32>, vector<32x288xf32>, vector<32x288xf32> -> vector<32x288xf32>
    %80 = arith.addf %75, %79 : vector<32x288xf32>
    %c4_58 = arith.constant 4 : index
    %c0_59 = arith.constant 0 : index
    %c0_60 = arith.constant 0 : index
    %81 = vector.load %arg5[%c4_58, %c0_59, %c0_60] : memref<9x32x32xf32, #tpu.memory_space<vmem>>, vector<1x32x32xf32>
    %82 = vector.shape_cast %81 : vector<1x32x32xf32> to vector<32x32xf32>
    %83 = vector.extract_strided_slice %59 {offsets = [0, 19], sizes = [32, 288], strides = [1, 1]} : vector<32x342xf32> to vector<32x288xf32>
    %cst_61 = arith.constant dense<0.000000e+00> : vector<32x288xf32>
    %84 = tpu.matmul %82, %83, %cst_61 {dimension_numbers = #tpu.dot_dimension_numbers<[1], [0], [0], [1], [0, 0, 1, 1], [], []>} : vector<32x32xf32>, vector<32x288xf32>, vector<32x288xf32> -> vector<32x288xf32>
    %85 = arith.addf %80, %84 : vector<32x288xf32>
    %c5_62 = arith.constant 5 : index
    %c0_63 = arith.constant 0 : index
    %c0_64 = arith.constant 0 : index
    %86 = vector.load %arg5[%c5_62, %c0_63, %c0_64] : memref<9x32x32xf32, #tpu.memory_space<vmem>>, vector<1x32x32xf32>
    %87 = vector.shape_cast %86 : vector<1x32x32xf32> to vector<32x32xf32>
    %88 = vector.extract_strided_slice %59 {offsets = [0, 20], sizes = [32, 288], strides = [1, 1]} : vector<32x342xf32> to vector<32x288xf32>
    %cst_65 = arith.constant dense<0.000000e+00> : vector<32x288xf32>
    %89 = tpu.matmul %87, %88, %cst_65 {dimension_numbers = #tpu.dot_dimension_numbers<[1], [0], [0], [1], [0, 0, 1, 1], [], []>} : vector<32x32xf32>, vector<32x288xf32>, vector<32x288xf32> -> vector<32x288xf32>
    %90 = arith.addf %85, %89 : vector<32x288xf32>
    %c6_66 = arith.constant 6 : index
    %c0_67 = arith.constant 0 : index
    %c0_68 = arith.constant 0 : index
    %91 = vector.load %arg5[%c6_66, %c0_67, %c0_68] : memref<9x32x32xf32, #tpu.memory_space<vmem>>, vector<1x32x32xf32>
    %92 = vector.shape_cast %91 : vector<1x32x32xf32> to vector<32x32xf32>
    %93 = vector.extract_strided_slice %59 {offsets = [0, 36], sizes = [32, 288], strides = [1, 1]} : vector<32x342xf32> to vector<32x288xf32>
    %cst_69 = arith.constant dense<0.000000e+00> : vector<32x288xf32>
    %94 = tpu.matmul %92, %93, %cst_69 {dimension_numbers = #tpu.dot_dimension_numbers<[1], [0], [0], [1], [0, 0, 1, 1], [], []>} : vector<32x32xf32>, vector<32x288xf32>, vector<32x288xf32> -> vector<32x288xf32>
    %95 = arith.addf %90, %94 : vector<32x288xf32>
    %c7_70 = arith.constant 7 : index
    %c0_71 = arith.constant 0 : index
    %c0_72 = arith.constant 0 : index
    %96 = vector.load %arg5[%c7_70, %c0_71, %c0_72] : memref<9x32x32xf32, #tpu.memory_space<vmem>>, vector<1x32x32xf32>
    %97 = vector.shape_cast %96 : vector<1x32x32xf32> to vector<32x32xf32>
    %98 = vector.extract_strided_slice %59 {offsets = [0, 37], sizes = [32, 288], strides = [1, 1]} : vector<32x342xf32> to vector<32x288xf32>
    %cst_73 = arith.constant dense<0.000000e+00> : vector<32x288xf32>
    %99 = tpu.matmul %97, %98, %cst_73 {dimension_numbers = #tpu.dot_dimension_numbers<[1], [0], [0], [1], [0, 0, 1, 1], [], []>} : vector<32x32xf32>, vector<32x288xf32>, vector<32x288xf32> -> vector<32x288xf32>
    %100 = arith.addf %95, %99 : vector<32x288xf32>
    %c8_74 = arith.constant 8 : index
    %c0_75 = arith.constant 0 : index
    %c0_76 = arith.constant 0 : index
    %101 = vector.load %arg5[%c8_74, %c0_75, %c0_76] : memref<9x32x32xf32, #tpu.memory_space<vmem>>, vector<1x32x32xf32>
    %102 = vector.shape_cast %101 : vector<1x32x32xf32> to vector<32x32xf32>
    %103 = vector.extract_strided_slice %59 {offsets = [0, 38], sizes = [32, 288], strides = [1, 1]} : vector<32x342xf32> to vector<32x288xf32>
    %cst_77 = arith.constant dense<0.000000e+00> : vector<32x288xf32>
    %104 = tpu.matmul %102, %103, %cst_77 {dimension_numbers = #tpu.dot_dimension_numbers<[1], [0], [0], [1], [0, 0, 1, 1], [], []>} : vector<32x32xf32>, vector<32x288xf32>, vector<32x288xf32> -> vector<32x288xf32>
    %105 = arith.addf %100, %104 : vector<32x288xf32>
    %c0_78 = arith.constant 0 : index
    %c0_79 = arith.constant 0 : index
    %106 = vector.load %arg6[%c0_78, %c0_79] : memref<32x1xf32, #tpu.memory_space<vmem>>, vector<32x1xf32>
    %107 = vector.broadcast %106 : vector<32x1xf32> to vector<32x288xf32>
    %108 = arith.addf %105, %107 : vector<32x288xf32>
    %109 = vector.broadcast %0 : vector<1x288xf32> to vector<32x288xf32>
    %110 = arith.mulf %108, %109 : vector<32x288xf32>
    %cst_80 = arith.constant dense<0.000000e+00> : vector<32xf32>
    %111 = vector.multi_reduction <add>, %110, %cst_80 [1] : vector<32x288xf32> to vector<32xf32>
    %112 = vector.shape_cast %111 : vector<32xf32> to vector<32x1xf32>
    %cst_81 = arith.constant 3.906250e-03 : f32
    %113 = vector.broadcast %cst_81 : f32 to vector<32x1xf32>
    %114 = arith.mulf %112, %113 : vector<32x1xf32>
    %c0_82 = arith.constant 0 : index
    %c0_83 = arith.constant 0 : index
    %115 = vector.load %arg7[%c0_82, %c0_83] : memref<32x2xf32, #tpu.memory_space<vmem>>, vector<32x2xf32>
    %116 = vector.broadcast %114 : vector<32x1xf32> to vector<32x2xf32>
    %117 = arith.mulf %115, %116 : vector<32x2xf32>
    %cst_84 = arith.constant dense<0.000000e+00> : vector<2xf32>
    %118 = vector.multi_reduction <add>, %117, %cst_84 [0] : vector<32x2xf32> to vector<2xf32>
    %119 = vector.shape_cast %118 : vector<2xf32> to vector<1x2xf32>
    %c0_85 = arith.constant 0 : index
    %c0_86 = arith.constant 0 : index
    %120 = vector.load %arg8[%c0_85, %c0_86] : memref<1x2xf32, #tpu.memory_space<vmem>>, vector<1x2xf32>
    %121 = arith.addf %119, %120 : vector<1x2xf32>
    %cst_87 = arith.constant 0.000000e+00 : f32
    %122 = vector.broadcast %cst_87 : f32 to vector<1x2xf32>
    %123 = arith.maximumf %121, %122 : vector<1x2xf32>
    %c0_88 = arith.constant 0 : index
    %c0_89 = arith.constant 0 : index
    %124 = vector.load %arg9[%c0_88, %c0_89] : memref<32x2xf32, #tpu.memory_space<vmem>>, vector<32x2xf32>
    %125 = vector.broadcast %123 : vector<1x2xf32> to vector<32x2xf32>
    %126 = arith.mulf %124, %125 : vector<32x2xf32>
    %cst_90 = arith.constant dense<0.000000e+00> : vector<32xf32>
    %127 = vector.multi_reduction <add>, %126, %cst_90 [1] : vector<32x2xf32> to vector<32xf32>
    %128 = vector.shape_cast %127 : vector<32xf32> to vector<32x1xf32>
    %c0_91 = arith.constant 0 : index
    %c0_92 = arith.constant 0 : index
    %129 = vector.load %arg10[%c0_91, %c0_92] : memref<32x1xf32, #tpu.memory_space<vmem>>, vector<32x1xf32>
    %130 = arith.addf %128, %129 : vector<32x1xf32>
    %131 = arith.negf %130 : vector<32x1xf32>
    %132 = math.exp %131 : vector<32x1xf32>
    %cst_93 = arith.constant 1.000000e+00 : f32
    %133 = vector.broadcast %cst_93 : f32 to vector<32x1xf32>
    %134 = arith.addf %133, %132 : vector<32x1xf32>
    %135 = arith.divf %133, %134 : vector<32x1xf32>
    %136 = vector.extract_strided_slice %4 {offsets = [0, 19], sizes = [32, 288], strides = [1, 1]} : vector<32x342xf32> to vector<32x288xf32>
    %137 = vector.broadcast %135 : vector<32x1xf32> to vector<32x288xf32>
    %138 = arith.mulf %108, %137 : vector<32x288xf32>
    %139 = arith.addf %138, %136 : vector<32x288xf32>
    %cst_94 = arith.constant 0.000000e+00 : f32
    %140 = vector.broadcast %cst_94 : f32 to vector<32x288xf32>
    %141 = arith.maximumf %139, %140 : vector<32x288xf32>
    %c0_95 = arith.constant 0 : index
    %c0_96 = arith.constant 0 : index
    %c0_97 = arith.constant 0 : index
    %142 = vector.load %arg11[%c0_95, %c0_96, %c0_97] : memref<2x32x288xf32, #tpu.memory_space<vmem>>, vector<1x32x288xf32>
    %143 = vector.shape_cast %142 : vector<1x32x288xf32> to vector<32x288xf32>
    %144 = vector.shape_cast %141 : vector<32x288xf32> to vector<1x32x288xf32>
    tpu.vector_store %arg11[%c0_95, %c0_96, %c0_97], %144 {strides = array<i32>} : memref<2x32x288xf32, #tpu.memory_space<vmem>>, vector<1x32x288xf32>,
    %c1_98 = arith.constant 1 : index
    %c0_99 = arith.constant 0 : index
    %c0_100 = arith.constant 0 : index
    %145 = vector.load %arg1[%c1_98, %c0_99, %c0_100] : memref<2x32x342xf32, #tpu.memory_space<vmem>>, vector<1x32x342xf32>
    %146 = vector.shape_cast %145 : vector<1x32x342xf32> to vector<32x342xf32>
    %cst_101 = arith.constant 0.000000e+00 : f32
    %147 = vector.broadcast %cst_101 : f32 to vector<32x288xf32>
    %c0_102 = arith.constant 0 : index
    %c0_103 = arith.constant 0 : index
    %c0_104 = arith.constant 0 : index
    %148 = vector.load %arg3[%c0_102, %c0_103, %c0_104] : memref<9x32x32xf32, #tpu.memory_space<vmem>>, vector<1x32x32xf32>
    %149 = vector.shape_cast %148 : vector<1x32x32xf32> to vector<32x32xf32>
    %150 = vector.extract_strided_slice %146 {offsets = [0, 0], sizes = [32, 288], strides = [1, 1]} : vector<32x342xf32> to vector<32x288xf32>
    %cst_105 = arith.constant dense<0.000000e+00> : vector<32x288xf32>
    %151 = tpu.matmul %149, %150, %cst_105 {dimension_numbers = #tpu.dot_dimension_numbers<[1], [0], [0], [1], [0, 0, 1, 1], [], []>} : vector<32x32xf32>, vector<32x288xf32>, vector<32x288xf32> -> vector<32x288xf32>
    %152 = arith.addf %147, %151 : vector<32x288xf32>
    %c1_106 = arith.constant 1 : index
    %c0_107 = arith.constant 0 : index
    %c0_108 = arith.constant 0 : index
    %153 = vector.load %arg3[%c1_106, %c0_107, %c0_108] : memref<9x32x32xf32, #tpu.memory_space<vmem>>, vector<1x32x32xf32>
    %154 = vector.shape_cast %153 : vector<1x32x32xf32> to vector<32x32xf32>
    %155 = vector.extract_strided_slice %146 {offsets = [0, 1], sizes = [32, 288], strides = [1, 1]} : vector<32x342xf32> to vector<32x288xf32>
    %cst_109 = arith.constant dense<0.000000e+00> : vector<32x288xf32>
    %156 = tpu.matmul %154, %155, %cst_109 {dimension_numbers = #tpu.dot_dimension_numbers<[1], [0], [0], [1], [0, 0, 1, 1], [], []>} : vector<32x32xf32>, vector<32x288xf32>, vector<32x288xf32> -> vector<32x288xf32>
    %157 = arith.addf %152, %156 : vector<32x288xf32>
    %c2_110 = arith.constant 2 : index
    %c0_111 = arith.constant 0 : index
    %c0_112 = arith.constant 0 : index
    %158 = vector.load %arg3[%c2_110, %c0_111, %c0_112] : memref<9x32x32xf32, #tpu.memory_space<vmem>>, vector<1x32x32xf32>
    %159 = vector.shape_cast %158 : vector<1x32x32xf32> to vector<32x32xf32>
    %160 = vector.extract_strided_slice %146 {offsets = [0, 2], sizes = [32, 288], strides = [1, 1]} : vector<32x342xf32> to vector<32x288xf32>
    %cst_113 = arith.constant dense<0.000000e+00> : vector<32x288xf32>
    %161 = tpu.matmul %159, %160, %cst_113 {dimension_numbers = #tpu.dot_dimension_numbers<[1], [0], [0], [1], [0, 0, 1, 1], [], []>} : vector<32x32xf32>, vector<32x288xf32>, vector<32x288xf32> -> vector<32x288xf32>
    %162 = arith.addf %157, %161 : vector<32x288xf32>
    %c3_114 = arith.constant 3 : index
    %c0_115 = arith.constant 0 : index
    %c0_116 = arith.constant 0 : index
    %163 = vector.load %arg3[%c3_114, %c0_115, %c0_116] : memref<9x32x32xf32, #tpu.memory_space<vmem>>, vector<1x32x32xf32>
    %164 = vector.shape_cast %163 : vector<1x32x32xf32> to vector<32x32xf32>
    %165 = vector.extract_strided_slice %146 {offsets = [0, 18], sizes = [32, 288], strides = [1, 1]} : vector<32x342xf32> to vector<32x288xf32>
    %cst_117 = arith.constant dense<0.000000e+00> : vector<32x288xf32>
    %166 = tpu.matmul %164, %165, %cst_117 {dimension_numbers = #tpu.dot_dimension_numbers<[1], [0], [0], [1], [0, 0, 1, 1], [], []>} : vector<32x32xf32>, vector<32x288xf32>, vector<32x288xf32> -> vector<32x288xf32>
    %167 = arith.addf %162, %166 : vector<32x288xf32>
    %c4_118 = arith.constant 4 : index
    %c0_119 = arith.constant 0 : index
    %c0_120 = arith.constant 0 : index
    %168 = vector.load %arg3[%c4_118, %c0_119, %c0_120] : memref<9x32x32xf32, #tpu.memory_space<vmem>>, vector<1x32x32xf32>
    %169 = vector.shape_cast %168 : vector<1x32x32xf32> to vector<32x32xf32>
    %170 = vector.extract_strided_slice %146 {offsets = [0, 19], sizes = [32, 288], strides = [1, 1]} : vector<32x342xf32> to vector<32x288xf32>
    %cst_121 = arith.constant dense<0.000000e+00> : vector<32x288xf32>
    %171 = tpu.matmul %169, %170, %cst_121 {dimension_numbers = #tpu.dot_dimension_numbers<[1], [0], [0], [1], [0, 0, 1, 1], [], []>} : vector<32x32xf32>, vector<32x288xf32>, vector<32x288xf32> -> vector<32x288xf32>
    %172 = arith.addf %167, %171 : vector<32x288xf32>
    %c5_122 = arith.constant 5 : index
    %c0_123 = arith.constant 0 : index
    %c0_124 = arith.constant 0 : index
    %173 = vector.load %arg3[%c5_122, %c0_123, %c0_124] : memref<9x32x32xf32, #tpu.memory_space<vmem>>, vector<1x32x32xf32>
    %174 = vector.shape_cast %173 : vector<1x32x32xf32> to vector<32x32xf32>
    %175 = vector.extract_strided_slice %146 {offsets = [0, 20], sizes = [32, 288], strides = [1, 1]} : vector<32x342xf32> to vector<32x288xf32>
    %cst_125 = arith.constant dense<0.000000e+00> : vector<32x288xf32>
    %176 = tpu.matmul %174, %175, %cst_125 {dimension_numbers = #tpu.dot_dimension_numbers<[1], [0], [0], [1], [0, 0, 1, 1], [], []>} : vector<32x32xf32>, vector<32x288xf32>, vector<32x288xf32> -> vector<32x288xf32>
    %177 = arith.addf %172, %176 : vector<32x288xf32>
    %c6_126 = arith.constant 6 : index
    %c0_127 = arith.constant 0 : index
    %c0_128 = arith.constant 0 : index
    %178 = vector.load %arg3[%c6_126, %c0_127, %c0_128] : memref<9x32x32xf32, #tpu.memory_space<vmem>>, vector<1x32x32xf32>
    %179 = vector.shape_cast %178 : vector<1x32x32xf32> to vector<32x32xf32>
    %180 = vector.extract_strided_slice %146 {offsets = [0, 36], sizes = [32, 288], strides = [1, 1]} : vector<32x342xf32> to vector<32x288xf32>
    %cst_129 = arith.constant dense<0.000000e+00> : vector<32x288xf32>
    %181 = tpu.matmul %179, %180, %cst_129 {dimension_numbers = #tpu.dot_dimension_numbers<[1], [0], [0], [1], [0, 0, 1, 1], [], []>} : vector<32x32xf32>, vector<32x288xf32>, vector<32x288xf32> -> vector<32x288xf32>
    %182 = arith.addf %177, %181 : vector<32x288xf32>
    %c7_130 = arith.constant 7 : index
    %c0_131 = arith.constant 0 : index
    %c0_132 = arith.constant 0 : index
    %183 = vector.load %arg3[%c7_130, %c0_131, %c0_132] : memref<9x32x32xf32, #tpu.memory_space<vmem>>, vector<1x32x32xf32>
    %184 = vector.shape_cast %183 : vector<1x32x32xf32> to vector<32x32xf32>
    %185 = vector.extract_strided_slice %146 {offsets = [0, 37], sizes = [32, 288], strides = [1, 1]} : vector<32x342xf32> to vector<32x288xf32>
    %cst_133 = arith.constant dense<0.000000e+00> : vector<32x288xf32>
    %186 = tpu.matmul %184, %185, %cst_133 {dimension_numbers = #tpu.dot_dimension_numbers<[1], [0], [0], [1], [0, 0, 1, 1], [], []>} : vector<32x32xf32>, vector<32x288xf32>, vector<32x288xf32> -> vector<32x288xf32>
    %187 = arith.addf %182, %186 : vector<32x288xf32>
    %c8_134 = arith.constant 8 : index
    %c0_135 = arith.constant 0 : index
    %c0_136 = arith.constant 0 : index
    %188 = vector.load %arg3[%c8_134, %c0_135, %c0_136] : memref<9x32x32xf32, #tpu.memory_space<vmem>>, vector<1x32x32xf32>
    %189 = vector.shape_cast %188 : vector<1x32x32xf32> to vector<32x32xf32>
    %190 = vector.extract_strided_slice %146 {offsets = [0, 38], sizes = [32, 288], strides = [1, 1]} : vector<32x342xf32> to vector<32x288xf32>
    %cst_137 = arith.constant dense<0.000000e+00> : vector<32x288xf32>
    %191 = tpu.matmul %189, %190, %cst_137 {dimension_numbers = #tpu.dot_dimension_numbers<[1], [0], [0], [1], [0, 0, 1, 1], [], []>} : vector<32x32xf32>, vector<32x288xf32>, vector<32x288xf32> -> vector<32x288xf32>
    %192 = arith.addf %187, %191 : vector<32x288xf32>
    %c0_138 = arith.constant 0 : index
    %c0_139 = arith.constant 0 : index
    %193 = vector.load %arg4[%c0_138, %c0_139] : memref<32x1xf32, #tpu.memory_space<vmem>>, vector<32x1xf32>
    %194 = vector.broadcast %193 : vector<32x1xf32> to vector<32x288xf32>
    %195 = arith.addf %192, %194 : vector<32x288xf32>
    %cst_140 = arith.constant 0.000000e+00 : f32
    %196 = vector.broadcast %cst_140 : f32 to vector<32x288xf32>
    %197 = arith.maximumf %195, %196 : vector<32x288xf32>
    %198 = vector.broadcast %0 : vector<1x288xf32> to vector<32x288xf32>
    %199 = arith.mulf %197, %198 : vector<32x288xf32>
    %c0_141 = arith.constant 0 : index
    %c19_142 = arith.constant 19 : index
    %200 = vector.load %arg12[%c0_141, %c19_142] : memref<32x342xf32, #tpu.memory_space<vmem>>, vector<32x288xf32>
    tpu.vector_store %arg12[%c0_141, %c19_142], %199 {strides = array<i32>} : memref<32x342xf32, #tpu.memory_space<vmem>>, vector<32x288xf32>,
    %c0_143 = arith.constant 0 : index
    %c0_144 = arith.constant 0 : index
    %201 = vector.load %arg12[%c0_143, %c0_144] : memref<32x342xf32, #tpu.memory_space<vmem>>, vector<32x342xf32>
    %cst_145 = arith.constant 0.000000e+00 : f32
    %202 = vector.broadcast %cst_145 : f32 to vector<32x288xf32>
    %c0_146 = arith.constant 0 : index
    %c0_147 = arith.constant 0 : index
    %c0_148 = arith.constant 0 : index
    %203 = vector.load %arg5[%c0_146, %c0_147, %c0_148] : memref<9x32x32xf32, #tpu.memory_space<vmem>>, vector<1x32x32xf32>
    %204 = vector.shape_cast %203 : vector<1x32x32xf32> to vector<32x32xf32>
    %205 = vector.extract_strided_slice %201 {offsets = [0, 0], sizes = [32, 288], strides = [1, 1]} : vector<32x342xf32> to vector<32x288xf32>
    %cst_149 = arith.constant dense<0.000000e+00> : vector<32x288xf32>
    %206 = tpu.matmul %204, %205, %cst_149 {dimension_numbers = #tpu.dot_dimension_numbers<[1], [0], [0], [1], [0, 0, 1, 1], [], []>} : vector<32x32xf32>, vector<32x288xf32>, vector<32x288xf32> -> vector<32x288xf32>
    %207 = arith.addf %202, %206 : vector<32x288xf32>
    %c1_150 = arith.constant 1 : index
    %c0_151 = arith.constant 0 : index
    %c0_152 = arith.constant 0 : index
    %208 = vector.load %arg5[%c1_150, %c0_151, %c0_152] : memref<9x32x32xf32, #tpu.memory_space<vmem>>, vector<1x32x32xf32>
    %209 = vector.shape_cast %208 : vector<1x32x32xf32> to vector<32x32xf32>
    %210 = vector.extract_strided_slice %201 {offsets = [0, 1], sizes = [32, 288], strides = [1, 1]} : vector<32x342xf32> to vector<32x288xf32>
    %cst_153 = arith.constant dense<0.000000e+00> : vector<32x288xf32>
    %211 = tpu.matmul %209, %210, %cst_153 {dimension_numbers = #tpu.dot_dimension_numbers<[1], [0], [0], [1], [0, 0, 1, 1], [], []>} : vector<32x32xf32>, vector<32x288xf32>, vector<32x288xf32> -> vector<32x288xf32>
    %212 = arith.addf %207, %211 : vector<32x288xf32>
    %c2_154 = arith.constant 2 : index
    %c0_155 = arith.constant 0 : index
    %c0_156 = arith.constant 0 : index
    %213 = vector.load %arg5[%c2_154, %c0_155, %c0_156] : memref<9x32x32xf32, #tpu.memory_space<vmem>>, vector<1x32x32xf32>
    %214 = vector.shape_cast %213 : vector<1x32x32xf32> to vector<32x32xf32>
    %215 = vector.extract_strided_slice %201 {offsets = [0, 2], sizes = [32, 288], strides = [1, 1]} : vector<32x342xf32> to vector<32x288xf32>
    %cst_157 = arith.constant dense<0.000000e+00> : vector<32x288xf32>
    %216 = tpu.matmul %214, %215, %cst_157 {dimension_numbers = #tpu.dot_dimension_numbers<[1], [0], [0], [1], [0, 0, 1, 1], [], []>} : vector<32x32xf32>, vector<32x288xf32>, vector<32x288xf32> -> vector<32x288xf32>
    %217 = arith.addf %212, %216 : vector<32x288xf32>
    %c3_158 = arith.constant 3 : index
    %c0_159 = arith.constant 0 : index
    %c0_160 = arith.constant 0 : index
    %218 = vector.load %arg5[%c3_158, %c0_159, %c0_160] : memref<9x32x32xf32, #tpu.memory_space<vmem>>, vector<1x32x32xf32>
    %219 = vector.shape_cast %218 : vector<1x32x32xf32> to vector<32x32xf32>
    %220 = vector.extract_strided_slice %201 {offsets = [0, 18], sizes = [32, 288], strides = [1, 1]} : vector<32x342xf32> to vector<32x288xf32>
    %cst_161 = arith.constant dense<0.000000e+00> : vector<32x288xf32>
    %221 = tpu.matmul %219, %220, %cst_161 {dimension_numbers = #tpu.dot_dimension_numbers<[1], [0], [0], [1], [0, 0, 1, 1], [], []>} : vector<32x32xf32>, vector<32x288xf32>, vector<32x288xf32> -> vector<32x288xf32>
    %222 = arith.addf %217, %221 : vector<32x288xf32>
    %c4_162 = arith.constant 4 : index
    %c0_163 = arith.constant 0 : index
    %c0_164 = arith.constant 0 : index
    %223 = vector.load %arg5[%c4_162, %c0_163, %c0_164] : memref<9x32x32xf32, #tpu.memory_space<vmem>>, vector<1x32x32xf32>
    %224 = vector.shape_cast %223 : vector<1x32x32xf32> to vector<32x32xf32>
    %225 = vector.extract_strided_slice %201 {offsets = [0, 19], sizes = [32, 288], strides = [1, 1]} : vector<32x342xf32> to vector<32x288xf32>
    %cst_165 = arith.constant dense<0.000000e+00> : vector<32x288xf32>
    %226 = tpu.matmul %224, %225, %cst_165 {dimension_numbers = #tpu.dot_dimension_numbers<[1], [0], [0], [1], [0, 0, 1, 1], [], []>} : vector<32x32xf32>, vector<32x288xf32>, vector<32x288xf32> -> vector<32x288xf32>
    %227 = arith.addf %222, %226 : vector<32x288xf32>
    %c5_166 = arith.constant 5 : index
    %c0_167 = arith.constant 0 : index
    %c0_168 = arith.constant 0 : index
    %228 = vector.load %arg5[%c5_166, %c0_167, %c0_168] : memref<9x32x32xf32, #tpu.memory_space<vmem>>, vector<1x32x32xf32>
    %229 = vector.shape_cast %228 : vector<1x32x32xf32> to vector<32x32xf32>
    %230 = vector.extract_strided_slice %201 {offsets = [0, 20], sizes = [32, 288], strides = [1, 1]} : vector<32x342xf32> to vector<32x288xf32>
    %cst_169 = arith.constant dense<0.000000e+00> : vector<32x288xf32>
    %231 = tpu.matmul %229, %230, %cst_169 {dimension_numbers = #tpu.dot_dimension_numbers<[1], [0], [0], [1], [0, 0, 1, 1], [], []>} : vector<32x32xf32>, vector<32x288xf32>, vector<32x288xf32> -> vector<32x288xf32>
    %232 = arith.addf %227, %231 : vector<32x288xf32>
    %c6_170 = arith.constant 6 : index
    %c0_171 = arith.constant 0 : index
    %c0_172 = arith.constant 0 : index
    %233 = vector.load %arg5[%c6_170, %c0_171, %c0_172] : memref<9x32x32xf32, #tpu.memory_space<vmem>>, vector<1x32x32xf32>
    %234 = vector.shape_cast %233 : vector<1x32x32xf32> to vector<32x32xf32>
    %235 = vector.extract_strided_slice %201 {offsets = [0, 36], sizes = [32, 288], strides = [1, 1]} : vector<32x342xf32> to vector<32x288xf32>
    %cst_173 = arith.constant dense<0.000000e+00> : vector<32x288xf32>
    %236 = tpu.matmul %234, %235, %cst_173 {dimension_numbers = #tpu.dot_dimension_numbers<[1], [0], [0], [1], [0, 0, 1, 1], [], []>} : vector<32x32xf32>, vector<32x288xf32>, vector<32x288xf32> -> vector<32x288xf32>
    %237 = arith.addf %232, %236 : vector<32x288xf32>
    %c7_174 = arith.constant 7 : index
    %c0_175 = arith.constant 0 : index
    %c0_176 = arith.constant 0 : index
    %238 = vector.load %arg5[%c7_174, %c0_175, %c0_176] : memref<9x32x32xf32, #tpu.memory_space<vmem>>, vector<1x32x32xf32>
    %239 = vector.shape_cast %238 : vector<1x32x32xf32> to vector<32x32xf32>
    %240 = vector.extract_strided_slice %201 {offsets = [0, 37], sizes = [32, 288], strides = [1, 1]} : vector<32x342xf32> to vector<32x288xf32>
    %cst_177 = arith.constant dense<0.000000e+00> : vector<32x288xf32>
    %241 = tpu.matmul %239, %240, %cst_177 {dimension_numbers = #tpu.dot_dimension_numbers<[1], [0], [0], [1], [0, 0, 1, 1], [], []>} : vector<32x32xf32>, vector<32x288xf32>, vector<32x288xf32> -> vector<32x288xf32>
    %242 = arith.addf %237, %241 : vector<32x288xf32>
    %c8_178 = arith.constant 8 : index
    %c0_179 = arith.constant 0 : index
    %c0_180 = arith.constant 0 : index
    %243 = vector.load %arg5[%c8_178, %c0_179, %c0_180] : memref<9x32x32xf32, #tpu.memory_space<vmem>>, vector<1x32x32xf32>
    %244 = vector.shape_cast %243 : vector<1x32x32xf32> to vector<32x32xf32>
    %245 = vector.extract_strided_slice %201 {offsets = [0, 38], sizes = [32, 288], strides = [1, 1]} : vector<32x342xf32> to vector<32x288xf32>
    %cst_181 = arith.constant dense<0.000000e+00> : vector<32x288xf32>
    %246 = tpu.matmul %244, %245, %cst_181 {dimension_numbers = #tpu.dot_dimension_numbers<[1], [0], [0], [1], [0, 0, 1, 1], [], []>} : vector<32x32xf32>, vector<32x288xf32>, vector<32x288xf32> -> vector<32x288xf32>
    %247 = arith.addf %242, %246 : vector<32x288xf32>
    %c0_182 = arith.constant 0 : index
    %c0_183 = arith.constant 0 : index
    %248 = vector.load %arg6[%c0_182, %c0_183] : memref<32x1xf32, #tpu.memory_space<vmem>>, vector<32x1xf32>
    %249 = vector.broadcast %248 : vector<32x1xf32> to vector<32x288xf32>
    %250 = arith.addf %247, %249 : vector<32x288xf32>
    %251 = vector.broadcast %0 : vector<1x288xf32> to vector<32x288xf32>
    %252 = arith.mulf %250, %251 : vector<32x288xf32>
    %cst_184 = arith.constant dense<0.000000e+00> : vector<32xf32>
    %253 = vector.multi_reduction <add>, %252, %cst_184 [1] : vector<32x288xf32> to vector<32xf32>
    %254 = vector.shape_cast %253 : vector<32xf32> to vector<32x1xf32>
    %cst_185 = arith.constant 3.906250e-03 : f32
    %255 = vector.broadcast %cst_185 : f32 to vector<32x1xf32>
    %256 = arith.mulf %254, %255 : vector<32x1xf32>
    %c0_186 = arith.constant 0 : index
    %c0_187 = arith.constant 0 : index
    %257 = vector.load %arg7[%c0_186, %c0_187] : memref<32x2xf32, #tpu.memory_space<vmem>>, vector<32x2xf32>
    %258 = vector.broadcast %256 : vector<32x1xf32> to vector<32x2xf32>
    %259 = arith.mulf %257, %258 : vector<32x2xf32>
    %cst_188 = arith.constant dense<0.000000e+00> : vector<2xf32>
    %260 = vector.multi_reduction <add>, %259, %cst_188 [0] : vector<32x2xf32> to vector<2xf32>
    %261 = vector.shape_cast %260 : vector<2xf32> to vector<1x2xf32>
    %c0_189 = arith.constant 0 : index
    %c0_190 = arith.constant 0 : index
    %262 = vector.load %arg8[%c0_189, %c0_190] : memref<1x2xf32, #tpu.memory_space<vmem>>, vector<1x2xf32>
    %263 = arith.addf %261, %262 : vector<1x2xf32>
    %cst_191 = arith.constant 0.000000e+00 : f32
    %264 = vector.broadcast %cst_191 : f32 to vector<1x2xf32>
    %265 = arith.maximumf %263, %264 : vector<1x2xf32>
    %c0_192 = arith.constant 0 : index
    %c0_193 = arith.constant 0 : index
    %266 = vector.load %arg9[%c0_192, %c0_193] : memref<32x2xf32, #tpu.memory_space<vmem>>, vector<32x2xf32>
    %267 = vector.broadcast %265 : vector<1x2xf32> to vector<32x2xf32>
    %268 = arith.mulf %266, %267 : vector<32x2xf32>
    %cst_194 = arith.constant dense<0.000000e+00> : vector<32xf32>
    %269 = vector.multi_reduction <add>, %268, %cst_194 [1] : vector<32x2xf32> to vector<32xf32>
    %270 = vector.shape_cast %269 : vector<32xf32> to vector<32x1xf32>
    %c0_195 = arith.constant 0 : index
    %c0_196 = arith.constant 0 : index
    %271 = vector.load %arg10[%c0_195, %c0_196] : memref<32x1xf32, #tpu.memory_space<vmem>>, vector<32x1xf32>
    %272 = arith.addf %270, %271 : vector<32x1xf32>
    %273 = arith.negf %272 : vector<32x1xf32>
    %274 = math.exp %273 : vector<32x1xf32>
    %cst_197 = arith.constant 1.000000e+00 : f32
    %275 = vector.broadcast %cst_197 : f32 to vector<32x1xf32>
    %276 = arith.addf %275, %274 : vector<32x1xf32>
    %277 = arith.divf %275, %276 : vector<32x1xf32>
    %278 = vector.extract_strided_slice %146 {offsets = [0, 19], sizes = [32, 288], strides = [1, 1]} : vector<32x342xf32> to vector<32x288xf32>
    %279 = vector.broadcast %277 : vector<32x1xf32> to vector<32x288xf32>
    %280 = arith.mulf %250, %279 : vector<32x288xf32>
    %281 = arith.addf %280, %278 : vector<32x288xf32>
    %cst_198 = arith.constant 0.000000e+00 : f32
    %282 = vector.broadcast %cst_198 : f32 to vector<32x288xf32>
    %283 = arith.maximumf %281, %282 : vector<32x288xf32>
    %c1_199 = arith.constant 1 : index
    %c0_200 = arith.constant 0 : index
    %c0_201 = arith.constant 0 : index
    %284 = vector.load %arg11[%c1_199, %c0_200, %c0_201] : memref<2x32x288xf32, #tpu.memory_space<vmem>>, vector<1x32x288xf32>
    %285 = vector.shape_cast %284 : vector<1x32x288xf32> to vector<32x288xf32>
    %286 = vector.shape_cast %283 : vector<32x288xf32> to vector<1x32x288xf32>
    tpu.vector_store %arg11[%c1_199, %c0_200, %c0_201], %286 {strides = array<i32>} : memref<2x32x288xf32, #tpu.memory_space<vmem>>, vector<1x32x288xf32>,
    return
  }
  func.func @transform_0(%arg0: i32) -> (i32, i32, i32) {
    %c0_i32 = arith.constant 0 : i32
    %c0_i32_0 = arith.constant 0 : i32
    %c0_i32_1 = arith.constant 0 : i32
    return %arg0, %c0_i32, %c0_i32_0 : i32, i32, i32
  }
  func.func @transform_1(%arg0: i32) -> (i32, i32) {
    %c0_i32 = arith.constant 0 : i32
    %c0_i32_0 = arith.constant 0 : i32
    %c0_i32_1 = arith.constant 0 : i32
    return %c0_i32, %c0_i32_0 : i32, i32
  }
  func.func @transform_2(%arg0: i32) -> (i32, i32, i32) {
    %c0_i32 = arith.constant 0 : i32
    %c0_i32_0 = arith.constant 0 : i32
    %c0_i32_1 = arith.constant 0 : i32
    %c0_i32_2 = arith.constant 0 : i32
    return %c0_i32, %c0_i32_0, %c0_i32_1 : i32, i32, i32
  }
  func.func @transform_3(%arg0: i32) -> (i32, i32) {
    %c0_i32 = arith.constant 0 : i32
    %c0_i32_0 = arith.constant 0 : i32
    %c0_i32_1 = arith.constant 0 : i32
    return %c0_i32, %c0_i32_0 : i32, i32
  }
  func.func @transform_4(%arg0: i32) -> (i32, i32, i32) {
    %c0_i32 = arith.constant 0 : i32
    %c0_i32_0 = arith.constant 0 : i32
    %c0_i32_1 = arith.constant 0 : i32
    %c0_i32_2 = arith.constant 0 : i32
    return %c0_i32, %c0_i32_0, %c0_i32_1 : i32, i32, i32
  }
  func.func @transform_5(%arg0: i32) -> (i32, i32) {
    %c0_i32 = arith.constant 0 : i32
    %c0_i32_0 = arith.constant 0 : i32
    %c0_i32_1 = arith.constant 0 : i32
    return %c0_i32, %c0_i32_0 : i32, i32
  }
  func.func @transform_6(%arg0: i32) -> (i32, i32) {
    %c0_i32 = arith.constant 0 : i32
    %c0_i32_0 = arith.constant 0 : i32
    %c0_i32_1 = arith.constant 0 : i32
    return %c0_i32, %c0_i32_0 : i32, i32
  }
  func.func @transform_7(%arg0: i32) -> (i32, i32) {
    %c0_i32 = arith.constant 0 : i32
    %c0_i32_0 = arith.constant 0 : i32
    %c0_i32_1 = arith.constant 0 : i32
    return %c0_i32, %c0_i32_0 : i32, i32
  }
  func.func @transform_8(%arg0: i32) -> (i32, i32) {
    %c0_i32 = arith.constant 0 : i32
    %c0_i32_0 = arith.constant 0 : i32
    %c0_i32_1 = arith.constant 0 : i32
    return %c0_i32, %c0_i32_0 : i32, i32
  }
  func.func @transform_9(%arg0: i32) -> (i32, i32) {
    %c0_i32 = arith.constant 0 : i32
    %c0_i32_0 = arith.constant 0 : i32
    %c0_i32_1 = arith.constant 0 : i32
    return %c0_i32, %c0_i32_0 : i32, i32
  }
  func.func @transform_10(%arg0: i32) -> (i32, i32, i32) {
    %c0_i32 = arith.constant 0 : i32
    %c0_i32_0 = arith.constant 0 : i32
    %c0_i32_1 = arith.constant 0 : i32
    return %arg0, %c0_i32, %c0_i32_0 : i32, i32, i32
  }
}

</mosaic_0001>

<bundles_post_ra>
// kernel: tile.6
= control target key start
LH: loop header
LB: loop body
LE: loop exit
PB: predicated region body
PF: predicated region fallthrough
CT: control target
= control target key end

     0   :  { %s28_s0 = inlined_call_operand.vmem [shape: f32[18], index: 0, kind: input, shape index: {}]   ;;  %s29_s1 = inlined_call_operand.vmem [shape: f32[16,18], index: 1, kind: output, shape index: {}]  }
   0x1   :  { %v4_v0 = vld [vmem:[%s28_s0] ss:$0 sm:$0xff] }
   0x2   :  { %5 = vst [vmem:[%s29_s1] sm:$0xff] %v4_v0 }
   0x3   :  { %8 = vst [vmem:[%s29_s1 + $0x8] sm:$0xff] %v4_v0 }

// kernel: tile.7
= control target key start
LH: loop header
LB: loop body
LE: loop exit
PB: predicated region body
PF: predicated region fallthrough
CT: control target
= control target key end

     0   :  { %vm9_vm0 = vcmask 15360   ;;  %s169_s10 = smov 108   ;;  %s170_s13 = smov 126   ;;  %vm22_vm1 = vcmask 31744   ;;  %vm3_vm2 = vcmask 146432   ;;  %vm13_vm3 = vcmask 130048   ;;  %s257_s0 = inlined_call_operand.vmem [shape: f32[16,18], index: 0, kind: input, shape index: {}]   ;;  %s258_s1 = inlined_call_operand.vmem [shape: f32[1,288], index: 1, kind: output, shape index: {}]  }
   0x1   :  { %v139_v0 = vld [vmem:[%s257_s0 + $0x6] sm:$0x1]   ;;  %v135_v1 = vld [vmem:[%s257_s0 + $0x7] sm:$0x1]   ;;  %v141_v4 = vld [vmem:[%s257_s0 + $0x5] sm:$0x1]  }
   0x2   :  { %34 = vrot.lane.b32.xlu1 %v139_v0, %s169_s10  ;;  %v136_v2 = vld [vmem:[%s257_s0 + $0x7] sm:$0x1]   ;;  %v137_v5 = vld [vmem:[%s257_s0 + $0xe] sm:$0x1]   ;;  %s171_s20 = smov 90   ;;  %s172_s23 = smov 106  }
   0x3   :  { %v10_v3 = vsel %vm9_vm0, %v136_v2, %v135_v1  ;;  %v138_v6 = vld [vmem:[%s257_s0 + $0xe] sm:$0x1]   ;;  %47 = vrot.lane.b32.xlu2 %v141_v4, %s171_s20  ;;  %v140_v7 = vld [vmem:[%s257_s0 + $0xd] sm:$0x1]   ;;  %v142_v9 = vld [vmem:[%s257_s0 + $0xc] sm:$0x1]  }
   0x4   :  { %11 = vrot.lane.b32.xlu0 %v10_v3, %s170_s13  ;;  %v23_v8 = vsel %vm22_vm1, %v138_v6, %v137_v5  ;;  %s173_s26 = smov 124   ;;  %s174_s27 = smov 88   ;;  %v144_v10 = vld [vmem:[%s257_s0 + $0xb] sm:$0x1]   ;;  %v143_v11 = vld [vmem:[%s257_s0 + $0x4] sm:$0x1]  }
   0x5   :  { %s175_s3 = smov 70   ;;  %v145_v12 = vld [vmem:[%s257_s0 + $0x3] sm:$0x1]   ;;  %s176_s6 = smov 72   ;;  %v147_v13 = vld [vmem:[%s257_s0 + $0x2] sm:$0x1]  }
   0x6   :  { %s177_s7 = smov 54   ;;  %v146_v14 = vld [vmem:[%s257_s0 + $0xa] sm:$0x1]   ;;  %s178_s12 = smov 36   ;;  %v148_v15 = vld [vmem:[%s257_s0 + $0x9] sm:$0x1]  }
   0x7   :  { %s179_s15 = smov 52   ;;  %s180_s16 = smov 34   ;;  %v150_v16 = vld [vmem:[%s257_s0 + $0x8] sm:$0x1]   ;;  %v149_v17 = vld [vmem:[%s257_s0 + $0x1] sm:$0x1]  }
   0x8   :  { %s181_s21 = smov 16   ;;  %v151_v18 = vld [vmem:[%s257_s0 + $0xf] sm:$0x1]   ;;  %s182_s24 = smov 18   ;;  %v2_v19 = vld [vmem:[%s257_s0] sm:$0x1]  }
   0x9   :  { %s183_s25 = smov 14   ;;  %4 = vst.msk [vmem:[#allocation0] sm:$0x1] %vm3_vm2, %v2_v19   ;;  %vm16_vm4 = vcmask 1048560   ;;  %vm36_vm5 = vcmask 1032032   ;;  %vm49_vm6 = vcmask 884432  }
   0xa   :  { %40 = vrot.lane.b32.xlu1 %v140_v7, %s172_s23  ;;  %vm26_vm7 = vcmask 113664   ;;  %vm29_vm8 = vcmask 1048544   ;;  %vm42_vm9 = vcmask 1015632   ;;  %vm55_vm10 = vcmask 868032  }
   0xb   :  { %53 = vrot.lane.b32.xlu2 %v142_v9, %s174_s27  ;;  %vm114_vm11 = vcmask 261232   ;;  %vm68_vm12 = vcmask 720432   ;;  %vm62_vm13 = vcmask 736832   ;;  %vm75_vm14 = vcmask 589232  }
   0xc   :  { %24 = vrot.lane.b32.xlu0 %v23_v8, %s173_s26  ;;  %vm88_vm15 = vcmask 441632   ;;  %vm81_vm0 = vcmask 572832   ;;  %vm94_vm1 = vcmask 425232   ;;  %vm107_vm2 = vcmask 277632  }
  0x12   :  { %66 = vrot.lane.b32.xlu1 %v144_v10, %s175_s3 }
  0x13   :  { %73 = vrot.lane.b32.xlu2 %v145_v12, %s177_s7 }
  0x14   :  { %60 = vrot.lane.b32.xlu0 %v143_v11, %s176_s6 }
  0x1a   :  { %86 = vrot.lane.b32.xlu1 %v147_v13, %s178_s12 }
  0x1b   :  { %92 = vrot.lane.b32.xlu2 %v148_v15, %s180_s16 }
  0x1c   :  { %79 = vrot.lane.b32.xlu0 %v146_v14, %s179_s15 }
  0x22   :  { %105 = vrot.lane.b32.xlu1 %v150_v16, %s181_s21 }
  0x23   :  { %112 = vrot.lane.b32.xlu2 %v151_v18, %s183_s25 }
  0x24   :  { %99 = vrot.lane.b32.xlu0 %v149_v17, %s182_s24 }
  0x5d   :  { %v48_v20 = vpop.permute.xlu2 %47  }
  0x65   :  { %v54_v21 = vpop.permute.xlu2 %53  }
  0x6d   :  { %v74_v22 = vpop.permute.xlu2 %73  }
  0x74   :  { %v35_v23 = vpop.permute.xlu1 %34  }
  0x75   :  { %v93_v25 = vpop.permute.xlu2 %92  }
  0x76   :  { %v12_v24 = vpop.permute.xlu0 %11  }
  0x77   :  { %15 = vst.msk [vmem:[#allocation0 + $0x8] sm:$0x1] %vm13_vm3, %v12_v24   ;;  %vm101_vm3 = vcmask 294032  }
  0x78   :  { %17 = vst.msk [vmem:[#allocation0] sm:$0x1] %vm16_vm4, %v12_v24  }
  0x79   :  { %37 = vst.msk [vmem:[#allocation0] sm:$0x1] %vm36_vm5, %v35_v23  }
  0x7a   :  { %50 = vst.msk [vmem:[#allocation0] sm:$0x1] %vm49_vm6, %v48_v20  }
  0x7c   :  { %v41_v26 = vpop.permute.xlu1 %40  }
  0x7d   :  { %v113_v28 = vpop.permute.xlu2 %112  }
  0x7e   :  { %v25_v27 = vpop.permute.xlu0 %24  }
  0x7f   :  { %28 = vst.msk [vmem:[#allocation0 + $0x10] sm:$0x1] %vm26_vm7, %v25_v27  }
  0x80   :  { %31 = vst.msk [vmem:[#allocation0 + $0x8] sm:$0x1] %vm29_vm8, %v25_v27  }
  0x81   :  { %44 = vst.msk [vmem:[#allocation0 + $0x8] sm:$0x1] %vm42_vm9, %v41_v26  }
  0x82   :  { %57 = vst.msk [vmem:[#allocation0 + $0x8] sm:$0x1] %vm55_vm10, %v54_v21  }
  0x83   :  { %116 = vst.msk [vmem:[#allocation0 + $0x10] sm:$0x1] %vm114_vm11, %v113_v28  }
  0x84   :  { %v67_v29 = vpop.permute.xlu1 %66  }
  0x85   :  { %70 = vst.msk [vmem:[#allocation0 + $0x8] sm:$0x1] %vm68_vm12, %v67_v29  }
  0x86   :  { %v61_v30 = vpop.permute.xlu0 %60  }
  0x87   :  { %63 = vst.msk [vmem:[#allocation0] sm:$0x1] %vm62_vm13, %v61_v30  }
  0x88   :  { %76 = vst.msk [vmem:[#allocation0] sm:$0x1] %vm75_vm14, %v74_v22  }
  0x8a   :  { %v130_v31 = vld [vmem:[#allocation0 + $0x10] sm:$0x1] }
  0x8b   :  { %153 = vst [vmem:[%s258_s1 + $0x2] sm:$0x1] %v130_v31 }
  0x8c   :  { %v87_v32 = vpop.permute.xlu1 %86  }
  0x8d   :  { %89 = vst.msk [vmem:[#allocation0] sm:$0x1] %vm88_vm15, %v87_v32  }
  0x8e   :  { %v80_v33 = vpop.permute.xlu0 %79  }
  0x8f   :  { %83 = vst.msk [vmem:[#allocation0 + $0x8] sm:$0x1] %vm81_vm0, %v80_v33  }
  0x90   :  { %96 = vst.msk [vmem:[#allocation0 + $0x8] sm:$0x1] %vm94_vm1, %v93_v25  }
  0x94   :  { %v106_v34 = vpop.permute.xlu1 %105  }
  0x95   :  { %109 = vst.msk [vmem:[#allocation0 + $0x8] sm:$0x1] %vm107_vm2, %v106_v34  }
  0x96   :  { %v100_v35 = vpop.permute.xlu0 %99  }
  0x97   :  { %102 = vst.msk [vmem:[#allocation0] sm:$0x1] %vm101_vm3, %v100_v35  }
  0x9c   :  { %v124_v36 = vld [vmem:[#allocation0 + $0x8] sm:$0x1] }
  0x9d   :  { %152 = vst [vmem:[%s258_s1 + $0x1] sm:$0x1] %v124_v36 }
  0x9e   :  { %v119_v37 = vld [vmem:[#allocation0] sm:$0x1] }
  0x9f   :  { %122 = vst [vmem:[%s258_s1] sm:$0x1] %v119_v37 }

// kernel: residual_block_fwd.1
= control target key start
LH: loop header
LB: loop body
LE: loop exit
PB: predicated region body
PF: predicated region fallthrough
CT: control target
= control target key end

     0   :  { %s7981_s25 = smov 127   ;;  %s7982_s18 = smov 126   ;;  %vm127_vm0 = vcmask 261120   ;;  %vm106_vm1 = vcmask 1039360   ;;  %vm355_vm2 = vcmask 1031168   ;;  %vm516_vm3 = vcmask 900096   ;;  %s12264_s0 = inlined_call_operand.vmem [shape: f32[2,32,342], index: 0, kind: input, shape index: {}]   ;;  %s12265_s2 = inlined_call_operand.vmem [shape: f32[9,32,32], index: 2, kind: input, shape index: {}]   ;;  %s12266_s3 = inlined_call_operand.vmem [shape: f32[32,1], index: 3, kind: input, shape index: {}]   ;;  %s12267_s1 = inlined_call_operand.vmem [shape: f32[1,288], index: 1, kind: input, shape index: {}]   ;;  %s12268_s4 = inlined_call_operand.vmem [shape: f32[9,32,32], index: 4, kind: input, shape index: {}]   ;;  %s12269_s5 = inlined_call_operand.vmem [shape: f32[32,1], index: 5, kind: input, shape index: {}]   ;;  %s12270_s6 = inlined_call_operand.vmem [shape: f32[32,2], index: 6, kind: input, shape index: {}]   ;;  %s12271_s7 = inlined_call_operand.vmem [shape: f32[1,2], index: 7, kind: input, shape index: {}]   ;;  %s12272_s8 = inlined_call_operand.vmem [shape: f32[32,2], index: 8, kind: input, shape index: {}]   ;;  %s12273_s9 = inlined_call_operand.vmem [shape: f32[32,1], index: 9, kind: input, shape index: {}]   ;;  %s12274_s10 = inlined_call_operand.vmem [shape: f32[2,32,288], index: 10, kind: output, shape index: {}]  }
   0x1   :  { %v58_v0 = vld [vmem:[%s12264_s0 + $0x48] sm:$0xff]  ;;  %v8053_v1 = vld [vmem:[%s12264_s0 + $0x50] sm:$0xff]  ;;  %v8058_v2 = vld [vmem:[%s12264_s0 + $0x38] sm:$0xff]  ;;  %s7983_s19 = smov 110   ;;  %s7984_s20 = smov 109   ;;  %vm677_vm4 = vcmask 891904  }
   0x2   :  { %v8061_v3 = vpack.i.bf16 %v8053_v1, %v58_v0  ;;  %v8066_v4 = vld [vmem:[%s12264_s0 + $0x40] sm:$0xff]  ;;  %251 = vmatpush.msra.mxu3 %v58_v0  ;;  %v55_v6 = vld [vmem:[%s12264_s0 + $0x30] sm:$0xff]  ;;  %v8083_v8 = vld [vmem:[%s12264_s0 + $0x28] sm:$0xff]  ;;  %s7985_s21 = smov 108   ;;  %s7986_s22 = smov 92   ;;  %vm838_vm5 = vcmask 883712  }
   0x3   :  { %v8070_v5 = vpack.i.bf16 %v8066_v4, %v8058_v2  ;;  %v49_v7 = vld [vmem:[%s12264_s0] sm:$0xff]  ;;  %v8090_v9 = vld [vmem:[%s12264_s0 + $0x58] sm:$0xff]  ;;  %v8111_v14 = vld [vmem:[%s12264_s0 + $0x8] sm:$0xff]  ;;  %v8132_v18 = vpack.i.bf16 %v8058_v2, %v55_v6  ;;  %s7987_s12 = smov 91   ;;  %s7988_s11 = smov 90   ;;  %vm999_vm6 = vcmask 752640  }
   0x4   :  { %7037 = vrot.lane.b32.xlu0 %v8061_v3, %s7981_s25  ;;  %252 = vmatpush.msra.mxu3 %v55_v6  ;;  %v52_v10 = vld [vmem:[%s12264_s0 + $0x18] sm:$0xff]  ;;  %v8096_v11 = vpack.i.bf16 %v49_v7, %v8083_v8  ;;  %v8101_v12 = vld [vmem:[%s12264_s0 + $0x20] sm:$0xff]  ;;  %v8106_v13 = vpack.i.bf16 %v55_v6, %v8090_v9  ;;  %v8116_v15 = vld [vmem:[%s12264_s0 + $0x10] sm:$0xff]  ;;  %v7081_v19 = vpack.i.bf16 %v8111_v14, %v49_v7  ;;  %vm1160_vm7 = vcmask 744448  }
   0x5   :  { %7047 = vrot.lane.b32.xlu1 %v8070_v5, %s7981_s25  ;;  %v8119_v16 = vpack.i.bf16 %v8101_v12, %v52_v10  ;;  %v8123_v17 = vpack.i.bf16 %v8116_v15, %v8111_v14  ;;  %v7086_v20 = vpack.i.bf16 %v8066_v4, %v8090_v9  ;;  %v7101_v21 = vpack.i.bf16 %v8116_v15, %v8083_v8  ;;  %v8194_v24 = vld [vmem:[%s12265_s2] sm:$0xff]  ;;  %v8203_v26 = vld [vmem:[%s12265_s2 + $0x8] sm:$0xff]  ;;  %v8212_v28 = vld [vmem:[%s12265_s2 + $0x10] sm:$0xff] }
   0x6   :  { %253 = vmatpush.msra.mxu3 %v52_v10  ;;  %7057 = vrot.lane.b32.xlu2 %v8096_v11, %s7981_s25  ;;  %v7146_v22 = vpack.i.bf16 %v8066_v4, %v8101_v12  ;;  %v7136_v23 = vpack.i.bf16 %v52_v10, %v8090_v9  ;;  %v8221_v34 = vld [vmem:[%s12265_s2 + $0x18] sm:$0xff]  ;;  %v6433_v53 = vld [vmem:[%s12265_s2 + $0x20] sm:$0xff]  ;;  %vm1321_vm8 = vcmask 736256   ;;  %vm1577_vm9 = vcmask 1047704  }
   0x7   :  { %vm38_vm10 = vcmask 703488   ;;  %vm1556_vm11 = vcmask 154624   ;;  %vm1580_vm12 = vcmask 416768   ;;  %vm3066_vm13 = vcmask 15360  }
   0x8   :  { %254 = vmatpush.msra.mxu3 %v49_v7 }
   0x9   :  { %6449 = vmatmul.msk.f32.vlgmr.msra.gmra.mxu3 %vm127_vm0, %v8194_v24 }
   0xc   :  { %7042 = vrot.lane.b32.xlu0 %v8106_v13, %s7981_s25 }
   0xd   :  { %7052 = vrot.lane.b32.xlu1 %v8119_v16, %s7981_s25 }
   0xe   :  { %7062 = vrot.lane.b32.xlu2 %v8123_v17, %s7981_s25 }
  0x11   :  { %6450 = vmatmul.msk.f32.gmra.mxu3 %vm127_vm0, %v8203_v26 }
  0x14   :  { %7067 = vrot.lane.b32.xlu0 %v8061_v3, %s7982_s18 }
  0x15   :  { %7072 = vrot.lane.b32.xlu1 %v8132_v18, %s7982_s18 }
  0x16   :  { %7077 = vrot.lane.b32.xlu2 %v8119_v16, %s7982_s18 }
  0x19   :  { %6451 = vmatmul.msk.f32.gmra.mxu3 %vm127_vm0, %v8212_v28 }
  0x1c   :  { %7082 = vrot.lane.b32.xlu0 %v7081_v19, %s7982_s18 }
  0x1d   :  { %7087 = vrot.lane.b32.xlu1 %v7086_v20, %s7982_s18 }
  0x1e   :  { %7092 = vrot.lane.b32.xlu2 %v8061_v3, %s7983_s19 }
  0x21   :  { %6452 = vmatmul.msk.f32.gmra.mxu3 %vm127_vm0, %v8221_v34 }
  0x24   :  { %7097 = vrot.lane.b32.xlu0 %v8106_v13, %s7983_s19 }
  0x25   :  { %7102 = vrot.lane.b32.xlu1 %v7101_v21, %s7982_s18 }
  0x26   :  { %7107 = vrot.lane.b32.xlu2 %v8070_v5, %s7983_s19 }
  0x2c   :  { %7112 = vrot.lane.b32.xlu0 %v8119_v16, %s7983_s19 }
  0x2d   :  { %7117 = vrot.lane.b32.xlu1 %v8096_v11, %s7983_s19 }
  0x2e   :  { %7122 = vrot.lane.b32.xlu2 %v8123_v17, %s7983_s19 }
  0x34   :  { %671 = vrot.lane.b32.xlu0 %v58_v0, %s7984_s20 }
  0x35   :  { %673 = vrot.lane.b32.xlu1 %v8053_v1, %s7984_s20 }
  0x36   :  { %675 = vrot.lane.b32.xlu2 %v8090_v9, %s7984_s20 }
  0x3c   :  { %665 = vrot.lane.b32.xlu0 %v55_v6, %s7984_s20 }
  0x3d   :  { %667 = vrot.lane.b32.xlu1 %v8058_v2, %s7984_s20 }
  0x3e   :  { %669 = vrot.lane.b32.xlu2 %v8066_v4, %s7984_s20 }
  0x44   :  { %659 = vrot.lane.b32.xlu0 %v52_v10, %s7984_s20 }
  0x45   :  { %661 = vrot.lane.b32.xlu1 %v8101_v12, %s7984_s20 }
  0x46   :  { %663 = vrot.lane.b32.xlu2 %v8083_v8, %s7984_s20 }
  0x4c   :  { %653 = vrot.lane.b32.xlu0 %v49_v7, %s7984_s20 }
  0x4d   :  { %655 = vrot.lane.b32.xlu1 %v8111_v14, %s7984_s20 }
  0x4e   :  { %657 = vrot.lane.b32.xlu2 %v8116_v15, %s7984_s20 }
  0x54   :  { %7127 = vrot.lane.b32.xlu0 %v8061_v3, %s7985_s21 }
  0x55   :  { %7132 = vrot.lane.b32.xlu1 %v8132_v18, %s7985_s21 }
  0x56   :  { %7137 = vrot.lane.b32.xlu2 %v7136_v23, %s7985_s21 }
  0x5c   :  { %7142 = vrot.lane.b32.xlu0 %v8061_v3, %s7986_s22 }
  0x5d   :  { %7147 = vrot.lane.b32.xlu1 %v7146_v22, %s7985_s21 }
  0x5e   :  { %7152 = vrot.lane.b32.xlu2 %v8132_v18, %s7986_s22 }
  0x60   :  { %v7058_v25 = vpop.permute.xlu2 %7057 }
  0x61   :  { %v7060_v36 = vunpack.i.h.bf16 %v7058_v25  ;;  %v7059_v52 = vunpack.i.l.bf16 %v7058_v25 }
  0x64   :  { %7157 = vrot.lane.b32.xlu0 %v7081_v19, %s7985_s21 }
  0x65   :  { %7162 = vrot.lane.b32.xlu1 %v7101_v21, %s7985_s21 }
  0x66   :  { %7167 = vrot.lane.b32.xlu2 %v8119_v16, %s7986_s22 }
  0x68   :  { %v7063_v27 = vpop.permute.xlu2 %7062 }
  0x69   :  { %v7064_v43 = vunpack.i.l.bf16 %v7063_v27  ;;  %v7065_v46 = vunpack.i.h.bf16 %v7063_v27 }
  0x6b   :  { %v107_v54 = vsel %vm106_vm1, %v7060_v36, %v7064_v43  ;;  %v108_v56 = vsel %vm106_vm1, %v7064_v43, %v7065_v46  ;;  %v6436_v43 = vld [vmem:[%s12265_s2 + $0x38] sm:$0xff] }
  0x6c   :  { %7172 = vrot.lane.b32.xlu0 %v7081_v19, %s7986_s22 }
  0x6d   :  { %7177 = vrot.lane.b32.xlu1 %v7086_v20, %s7986_s22 }
  0x6e   :  { %7182 = vrot.lane.b32.xlu2 %v8061_v3, %s7987_s12 }
  0x70   :  { %v8223_v35 = vpop.permute.xlu2 %7077 }
  0x71   :  { %v7079_v61 = vunpack.i.l.bf16 %v8223_v35  ;;  %v7080_v0 = vunpack.i.h.bf16 %v8223_v35 }
  0x73   :  { %v358_v18 = vsel %vm355_vm2, %v7079_v61, %v7080_v0 }
  0x74   :  { %7187 = vrot.lane.b32.xlu0 %v8106_v13, %s7987_s12 }
  0x75   :  { %7192 = vrot.lane.b32.xlu1 %v7101_v21, %s7986_s22 }
  0x76   :  { %v7038_v29 = vpop.permute.xlu0 %7037  ;;  %7197 = vrot.lane.b32.xlu2 %v8070_v5, %s7987_s12 }
  0x77   :  { %v7040_v30 = vunpack.i.h.bf16 %v7038_v29  ;;  %v7039_v31 = vunpack.i.l.bf16 %v7038_v29  ;;  %v7048_v32 = vpop.permute.xlu1 %7047 }
  0x78   :  { %v7049_v38 = vunpack.i.l.bf16 %v7048_v32  ;;  %v7050_v42 = vunpack.i.h.bf16 %v7048_v32  ;;  %v8231_v49 = vpop.permute.xlu2 %7092 }
  0x79   :  { %v113_v33 = vsel %vm106_vm1, %v7039_v31, %v7040_v30  ;;  %v7095_v25 = vunpack.i.h.bf16 %v8231_v49  ;;  %v7094_v27 = vunpack.i.l.bf16 %v8231_v49 }
  0x7a   :  { %152 = vmatpush.msra.mxu0 %v113_v33  ;;  %v112_v51 = vsel %vm106_vm1, %v7049_v38, %v7050_v42 }
  0x7b   :  { %v523_v36 = vsel %vm516_vm3, %v7094_v27, %v7095_v25 }
  0x7c   :  { %7202 = vrot.lane.b32.xlu0 %v8119_v16, %s7987_s12 }
  0x7d   :  { %7207 = vrot.lane.b32.xlu1 %v8096_v11, %s7987_s12 }
  0x7e   :  { %v7043_v37 = vpop.permute.xlu0 %7042  ;;  %7212 = vrot.lane.b32.xlu2 %v8123_v17, %s7987_s12 }
  0x7f   :  { %v7045_v39 = vunpack.i.h.bf16 %v7043_v37  ;;  %v7053_v40 = vpop.permute.xlu1 %7052  ;;  %v7044_v41 = vunpack.i.l.bf16 %v7043_v37 }
  0x80   :  { %v7055_v44 = vunpack.i.h.bf16 %v7053_v40  ;;  %v7054_v45 = vunpack.i.l.bf16 %v7053_v40  ;;  %v8252_v7 = vpop.permute.xlu2 %7107 }
  0x81   :  { %210 = vmatpush.msra.mxu2 %v7044_v41  ;;  %v111_v47 = vsel %vm106_vm1, %v7045_v39, %v7049_v38  ;;  %v114_v48 = vsel %vm106_vm1, %v7040_v30, %v7044_v41  ;;  %v7109_v29 = vunpack.i.l.bf16 %v8252_v7 }
  0x82   :  { %153 = vmatpush.msra.mxu0 %v111_v47  ;;  %181 = vmatpush.msra.mxu1 %v114_v48  ;;  %v109_v50 = vsel %vm106_vm1, %v7054_v45, %v7055_v44  ;;  %v110_v55 = vsel %vm106_vm1, %v7055_v44, %v7059_v52  ;;  %v7110_v44 = vunpack.i.h.bf16 %v8252_v7 }
  0x83   :  { %211 = vmatpush.msra.mxu2 %v7050_v42  ;;  %v8299_v42 = vld [vmem:[%s12265_s2 + $0x40] sm:$0xff] }
  0x84   :  { %154 = vmatpush.msra.mxu0 %v109_v50  ;;  %182 = vmatpush.msra.mxu1 %v112_v51  ;;  %v522_v50 = vsel %vm516_vm3, %v7109_v29, %v7110_v44 }
  0x85   :  { %212 = vmatpush.msra.mxu2 %v7059_v52  ;;  %7217 = vrot.lane.b32.xlu0 %v8061_v3, %s7988_s11 }
  0x86   :  { %155 = vmatpush.msra.mxu0 %v107_v54  ;;  %183 = vmatpush.msra.mxu1 %v110_v55  ;;  %v7068_v57 = vpop.permute.xlu0 %7067  ;;  %v8321_v55 = vld [vmem:[%s12265_s2 + $0x48] sm:$0xff] }
  0x87   :  { %6437 = vmatmul.msk.f32.vlgmr.msra.gmra.mxu0 %vm127_vm0, %v6433_v53  ;;  %213 = vmatpush.msra.mxu2 %v7065_v46  ;;  %v7073_v58 = vpop.permute.xlu1 %7072  ;;  %v7070_v59 = vunpack.i.h.bf16 %v7068_v57  ;;  %v7069_v60 = vunpack.i.l.bf16 %v7068_v57 }
  0x88   :  { %184 = vmatpush.msra.mxu1 %v108_v56  ;;  %6445 = vmatmul.msk.f32.vlgmr.msra.gmra.mxu2 %vm127_vm0, %v6433_v53  ;;  %v7075_v62 = vunpack.i.h.bf16 %v7073_v58  ;;  %v7074_v63 = vunpack.i.l.bf16 %v7073_v58 }
  0x89   :  { %6441 = vmatmul.msk.f32.vlgmr.msra.gmra.mxu1 %vm127_vm0, %v6433_v53  ;;  %280 = vmatpush.msrb.mxu0 %v8053_v1  ;;  %v362_v6 = vsel %vm355_vm2, %v7069_v60, %v7070_v59  ;;  %v6434_v1 = vld [vmem:[%s12265_s2 + $0x28] sm:$0xff] }
  0x8a   :  { %309 = vmatpush.msrb.mxu1 %v8090_v9  ;;  %400 = vmatpush.msrb.mxu2 %v362_v6  ;;  %v360_v10 = vsel %vm355_vm2, %v7074_v63, %v7075_v62  ;;  %v8376_v6 = vld [vmem:[%s12265_s2 + $0x58] sm:$0xff] }
  0x8b   :  { %281 = vmatpush.msrb.mxu0 %v8058_v2  ;;  %7222 = vrot.lane.b32.xlu1 %v8106_v13, %s7988_s11 }
  0x8c   :  { %401 = vmatpush.msrb.mxu2 %v360_v10  ;;  %310 = vmatpush.msrb.mxu1 %v8066_v4 }
  0x8d   :  { %282 = vmatpush.msrb.mxu0 %v8101_v12  ;;  %v8273_v12 = vpop.permute.xlu2 %7122  ;;  %7232 = vrot.lane.b32.xlu0 %v8119_v16, %s7988_s11 }
  0x8e   :  { %v7083_v9 = vpop.permute.xlu0 %7082  ;;  %402 = vmatpush.msrb.mxu2 %v358_v18  ;;  %311 = vmatpush.msrb.mxu1 %v8083_v8  ;;  %v7125_v51 = vunpack.i.h.bf16 %v8273_v12  ;;  %v7124_v57 = vunpack.i.l.bf16 %v8273_v12  ;;  %v6477_v18 = vld [vmem:[%s12265_s2 + $0x60] sm:$0xff] }
  0x8f   :  { %6438 = vmatmul.msk.f32.gmra.mxu0 %vm127_vm0, %v6434_v1  ;;  %v7088_v2 = vpop.permute.xlu1 %7087  ;;  %v7085_v19 = vunpack.i.h.bf16 %v7083_v9  ;;  %v7084_v20 = vunpack.i.l.bf16 %v7083_v9  ;;  %7227 = vrot.lane.b32.xlu2 %v8070_v5, %s7988_s11 }
  0x90   :  { %6446 = vmatmul.msk.f32.gmra.mxu2 %vm127_vm0, %v6434_v1  ;;  %v7090_v21 = vunpack.i.h.bf16 %v7088_v2  ;;  %v7089_v22 = vunpack.i.l.bf16 %v7088_v2  ;;  %283 = vmatpush.msrb.mxu0 %v8111_v14  ;;  %v6435_v14 = vld [vmem:[%s12265_s2 + $0x30] sm:$0xff]  ;;  %v518_v60 = vsel %vm516_vm3, %v7124_v57, %v7125_v51 }
  0x91   :  { %6442 = vmatmul.msk.f32.gmra.mxu1 %vm127_vm0, %v6434_v1  ;;  %v356_v4 = vsel %vm355_vm2, %v7084_v20, %v7085_v19  ;;  %v6478_v20 = vld [vmem:[%s12265_s2 + $0x68] sm:$0xff] }
  0x92   :  { %v363_v23 = vsel %vm355_vm2, %v7070_v59, %v7089_v22  ;;  %v361_v8 = vsel %vm355_vm2, %v7075_v62, %v7090_v21  ;;  %403 = vmatpush.msrb.mxu2 %v356_v4  ;;  %312 = vmatpush.msrb.mxu1 %v8116_v15  ;;  %v8346_v62 = vld [vmem:[%s12265_s2 + $0x50] sm:$0xff] }
  0x93   :  { %429 = vmatpush.msrb.mxu3 %v363_v23  ;;  %458 = vmatpush.msra.mxu0 %v7089_v22 }
  0x94   :  { %561 = vmatpush.msra.mxu1 %v523_v36  ;;  %7237 = vrot.lane.b32.xlu1 %v8096_v11, %s7988_s11 }
  0x95   :  { %430 = vmatpush.msrb.mxu3 %v361_v8  ;;  %459 = vmatpush.msra.mxu0 %v7090_v21  ;;  %v8291_v38 = vpop.permute.xlu2 %675 }
  0x96   :  { %v7098_v30 = vpop.permute.xlu0 %7097  ;;  %12320 = vst [vmem:[#allocation3_spill] sm:$0xff] %v8291_v38 }
  0x97   :  { %6439 = vmatmul.msk.f32.gmra.mxu0 %vm127_vm0, %v6435_v14  ;;  %v7103_v15 = vpop.permute.xlu1 %7102  ;;  %v7100_v31 = vunpack.i.h.bf16 %v7098_v30  ;;  %v7099_v32 = vunpack.i.l.bf16 %v7098_v30  ;;  %7242 = vrot.lane.b32.xlu2 %v8123_v17, %s7988_s11 }
  0x98   :  { %6447 = vmatmul.msk.f32.gmra.mxu2 %vm127_vm0, %v6435_v14  ;;  %v7105_v33 = vunpack.i.h.bf16 %v7103_v15  ;;  %v7104_v35 = vunpack.i.l.bf16 %v7103_v15 }
  0x99   :  { %6443 = vmatmul.msk.f32.gmra.mxu1 %vm127_vm0, %v6435_v14  ;;  %v524_v37 = vsel %vm516_vm3, %v7095_v25, %v7099_v32  ;;  %v521_v39 = vsel %vm516_vm3, %v7100_v31, %v7109_v29  ;;  %v6479_v29 = vld [vmem:[%s12265_s2 + $0x70] sm:$0xff] }
  0x9a   :  { %v359_v40 = vsel %vm355_vm2, %v7080_v0, %v7104_v35  ;;  %v357_v41 = vsel %vm355_vm2, %v7085_v19, %v7105_v33  ;;  %590 = vmatpush.msra.mxu2 %v524_v37  ;;  %460 = vmatpush.msra.mxu0 %v7104_v35  ;;  %v6480_v37 = vld [vmem:[%s12265_s2 + $0x78] sm:$0xff] }
  0x9b   :  { %431 = vmatpush.msrb.mxu3 %v359_v40  ;;  %562 = vmatpush.msra.mxu1 %v521_v39 }
  0x9c   :  { %461 = vmatpush.msra.mxu0 %v7105_v33  ;;  %591 = vmatpush.msra.mxu2 %v522_v50 }
  0x9d   :  { %432 = vmatpush.msrb.mxu3 %v357_v41  ;;  %v8314_v52 = vpop.permute.xlu2 %669 }
  0x9e   :  { %6469 = vmatmul.msk.f32.vlgmr.msrb.gmra.mxu3 %vm127_vm0, %v8299_v42  ;;  %v7113_v45 = vpop.permute.xlu0 %7112  ;;  %12321 = vst [vmem:[#allocation4_spill] sm:$0xff] %v8314_v52 }
  0x9f   :  { %6440 = vmatmul.msk.f32.gmra.mxu0 %vm127_vm0, %v6436_v43  ;;  %v7115_v46 = vunpack.i.h.bf16 %v7113_v45  ;;  %v7114_v47 = vunpack.i.l.bf16 %v7113_v45  ;;  %v7118_v48 = vpop.permute.xlu1 %7117  ;;  %619 = vmatpush.msra.mxu3 %v7099_v32 }
  0xa0   :  { %6448 = vmatmul.msk.f32.gmra.mxu2 %vm127_vm0, %v6436_v43  ;;  %v7119_v49 = vunpack.i.l.bf16 %v7118_v48  ;;  %v7120_v56 = vunpack.i.h.bf16 %v7118_v48  ;;  %v8462_v48 = vld [vmem:[%s12265_s2 + $0xa0] sm:$0xff] }
  0xa1   :  { %6444 = vmatmul.msk.f32.gmra.mxu1 %vm127_vm0, %v6436_v43  ;;  %620 = vmatpush.msra.mxu3 %v7110_v44  ;;  %v519_v53 = vsel %vm516_vm3, %v7114_v47, %v7115_v46 }
  0xa2   :  { %v520_v54 = vsel %vm516_vm3, %v7115_v46, %v7119_v49  ;;  %563 = vmatpush.msra.mxu1 %v519_v53  ;;  %v517_v61 = vsel %vm516_vm3, %v7120_v56, %v7124_v57 }
  0xa3   :  { %621 = vmatpush.msra.mxu3 %v7119_v49  ;;  %592 = vmatpush.msra.mxu2 %v520_v54 }
  0xa4   :  { %564 = vmatpush.msra.mxu1 %v517_v61 }
  0xa5   :  { %622 = vmatpush.msra.mxu3 %v7125_v51  ;;  %593 = vmatpush.msra.mxu2 %v518_v60  ;;  %v8338_v3 = vpop.permute.xlu2 %663 }
  0xa6   :  { %6470 = vmatmul.msk.f32.gmra.mxu3 %vm127_vm0, %v8321_v55  ;;  %v672_v58 = vpop.permute.xlu0 %671  ;;  %12322 = vst [vmem:[#allocation5_spill] sm:$0xff] %v8338_v3 }
  0xa7   :  { %6453 = vmatmul.msk.f32.vlgmr.msrb.gmra.mxu0 %vm127_vm0, %v8194_v24  ;;  %v674_v59 = vpop.permute.xlu1 %673 }
  0xa8   :  { %6465 = vmatmul.msk.f32.vlgmr.msrb.gmra.mxu2 %vm127_vm0, %v8299_v42  ;;  %v8359_v63 = vsel %vm677_vm4, %v672_v58, %v674_v59  ;;  %v8363_v16 = vsel %vm677_vm4, %v674_v59, %v8291_v38 }
  0xa9   :  { %6457 = vmatmul.msk.f32.vlgmr.msrb.gmra.mxu1 %vm127_vm0, %v8194_v24  ;;  %780 = vmatpush.msrb.mxu2 %v8291_v38  ;;  %12323 = vst [vmem:[#allocation6_spill] sm:$0xff] %v8359_v63 }
  0xaa   :  { %12324 = vst [vmem:[#allocation7_spill] sm:$0xff] %v8363_v16  ;;  %722 = vmatpush.msrb.mxu0 %v8359_v63  ;;  %751 = vmatpush.msrb.mxu1 %v8363_v16 }
  0xab   :  { %781 = vmatpush.msrb.mxu2 %v8314_v52 }
  0xad   :  { %782 = vmatpush.msrb.mxu2 %v8338_v3  ;;  %v8371_v0 = vpop.permute.xlu2 %657 }
  0xae   :  { %6471 = vmatmul.msk.f32.gmra.mxu3 %vm127_vm0, %v8346_v62  ;;  %v666_v24 = vpop.permute.xlu0 %665  ;;  %12325 = vst [vmem:[#allocation8_spill] sm:$0xff] %v8371_v0 }
  0xaf   :  { %6454 = vmatmul.msk.f32.gmra.mxu0 %vm127_vm0, %v8203_v26  ;;  %v668_v13 = vpop.permute.xlu1 %667  ;;  %783 = vmatpush.msrb.mxu2 %v8371_v0 }
  0xb0   :  { %6466 = vmatmul.msk.f32.gmra.mxu2 %vm127_vm0, %v8321_v55  ;;  %v8386_v11 = vsel %vm677_vm4, %v666_v24, %v668_v13  ;;  %v8390_v10 = vsel %vm677_vm4, %v668_v13, %v8314_v52 }
  0xb1   :  { %6458 = vmatmul.msk.f32.gmra.mxu1 %vm127_vm0, %v8203_v26  ;;  %12326 = vst [vmem:[#allocation9_spill] sm:$0xff] %v8386_v11  ;;  %723 = vmatpush.msrb.mxu0 %v8386_v11 }
  0xb2   :  { %12327 = vst [vmem:[#allocation10_spill] sm:$0xff] %v8390_v10  ;;  %752 = vmatpush.msrb.mxu1 %v8390_v10 }
  0xb5   :  { %v7138_v4 = vpop.permute.xlu2 %7137 }
  0xb6   :  { %6472 = vmatmul.msk.f32.gmra.mxu3 %vm127_vm0, %v8376_v6  ;;  %v660_v26 = vpop.permute.xlu0 %659  ;;  %v7139_v14 = vunpack.i.l.bf16 %v7138_v4  ;;  %v7140_v15 = vunpack.i.h.bf16 %v7138_v4 }
  0xb7   :  { %6455 = vmatmul.msk.f32.gmra.mxu0 %vm127_vm0, %v8212_v28  ;;  %v662_v7 = vpop.permute.xlu1 %661 }
  0xb8   :  { %6467 = vmatmul.msk.f32.gmra.mxu2 %vm127_vm0, %v8346_v62  ;;  %v8409_v2 = vsel %vm677_vm4, %v662_v7, %v8338_v3 }
  0xb9   :  { %6459 = vmatmul.msk.f32.gmra.mxu1 %vm127_vm0, %v8212_v28  ;;  %v8405_v28 = vsel %vm677_vm4, %v660_v26, %v662_v7  ;;  %12329 = vst [vmem:[#allocation12_spill] sm:$0xff] %v8409_v2  ;;  %v6493_v7 = vld [vmem:[%s12265_s2 + $0x80] sm:$0xff] }
  0xba   :  { %12328 = vst [vmem:[#allocation11_spill] sm:$0xff] %v8405_v28  ;;  %724 = vmatpush.msrb.mxu0 %v8405_v28  ;;  %753 = vmatpush.msrb.mxu1 %v8409_v2 }
  0xbd   :  { %v7153_v39 = vpop.permute.xlu2 %7152 }
  0xbe   :  { %6489 = vmatmul.msk.f32.vlgmr.msra.gmra.mxu3 %vm127_vm0, %v6477_v18  ;;  %v654_v1 = vpop.permute.xlu0 %653  ;;  %v7154_v50 = vunpack.i.l.bf16 %v7153_v39  ;;  %v7155_v53 = vunpack.i.h.bf16 %v7153_v39 }
  0xbf   :  { %6456 = vmatmul.msk.f32.gmra.mxu0 %vm127_vm0, %v8221_v34  ;;  %v656_v9 = vpop.permute.xlu1 %655 }
  0xc0   :  { %6468 = vmatmul.msk.f32.gmra.mxu2 %vm127_vm0, %v8376_v6  ;;  %v8416_v19 = vsel %vm677_vm4, %v654_v1, %v656_v9  ;;  %v8429_v12 = vsel %vm677_vm4, %v656_v9, %v8371_v0  ;;  %v1004_v60 = vsel %vm999_vm6, %v7154_v50, %v7155_v53 }
  0xc1   :  { %6460 = vmatmul.msk.f32.gmra.mxu1 %vm127_vm0, %v8221_v34  ;;  %12330 = vst [vmem:[#allocation13_spill] sm:$0xff] %v8416_v19  ;;  %725 = vmatpush.msrb.mxu0 %v8416_v19 }
  0xc2   :  { %12331 = vst [vmem:[#allocation14_spill] sm:$0xff] %v8429_v12  ;;  %754 = vmatpush.msrb.mxu1 %v8429_v12 }
  0xc6   :  { %6490 = vmatmul.msk.f32.gmra.mxu3 %vm127_vm0, %v6478_v20  ;;  %v7128_v21 = vpop.permute.xlu0 %7127 }
  0xc7   :  { %6473 = vmatmul.msk.f32.vlgmr.msra.gmra.mxu0 %vm127_vm0, %v8299_v42  ;;  %v7130_v5 = vunpack.i.h.bf16 %v7128_v21  ;;  %v7129_v34 = vunpack.i.l.bf16 %v7128_v21  ;;  %v7133_v22 = vpop.permute.xlu1 %7132 }
  0xc8   :  { %6485 = vmatmul.msk.f32.vlgmr.msra.gmra.mxu2 %vm127_vm0, %v6477_v18  ;;  %v7135_v23 = vunpack.i.h.bf16 %v7133_v22  ;;  %v7134_v8 = vunpack.i.l.bf16 %v7133_v22 }
  0xc9   :  { %6481 = vmatmul.msk.f32.vlgmr.msra.gmra.mxu1 %vm127_vm0, %v6477_v18  ;;  %v845_v25 = vsel %vm838_vm5, %v7129_v34, %v7130_v5  ;;  %v846_v33 = vsel %vm838_vm5, %v7130_v5, %v7139_v14 }
  0xca   :  { %883 = vmatpush.msrb.mxu3 %v845_v25  ;;  %v843_v27 = vsel %vm838_vm5, %v7134_v8, %v7135_v23  ;;  %941 = vmatpush.msra.mxu1 %v7139_v14  ;;  %v6494_v8 = vld [vmem:[%s12265_s2 + $0x88] sm:$0xff]  ;;  %v8508_v25 = vld [vmem:[%s12265_s2 + $0xb8] sm:$0xff] }
  0xcb   :  { %912 = vmatpush.msra.mxu0 %v846_v33 }
  0xcc   :  { %884 = vmatpush.msrb.mxu3 %v843_v27  ;;  %v6495_v27 = vld [vmem:[%s12265_s2 + $0x90] sm:$0xff] }
  0xce   :  { %6491 = vmatmul.msk.f32.gmra.mxu3 %vm127_vm0, %v6479_v29  ;;  %v7143_v30 = vpop.permute.xlu0 %7142 }
  0xcf   :  { %6474 = vmatmul.msk.f32.gmra.mxu0 %vm127_vm0, %v8321_v55  ;;  %v7148_v31 = vpop.permute.xlu1 %7147  ;;  %v7144_v49 = vunpack.i.l.bf16 %v7143_v30  ;;  %v7145_v51 = vunpack.i.h.bf16 %v7143_v30  ;;  %v7168_v55 = vpop.permute.xlu2 %7167 }
  0xd0   :  { %6486 = vmatmul.msk.f32.gmra.mxu2 %vm127_vm0, %v6478_v20  ;;  %v7150_v17 = vunpack.i.h.bf16 %v7148_v31  ;;  %v7149_v32 = vunpack.i.l.bf16 %v7148_v31  ;;  %v7169_v58 = vunpack.i.l.bf16 %v7168_v55  ;;  %v7170_v61 = vunpack.i.h.bf16 %v7168_v55 }
  0xd1   :  { %6482 = vmatmul.msk.f32.gmra.mxu1 %vm127_vm0, %v6478_v20  ;;  %v1006_v59 = vsel %vm999_vm6, %v7144_v49, %v7145_v51 }
  0xd2   :  { %v841_v35 = vsel %vm838_vm5, %v7140_v15, %v7149_v32  ;;  %v844_v36 = vsel %vm838_vm5, %v7135_v23, %v7150_v17  ;;  %942 = vmatpush.msra.mxu1 %v7150_v17  ;;  %1044 = vmatpush.msra.mxu2 %v1006_v59  ;;  %v1002_v18 = vsel %vm999_vm6, %v7169_v58, %v7170_v61  ;;  %v8495_v23 = vld [vmem:[%s12265_s2 + $0xb0] sm:$0xff] }
  0xd3   :  { %885 = vmatpush.msrb.mxu3 %v841_v35  ;;  %913 = vmatpush.msra.mxu0 %v844_v36  ;;  %v8520_v36 = vpop.f32.mrf.mxu3 }
  0xd4   :  { %1045 = vmatpush.msra.mxu2 %v1004_v60 }
  0xd6   :  { %6492 = vmatmul.msk.f32.gmra.mxu3 %vm127_vm0, %v6480_v37  ;;  %v7158_v40 = vpop.permute.xlu0 %7157  ;;  %1046 = vmatpush.msra.mxu2 %v1002_v18 }
  0xd7   :  { %6475 = vmatmul.msk.f32.gmra.mxu0 %vm127_vm0, %v8346_v62  ;;  %v7160_v41 = vunpack.i.h.bf16 %v7158_v40  ;;  %v7159_v42 = vunpack.i.l.bf16 %v7158_v40  ;;  %v7163_v43 = vpop.permute.xlu1 %7162  ;;  %v7183_v14 = vpop.permute.xlu2 %7182  ;;  %v8525_v40 = vld [vmem:[%s12265_s2 + $0xc0] sm:$0xff] }
  0xd8   :  { %6487 = vmatmul.msk.f32.gmra.mxu2 %vm127_vm0, %v6479_v29  ;;  %v7165_v44 = vunpack.i.h.bf16 %v7163_v43  ;;  %v7164_v45 = vunpack.i.l.bf16 %v7163_v43  ;;  %v7184_v30 = vunpack.i.l.bf16 %v7183_v14 }
  0xd9   :  { %6483 = vmatmul.msk.f32.gmra.mxu1 %vm127_vm0, %v6479_v29  ;;  %v839_v46 = vsel %vm838_vm5, %v7159_v42, %v7160_v41  ;;  %v7185_v29 = vunpack.i.h.bf16 %v7183_v14 }
  0xda   :  { %886 = vmatpush.msrb.mxu3 %v839_v46  ;;  %v842_v47 = vsel %vm838_vm5, %v7149_v32, %v7164_v45  ;;  %943 = vmatpush.msra.mxu1 %v7164_v45  ;;  %v840_v9 = vsel %vm838_vm5, %v7160_v41, %v7165_v44  ;;  %v6496_v41 = vld [vmem:[%s12265_s2 + $0x98] sm:$0xff] }
  0xdb   :  { %914 = vmatpush.msra.mxu0 %v842_v47  ;;  %v1167_v33 = vsel %vm1160_vm7, %v7184_v30, %v7185_v29 }
  0xdc   :  { %944 = vmatpush.msra.mxu1 %v7165_v44 }
  0xdd   :  { %915 = vmatpush.msra.mxu0 %v840_v9 }
  0xde   :  { %6513 = vmatmul.msk.f32.vlgmr.msrb.gmra.mxu3 %vm127_vm0, %v8462_v48  ;;  %v7173_v24 = vpop.permute.xlu0 %7172 }
  0xdf   :  { %6476 = vmatmul.msk.f32.gmra.mxu0 %vm127_vm0, %v8376_v6  ;;  %v7178_v54 = vpop.permute.xlu1 %7177  ;;  %v8477_v6 = vld [vmem:[%s12265_s2 + $0xa8] sm:$0xff]  ;;  %v7174_v26 = vunpack.i.l.bf16 %v7173_v24  ;;  %v7175_v1 = vunpack.i.h.bf16 %v7173_v24  ;;  %v7198_v17 = vpop.permute.xlu2 %7197 }
  0xe0   :  { %6488 = vmatmul.msk.f32.gmra.mxu2 %vm127_vm0, %v6480_v37  ;;  %v7180_v56 = vunpack.i.h.bf16 %v7178_v54  ;;  %v7179_v57 = vunpack.i.l.bf16 %v7178_v54  ;;  %v7200_v32 = vunpack.i.h.bf16 %v7198_v17  ;;  %v7199_v39 = vunpack.i.l.bf16 %v7198_v17  ;;  %v8542_v54 = vpop.f32.mrf.mxu3 }
  0xe1   :  { %6484 = vmatmul.msk.f32.gmra.mxu1 %vm127_vm0, %v6480_v37  ;;  %v1000_v21 = vsel %vm999_vm6, %v7174_v26, %v7175_v1 }
  0xe2   :  { %v1007_v62 = vsel %vm999_vm6, %v7145_v51, %v7179_v57  ;;  %v1005_v13 = vsel %vm999_vm6, %v7155_v53, %v7180_v56  ;;  %1047 = vmatpush.msra.mxu2 %v1000_v21  ;;  %v1166_v47 = vsel %vm1160_vm7, %v7199_v39, %v7200_v32  ;;  %v8540_v53 = vld [vmem:[%s12265_s2 + $0xc8] sm:$0xff] }
  0xe3   :  { %1073 = vmatpush.msra.mxu3 %v1007_v62 }
  0xe5   :  { %1074 = vmatpush.msra.mxu3 %v1005_v13  ;;  %v8565_v13 = vld [vmem:[%s12265_s2 + $0xd0] sm:$0xff] }
  0xe6   :  { %6514 = vmatmul.msk.f32.gmra.mxu3 %vm127_vm0, %v8477_v6  ;;  %v7188_v15 = vpop.permute.xlu0 %7187 }
  0xe7   :  { %6497 = vmatmul.msk.f32.vlgmr.msrb.gmra.mxu0 %vm127_vm0, %v6493_v7  ;;  %v7193_v20 = vpop.permute.xlu1 %7192  ;;  %v7189_v31 = vunpack.i.l.bf16 %v7188_v15  ;;  %v7190_v37 = vunpack.i.h.bf16 %v7188_v15  ;;  %v7213_v45 = vpop.permute.xlu2 %7212 }
  0xe8   :  { %6505 = vmatmul.msk.f32.vlgmr.msrb.gmra.mxu2 %vm127_vm0, %v6493_v7  ;;  %v7195_v5 = vunpack.i.h.bf16 %v7193_v20  ;;  %v7194_v34 = vunpack.i.l.bf16 %v7193_v20  ;;  %1102 = vmatpush.msrb.mxu0 %v7179_v57  ;;  %v7215_v46 = vunpack.i.h.bf16 %v7213_v45 }
  0xe9   :  { %6501 = vmatmul.msk.f32.vlgmr.msrb.gmra.mxu1 %vm127_vm0, %v6493_v7  ;;  %v1168_v35 = vsel %vm1160_vm7, %v7185_v29, %v7189_v31  ;;  %v1165_v44 = vsel %vm1160_vm7, %v7190_v37, %v7199_v39  ;;  %v8569_v7 = vpop.f32.mrf.mxu3 }
  0xea   :  { %v1003_v22 = vsel %vm999_vm6, %v7170_v61, %v7194_v34  ;;  %v1001_v4 = vsel %vm999_vm6, %v7175_v1, %v7195_v5  ;;  %1103 = vmatpush.msrb.mxu0 %v7180_v56  ;;  %1234 = vmatpush.msrb.mxu2 %v1168_v35  ;;  %v7214_v56 = vunpack.i.l.bf16 %v7213_v45  ;;  %v8586_v1 = vld [vmem:[%s12265_s2 + $0xd8] sm:$0xff] }
  0xeb   :  { %1075 = vmatpush.msra.mxu3 %v1003_v22  ;;  %1205 = vmatpush.msrb.mxu1 %v1167_v33 }
  0xec   :  { %1104 = vmatpush.msrb.mxu0 %v7194_v34  ;;  %1235 = vmatpush.msrb.mxu2 %v1166_v47  ;;  %v1162_v61 = vsel %vm1160_vm7, %v7214_v56, %v7215_v46 }
  0xed   :  { %1076 = vmatpush.msra.mxu3 %v1001_v4  ;;  %1206 = vmatpush.msrb.mxu1 %v1165_v44  ;;  %v6541_v4 = vld [vmem:[%s12265_s2 + $0xe0] sm:$0xff]  ;;  %v6542_v44 = vld [vmem:[%s12265_s2 + $0xe8] sm:$0xff] }
  0xee   :  { %6515 = vmatmul.msk.f32.gmra.mxu3 %vm127_vm0, %v8495_v23  ;;  %1105 = vmatpush.msrb.mxu0 %v7195_v5  ;;  %v7203_v49 = vpop.permute.xlu0 %7202 }
  0xef   :  { %6498 = vmatmul.msk.f32.gmra.mxu0 %vm127_vm0, %v6494_v8  ;;  %1263 = vmatpush.msrb.mxu3 %v7189_v31  ;;  %v7208_v42 = vpop.permute.xlu1 %7207  ;;  %v7205_v50 = vunpack.i.h.bf16 %v7203_v49  ;;  %v7204_v51 = vunpack.i.l.bf16 %v7203_v49 }
  0xf0   :  { %6506 = vmatmul.msk.f32.gmra.mxu2 %vm127_vm0, %v6494_v8  ;;  %v7209_v43 = vunpack.i.l.bf16 %v7208_v42  ;;  %v7210_v55 = vunpack.i.h.bf16 %v7208_v42 }
  0xf1   :  { %6502 = vmatmul.msk.f32.gmra.mxu1 %vm127_vm0, %v6494_v8  ;;  %1264 = vmatpush.msrb.mxu3 %v7200_v32  ;;  %v1163_v60 = vsel %vm1160_vm7, %v7204_v51, %v7205_v50  ;;  %v8596_v21 = vpop.f32.mrf.mxu3  ;;  %v7228_v8 = vpop.permute.xlu2 %7227 }
  0xf2   :  { %v1164_v58 = vsel %vm1160_vm7, %v7205_v50, %v7209_v43  ;;  %1207 = vmatpush.msrb.mxu1 %v1163_v60  ;;  %v1161_v62 = vsel %vm1160_vm7, %v7210_v55, %v7214_v56  ;;  %v7229_v29 = vunpack.i.l.bf16 %v7228_v8  ;;  %v7230_v17 = vunpack.i.h.bf16 %v7228_v8 }
  0xf3   :  { %1265 = vmatpush.msrb.mxu3 %v7209_v43  ;;  %1236 = vmatpush.msrb.mxu2 %v1164_v58 }
  0xf4   :  { %1208 = vmatpush.msrb.mxu1 %v1161_v62  ;;  %v1327_v42 = vsel %vm1321_vm8, %v7229_v29, %v7230_v17  ;;  %v7989_v62 = vmov 0  }
  0xf5   :  { %1266 = vmatpush.msrb.mxu3 %v7215_v46  ;;  %1237 = vmatpush.msrb.mxu2 %v1162_v61 }
  0xf6   :  { %6516 = vmatmul.msk.f32.gmra.mxu3 %vm127_vm0, %v8508_v25  ;;  %7247 = vset.pattern.permute.xlu1 %v7989_v62 }
  0xf7   :  { %6499 = vmatmul.msk.f32.gmra.mxu0 %vm127_vm0, %v6495_v27  ;;  %7246 = vset.pattern.permute.xlu0 %v7989_v62 }
  0xf8   :  { %6507 = vmatmul.msk.f32.gmra.mxu2 %vm127_vm0, %v6495_v27  ;;  %7248 = vset.pattern.permute.xlu2 %v7989_v62 }
  0xf9   :  { %6503 = vmatmul.msk.f32.gmra.mxu1 %vm127_vm0, %v6495_v27  ;;  %v7243_v45 = vpop.permute.xlu2 %7242 }
  0xfa   :  { %v7244_v49 = vunpack.i.l.bf16 %v7243_v45  ;;  %v7245_v55 = vunpack.i.h.bf16 %v7243_v45 }
  0xfc   :  { %v1323_v61 = vsel %vm1321_vm8, %v7244_v49, %v7245_v55 }
  0xfd   :  { %v7223_v27 = vpop.permute.xlu1 %7222 }
  0xfe   :  { %6533 = vmatmul.msk.f32.vlgmr.msra.gmra.mxu3 %vm127_vm0, %v8525_v40  ;;  %v7225_v15 = vunpack.i.h.bf16 %v7223_v27  ;;  %v7224_v31 = vunpack.i.l.bf16 %v7223_v27 }
  0xff   :  { %6500 = vmatmul.msk.f32.gmra.mxu0 %vm127_vm0, %v6496_v41 }
 0x100   :  { %6508 = vmatmul.msk.f32.gmra.mxu2 %vm127_vm0, %v6496_v41 }
 0x101   :  { %6504 = vmatmul.msk.f32.gmra.mxu1 %vm127_vm0, %v6496_v41 }
 0x104   :  { %v8544_v57 = vpop.f32.mrf.mxu0 }
 0x106   :  { %v8547_v59 = vpop.f32.mrf.mxu1  ;;  %6534 = vmatmul.msk.f32.gmra.mxu3 %vm127_vm0, %v8540_v53  ;;  %v7238_v47 = vpop.permute.xlu1 %7237 }
 0x107   :  { %6517 = vmatmul.msk.f32.vlgmr.msra.gmra.mxu0 %vm127_vm0, %v8462_v48  ;;  %v7240_v50 = vunpack.i.h.bf16 %v7238_v47  ;;  %v7239_v51 = vunpack.i.l.bf16 %v7238_v47  ;;  %v6558_v47 = vld [vmem:[%s12265_s2 + $0x108] sm:$0xff] }
 0x108   :  { %6529 = vmatmul.msk.f32.vlgmr.msra.gmra.mxu2 %vm127_vm0, %v8525_v40 }
 0x109   :  { %6521 = vmatmul.msk.f32.vlgmr.msra.gmra.mxu1 %vm127_vm0, %v8462_v48  ;;  %1424 = vmatpush.msra.mxu2 %v7224_v31  ;;  %v1322_v58 = vsel %vm1321_vm8, %v7240_v50, %v7244_v49  ;;  %v1456_v49 = vld [vmem:[%s12266_s3 + $0x18] sm:$0xff] }
 0x10a   :  { %1474 = vperm.xlu0 %7246, %v1456_v49  }
 0x10b   :  { %v8560_v24 = vpop.f32.mrf.mxu2  ;;  %1425 = vmatpush.msra.mxu2 %v7230_v17 }
 0x10c   :  { %v8567_v26 = vpop.f32.mrf.mxu0 }
 0x10d   :  { %1426 = vmatpush.msra.mxu2 %v7239_v51 }
 0x10e   :  { %v8571_v18 = vpop.f32.mrf.mxu1  ;;  %6535 = vmatmul.msk.f32.gmra.mxu3 %vm127_vm0, %v8565_v13 }
 0x10f   :  { %6518 = vmatmul.msk.f32.gmra.mxu0 %vm127_vm0, %v8477_v6  ;;  %1427 = vmatpush.msra.mxu2 %v7245_v55 }
 0x110   :  { %6530 = vmatmul.msk.f32.gmra.mxu2 %vm127_vm0, %v8540_v53 }
 0x111   :  { %6522 = vmatmul.msk.f32.gmra.mxu1 %vm127_vm0, %v8477_v6  ;;  %v7218_v6 = vpop.permute.xlu0 %7217 }
 0x112   :  { %v7220_v5 = vunpack.i.h.bf16 %v7218_v6  ;;  %v7219_v34 = vunpack.i.l.bf16 %v7218_v6 }
 0x113   :  { %v8581_v48 = vpop.f32.mrf.mxu2 }
 0x114   :  { %12332 = vst [vmem:[#allocation15_spill] sm:$0xff] %v8581_v48  ;;  %v8588_v9 = vpop.f32.mrf.mxu0  ;;  %v1328_v30 = vsel %vm1321_vm8, %v7219_v34, %v7220_v5  ;;  %v1329_v33 = vsel %vm1321_vm8, %v7220_v5, %v7224_v31 }
 0x115   :  { %1366 = vmatpush.msra.mxu0 %v1328_v30  ;;  %1395 = vmatpush.msra.mxu1 %v1329_v33 }
 0x116   :  { %v8590_v20 = vpop.f32.mrf.mxu1  ;;  %6536 = vmatmul.msk.f32.gmra.mxu3 %vm127_vm0, %v8586_v1 }
 0x117   :  { %6519 = vmatmul.msk.f32.gmra.mxu0 %vm127_vm0, %v8495_v23  ;;  %1396 = vmatpush.msra.mxu1 %v1327_v42 }
 0x118   :  { %6531 = vmatmul.msk.f32.gmra.mxu2 %vm127_vm0, %v8565_v13 }
 0x119   :  { %6523 = vmatmul.msk.f32.gmra.mxu1 %vm127_vm0, %v8495_v23  ;;  %v1326_v23 = vsel %vm1321_vm8, %v7225_v15, %v7229_v29  ;;  %v7233_v35 = vpop.permute.xlu0 %7232  ;;  %v6544_v29 = vld [vmem:[%s12265_s2 + $0xf8] sm:$0xff]  ;;  %v1453_v15 = vld [vmem:[%s12266_s3] sm:$0xff] }
 0x11a   :  { %1367 = vmatpush.msra.mxu0 %v1326_v23  ;;  %v7235_v37 = vunpack.i.h.bf16 %v7233_v35  ;;  %v7234_v39 = vunpack.i.l.bf16 %v7233_v35 }
 0x11b   :  { %v8602_v22 = vpop.f32.mrf.mxu2 }
 0x11c   :  { %v8607_v14 = vpop.f32.mrf.mxu0  ;;  %v1325_v60 = vsel %vm1321_vm8, %v7235_v37, %v7239_v51 }
 0x11d   :  { %1397 = vmatpush.msra.mxu1 %v1325_v60  ;;  %v1454_v60 = vld [vmem:[%s12266_s3 + $0x8] sm:$0xff] }
 0x11e   :  { %v8610_v32 = vpop.f32.mrf.mxu1  ;;  %6553 = vmatmul.msk.f32.vlgmr.msrb.gmra.mxu3 %vm127_vm0, %v6541_v4  ;;  %1464 = vperm.xlu2 %7248, %v1454_v60  }
 0x11f   :  { %6520 = vmatmul.msk.f32.gmra.mxu0 %vm127_vm0, %v8508_v25  ;;  %1398 = vmatpush.msra.mxu1 %v1323_v61 }
 0x120   :  { %6532 = vmatmul.msk.f32.gmra.mxu2 %vm127_vm0, %v8586_v1 }
 0x121   :  { %6524 = vmatmul.msk.f32.gmra.mxu1 %vm127_vm0, %v8508_v25  ;;  %v8621_v41 = vpop.f32.mrf.mxu3  ;;  %v1324_v25 = vsel %vm1321_vm8, %v7234_v39, %v7235_v37  ;;  %v6557_v39 = vld [vmem:[%s12265_s2 + $0x100] sm:$0xff] }
 0x122   :  { %1368 = vmatpush.msra.mxu0 %v1324_v25 }
 0x123   :  { %v8624_v43 = vpop.f32.mrf.mxu2 }
 0x124   :  { %v8629_v46 = vpop.f32.mrf.mxu0  ;;  %1369 = vmatpush.msra.mxu0 %v1322_v58  ;;  %v6559_v58 = vld [vmem:[%s12265_s2 + $0x110] sm:$0xff] }
 0x126   :  { %v8632_v56 = vpop.f32.mrf.mxu1  ;;  %6554 = vmatmul.msk.f32.gmra.mxu3 %vm127_vm0, %v6542_v44 }
 0x127   :  { %6537 = vmatmul.msk.f32.vlgmr.msrb.gmra.mxu0 %vm127_vm0, %v8525_v40  ;;  %v6543_v40 = vld [vmem:[%s12265_s2 + $0xf0] sm:$0xff] }
 0x128   :  { %6549 = vmatmul.msk.f32.vlgmr.msrb.gmra.mxu2 %vm127_vm0, %v6541_v4 }
 0x129   :  { %6545 = vmatmul.msk.f32.vlgmr.msrb.gmra.mxu1 %vm127_vm0, %v6541_v4  ;;  %v8644_v5 = vpop.f32.mrf.mxu3  ;;  %v1455_v4 = vld [vmem:[%s12266_s3 + $0x10] sm:$0xff] }
 0x12a   :  { %1469 = vperm.xlu1 %7247, %v1455_v4   ;;  %v6560_v4 = vld [vmem:[%s12265_s2 + $0x118] sm:$0xff] }
 0x12b   :  { %v8642_v6 = vpop.f32.mrf.mxu2 }
 0x12c   :  { %v8649_v34 = vpop.f32.mrf.mxu0 }
 0x12e   :  { %v8654_v8 = vpop.f32.mrf.mxu1  ;;  %6555 = vmatmul.msk.f32.gmra.mxu3 %vm127_vm0, %v6543_v40 }
 0x12f   :  { %12333 = vst [vmem:[#allocation16_spill] sm:$0xff] %v8654_v8  ;;  %6538 = vmatmul.msk.f32.gmra.mxu0 %vm127_vm0, %v8540_v53 }
 0x130   :  { %6550 = vmatmul.msk.f32.gmra.mxu2 %vm127_vm0, %v6542_v44 }
 0x131   :  { %6546 = vmatmul.msk.f32.gmra.mxu1 %vm127_vm0, %v6542_v44  ;;  %v8671_v31 = vpop.f32.mrf.mxu3 }
 0x132   :  { %1459 = vperm.xlu1 %7247, %v1453_v15  }
 0x133   :  { %v8661_v27 = vpop.f32.mrf.mxu2 }
 0x134   :  { %v8666_v30 = vpop.f32.mrf.mxu0 }
 0x136   :  { %v8673_v53 = vpop.f32.mrf.mxu1  ;;  %6556 = vmatmul.msk.f32.gmra.mxu3 %vm127_vm0, %v6544_v29 }
 0x137   :  { %6539 = vmatmul.msk.f32.gmra.mxu0 %vm127_vm0, %v8565_v13 }
 0x138   :  { %6551 = vmatmul.msk.f32.gmra.mxu2 %vm127_vm0, %v6543_v40 }
 0x139   :  { %6547 = vmatmul.msk.f32.gmra.mxu1 %vm127_vm0, %v6543_v40  ;;  %v8686_v35 = vpop.f32.mrf.mxu3 }
 0x13b   :  { %v8680_v17 = vpop.f32.mrf.mxu2 }
 0x13c   :  { %v8682_v23 = vpop.f32.mrf.mxu0 }
 0x13e   :  { %v8684_v33 = vpop.f32.mrf.mxu1 }
 0x13f   :  { %6540 = vmatmul.msk.f32.gmra.mxu0 %vm127_vm0, %v8586_v1 }
 0x140   :  { %6552 = vmatmul.msk.f32.gmra.mxu2 %vm127_vm0, %v6544_v29 }
 0x141   :  { %6548 = vmatmul.msk.f32.gmra.mxu1 %vm127_vm0, %v6544_v29  ;;  %v8703_v44 = vpop.f32.mrf.mxu3 }
 0x142   :  { %12335 = vst [vmem:[#allocation18_spill] sm:$0xff] %v8703_v44 }
 0x143   :  { %v8692_v13 = vpop.f32.mrf.mxu2 }
 0x144   :  { %v8694_v37 = vpop.f32.mrf.mxu0 }
 0x145   :  { %12334 = vst [vmem:[#allocation17_spill] sm:$0xff] %v8694_v37 }
 0x146   :  { %v8699_v42 = vpop.f32.mrf.mxu1 }
 0x147   :  { %6561 = vmatmul.msk.f32.vlgmr.msra.gmra.mxu0 %vm127_vm0, %v6557_v39 }
 0x148   :  { %6569 = vmatmul.msk.f32.vlgmr.msra.gmra.mxu2 %vm127_vm0, %v6557_v39 }
 0x149   :  { %6565 = vmatmul.msk.f32.vlgmr.msra.gmra.mxu1 %vm127_vm0, %v6557_v39  ;;  %v8721_v50 = vpop.f32.mrf.mxu3 }
 0x14a   :  { %12338 = vst [vmem:[#allocation21_spill] sm:$0xff] %v8721_v50 }
 0x14b   :  { %v8706_v1 = vpop.f32.mrf.mxu2 }
 0x14c   :  { %12336 = vst [vmem:[#allocation19_spill] sm:$0xff] %v8706_v1  ;;  %v8708_v45 = vpop.f32.mrf.mxu0 }
 0x14d   :  { %12337 = vst [vmem:[#allocation20_spill] sm:$0xff] %v8708_v45 }
 0x14e   :  { %v8716_v25 = vpop.f32.mrf.mxu1 }
 0x14f   :  { %6562 = vmatmul.msk.f32.gmra.mxu0 %vm127_vm0, %v6558_v47 }
 0x150   :  { %6570 = vmatmul.msk.f32.gmra.mxu2 %vm127_vm0, %v6558_v47 }
 0x151   :  { %6566 = vmatmul.msk.f32.gmra.mxu1 %vm127_vm0, %v6558_v47  ;;  %v8745_v29 = vpop.f32.mrf.mxu3 }
 0x152   :  { %12340 = vst [vmem:[#allocation23_spill] sm:$0xff] %v8745_v29 }
 0x153   :  { %v8723_v51 = vpop.f32.mrf.mxu2 }
 0x154   :  { %v8725_v55 = vpop.f32.mrf.mxu0 }
 0x156   :  { %v8733_v61 = vpop.f32.mrf.mxu1 }
 0x157   :  { %6563 = vmatmul.msk.f32.gmra.mxu0 %vm127_vm0, %v6559_v58 }
 0x158   :  { %6571 = vmatmul.msk.f32.gmra.mxu2 %vm127_vm0, %v6559_v58 }
 0x159   :  { %6567 = vmatmul.msk.f32.gmra.mxu1 %vm127_vm0, %v6559_v58  ;;  %v8756_v58 = vpop.f32.mrf.mxu3 }
 0x15a   :  { %12343 = vst [vmem:[#allocation26_spill] sm:$0xff] %v8756_v58 }
 0x15b   :  { %v8738_v62 = vpop.f32.mrf.mxu2 }
 0x15c   :  { %v8740_v40 = vpop.f32.mrf.mxu0 }
 0x15d   :  { %12339 = vst [vmem:[#allocation22_spill] sm:$0xff] %v8740_v40 }
 0x15e   :  { %v8747_v15 = vpop.f32.mrf.mxu1 }
 0x15f   :  { %6564 = vmatmul.msk.f32.gmra.mxu0 %vm127_vm0, %v6560_v4 }
 0x160   :  { %6572 = vmatmul.msk.f32.gmra.mxu2 %vm127_vm0, %v6560_v4 }
 0x161   :  { %6568 = vmatmul.msk.f32.gmra.mxu1 %vm127_vm0, %v6560_v4  ;;  %v888_v63 = vpop.f32.mrf.mxu3 }
 0x163   :  { %v8752_v39 = vpop.f32.mrf.mxu2 }
 0x164   :  { %12341 = vst [vmem:[#allocation24_spill] sm:$0xff] %v8752_v39  ;;  %v727_v47 = vpop.f32.mrf.mxu0 }
 0x166   :  { %v8754_v49 = vpop.f32.mrf.mxu1 }
 0x167   :  { %12342 = vst [vmem:[#allocation25_spill] sm:$0xff] %v8754_v49 }
 0x169   :  { %v891_v52 = vpop.f32.mrf.mxu3 }
 0x16b   :  { %v8758_v60 = vpop.f32.mrf.mxu2 }
 0x16c   :  { %12344 = vst [vmem:[#allocation27_spill] sm:$0xff] %v8758_v60  ;;  %v730_v38 = vpop.f32.mrf.mxu0 }
 0x16e   :  { %v759_v16 = vpop.f32.mrf.mxu1 }
 0x171   :  { %v8776_v19 = vpop.f32.mrf.mxu3 }
 0x173   :  { %v8760_v3 = vpop.f32.mrf.mxu2 }
 0x174   :  { %12345 = vst [vmem:[#allocation28_spill] sm:$0xff] %v8760_v3  ;;  %v8762_v2 = vpop.f32.mrf.mxu0 }
 0x176   :  { %v8764_v28 = vpop.f32.mrf.mxu1 }
 0x179   :  { %v8782_v58 = vpop.f32.mrf.mxu3 }
 0x17a   :  { %12353 = vst [vmem:[#allocation36_spill] sm:$0xff] %v8782_v58 }
 0x17b   :  { %v8766_v4 = vpop.f32.mrf.mxu2 }
 0x17c   :  { %12346 = vst [vmem:[#allocation29_spill] sm:$0xff] %v8766_v4  ;;  %v8768_v10 = vpop.f32.mrf.mxu0 }
 0x17d   :  { %12347 = vst [vmem:[#allocation30_spill] sm:$0xff] %v8768_v10 }
 0x17e   :  { %v8770_v11 = vpop.f32.mrf.mxu1 }
 0x17f   :  { %12348 = vst [vmem:[#allocation31_spill] sm:$0xff] %v8770_v11 }
 0x181   :  { %v8788_v37 = vpop.f32.mrf.mxu3 }
 0x182   :  { %12355 = vst [vmem:[#allocation38_spill] sm:$0xff] %v8788_v37 }
 0x183   :  { %v8772_v0 = vpop.f32.mrf.mxu2 }
 0x184   :  { %12349 = vst [vmem:[#allocation32_spill] sm:$0xff] %v8772_v0  ;;  %v8774_v12 = vpop.f32.mrf.mxu0 }
 0x185   :  { %12350 = vst [vmem:[#allocation33_spill] sm:$0xff] %v8774_v12 }
 0x186   :  { %v8778_v60 = vpop.f32.mrf.mxu1 }
 0x187   :  { %12351 = vst [vmem:[#allocation34_spill] sm:$0xff] %v8778_v60 }
 0x189   :  { %v1081_v60 = vpop.f32.mrf.mxu3 }
 0x18b   :  { %v1049_v3 = vpop.f32.mrf.mxu2 }
 0x18c   :  { %v920_v50 = vpop.f32.mrf.mxu0 }
 0x18e   :  { %v8780_v44 = vpop.f32.mrf.mxu1 }
 0x18f   :  { %12352 = vst [vmem:[#allocation35_spill] sm:$0xff] %v8780_v44 }
 0x191   :  { %v8804_v8 = vpop.f32.mrf.mxu3 }
 0x192   :  { %12362 = vst [vmem:[#allocation45_spill] sm:$0xff] %v8804_v8 }
 0x193   :  { %v1052_v45 = vpop.f32.mrf.mxu2 }
 0x194   :  { %v8784_v4 = vpop.f32.mrf.mxu0 }
 0x196   :  { %v8786_v49 = vpop.f32.mrf.mxu1 }
 0x197   :  { %12354 = vst [vmem:[#allocation37_spill] sm:$0xff] %v8786_v49 }
 0x199   :  { %v8813_v10 = vpop.f32.mrf.mxu3 }
 0x19a   :  { %12364 = vst [vmem:[#allocation47_spill] sm:$0xff] %v8813_v10 }
 0x19b   :  { %v8790_v0 = vpop.f32.mrf.mxu2 }
 0x19c   :  { %v8792_v12 = vpop.f32.mrf.mxu0 }
 0x19d   :  { %12356 = vst [vmem:[#allocation39_spill] sm:$0xff] %v8792_v12  ;;  %v257_v12 = vadd.f32 %v8520_v36, %v8544_v57  ;;  %v289_v36 = vadd.f32 %v8649_v34, %v8571_v18  ;;  %v292_v18 = vadd.f32 %v8666_v30, %v8590_v20 }
 0x19e   :  { %v8794_v11 = vpop.f32.mrf.mxu1 }
 0x19f   :  { %12357 = vst [vmem:[#allocation40_spill] sm:$0xff] %v8794_v11  ;;  %v482_v20 = vadd.f32 %v8671_v31, %v292_v18  ;;  %v295_v31 = vadd.f32 %v8682_v23, %v8610_v32 }
 0x1a3   :  { %v8796_v40 = vpop.f32.mrf.mxu2 }
 0x1a4   :  { %12358 = vst [vmem:[#allocation41_spill] sm:$0xff] %v8796_v40  ;;  %v8798_v29 = vpop.f32.mrf.mxu0  ;;  %v475_v40 = vadd.f32 %v8642_v6, %v257_v12 }
 0x1a5   :  { %12359 = vst [vmem:[#allocation42_spill] sm:$0xff] %v8798_v29 }
 0x1a6   :  { %v1210_v44 = vpop.f32.mrf.mxu1  ;;  %v636_v29 = vadd.f32 %v8699_v42, %v475_v40  ;;  %v479_v42 = vadd.f32 %v8644_v5, %v289_v36 }
 0x1ab   :  { %v8800_v58 = vpop.f32.mrf.mxu2 }
 0x1ac   :  { %12360 = vst [vmem:[#allocation43_spill] sm:$0xff] %v8800_v58  ;;  %v8802_v1 = vpop.f32.mrf.mxu0  ;;  %v8816_v58 = vpop.permute.xlu1 %1469 }
 0x1ad   :  { %12361 = vst [vmem:[#allocation44_spill] sm:$0xff] %v8802_v1  ;;  %v797_v1 = vadd.f32 %v727_v47, %v636_v29  ;;  %v8831_v47 = vpop.f32.mrf.mxu3 }
 0x1ae   :  { %v1213_v49 = vpop.f32.mrf.mxu1  ;;  %12365 = vst [vmem:[#allocation48_spill] sm:$0xff] %v8816_v58 }
 0x1af   :  { %v958_v6 = vadd.f32 %v888_v63, %v797_v1 }
 0x1b1   :  { %v1119_v29 = vadd.f32 %v1049_v3, %v958_v6  ;;  %v8845_v3 = vld [vmem:[%s12267_s1] sm:$0x7]  ;;  %s7990_s1 = smov 19  }
 0x1b3   :  { %v1242_v37 = vpop.f32.mrf.mxu2  ;;  %v1280_v58 = vadd.f32 %v1210_v44, %v1119_v29 }
 0x1b4   :  { %v8806_v48 = vpop.f32.mrf.mxu0 }
 0x1b5   :  { %12363 = vst [vmem:[#allocation46_spill] sm:$0xff] %v8806_v48  ;;  %v260_v48 = vadd.f32 %v8542_v54, %v8567_v26  ;;  %v263_v26 = vadd.f32 %v8569_v7, %v8588_v9  ;;  %v8852_v9 = vperm.slane %v8845_v3, 0  ;;  %v8858_v36 = vpop.f32.mrf.mxu3 }
 0x1b6   :  { %v8810_v11 = vpop.f32.mrf.mxu1 }
 0x1b7   :  { %v478_v12 = vadd.f32 %v8661_v27, %v260_v48  ;;  %v8840_v48 = vpop.permute.xlu1 %1459 }
 0x1b9   :  { %v639_v40 = vadd.f32 %v8716_v25, %v478_v12  ;;  %v321_v12 = vadd.f32 %v8673_v53, %v8602_v22 }
 0x1bb   :  { %v8818_v39 = vpop.f32.mrf.mxu2  ;;  %v800_v10 = vadd.f32 %v730_v38, %v639_v40  ;;  %v481_v38 = vadd.f32 %v8680_v17, %v263_v26  ;;  %v12367_v40 = vld [vmem:[#allocation24_spill] sm:$0xff]  ;;  %v12368_v26 = vld [vmem:[#allocation30_spill] sm:$0xff] }
 0x1bc   :  { %v8820_v8 = vpop.f32.mrf.mxu0 }
 0x1bd   :  { %12366 = vst [vmem:[#allocation49_spill] sm:$0xff] %v8820_v8  ;;  %v640_v8 = vadd.f32 %v8723_v51, %v479_v42  ;;  %v961_v44 = vadd.f32 %v891_v52, %v800_v10  ;;  %v642_v30 = vadd.f32 %v8733_v61, %v481_v38  ;;  %v12374_v38 = vld [vmem:[#allocation23_spill] sm:$0xff] }
 0x1be   :  { %v8826_v57 = vpop.f32.mrf.mxu1 }
 0x1bf   :  { %v801_v5 = vadd.f32 %v759_v16, %v640_v8  ;;  %v1122_v25 = vadd.f32 %v1052_v45, %v961_v44  ;;  %v643_v16 = vadd.f32 %v8738_v62, %v482_v20  ;;  %v803_v8 = vadd.f32 %v8762_v2, %v642_v30  ;;  %v8868_v62 = vpop.permute.xlu2 %1464  ;;  %v12376_v30 = vld [vmem:[#allocation31_spill] sm:$0xff] }
 0x1c0   :  { %v286_v2 = vadd.f32 %v8629_v46, %v8547_v59  ;;  %v315_v59 = vadd.f32 %v8632_v56, %v8560_v24  ;;  %v485_v46 = vadd.f32 %v8686_v35, %v295_v31  ;;  %v12369_v56 = vld [vmem:[#allocation45_spill] sm:$0xff] }
 0x1c1   :  { %v962_v1 = vadd.f32 %v920_v50, %v801_v5  ;;  %v266_v50 = vadd.f32 %v8596_v21, %v8607_v14  ;;  %v804_v45 = vadd.f32 %v8764_v28, %v643_v16  ;;  %v964_v28 = vadd.f32 %v8776_v19, %v803_v8  ;;  %v12372_v5 = vld [vmem:[#allocation16_spill] sm:$0xff]  ;;  %v12379_v31 = vld [vmem:[#allocation29_spill] sm:$0xff] }
 0x1c2   :  { %v476_v22 = vadd.f32 %v8621_v41, %v286_v2  ;;  %v324_v19 = vadd.f32 %v8684_v33, %v8624_v43  ;;  %v646_v29 = vadd.f32 %v12367_v40, %v485_v46  ;;  %v12373_v43 = vld [vmem:[#allocation19_spill] sm:$0xff]  ;;  %v12385_v46 = vld [vmem:[#allocation33_spill] sm:$0xff]  ;;  %v12388_v40 = vld [vmem:[#allocation18_spill] sm:$0xff] }
 0x1c3   :  { %v8834_v54 = vpop.f32.mrf.mxu2  ;;  %v1123_v17 = vadd.f32 %v1081_v60, %v962_v1  ;;  %v484_v21 = vadd.f32 %v8692_v13, %v266_v50  ;;  %v965_v14 = vadd.f32 %v8784_v4, %v804_v45  ;;  %v1125_v53 = vadd.f32 %v8790_v0, %v964_v28  ;;  %v12375_v1 = vld [vmem:[#allocation22_spill] sm:$0xff] }
 0x1c4   :  { %v1371_v63 = vpop.f32.mrf.mxu0  ;;  %v8897_v0 = vperm.slane %v8845_v3, 1  ;;  %v637_v33 = vadd.f32 %v12373_v43, %v476_v22 }
 0x1c5   :  { %v1441_v34 = vadd.f32 %v1371_v63, %v1280_v58  ;;  %v1283_v58 = vadd.f32 %v1213_v49, %v1122_v25  ;;  %v1284_v49 = vadd.f32 %v1242_v37, %v1123_v17  ;;  %v483_v37 = vadd.f32 %v8725_v55, %v321_v12  ;;  %v12371_v63 = vld [vmem:[#allocation15_spill] sm:$0xff]  ;;  %v1274_v25 = vpop.f32.mrf.mxu3  ;;  %v12377_v17 = vld [vmem:[#allocation17_spill] sm:$0xff] }
 0x1c6   :  { %v8848_v27 = vpop.f32.mrf.mxu1  ;;  %v645_v42 = vadd.f32 %v8747_v15, %v484_v21  ;;  %v1126_v35 = vadd.f32 %v12369_v56, %v965_v14  ;;  %v1286_v55 = vadd.f32 %v8810_v11, %v1125_v53  ;;  %12370 = vst [vmem:[#allocation24_spill] sm:$0xff] %v8897_v0  ;;  %v807_v11 = vadd.f32 %v12376_v30, %v646_v29  ;;  %v12382_v21 = vld [vmem:[#allocation48_spill] sm:$0xff]  ;;  %v12387_v53 = vld [vmem:[#allocation41_spill] sm:$0xff]  ;;  %v12390_v56 = vld [vmem:[#allocation47_spill] sm:$0xff] }
 0x1c7   :  { %v1477_v7 = vadd.f32 %v8840_v48, %v1441_v34  ;;  %v318_v34 = vadd.f32 %v12372_v5, %v12371_v63  ;;  %v644_v44 = vadd.f32 %v12374_v38, %v483_v37  ;;  %v7991_v37 = vmov 0.0  }
 0x1c8   :  { %v806_v24 = vadd.f32 %v12368_v26, %v645_v42  ;;  %36 = vst [vmem:[#allocation2] sm:$0xff] %v7991_v37  ;;  %v12386_v42 = vld [vmem:[#allocation37_spill] sm:$0xff]  ;;  %v12389_v26 = vld [vmem:[#allocation32_spill] sm:$0xff] }
 0x1c9   :  { %v1489_v51 = vmax.f32 %v1477_v7, 0.0  ;;  %v486_v7 = vadd.f32 %v12375_v1, %v324_v19  ;;  %v805_v45 = vadd.f32 %v12379_v31, %v644_v44  ;;  %40 = vst [vmem:[#allocation2 + $0x18] sm:$0xff] %v7991_v37  ;;  %v12394_v44 = vld [vmem:[#allocation38_spill] sm:$0xff]  ;;  %v12398_v31 = vld [vmem:[#allocation43_spill] sm:$0xff] }
 0x1ca   :  { %43 = vst [vmem:[#allocation2 + $0x30] sm:$0xff] %v7991_v37 }
 0x1cb   :  { %v8860_v52 = vpop.f32.mrf.mxu2  ;;  %v1508_v10 = vmul.f32 %v8852_v9, %v1489_v51  ;;  %v1287_v51 = vadd.f32 %v8818_v39, %v1126_v35  ;;  %v12383_v39 = vld [vmem:[#allocation20_spill] sm:$0xff]  ;;  %v966_v22 = vadd.f32 %v12386_v42, %v805_v45  ;;  %46 = vst [vmem:[#allocation2 + $0x48] sm:$0xff] %v7991_v37 }
 0x1cc   :  { %v1374_v61 = vpop.f32.mrf.mxu0  ;;  %v480_v28 = vadd.f32 %v12383_v39, %v318_v34  ;;  %v12392_v34 = vld [vmem:[#allocation21_spill] sm:$0xff]  ;;  %45 = vst.msk [vmem:[#allocation2 + $0x40] sm:$0xff] %vm38_vm10, %v7991_v37 }
 0x1cd   :  { %v1444_v60 = vadd.f32 %v1374_v61, %v1283_v58  ;;  %1532 = vrot.lane.b32.xlu2 %v1508_v10, %s7990_s1  ;;  %v477_v58 = vadd.f32 %v12377_v17, %v315_v59  ;;  %v12378_v10 = vld [vmem:[#allocation25_spill] sm:$0xff]  ;;  %v12380_v61 = vld [vmem:[#allocation36_spill] sm:$0xff]  ;;  %39 = vst.msk [vmem:[#allocation2 + $0x10] sm:$0xff] %vm38_vm10, %v7991_v37 }
 0x1ce   :  { %v1403_v32 = vpop.f32.mrf.mxu1  ;;  %v798_v50 = vadd.f32 %v12378_v10, %v637_v33  ;;  %v967_v2 = vadd.f32 %v12380_v61, %v806_v24  ;;  %v641_v43 = vadd.f32 %v12392_v34, %v480_v28  ;;  %v12393_v33 = vld [vmem:[#allocation27_spill] sm:$0xff]  ;;  %v12396_v17 = vld [vmem:[#allocation28_spill] sm:$0xff]  ;;  %v12397_v10 = vld [vmem:[#allocation34_spill] sm:$0xff]  ;;  %42 = vst.msk [vmem:[#allocation2 + $0x28] sm:$0xff] %vm38_vm10, %v7991_v37 }
 0x1cf   :  { %v1480_v23 = vadd.f32 %v8868_v62, %v1444_v60  ;;  %v1445_v6 = vadd.f32 %v1403_v32, %v1284_v49  ;;  %v12381_v60 = vld [vmem:[#allocation39_spill] sm:$0xff]  ;;  %v638_v29 = vadd.f32 %v12388_v40, %v477_v58  ;;  %v12399_v61 = vld [vmem:[#allocation49_spill] sm:$0xff]  ;;  %v12401_v28 = vld [vmem:[#allocation42_spill] sm:$0xff]  ;;  %48 = vst.msk [vmem:[#allocation2 + $0x58] sm:$0xff] %vm38_vm10, %v7991_v37 }
 0x1d0   :  { %v968_v12 = vadd.f32 %v12381_v60, %v807_v11  ;;  %v959_v59 = vadd.f32 %v12385_v46, %v798_v50  ;;  %v1475_v11 = vpop.permute.xlu0 %1474  ;;  %v802_v58 = vadd.f32 %v12396_v17, %v641_v43 }
 0x1d1   :  { %v1481_v13 = vadd.f32 %v8868_v62, %v1445_v6  ;;  %v1492_v4 = vmax.f32 %v1480_v23, 0.0  ;;  %v12384_v23 = vld [vmem:[#allocation26_spill] sm:$0xff]  ;;  %v799_v38 = vadd.f32 %v12393_v33, %v638_v29 }
 0x1d2   :  { %v647_v6 = vadd.f32 %v12384_v23, %v486_v7  ;;  %v1129_v35 = vadd.f32 %v12390_v56, %v968_v12  ;;  %v1120_v1 = vadd.f32 %v12394_v44, %v959_v59  ;;  %v12395_v7 = vld [vmem:[#allocation40_spill] sm:$0xff]  ;;  %v1277_v12 = vpop.f32.mrf.mxu3 }
 0x1d3   :  { %v1493_v18 = vmax.f32 %v1481_v13, 0.0  ;;  %v8893_v15 = vpop.f32.mrf.mxu2  ;;  %v1511_v41 = vmul.f32 %v8852_v9, %v1492_v4  ;;  %v1128_v13 = vadd.f32 %v12387_v53, %v967_v2  ;;  %v960_v50 = vadd.f32 %v12397_v10, %v799_v38  ;;  %v12402_v53 = vld [vmem:[#allocation44_spill] sm:$0xff] }
 0x1d4   :  { %v1377_v20 = vpop.f32.mrf.mxu0  ;;  %v808_v24 = vadd.f32 %v12389_v26, %v647_v6  ;;  %v1281_v45 = vadd.f32 %v12398_v31, %v1120_v1 }
 0x1d5   :  { %v1447_v16 = vadd.f32 %v1377_v20, %v1286_v55  ;;  %1538 = vrot.lane.b32.xlu0 %v1511_v41, %s7990_s1  ;;  %v1512_v8 = vmul.f32 %v8897_v0, %v1493_v18  ;;  %v12391_v55 = vld [vmem:[#allocation46_spill] sm:$0xff]  ;;  %v1289_v41 = vadd.f32 %v8826_v57, %v1128_v13  ;;  %v1121_v23 = vadd.f32 %v12401_v28, %v960_v50 }
 0x1d6   :  { %v1406_v49 = vpop.f32.mrf.mxu1  ;;  %v1127_v18 = vadd.f32 %v12391_v55, %v966_v22  ;;  %v969_v20 = vadd.f32 %v12395_v7, %v808_v24  ;;  %v1442_v6 = vadd.f32 %v8848_v27, %v1281_v45 }
 0x1d7   :  { %v1483_v14 = vadd.f32 %v12382_v21, %v1447_v16  ;;  %v1448_v32 = vadd.f32 %v1406_v49, %v1287_v51  ;;  %1540 = vrot.lane.b32.xlu1 %v1512_v8, %s7990_s1  ;;  %v1290_v51 = vadd.f32 %v8834_v54, %v1129_v35  ;;  %v12400_v54 = vld [vmem:[#allocation35_spill] sm:$0xff] }
 0x1d8   :  { %v1130_v2 = vadd.f32 %v12399_v61, %v969_v20  ;;  %v1288_v60 = vadd.f32 %v1274_v25, %v1127_v18  ;;  %v963_v39 = vadd.f32 %v12400_v54, %v802_v58  ;;  %v1478_v29 = vadd.f32 %v8840_v48, %v1442_v6 }
 0x1d9   :  { %v1495_v4 = vmax.f32 %v1483_v14, 0.0  ;;  %v1484_v19 = vadd.f32 %v12382_v21, %v1448_v32 }
 0x1da   :  { %v1291_v22 = vadd.f32 %v1277_v12, %v1130_v2  ;;  %v1124_v13 = vadd.f32 %v12402_v53, %v963_v39 }
 0x1db   :  { %v1496_v63 = vmax.f32 %v1484_v19, 0.0  ;;  %v1435_v5 = vpop.f32.mrf.mxu2  ;;  %v1514_v8 = vmul.f32 %v8852_v9, %v1495_v4  ;;  %v1282_v19 = vadd.f32 %v8831_v47, %v1121_v23  ;;  %v8957_v47 = vperm.slane %v8845_v3, 2 }
 0x1dc   :  { %v1380_v30 = vpop.f32.mrf.mxu0  ;;  %v1449_v46 = vadd.f32 %v1435_v5, %v1288_v60  ;;  %v1285_v55 = vadd.f32 %v8858_v36, %v1124_v13 }
 0x1dd   :  { %v1450_v16 = vadd.f32 %v1380_v30, %v1289_v41  ;;  %v1515_v57 = vmul.f32 %v8897_v0, %v1496_v63  ;;  %v1443_v27 = vadd.f32 %v8860_v52, %v1282_v19  ;;  %12403 = vst [vmem:[#allocation30_spill] sm:$0xff] %v8957_v47  ;;  %v1490_v41 = vmax.f32 %v1478_v29, 0.0 }
 0x1de   :  { %v1409_v49 = vpop.f32.mrf.mxu1  ;;  %v1485_v26 = vadd.f32 %v12382_v21, %v1449_v46  ;;  %v1446_v21 = vadd.f32 %v8893_v15, %v1285_v55 }
 0x1df   :  { %v1486_v14 = vadd.f32 %v1475_v11, %v1450_v16  ;;  %v1451_v32 = vadd.f32 %v1409_v49, %v1290_v51  ;;  %1544 = vrot.lane.b32.xlu1 %v1514_v8, %s7990_s1  ;;  %1546 = vrot.lane.b32.xlu2 %v1515_v57, %s7990_s1  ;;  %v1479_v5 = vadd.f32 %v8840_v48, %v1443_v27 }
 0x1e0   :  { %v1497_v63 = vmax.f32 %v1485_v26, 0.0  ;;  %v1482_v36 = vadd.f32 %v8868_v62, %v1446_v21  ;;  %v1509_v52 = vmul.f32 %v8897_v0, %v1490_v41  ;;  %v9115_v41 = vld [vmem:[%s12268_s4 + $0x8] sm:$0xff] }
 0x1e1   :  { %v1487_v59 = vadd.f32 %v1475_v11, %v1451_v32  ;;  %v1498_v42 = vmax.f32 %v1486_v14, 0.0  ;;  %v1491_v33 = vmax.f32 %v1479_v5, 0.0 }
 0x1e2   :  { %v1516_v43 = vmul.f32 %v8957_v47, %v1497_v63  ;;  %v1494_v3 = vmax.f32 %v1482_v36, 0.0  ;;  %v9130_v63 = vld [vmem:[%s12268_s4 + $0x10] sm:$0xff] }
 0x1e3   :  { %v1499_v25 = vmax.f32 %v1487_v59, 0.0  ;;  %v1438_v4 = vpop.f32.mrf.mxu2  ;;  %v1517_v56 = vmul.f32 %v8852_v9, %v1498_v42  ;;  %v1510_v15 = vmul.f32 %v8957_v47, %v1491_v33 }
 0x1e4   :  { %v1452_v40 = vadd.f32 %v1438_v4, %v1291_v22  ;;  %v1513_v48 = vmul.f32 %v8957_v47, %v1494_v3 }
 0x1e5   :  { %v1518_v24 = vmul.f32 %v8897_v0, %v1499_v25 }
 0x1e6   :  { %v1488_v35 = vadd.f32 %v1475_v11, %v1452_v40 }
 0x1e7   :  { %1552 = vrot.lane.b32.xlu0 %v1518_v24, %s7990_s1  ;;  %1550 = vrot.lane.b32.xlu2 %v1517_v56, %s7990_s1  ;;  %v9098_v56 = vld [vmem:[%s12268_s4] sm:$0xff] }
 0x1e8   :  { %v1500_v18 = vmax.f32 %v1488_v35, 0.0 }
 0x1ea   :  { %v1519_v34 = vmul.f32 %v8957_v47, %v1500_v18 }
 0x1ec   :  { %1554 = vrot.lane.b32.xlu1 %v1519_v34, %s7990_s1 }
 0x1ef   :  { %1534 = vrot.lane.b32.xlu0 %v1509_v52, %s7990_s1  ;;  %1548 = vrot.lane.b32.xlu2 %v1516_v43, %s7990_s1 }
 0x1f4   :  { %1536 = vrot.lane.b32.xlu1 %v1510_v15, %s7990_s1 }
 0x1f7   :  { %1542 = vrot.lane.b32.xlu0 %v1513_v48, %s7990_s1 }
 0x227   :  { %v1533_v62 = vpop.permute.xlu2 %1532 }
 0x228   :  { %1578 = vst.msk [vmem:[#allocation2] sm:$0xff] %vm1577_vm9, %v1533_v62 }
 0x22f   :  { %v1591_v45 = vld [vmem:[#allocation2] sm:$0xff] }
 0x239   :  { %v1547_v38 = vpop.permute.xlu2 %1546 }
 0x241   :  { %v1551_v44 = vpop.permute.xlu2 %1550 }
 0x242   :  { %1588 = vst.msk [vmem:[#allocation2 + $0x48] sm:$0xff] %vm1577_vm9, %v1551_v44 }
 0x247   :  { %v1539_v1 = vpop.permute.xlu0 %1538 }
 0x248   :  { %1582 = vst.msk [vmem:[#allocation2 + $0x18] sm:$0xff] %vm1577_vm9, %v1539_v1 }
 0x249   :  { %v1541_v7 = vpop.permute.xlu1 %1540  ;;  %v1549_v20 = vpop.permute.xlu2 %1548  ;;  %v1600_v30 = vld [vmem:[#allocation2 + $0x48] sm:$0xff] }
 0x24a   :  { %v1562_v11 = vsel %vm1556_vm11, %v1547_v38, %v1549_v20  ;;  %1791 = vmatpush.msrb.mxu2 %v1600_v30  ;;  %v8982_v51 = vsel %vm1556_vm11, %v1539_v1, %v1541_v7 }
 0x24b   :  { %1587 = vst.msk [vmem:[#allocation2 + $0x40] sm:$0xff] %vm1580_vm12, %v1562_v11 }
 0x24f   :  { %v1594_v37 = vld [vmem:[#allocation2 + $0x18] sm:$0xff] }
 0x250   :  { %v8985_v16 = vpack.i.bf16 %v8982_v51, %v1594_v37  ;;  %v7309_v19 = vpack.i.bf16 %v1591_v45, %v1594_v37 }
 0x251   :  { %v1545_v8 = vpop.permute.xlu1 %1544 }
 0x252   :  { %1585 = vst.msk [vmem:[#allocation2 + $0x30] sm:$0xff] %vm1577_vm9, %v1545_v8  ;;  %7250 = vrot.lane.b32.xlu1 %v8985_v16, %s7981_s25  ;;  %v8991_v57 = vsel %vm1556_vm11, %v1545_v8, %v1547_v38  ;;  %v9017_v54 = vld [vmem:[#allocation2 + $0x40] sm:$0xff] }
 0x253   :  { %v7279_v59 = vpack.i.bf16 %v9017_v54, %v8991_v57 }
 0x259   :  { %v1553_v17 = vpop.permute.xlu0 %1552  ;;  %v1597_v58 = vld [vmem:[#allocation2 + $0x30] sm:$0xff] }
 0x25a   :  { %v8994_v10 = vsel %vm1556_vm11, %v1551_v44, %v1553_v17  ;;  %1792 = vmatpush.msrb.mxu2 %v1597_v58  ;;  %v8997_v50 = vpack.i.bf16 %v8991_v57, %v1597_v58 }
 0x25b   :  { %v9000_v31 = vpack.i.bf16 %v8994_v10, %v1600_v30 }
 0x25c   :  { %1793 = vmatpush.msrb.mxu2 %v1594_v37  ;;  %7255 = vrot.lane.b32.xlu0 %v8997_v50, %s7981_s25  ;;  %v9181_v37 = vld [vmem:[%s12264_s0 + $0xa8] sm:$0xff] }
 0x25d   :  { %7260 = vrot.lane.b32.xlu2 %v9000_v31, %s7981_s25 }
 0x25e   :  { %v1555_v61 = vpop.permute.xlu1 %1554  ;;  %1794 = vmatpush.msrb.mxu2 %v1591_v45 }
 0x25f   :  { %v1564_v2 = vsel %vm1556_vm11, %v1553_v17, %v1555_v61  ;;  %6589 = vmatmul.msk.f32.vlgmr.msrb.gmra.mxu2 %vm127_vm0, %v9098_v56  ;;  %v9201_v17 = vld [vmem:[%s12264_s0 + $0x90] sm:$0xff]  ;;  %v9228_v61 = vld [vmem:[%s12264_s0 + $0x78] sm:$0xff] }
 0x260   :  { %1590 = vst.msk [vmem:[#allocation2 + $0x58] sm:$0xff] %vm1580_vm12, %v1564_v2  ;;  %v9233_v2 = vld [vmem:[%s12264_s0 + $0x80] sm:$0xff] }
 0x261   :  { %v1535_v49 = vpop.permute.xlu0 %1534 }
 0x262   :  { %v9009_v60 = vsel %vm1556_vm11, %v1533_v62, %v1535_v49  ;;  %v9151_v62 = vld [vmem:[%s12268_s4 + $0x18] sm:$0xff] }
 0x263   :  { %v9012_v12 = vpack.i.bf16 %v9009_v60, %v1591_v45  ;;  %v7289_v46 = vpack.i.bf16 %v9009_v60, %v1600_v30  ;;  %v9169_v30 = vld [vmem:[%s12268_s4 + $0x20] sm:$0xff] }
 0x265   :  { %7265 = vrot.lane.b32.xlu2 %v9012_v12, %s7981_s25 }
 0x266   :  { %v1537_v14 = vpop.permute.xlu1 %1536 }
 0x267   :  { %v1558_v32 = vsel %vm1556_vm11, %v1535_v49, %v1537_v14  ;;  %v9019_v39 = vld [vmem:[#allocation2 + $0x58] sm:$0xff]  ;;  %6590 = vmatmul.msk.f32.gmra.mxu2 %vm127_vm0, %v9115_v41  ;;  %v9250_v14 = vld [vmem:[%s12264_s0 + $0x60] sm:$0xff] }
 0x268   :  { %1581 = vst.msk [vmem:[#allocation2 + $0x10] sm:$0xff] %vm1580_vm12, %v1558_v32  ;;  %v9024_v28 = vpack.i.bf16 %v9017_v54, %v9019_v39  ;;  %v7304_v13 = vpack.i.bf16 %v9019_v39, %v8994_v10  ;;  %v7384_v40 = vpack.i.bf16 %v1597_v58, %v9019_v39  ;;  %v9255_v32 = vld [vmem:[%s12264_s0 + $0x88] sm:$0xff] }
 0x269   :  { %v1543_v23 = vpop.permute.xlu0 %1542 }
 0x26a   :  { %v1560_v6 = vsel %vm1556_vm11, %v1541_v7, %v1543_v23  ;;  %7270 = vrot.lane.b32.xlu0 %v9024_v28, %s7981_s25 }
 0x26b   :  { %1584 = vst.msk [vmem:[#allocation2 + $0x28] sm:$0xff] %vm1580_vm12, %v1560_v6 }
 0x26d   :  { %7290 = vrot.lane.b32.xlu2 %v7289_v46, %s7982_s18 }
 0x26f   :  { %v9035_v42 = vld [vmem:[#allocation2 + $0x10] sm:$0xff]  ;;  %6591 = vmatmul.msk.f32.gmra.mxu2 %vm127_vm0, %v9130_v63 }
 0x270   :  { %v7294_v25 = vpack.i.bf16 %v1597_v58, %v9035_v42  ;;  %v7394_v26 = vpack.i.bf16 %v9035_v42, %v9009_v60  ;;  %v9206_v58 = vld [vmem:[%s12264_s0 + $0xb8] sm:$0xff] }
 0x272   :  { %7280 = vrot.lane.b32.xlu0 %v7279_v59, %s7982_s18  ;;  %v9037_v22 = vld [vmem:[#allocation2 + $0x28] sm:$0xff] }
 0x273   :  { %v9041_v53 = vpack.i.bf16 %v9035_v42, %v9037_v22  ;;  %v7284_v4 = vpack.i.bf16 %v9037_v22, %v8982_v51  ;;  %v7389_v29 = vpack.i.bf16 %v1591_v45, %v9037_v22 }
 0x275   :  { %7275 = vrot.lane.b32.xlu1 %v9041_v53, %s7981_s25  ;;  %7305 = vrot.lane.b32.xlu2 %v7304_v13, %s7982_s18 }
 0x277   :  { %6592 = vmatmul.msk.f32.gmra.mxu2 %vm127_vm0, %v9151_v62 }
 0x27a   :  { %7295 = vrot.lane.b32.xlu0 %v7294_v25, %s7982_s18 }
 0x27d   :  { %7285 = vrot.lane.b32.xlu1 %v7284_v4, %s7982_s18  ;;  %7310 = vrot.lane.b32.xlu2 %v7309_v19, %s7982_s18 }
 0x282   :  { %7315 = vrot.lane.b32.xlu0 %v8997_v50, %s7983_s19 }
 0x285   :  { %7300 = vrot.lane.b32.xlu1 %v9000_v31, %s7983_s19  ;;  %7325 = vrot.lane.b32.xlu2 %v9012_v12, %s7983_s19 }
 0x28a   :  { %7330 = vrot.lane.b32.xlu0 %v9000_v31, %s7984_s20 }
 0x28d   :  { %7320 = vrot.lane.b32.xlu1 %v8985_v16, %s7983_s19  ;;  %7335 = vrot.lane.b32.xlu2 %v8997_v50, %s7984_s20 }
 0x292   :  { %7340 = vrot.lane.b32.xlu0 %v8985_v16, %s7984_s20 }
 0x295   :  { %7345 = vrot.lane.b32.xlu1 %v9024_v28, %s7983_s19  ;;  %7355 = vrot.lane.b32.xlu2 %v9012_v12, %s7984_s20 }
 0x29a   :  { %7360 = vrot.lane.b32.xlu0 %v9024_v28, %s7984_s20 }
 0x29d   :  { %7350 = vrot.lane.b32.xlu1 %v9041_v53, %s7983_s19  ;;  %7370 = vrot.lane.b32.xlu2 %v9000_v31, %s7985_s21 }
 0x2a2   :  { %7385 = vrot.lane.b32.xlu0 %v7384_v40, %s7985_s21 }
 0x2a5   :  { %7365 = vrot.lane.b32.xlu1 %v9041_v53, %s7984_s20  ;;  %7380 = vrot.lane.b32.xlu2 %v8985_v16, %s7985_s21 }
 0x2aa   :  { %7390 = vrot.lane.b32.xlu0 %v7389_v29, %s7985_s21 }
 0x2ad   :  { %7375 = vrot.lane.b32.xlu1 %v7279_v59, %s7985_s21  ;;  %7410 = vrot.lane.b32.xlu2 %v7289_v46, %s7986_s22  ;;  %v9262_v46 = vld [vmem:[%s12268_s4 + $0x30] sm:$0xff] }
 0x2b2   :  { %7400 = vrot.lane.b32.xlu0 %v7279_v59, %s7986_s22  ;;  %v9268_v59 = vpack.i.bf16 %v9250_v14, %v9255_v32 }
 0x2b5   :  { %7395 = vrot.lane.b32.xlu1 %v7394_v26, %s7985_s21  ;;  %7425 = vrot.lane.b32.xlu2 %v7304_v13, %s7986_s22  ;;  %v9273_v13 = vld [vmem:[%s12264_s0 + $0x98] sm:$0xff] }
 0x2b7   :  { %v9093_v24 = vpop.permute.xlu2 %7260 }
 0x2b8   :  { %v7263_v27 = vunpack.i.h.bf16 %v9093_v24  ;;  %v7262_v35 = vunpack.i.l.bf16 %v9093_v24 }
 0x2ba   :  { %7415 = vrot.lane.b32.xlu0 %v7294_v25, %s7986_s22  ;;  %v1654_v55 = vsel %vm106_vm1, %v7262_v35, %v7263_v27 }
 0x2bb   :  { %1692 = vmatpush.msra.mxu3 %v1654_v55 }
 0x2bd   :  { %7405 = vrot.lane.b32.xlu1 %v7284_v4, %s7986_s22  ;;  %7430 = vrot.lane.b32.xlu2 %v7309_v19, %s7986_s22 }
 0x2bf   :  { %v9110_v18 = vpop.permute.xlu2 %7265 }
 0x2c0   :  { %v7268_v38 = vunpack.i.h.bf16 %v9110_v18  ;;  %v7267_v44 = vunpack.i.l.bf16 %v9110_v18  ;;  %v9314_v18 = vpack.i.bf16 %v9273_v13, %v9201_v17 }
 0x2c2   :  { %7435 = vrot.lane.b32.xlu0 %v8997_v50, %s7987_s12  ;;  %v1648_v11 = vsel %vm106_vm1, %v7267_v44, %v7268_v38 }
 0x2c4   :  { %v9136_v5 = vpop.permute.xlu1 %7250 }
 0x2c5   :  { %7420 = vrot.lane.b32.xlu1 %v9000_v31, %s7987_s12  ;;  %7445 = vrot.lane.b32.xlu2 %v9012_v12, %s7987_s12  ;;  %v7253_v36 = vunpack.i.h.bf16 %v9136_v5  ;;  %v7252_v52 = vunpack.i.l.bf16 %v9136_v5  ;;  %v9303_v5 = vld [vmem:[%s12268_s4 + $0x38] sm:$0xff] }
 0x2c7   :  { %v9125_v21 = vpop.permute.xlu2 %7290  ;;  %v1650_v20 = vsel %vm106_vm1, %v7252_v52, %v7253_v36  ;;  %v9319_v52 = vld [vmem:[%s12264_s0 + $0x68] sm:$0xff] }
 0x2ca   :  { %7450 = vrot.lane.b32.xlu0 %v9000_v31, %s7988_s11 }
 0x2cd   :  { %7440 = vrot.lane.b32.xlu1 %v8985_v16, %s7987_s12  ;;  %7455 = vrot.lane.b32.xlu2 %v8997_v50, %s7988_s11 }
 0x2ce   :  { %v7256_v34 = vpop.permute.xlu0 %7255 }
 0x2cf   :  { %v7258_v43 = vunpack.i.h.bf16 %v7256_v34  ;;  %v7257_v33 = vunpack.i.l.bf16 %v7256_v34  ;;  %v9144_v3 = vpop.permute.xlu2 %7305 }
 0x2d0   :  { %v7308_v15 = vunpack.i.h.bf16 %v9144_v3  ;;  %v7307_v48 = vunpack.i.l.bf16 %v9144_v3 }
 0x2d1   :  { %v1652_v1 = vsel %vm106_vm1, %v7257_v33, %v7258_v43 }
 0x2d2   :  { %7460 = vrot.lane.b32.xlu0 %v8985_v16, %s7988_s11  ;;  %1693 = vmatpush.msra.mxu3 %v1652_v1  ;;  %v1902_v7 = vsel %vm355_vm2, %v7307_v48, %v7308_v15  ;;  %v9186_v16 = vld [vmem:[%s12264_s0 + $0xb0] sm:$0xff] }
 0x2d3   :  { %1968 = vmatpush.msra.mxu2 %v1902_v7  ;;  %v9193_v8 = vpack.i.bf16 %v9186_v16, %v9181_v37 }
 0x2d4   :  { %1694 = vmatpush.msra.mxu3 %v1650_v20 }
 0x2d5   :  { %7465 = vrot.lane.b32.xlu1 %v9024_v28, %s7987_s12  ;;  %7475 = vrot.lane.b32.xlu2 %v9012_v12, %s7988_s11  ;;  %v9243_v12 = vpack.i.bf16 %v9233_v2, %v9228_v61 }
 0x2d6   :  { %1695 = vmatpush.msra.mxu3 %v1648_v11  ;;  %v7293_v11 = vunpack.i.h.bf16 %v9125_v21 }
 0x2d7   :  { %6577 = vmatmul.msk.f32.vlgmr.msra.gmra.mxu3 %vm127_vm0, %v9169_v30  ;;  %v9211_v45 = vpop.permute.xlu2 %7310 }
 0x2d8   :  { %1820 = vmatpush.msrb.mxu3 %v8994_v10  ;;  %v7313_v7 = vunpack.i.h.bf16 %v9211_v45 }
 0x2da   :  { %7480 = vrot.lane.b32.xlu0 %v9024_v28, %s7988_s11  ;;  %1821 = vmatpush.msrb.mxu3 %v8991_v57  ;;  %v9216_v57 = vld [vmem:[%s12268_s4 + $0x28] sm:$0xff] }
 0x2dc   :  { %v7271_v10 = vpop.permute.xlu0 %7270  ;;  %1822 = vmatpush.msrb.mxu3 %v8982_v51  ;;  %v9223_v51 = vpack.i.bf16 %v9201_v17, %v9206_v58 }
 0x2dd   :  { %v7273_v50 = vunpack.i.h.bf16 %v7271_v10  ;;  %v7272_v31 = vunpack.i.l.bf16 %v7271_v10  ;;  %7470 = vrot.lane.b32.xlu1 %v9041_v53, %s7987_s12  ;;  %7490 = vrot.lane.b32.xlu2 %v9193_v8, %s7981_s25 }
 0x2de   :  { %1823 = vmatpush.msrb.mxu3 %v9009_v60 }
 0x2df   :  { %1750 = vmatpush.msrb.mxu1 %v7272_v31  ;;  %v1655_v49 = vsel %vm106_vm1, %v7263_v27, %v7272_v31  ;;  %6578 = vmatmul.msk.f32.gmra.mxu3 %vm127_vm0, %v9216_v57  ;;  %v1653_v60 = vsel %vm106_vm1, %v7258_v43, %v7273_v50  ;;  %v9280_v4 = vpop.permute.xlu2 %7325  ;;  %v7292_v27 = vunpack.i.l.bf16 %v9125_v21  ;;  %v9324_v43 = vld [vmem:[%s12264_s0 + $0x70] sm:$0xff]  ;;  %v1895_v21 = vsel %vm355_vm2, %v7313_v7, %v7293_v11 }
 0x2e0   :  { %1997 = vmatpush.msra.mxu3 %v7308_v15  ;;  %1721 = vmatpush.msrb.mxu0 %v1655_v49  ;;  %v7312_v15 = vunpack.i.l.bf16 %v9211_v45 }
 0x2e1   :  { %1751 = vmatpush.msrb.mxu1 %v7273_v50  ;;  %v9356_v50 = vld [vmem:[%s12268_s4 + $0x40] sm:$0xff] }
 0x2e2   :  { %7495 = vrot.lane.b32.xlu0 %v9223_v51, %s7981_s25  ;;  %1722 = vmatpush.msrb.mxu0 %v1653_v60 }
 0x2e4   :  { %v7281_v28 = vpop.permute.xlu0 %7280 }
 0x2e5   :  { %v7283_v23 = vunpack.i.h.bf16 %v7281_v28  ;;  %v7282_v6 = vunpack.i.l.bf16 %v7281_v28  ;;  %7485 = vrot.lane.b32.xlu1 %v9041_v53, %s7988_s11  ;;  %7505 = vrot.lane.b32.xlu2 %v9243_v12, %s7981_s25  ;;  %v9278_v53 = vld [vmem:[%s12264_s0 + $0xa0] sm:$0xff] }
 0x2e6   :  { %v9287_v26 = vpack.i.bf16 %v9278_v53, %v9273_v13 }
 0x2e7   :  { %v7276_v25 = vpop.permute.xlu1 %7275  ;;  %1998 = vmatpush.msra.mxu3 %v7283_v23  ;;  %v1900_v19 = vsel %vm355_vm2, %v7282_v6, %v7283_v23  ;;  %v9333_v1 = vpop.permute.xlu2 %7335 }
 0x2e8   :  { %v7278_v40 = vunpack.i.h.bf16 %v7276_v25  ;;  %v7277_v29 = vunpack.i.l.bf16 %v7276_v25  ;;  %6579 = vmatmul.msk.f32.gmra.mxu3 %vm127_vm0, %v9262_v46  ;;  %1969 = vmatpush.msra.mxu2 %v1900_v19 }
 0x2ea   :  { %7510 = vrot.lane.b32.xlu0 %v9268_v59, %s7981_s25  ;;  %1752 = vmatpush.msrb.mxu1 %v7277_v29  ;;  %v1651_v24 = vsel %vm106_vm1, %v7253_v36, %v7277_v29  ;;  %v1649_v55 = vsel %vm106_vm1, %v7268_v38, %v7278_v40  ;;  %v1901_v36 = vsel %vm355_vm2, %v7292_v27, %v7307_v48  ;;  %v7338_v29 = vunpack.i.h.bf16 %v9333_v1 }
 0x2eb   :  { %1723 = vmatpush.msrb.mxu0 %v1651_v24  ;;  %v7337_v24 = vunpack.i.l.bf16 %v9333_v1 }
 0x2ec   :  { %v7296_v35 = vpop.permute.xlu0 %7295  ;;  %1753 = vmatpush.msrb.mxu1 %v7278_v40  ;;  %v9396_v40 = vld [vmem:[%s12268_s4 + $0x48] sm:$0xff] }
 0x2ed   :  { %v7298_v34 = vunpack.i.h.bf16 %v7296_v35  ;;  %7500 = vrot.lane.b32.xlu1 %v9287_v26, %s7981_s25  ;;  %1724 = vmatpush.msrb.mxu0 %v1649_v55  ;;  %v7297_v44 = vunpack.i.l.bf16 %v7296_v35  ;;  %v7328_v55 = vunpack.i.h.bf16 %v9280_v4 }
 0x2ee   :  { %6585 = vmatmul.msk.f32.vlgmr.msrb.gmra.mxu1 %vm127_vm0, %v9169_v30  ;;  %6581 = vmatmul.msk.f32.vlgmr.msrb.gmra.mxu0 %vm127_vm0, %v9169_v30 }
 0x2ef   :  { %1939 = vmatpush.msra.mxu1 %v1901_v36  ;;  %1849 = vmatpush.msra.mxu0 %v9019_v39  ;;  %v7286_v33 = vpop.permute.xlu1 %7285  ;;  %v1899_v3 = vsel %vm355_vm2, %v7298_v34, %v7282_v6  ;;  %v9338_v39 = vpack.i.bf16 %v9324_v43, %v9319_v52  ;;  %v1896_v10 = vsel %vm355_vm2, %v7293_v11, %v7297_v44  ;;  %v9382_v28 = vpop.permute.xlu2 %7355  ;;  %v7327_v34 = vunpack.i.l.bf16 %v9280_v4 }
 0x2f0   :  { %v7288_v48 = vunpack.i.h.bf16 %v7286_v33  ;;  %v7287_v38 = vunpack.i.l.bf16 %v7286_v33  ;;  %6580 = vmatmul.msk.f32.gmra.mxu3 %vm127_vm0, %v9303_v5  ;;  %7520 = vrot.lane.b32.xlu2 %v9193_v8, %s7982_s18  ;;  %v7358_v11 = vunpack.i.h.bf16 %v9382_v28 }
 0x2f1   :  { %1850 = vmatpush.msra.mxu0 %v9017_v54  ;;  %1940 = vmatpush.msra.mxu1 %v1899_v3  ;;  %v2219_v3 = vsel %vm677_vm4, %v7337_v24, %v7338_v29 }
 0x2f2   :  { %7525 = vrot.lane.b32.xlu0 %v9314_v18, %s7982_s18  ;;  %1999 = vmatpush.msra.mxu3 %v7288_v48  ;;  %v1897_v20 = vsel %vm355_vm2, %v7312_v15, %v7287_v38  ;;  %v1898_v30 = vsel %vm355_vm2, %v7287_v38, %v7288_v48  ;;  %v2055_v38 = vsel %vm516_vm3, %v7327_v34, %v7328_v55  ;;  %v9480_v34 = vld [vmem:[%s12268_s4 + $0x58] sm:$0xff] }
 0x2f3   :  { %1851 = vmatpush.msra.mxu0 %v9037_v22  ;;  %1941 = vmatpush.msra.mxu1 %v1897_v20  ;;  %v9360_v22 = vpack.i.bf16 %v9319_v52, %v9250_v14 }
 0x2f4   :  { %1970 = vmatpush.msra.mxu2 %v1898_v30  ;;  %v9347_v54 = vpop.permute.xlu0 %7315  ;;  %2000 = vmatpush.msra.mxu3 %v7297_v44  ;;  %v9445_v30 = vld [vmem:[%s12268_s4 + $0x50] sm:$0xff] }
 0x2f5   :  { %1852 = vmatpush.msra.mxu0 %v9035_v42  ;;  %7515 = vrot.lane.b32.xlu1 %v9338_v39, %s7981_s25  ;;  %v7318_v31 = vunpack.i.h.bf16 %v9347_v54  ;;  %v7317_v45 = vunpack.i.l.bf16 %v9347_v54 }
 0x2f6   :  { %6586 = vmatmul.msk.f32.gmra.mxu1 %vm127_vm0, %v9216_v57  ;;  %1971 = vmatpush.msra.mxu2 %v1896_v10  ;;  %v7357_v10 = vunpack.i.l.bf16 %v9382_v28 }
 0x2f7   :  { %1942 = vmatpush.msra.mxu1 %v1895_v21  ;;  %6582 = vmatmul.msk.f32.gmra.mxu0 %vm127_vm0, %v9216_v57  ;;  %v9367_v42 = vpop.permute.xlu1 %7300  ;;  %v2059_v6 = vsel %vm516_vm3, %v7317_v45, %v7318_v31  ;;  %v9436_v44 = vpop.permute.xlu2 %7370 }
 0x2f8   :  { %v7303_v49 = vunpack.i.h.bf16 %v9367_v42  ;;  %v7302_v60 = vunpack.i.l.bf16 %v9367_v42  ;;  %6593 = vmatmul.msk.f32.vlgmr.msrb.gmra.mxu3 %vm127_vm0, %v9098_v56  ;;  %6609 = vmatmul.msk.f32.vlgmr.msra.gmra.mxu2 %vm127_vm0, %v9356_v50 }
 0x2f9   :  { %7535 = vrot.lane.b32.xlu2 %v9360_v22, %s7982_s18 }
 0x2fa   :  { %7540 = vrot.lane.b32.xlu0 %v9193_v8, %s7983_s19  ;;  %v2061_v57 = vsel %vm516_vm3, %v7302_v60, %v7303_v49 }
 0x2fb   :  { %2099 = vmatpush.msrb.mxu0 %v2061_v57  ;;  %v2215_v57 = vsel %vm677_vm4, %v7357_v10, %v7358_v11 }
 0x2fc   :  { %v9384_v23 = vpop.permute.xlu0 %7330 }
 0x2fd   :  { %v7333_v25 = vunpack.i.h.bf16 %v9384_v23  ;;  %v7332_v19 = vunpack.i.l.bf16 %v9384_v23  ;;  %7530 = vrot.lane.b32.xlu1 %v9243_v12, %s7982_s18  ;;  %2100 = vmatpush.msrb.mxu0 %v2059_v6 }
 0x2fe   :  { %6587 = vmatmul.msk.f32.gmra.mxu1 %vm127_vm0, %v9262_v46 }
 0x2ff   :  { %6583 = vmatmul.msk.f32.gmra.mxu0 %vm127_vm0, %v9262_v46  ;;  %v9404_v27 = vpop.permute.xlu1 %7320  ;;  %v2221_v35 = vsel %vm677_vm4, %v7332_v19, %v7333_v25  ;;  %v9421_v46 = vpack.i.bf16 %v9278_v53, %v9206_v58 }
 0x300   :  { %v7323_v36 = vunpack.i.h.bf16 %v9404_v27  ;;  %v7322_v33 = vunpack.i.l.bf16 %v9404_v27  ;;  %6594 = vmatmul.msk.f32.gmra.mxu3 %vm127_vm0, %v9115_v41  ;;  %6610 = vmatmul.msk.f32.gmra.mxu2 %vm127_vm0, %v9396_v40 }
 0x301   :  { %2259 = vmatpush.msrb.mxu3 %v2221_v35  ;;  %7550 = vrot.lane.b32.xlu2 %v9314_v18, %s7983_s19 }
 0x302   :  { %7555 = vrot.lane.b32.xlu0 %v9243_v12, %s7983_s19  ;;  %v2057_v15 = vsel %vm516_vm3, %v7322_v33, %v7323_v36 }
 0x303   :  { %2260 = vmatpush.msrb.mxu3 %v2219_v3  ;;  %2101 = vmatpush.msrb.mxu0 %v2057_v15 }
 0x304   :  { %v9431_v48 = vpop.permute.xlu0 %7340 }
 0x305   :  { %v7343_v7 = vunpack.i.h.bf16 %v9431_v48  ;;  %v7342_v20 = vunpack.i.l.bf16 %v9431_v48  ;;  %7545 = vrot.lane.b32.xlu1 %v9421_v46, %s7982_s18  ;;  %2102 = vmatpush.msrb.mxu0 %v2055_v38  ;;  %v7373_v38 = vunpack.i.h.bf16 %v9436_v44  ;;  %v9551_v48 = vld [vmem:[%s12268_s4 + $0x68] sm:$0xff] }
 0x306   :  { %6588 = vmatmul.msk.f32.gmra.mxu1 %vm127_vm0, %v9303_v5 }
 0x307   :  { %6584 = vmatmul.msk.f32.gmra.mxu0 %vm127_vm0, %v9303_v5  ;;  %v7346_v21 = vpop.permute.xlu1 %7345  ;;  %v2217_v42 = vsel %vm677_vm4, %v7342_v20, %v7343_v7  ;;  %v9464_v5 = vpack.i.bf16 %v9324_v43, %v9255_v32  ;;  %v7372_v20 = vunpack.i.l.bf16 %v9436_v44 }
 0x308   :  { %v7348_v45 = vunpack.i.h.bf16 %v7346_v21  ;;  %v7347_v60 = vunpack.i.l.bf16 %v7346_v21  ;;  %6595 = vmatmul.msk.f32.gmra.mxu3 %vm127_vm0, %v9130_v63  ;;  %6611 = vmatmul.msk.f32.gmra.mxu2 %vm127_vm0, %v9445_v30 }
 0x309   :  { %2261 = vmatpush.msrb.mxu3 %v2217_v42  ;;  %7565 = vrot.lane.b32.xlu2 %v9360_v22, %s7983_s19  ;;  %v2381_v1 = vsel %vm838_vm5, %v7372_v20, %v7373_v38 }
 0x30a   :  { %7570 = vrot.lane.b32.xlu0 %v9421_v46, %s7983_s19  ;;  %2157 = vmatpush.msrb.mxu2 %v7347_v60  ;;  %v2062_v6 = vsel %vm516_vm3, %v7303_v49, %v7347_v60  ;;  %v2060_v24 = vsel %vm516_vm3, %v7318_v31, %v7348_v45  ;;  %v9484_v49 = vpop.permute.xlu2 %7380 }
 0x30b   :  { %2262 = vmatpush.msrb.mxu3 %v2215_v57  ;;  %2128 = vmatpush.msrb.mxu1 %v2062_v6  ;;  %v7382_v28 = vunpack.i.l.bf16 %v9484_v49 }
 0x30c   :  { %v7361_v19 = vpop.permute.xlu0 %7360  ;;  %2158 = vmatpush.msrb.mxu2 %v7348_v45 }
 0x30d   :  { %v7362_v35 = vunpack.i.l.bf16 %v7361_v19  ;;  %7560 = vrot.lane.b32.xlu1 %v9464_v5, %s7982_s18  ;;  %2129 = vmatpush.msrb.mxu1 %v2060_v24  ;;  %v7363_v33 = vunpack.i.h.bf16 %v7361_v19 }
 0x30e   :  { %6605 = vmatmul.msk.f32.vlgmr.msra.gmra.mxu1 %vm127_vm0, %v9356_v50 }
 0x30f   :  { %6597 = vmatmul.msk.f32.vlgmr.msra.gmra.mxu0 %vm127_vm0, %v9098_v56  ;;  %v7351_v54 = vpop.permute.xlu1 %7350  ;;  %v2222_v31 = vsel %vm677_vm4, %v7333_v25, %v7362_v35  ;;  %v2220_v56 = vsel %vm677_vm4, %v7338_v29, %v7363_v33  ;;  %v9519_v29 = vld [vmem:[%s12268_s4 + $0x60] sm:$0xff] }
 0x310   :  { %v7353_v3 = vunpack.i.h.bf16 %v7351_v54  ;;  %v7352_v15 = vunpack.i.l.bf16 %v7351_v54  ;;  %6596 = vmatmul.msk.f32.gmra.mxu3 %vm127_vm0, %v9151_v62  ;;  %6612 = vmatmul.msk.f32.gmra.mxu2 %vm127_vm0, %v9480_v34 }
 0x311   :  { %2288 = vmatpush.msra.mxu0 %v2222_v31  ;;  %3871 = vrot.lane.b32.xlu2 %v9181_v37, %s7984_s20 }
 0x312   :  { %3873 = vrot.lane.b32.xlu0 %v9186_v16, %s7984_s20  ;;  %2159 = vmatpush.msrb.mxu2 %v7352_v15  ;;  %v2058_v23 = vsel %vm516_vm3, %v7323_v36, %v7352_v15  ;;  %v2056_v44 = vsel %vm516_vm3, %v7328_v55, %v7353_v3  ;;  %v9532_v36 = vpop.permute.xlu2 %7410 }
 0x313   :  { %2289 = vmatpush.msra.mxu0 %v2220_v56  ;;  %2130 = vmatpush.msrb.mxu1 %v2058_v23 }
 0x314   :  { %v9507_v25 = vpop.permute.xlu0 %7385  ;;  %2160 = vmatpush.msrb.mxu2 %v7353_v3 }
 0x315   :  { %v7387_v10 = vunpack.i.l.bf16 %v9507_v25  ;;  %7575 = vrot.lane.b32.xlu1 %v9464_v5, %s7983_s19  ;;  %2131 = vmatpush.msrb.mxu1 %v2056_v44  ;;  %v7412_v44 = vunpack.i.l.bf16 %v9532_v36 }
 0x316   :  { %6606 = vmatmul.msk.f32.gmra.mxu1 %vm127_vm0, %v9396_v40  ;;  %2419 = vmatpush.msra.mxu2 %v2381_v1 }
 0x317   :  { %6598 = vmatmul.msk.f32.gmra.mxu0 %vm127_vm0, %v9115_v41  ;;  %2317 = vmatpush.msra.mxu1 %v7362_v35  ;;  %v7366_v4 = vpop.permute.xlu1 %7365  ;;  %v2382_v27 = vsel %vm838_vm5, %v7373_v38, %v7387_v10 }
 0x318   :  { %v7367_v55 = vunpack.i.l.bf16 %v7366_v4  ;;  %6613 = vmatmul.msk.f32.vlgmr.msra.gmra.mxu3 %vm127_vm0, %v9356_v50  ;;  %6629 = vmatmul.msk.f32.vlgmr.msrb.gmra.mxu2 %vm127_vm0, %v9519_v29  ;;  %v7368_v21 = vunpack.i.h.bf16 %v7366_v4 }
 0x319   :  { %2318 = vmatpush.msra.mxu1 %v7363_v33  ;;  %2448 = vmatpush.msra.mxu3 %v2382_v27 }
 0x31a   :  { %3867 = vrot.lane.b32.xlu0 %v9273_v13, %s7984_s20  ;;  %v2218_v41 = vsel %vm677_vm4, %v7343_v7, %v7367_v55  ;;  %3865 = vrot.lane.b32.xlu2 %v9201_v17, %s7984_s20  ;;  %v2216_v42 = vsel %vm677_vm4, %v7358_v11, %v7368_v21  ;;  %v7383_v7 = vunpack.i.h.bf16 %v9484_v49  ;;  %v7388_v11 = vunpack.i.h.bf16 %v9507_v25  ;;  %v9577_v24 = vpop.permute.xlu2 %7425  ;;  %v9590_v49 = vld [vmem:[%s12268_s4 + $0x70] sm:$0xff]  ;;  %v6633_v25 = vld [vmem:[%s12268_s4 + $0x80] sm:$0xff] }
 0x31b   :  { %2319 = vmatpush.msra.mxu1 %v7367_v55  ;;  %2290 = vmatpush.msra.mxu0 %v2218_v41  ;;  %v7428_v54 = vunpack.i.h.bf16 %v9577_v24  ;;  %v7427_v31 = vunpack.i.l.bf16 %v9577_v24  ;;  %v9624_v41 = vld [vmem:[%s12268_s4 + $0x78] sm:$0xff]  ;;  %v9707_v24 = vld [vmem:[%s12268_s4 + $0x90] sm:$0xff] }
 0x31c   :  { %v9541_v50 = vpop.permute.xlu0 %7390  ;;  %v2377_v35 = vsel %vm838_vm5, %v7382_v28, %v7383_v7  ;;  %v7579_v28 = vpack.i.bf16 %v9206_v58, %v9186_v16 }
 0x31d   :  { %2320 = vmatpush.msra.mxu1 %v7368_v21  ;;  %3875 = vrot.lane.b32.xlu1 %v9206_v58, %s7984_s20  ;;  %v7392_v6 = vunpack.i.l.bf16 %v9541_v50  ;;  %v7393_v3 = vunpack.i.h.bf16 %v9541_v50  ;;  %v2541_v21 = vsel %vm999_vm6, %v7412_v44, %v7427_v31  ;;  %v7599_v50 = vpack.i.bf16 %v9201_v17, %v9324_v43  ;;  %v9687_v17 = vld [vmem:[%s12268_s4 + $0xa8] sm:$0xff] }
 0x31e   :  { %6607 = vmatmul.msk.f32.gmra.mxu1 %vm127_vm0, %v9445_v30  ;;  %2291 = vmatpush.msra.mxu0 %v2216_v42 }
 0x31f   :  { %6599 = vmatmul.msk.f32.gmra.mxu0 %vm127_vm0, %v9130_v63  ;;  %v9558_v45 = vpop.permute.xlu1 %7375  ;;  %v2378_v33 = vsel %vm838_vm5, %v7383_v7, %v7392_v6 }
 0x320   :  { %v7378_v60 = vunpack.i.h.bf16 %v9558_v45  ;;  %v7377_v57 = vunpack.i.l.bf16 %v9558_v45  ;;  %6614 = vmatmul.msk.f32.gmra.mxu3 %vm127_vm0, %v9396_v40  ;;  %6630 = vmatmul.msk.f32.gmra.mxu2 %vm127_vm0, %v9551_v48 }
 0x322   :  { %3861 = vrot.lane.b32.xlu0 %v9233_v2, %s7984_s20  ;;  %v2379_v63 = vsel %vm838_vm5, %v7388_v11, %v7377_v57  ;;  %v2380_v19 = vsel %vm838_vm5, %v7377_v57, %v7378_v60  ;;  %3859 = vrot.lane.b32.xlu2 %v9228_v61, %s7984_s20  ;;  %v7431_v4 = vpop.permute.xlu2 %7430 }
 0x323   :  { %2420 = vmatpush.msra.mxu2 %v2379_v63  ;;  %2449 = vmatpush.msra.mxu3 %v2380_v19  ;;  %v7433_v11 = vunpack.i.h.bf16 %v7431_v4  ;;  %v7432_v57 = vunpack.i.l.bf16 %v7431_v4 }
 0x324   :  { %v9579_v40 = vpop.permute.xlu0 %7400 }
 0x325   :  { %3869 = vrot.lane.b32.xlu1 %v9278_v53, %s7984_s20  ;;  %2421 = vmatpush.msra.mxu2 %v2377_v35  ;;  %v7403_v20 = vunpack.i.h.bf16 %v9579_v40  ;;  %v7402_v56 = vunpack.i.l.bf16 %v9579_v40 }
 0x326   :  { %6608 = vmatmul.msk.f32.gmra.mxu1 %vm127_vm0, %v9480_v34  ;;  %2450 = vmatpush.msra.mxu3 %v2378_v33 }
 0x327   :  { %6600 = vmatmul.msk.f32.gmra.mxu0 %vm127_vm0, %v9151_v62  ;;  %v7396_v53 = vpop.permute.xlu1 %7395  ;;  %v2540_v55 = vsel %vm999_vm6, %v7402_v56, %v7403_v20 }
 0x328   :  { %v7398_v15 = vunpack.i.h.bf16 %v7396_v53  ;;  %v7397_v38 = vunpack.i.l.bf16 %v7396_v53  ;;  %6615 = vmatmul.msk.f32.gmra.mxu3 %vm127_vm0, %v9445_v30  ;;  %6631 = vmatmul.msk.f32.gmra.mxu2 %vm127_vm0, %v9590_v49  ;;  %v2542_v30 = vsel %vm999_vm6, %v7427_v31, %v7428_v54 }
 0x32a   :  { %3855 = vrot.lane.b32.xlu0 %v9319_v52, %s7984_s20  ;;  %v2375_v62 = vsel %vm838_vm5, %v7393_v3, %v7397_v38  ;;  %v2376_v23 = vsel %vm838_vm5, %v7397_v38, %v7398_v15  ;;  %3853 = vrot.lane.b32.xlu2 %v9250_v14, %s7984_s20  ;;  %v9735_v38 = vld [vmem:[%s12268_s4 + $0x98] sm:$0xff] }
 0x32b   :  { %2422 = vmatpush.msra.mxu2 %v2375_v62  ;;  %2451 = vmatpush.msra.mxu3 %v2376_v23 }
 0x32c   :  { %v7416_v1 = vpop.permute.xlu0 %7415 }
 0x32d   :  { %2608 = vmatpush.msrb.mxu2 %v2542_v30  ;;  %v7418_v27 = vunpack.i.h.bf16 %v7416_v1  ;;  %3863 = vrot.lane.b32.xlu1 %v9255_v32, %s7984_s20  ;;  %v7417_v40 = vunpack.i.l.bf16 %v7416_v1 }
 0x32e   :  { %6625 = vmatmul.msk.f32.vlgmr.msrb.gmra.mxu1 %vm127_vm0, %v9519_v29 }
 0x32f   :  { %2609 = vmatpush.msrb.mxu2 %v2540_v55  ;;  %2579 = vmatpush.msrb.mxu1 %v2541_v21  ;;  %v7406_v42 = vpop.permute.xlu1 %7405  ;;  %v2539_v7 = vsel %vm999_vm6, %v7418_v27, %v7402_v56  ;;  %v9742_v56 = vld [vmem:[%s12268_s4 + $0xb8] sm:$0xff] }
 0x330   :  { %6621 = vmatmul.msk.f32.vlgmr.msrb.gmra.mxu0 %vm127_vm0, %v9519_v29  ;;  %v7408_v63 = vunpack.i.h.bf16 %v7406_v42  ;;  %v7407_v19 = vunpack.i.l.bf16 %v7406_v42  ;;  %6616 = vmatmul.msk.f32.gmra.mxu3 %vm127_vm0, %v9480_v34  ;;  %v7413_v29 = vunpack.i.h.bf16 %v9532_v36  ;;  %v9659_v36 = vld [vmem:[%s12268_s4 + $0xa0] sm:$0xff] }
 0x331   :  { %2477 = vmatpush.msrb.mxu0 %v7387_v10  ;;  %6632 = vmatmul.msk.f32.gmra.mxu2 %vm127_vm0, %v9624_v41 }
 0x332   :  { %2580 = vmatpush.msrb.mxu1 %v2539_v7  ;;  %7585 = vrot.lane.b32.xlu0 %v9287_v26, %s7985_s21  ;;  %v2537_v16 = vsel %vm999_vm6, %v7432_v57, %v7407_v19  ;;  %v2538_v58 = vsel %vm999_vm6, %v7407_v19, %v7408_v63  ;;  %v2535_v34 = vsel %vm999_vm6, %v7433_v11, %v7413_v29 }
 0x333   :  { %2478 = vmatpush.msrb.mxu0 %v7378_v60  ;;  %2610 = vmatpush.msrb.mxu2 %v2538_v58  ;;  %v2536_v10 = vsel %vm999_vm6, %v7413_v29, %v7417_v40  ;;  %v7594_v60 = vpack.i.bf16 %v9319_v52, %v9181_v37  ;;  %v9680_v37 = vld [vmem:[%s12268_s4 + $0x88] sm:$0xff] }
 0x334   :  { %2581 = vmatpush.msrb.mxu1 %v2537_v16  ;;  %7580 = vrot.lane.b32.xlu2 %v7579_v28, %s7985_s21  ;;  %v9758_v28 = vpop.f32.mrf.mxu2 }
 0x335   :  { %2479 = vmatpush.msrb.mxu0 %v7392_v6  ;;  %3857 = vrot.lane.b32.xlu1 %v9324_v43, %s7984_s20  ;;  %v7589_v6 = vpack.i.bf16 %v9255_v32, %v9233_v2  ;;  %v7436_v32 = vpop.permute.xlu0 %7435  ;;  %v7609_v43 = vpack.i.bf16 %v9250_v14, %v9228_v61  ;;  %v9714_v61 = vld [vmem:[%s12268_s4 + $0xb0] sm:$0xff] }
 0x336   :  { %2582 = vmatpush.msrb.mxu1 %v2535_v34  ;;  %2611 = vmatpush.msrb.mxu2 %v2536_v10  ;;  %v7438_v3 = vunpack.i.h.bf16 %v7436_v32 }
 0x337   :  { %2480 = vmatpush.msrb.mxu0 %v7398_v15  ;;  %6626 = vmatmul.msk.f32.gmra.mxu1 %vm127_vm0, %v9551_v48  ;;  %v7421_v45 = vpop.permute.xlu1 %7420  ;;  %v7437_v15 = vunpack.i.l.bf16 %v7436_v32 }
 0x338   :  { %6622 = vmatmul.msk.f32.gmra.mxu0 %vm127_vm0, %v9551_v48  ;;  %6637 = vmatmul.msk.f32.vlgmr.msrb.gmra.mxu3 %vm127_vm0, %v6633_v25  ;;  %v9699_v48 = vpop.permute.xlu2 %7445  ;;  %v7422_v31 = vunpack.i.l.bf16 %v7421_v45 }
 0x339   :  { %6653 = vmatmul.msk.f32.vlgmr.msra.gmra.mxu2 %vm127_vm0, %v9659_v36  ;;  %2637 = vmatpush.msrb.mxu3 %v7428_v54  ;;  %v7423_v54 = vunpack.i.h.bf16 %v7421_v45  ;;  %v7448_v27 = vunpack.i.h.bf16 %v9699_v48  ;;  %v7447_v55 = vunpack.i.l.bf16 %v9699_v48  ;;  %v2699_v21 = vsel %vm1160_vm7, %v7437_v15, %v7438_v3 }
 0x33a   :  { %7600 = vrot.lane.b32.xlu0 %v7599_v50, %s7985_s21 }
 0x33b   :  { %2638 = vmatpush.msrb.mxu3 %v7403_v20  ;;  %v2701_v30 = vsel %vm1160_vm7, %v7422_v31, %v7423_v54  ;;  %v2695_v19 = vsel %vm1160_vm7, %v7447_v55, %v7448_v27 }
 0x33c   :  { %7595 = vrot.lane.b32.xlu2 %v7594_v60, %s7985_s21 }
 0x33d   :  { %2639 = vmatpush.msrb.mxu3 %v7408_v63  ;;  %7590 = vrot.lane.b32.xlu1 %v7589_v6, %s7985_s21  ;;  %v9722_v33 = vpop.permute.xlu0 %7450 }
 0x33e   :  { %v7453_v11 = vunpack.i.h.bf16 %v9722_v33  ;;  %v7452_v57 = vunpack.i.l.bf16 %v9722_v33 }
 0x33f   :  { %6627 = vmatmul.msk.f32.gmra.mxu1 %vm127_vm0, %v9590_v49  ;;  %2640 = vmatpush.msrb.mxu3 %v7417_v40  ;;  %v7441_v2 = vpop.permute.xlu1 %7440 }
 0x340   :  { %6623 = vmatmul.msk.f32.gmra.mxu0 %vm127_vm0, %v9590_v49  ;;  %6638 = vmatmul.msk.f32.gmra.mxu3 %vm127_vm0, %v9680_v37  ;;  %v9728_v53 = vpop.permute.xlu2 %7455  ;;  %v7443_v62 = vunpack.i.h.bf16 %v7441_v2  ;;  %v7442_v23 = vunpack.i.l.bf16 %v7441_v2  ;;  %v2861_v10 = vsel %vm1321_vm8, %v7452_v57, %v7453_v11  ;;  %v9808_v2 = vpop.f32.mrf.mxu2 }
 0x341   :  { %6654 = vmatmul.msk.f32.gmra.mxu2 %vm127_vm0, %v9687_v17  ;;  %v7458_v29 = vunpack.i.h.bf16 %v9728_v53  ;;  %v7457_v40 = vunpack.i.l.bf16 %v9728_v53 }
 0x342   :  { %7615 = vrot.lane.b32.xlu0 %v9314_v18, %s7986_s22  ;;  %v2697_v7 = vsel %vm1160_vm7, %v7442_v23, %v7443_v62  ;;  %v4647_v23 = vld [vmem:[%s12266_s3 + $0x18] sm:$0xff] }
 0x343   :  { %v2859_v60 = vsel %vm1321_vm8, %v7457_v40, %v7458_v29  ;;  %v6681_v40 = vld [vmem:[%s12268_s4 + $0xe0] sm:$0xff] }
 0x344   :  { %7610 = vrot.lane.b32.xlu2 %v7609_v43, %s7985_s21  ;;  %v9818_v43 = vld [vmem:[%s12268_s4 + $0xc8] sm:$0xff] }
 0x345   :  { %7605 = vrot.lane.b32.xlu1 %v9193_v8, %s7986_s22  ;;  %v9762_v63 = vpop.permute.xlu0 %7460 }
 0x346   :  { %v7463_v34 = vunpack.i.h.bf16 %v9762_v63 }
 0x347   :  { %6628 = vmatmul.msk.f32.gmra.mxu1 %vm127_vm0, %v9624_v41  ;;  %v7466_v14 = vpop.permute.xlu1 %7465 }
 0x348   :  { %6624 = vmatmul.msk.f32.gmra.mxu0 %vm127_vm0, %v9624_v41  ;;  %v7467_v35 = vunpack.i.l.bf16 %v7466_v14  ;;  %6639 = vmatmul.msk.f32.gmra.mxu3 %vm127_vm0, %v9707_v24  ;;  %v7468_v49 = vunpack.i.h.bf16 %v7466_v14  ;;  %v9779_v58 = vpop.permute.xlu2 %7475 }
 0x349   :  { %6655 = vmatmul.msk.f32.gmra.mxu2 %vm127_vm0, %v9714_v61  ;;  %v7478_v50 = vunpack.i.h.bf16 %v9779_v58  ;;  %v7477_v45 = vunpack.i.l.bf16 %v9779_v58  ;;  %v4644_v58 = vld [vmem:[%s12266_s3] sm:$0xff] }
 0x34a   :  { %7630 = vrot.lane.b32.xlu0 %v9193_v8, %s7987_s12  ;;  %2797 = vmatpush.msra.mxu2 %v7467_v35  ;;  %v2702_v20 = vsel %vm1160_vm7, %v7423_v54, %v7467_v35  ;;  %v2700_v4 = vsel %vm1160_vm7, %v7438_v3, %v7468_v49 }
 0x34b   :  { %v2855_v32 = vsel %vm1321_vm8, %v7477_v45, %v7478_v50 }
 0x34c   :  { %2798 = vmatpush.msra.mxu2 %v7468_v49  ;;  %7625 = vrot.lane.b32.xlu2 %v9360_v22, %s7986_s22 }
 0x34d   :  { %7620 = vrot.lane.b32.xlu1 %v9243_v12, %s7986_s22 }
 0x34f   :  { %6645 = vmatmul.msk.f32.vlgmr.msra.gmra.mxu1 %vm127_vm0, %v6633_v25  ;;  %v7471_v44 = vpop.permute.xlu1 %7470 }
 0x350   :  { %2768 = vmatpush.msra.mxu1 %v2702_v20  ;;  %6641 = vmatmul.msk.f32.vlgmr.msra.gmra.mxu0 %vm127_vm0, %v6633_v25  ;;  %v7472_v1 = vunpack.i.l.bf16 %v7471_v44  ;;  %v7473_v41 = vunpack.i.h.bf16 %v7471_v44  ;;  %v7462_v25 = vunpack.i.l.bf16 %v9762_v63  ;;  %v9847_v14 = vpop.permute.xlu2 %7490 }
 0x351   :  { %2739 = vmatpush.msra.mxu0 %v2701_v30  ;;  %6640 = vmatmul.msk.f32.gmra.mxu3 %vm127_vm0, %v9735_v38  ;;  %v7493_v3 = vunpack.i.h.bf16 %v9847_v14  ;;  %v7492_v15 = vunpack.i.l.bf16 %v9847_v14 }
 0x352   :  { %2769 = vmatpush.msra.mxu1 %v2700_v4  ;;  %6656 = vmatmul.msk.f32.gmra.mxu2 %vm127_vm0, %v9742_v56  ;;  %v2698_v42 = vsel %vm1160_vm7, %v7443_v62, %v7472_v1  ;;  %v2696_v16 = vsel %vm1160_vm7, %v7448_v27, %v7473_v41 }
 0x353   :  { %2740 = vmatpush.msra.mxu0 %v2699_v21  ;;  %7645 = vrot.lane.b32.xlu0 %v9243_v12, %s7987_s12  ;;  %v3319_v30 = vsel %vm106_vm1, %v7492_v15, %v7493_v3 }
 0x354   :  { %2799 = vmatpush.msra.mxu2 %v7472_v1  ;;  %2770 = vmatpush.msra.mxu1 %v2698_v42 }
 0x355   :  { %2741 = vmatpush.msra.mxu0 %v2697_v7  ;;  %7640 = vrot.lane.b32.xlu2 %v9314_v18, %s7987_s12  ;;  %v9777_v18 = vld [vmem:[%s12268_s4 + $0xc0] sm:$0xff] }
 0x356   :  { %2800 = vmatpush.msra.mxu2 %v7473_v41  ;;  %7635 = vrot.lane.b32.xlu1 %v9421_v46, %s7986_s22 }
 0x357   :  { %2742 = vmatpush.msra.mxu0 %v2695_v19  ;;  %6646 = vmatmul.msk.f32.gmra.mxu1 %vm127_vm0, %v9680_v37 }
 0x358   :  { %2771 = vmatpush.msra.mxu1 %v2696_v16  ;;  %6642 = vmatmul.msk.f32.gmra.mxu0 %vm127_vm0, %v9680_v37  ;;  %v2857_v37 = vsel %vm1321_vm8, %v7462_v25, %v7463_v34  ;;  %v9899_v44 = vpop.permute.xlu2 %7505 }
 0x359   :  { %6657 = vmatmul.msk.f32.vlgmr.msra.gmra.mxu3 %vm127_vm0, %v9659_v36  ;;  %v7508_v53 = vunpack.i.h.bf16 %v9899_v44  ;;  %v7507_v55 = vunpack.i.l.bf16 %v9899_v44  ;;  %v7975_v44 = vld [vmem:[%s12264_s0 + $0x78] sm:$0xff] }
 0x35a   :  { %6673 = vmatmul.msk.f32.vlgmr.msrb.gmra.mxu2 %vm127_vm0, %v9777_v18  ;;  %2899 = vmatpush.msra.mxu3 %v2861_v10  ;;  %v9799_v6 = vpop.f32.mrf.mxu3 }
 0x35b   :  { %7660 = vrot.lane.b32.xlu0 %v9421_v46, %s7987_s12  ;;  %v7481_v46 = vpop.permute.xlu0 %7480  ;;  %3357 = vmatpush.msrb.mxu2 %v3319_v30 }
 0x35c   :  { %2900 = vmatpush.msra.mxu3 %v2859_v60  ;;  %v7971_v60 = vld [vmem:[%s12264_s0 + $0xb0] sm:$0xff] }
 0x35d   :  { %7655 = vrot.lane.b32.xlu2 %v9360_v22, %s7987_s12  ;;  %v9822_v22 = vpop.permute.xlu1 %7485 }
 0x35e   :  { %2901 = vmatpush.msra.mxu3 %v2857_v37  ;;  %7650 = vrot.lane.b32.xlu1 %v9464_v5, %s7986_s22  ;;  %v7487_v20 = vunpack.i.l.bf16 %v9822_v22  ;;  %v7488_v62 = vunpack.i.h.bf16 %v9822_v22  ;;  %v7972_v22 = vld [vmem:[%s12264_s0 + $0x80] sm:$0xff] }
 0x35f   :  { %6647 = vmatmul.msk.f32.gmra.mxu1 %vm127_vm0, %v9707_v24 }
 0x360   :  { %6643 = vmatmul.msk.f32.gmra.mxu0 %vm127_vm0, %v9707_v24  ;;  %2902 = vmatpush.msra.mxu3 %v2855_v32  ;;  %v9841_v24 = vld [vmem:[%s12268_s4 + $0xd0] sm:$0xff]  ;;  %v2858_v41 = vsel %vm1321_vm8, %v7463_v34, %v7487_v20  ;;  %v2856_v63 = vsel %vm1321_vm8, %v7478_v50, %v7488_v62 }
 0x361   :  { %6658 = vmatmul.msk.f32.gmra.mxu3 %vm127_vm0, %v9687_v17 }
 0x362   :  { %6674 = vmatmul.msk.f32.gmra.mxu2 %vm127_vm0, %v9818_v43  ;;  %v9830_v48 = vpop.f32.mrf.mxu3 }
 0x363   :  { %7675 = vrot.lane.b32.xlu0 %v9223_v51, %s7988_s11  ;;  %v9845_v51 = vpop.f32.mrf.mxu2  ;;  %v9849_v35 = vpop.permute.xlu0 %7495 }
 0x364   :  { %v7498_v1 = vunpack.i.h.bf16 %v9849_v35 }
 0x365   :  { %7670 = vrot.lane.b32.xlu2 %v9193_v8, %s7988_s11  ;;  %v9855_v8 = vpop.permute.xlu1 %7500 }
 0x366   :  { %7665 = vrot.lane.b32.xlu1 %v9464_v5, %s7987_s12  ;;  %v7482_v5 = vunpack.i.l.bf16 %v7481_v46  ;;  %v7502_v27 = vunpack.i.l.bf16 %v9855_v8 }
 0x367   :  { %6648 = vmatmul.msk.f32.gmra.mxu1 %vm127_vm0, %v9735_v38 }
 0x368   :  { %6644 = vmatmul.msk.f32.gmra.mxu0 %vm127_vm0, %v9735_v38  ;;  %v7483_v38 = vunpack.i.h.bf16 %v7481_v46  ;;  %v3317_v16 = vsel %vm106_vm1, %v7498_v1, %v7502_v27  ;;  %v9960_v46 = vld [vmem:[%s12268_s4 + $0xe8] sm:$0xff] }
 0x369   :  { %6659 = vmatmul.msk.f32.gmra.mxu3 %vm127_vm0, %v9714_v61  ;;  %3358 = vmatpush.msrb.mxu2 %v3317_v16 }
 0x36a   :  { %6675 = vmatmul.msk.f32.gmra.mxu2 %vm127_vm0, %v9841_v24 }
 0x36b   :  { %7690 = vrot.lane.b32.xlu0 %v9268_v59, %s7988_s11  ;;  %v9859_v49 = vpop.f32.mrf.mxu1  ;;  %v9861_v54 = vpop.f32.mrf.mxu3  ;;  %v9874_v59 = vld [vmem:[%s12268_s4 + $0xd8] sm:$0xff] }
 0x36c   :  { %v1726_v31 = vpop.f32.mrf.mxu0  ;;  %v1805_v33 = vpop.f32.mrf.mxu2 }
 0x36d   :  { %7685 = vrot.lane.b32.xlu2 %v9243_v12, %s7988_s11  ;;  %v2862_v12 = vsel %vm1321_vm8, %v7453_v11, %v7482_v5  ;;  %v9902_v4 = vpop.permute.xlu0 %7510  ;;  %v9912_v7 = vpop.permute.xlu1 %7515 }
 0x36e   :  { %7680 = vrot.lane.b32.xlu1 %v9287_v26, %s7988_s11  ;;  %v4646_v26 = vld [vmem:[%s12266_s3 + $0x10] sm:$0xff]  ;;  %v7513_v19 = vunpack.i.h.bf16 %v9902_v4  ;;  %v7518_v14 = vunpack.i.h.bf16 %v9912_v7 }
 0x36f   :  { %6669 = vmatmul.msk.f32.vlgmr.msrb.gmra.mxu1 %vm127_vm0, %v9777_v18 }
 0x370   :  { %2957 = vmatpush.msrb.mxu1 %v7482_v5  ;;  %6661 = vmatmul.msk.f32.vlgmr.msrb.gmra.mxu0 %vm127_vm0, %v9659_v36  ;;  %v2860_v36 = vsel %vm1321_vm8, %v7458_v29, %v7483_v38  ;;  %v7517_v29 = vunpack.i.l.bf16 %v9912_v7  ;;  %v7977_v7 = vld [vmem:[%s12264_s0 + $0xb8] sm:$0xff] }
 0x371   :  { %2928 = vmatpush.msrb.mxu0 %v2862_v12  ;;  %6660 = vmatmul.msk.f32.gmra.mxu3 %vm127_vm0, %v9742_v56 }
 0x372   :  { %2958 = vmatpush.msrb.mxu1 %v7483_v38  ;;  %6676 = vmatmul.msk.f32.gmra.mxu2 %vm127_vm0, %v9874_v59  ;;  %v3313_v34 = vsel %vm106_vm1, %v7513_v19, %v7517_v29 }
 0x373   :  { %2929 = vmatpush.msrb.mxu0 %v2860_v36  ;;  %4660 = vperm.xlu0 %7246, %v4646_v26   ;;  %v9907_v21 = vpop.f32.mrf.mxu1  ;;  %v1706_v42 = vpop.f32.mrf.mxu3 }
 0x374   :  { %2959 = vmatpush.msrb.mxu1 %v7487_v20  ;;  %v1729_v11 = vpop.f32.mrf.mxu0  ;;  %v9914_v57 = vadd.f32 %v1805_v33, %v1706_v42  ;;  %v9990_v20 = vpop.permute.xlu2 %7520  ;;  %v7503_v33 = vunpack.i.h.bf16 %v9855_v8 }
 0x375   :  { %2930 = vmatpush.msrb.mxu0 %v2858_v41  ;;  %4665 = vperm.xlu2 %7248, %v4647_v23   ;;  %v9965_v32 = vpop.permute.xlu1 %7530  ;;  %v9995_v12 = vpop.permute.xlu0 %7525 }
 0x376   :  { %2960 = vmatpush.msrb.mxu1 %v7488_v62  ;;  %7695 = vrot.lane.b32.xlu1 %v9338_v39, %s7988_s11  ;;  %v3315_v39 = vsel %vm106_vm1, %v7507_v55, %v7508_v53  ;;  %v7512_v55 = vunpack.i.l.bf16 %v9902_v4  ;;  %v3318_v41 = vsel %vm106_vm1, %v7502_v27, %v7503_v33  ;;  %v7974_v27 = vld [vmem:[%s12264_s0 + $0x90] sm:$0xff] }
 0x377   :  { %2931 = vmatpush.msrb.mxu0 %v2856_v63  ;;  %6670 = vmatmul.msk.f32.gmra.mxu1 %vm127_vm0, %v9818_v43  ;;  %v10036_v63 = vld [vmem:[%s12268_s4 + $0x100] sm:$0xff] }
 0x378   :  { %6662 = vmatmul.msk.f32.gmra.mxu0 %vm127_vm0, %v9687_v17  ;;  %v4645_v17 = vld [vmem:[%s12266_s3 + $0x8] sm:$0xff]  ;;  %3359 = vmatpush.msrb.mxu2 %v3315_v39 }
 0x379   :  { %6677 = vmatmul.msk.f32.vlgmr.msrb.gmra.mxu3 %vm127_vm0, %v9777_v18 }
 0x37a   :  { %6693 = vmatmul.msk.f32.vlgmr.msra.gmra.mxu2 %vm127_vm0, %v6681_v40 }
 0x37b   :  { %v9948_v25 = vpop.f32.mrf.mxu1  ;;  %v1825_v10 = vpop.f32.mrf.mxu3  ;;  %3360 = vmatpush.msrb.mxu2 %v3313_v34  ;;  %v3316_v34 = vsel %vm106_vm1, %v7508_v53, %v7512_v55 }
 0x37c   :  { %v1732_v50 = vpop.f32.mrf.mxu0  ;;  %v1826_v18 = vadd.f32 %v1825_v10, %v1726_v31  ;;  %v1973_v45 = vpop.f32.mrf.mxu2  ;;  %v3314_v10 = vsel %vm106_vm1, %v7517_v29, %v7518_v14 }
 0x37d   :  { %4650 = vperm.xlu2 %7248, %v4644_v58   ;;  %3485 = vmatpush.msra.mxu2 %v7971_v60  ;;  %v9997_v26 = vpop.permute.xlu1 %7545  ;;  %v10031_v19 = vpop.permute.xlu2 %7535  ;;  %v10049_v58 = vld [vmem:[%s12265_s2 + $0x20] sm:$0xff] }
 0x37e   :  { %4655 = vperm.xlu1 %7247, %v4645_v17   ;;  %v9953_v37 = vadd.f32 %v1973_v45, %v1826_v18  ;;  %v7547_v17 = vunpack.i.l.bf16 %v9997_v26  ;;  %v7548_v53 = vunpack.i.h.bf16 %v9997_v26  ;;  %v7976_v18 = vld [vmem:[%s12264_s0 + $0x60] sm:$0xff] }
 0x37f   :  { %6671 = vmatmul.msk.f32.gmra.mxu1 %vm127_vm0, %v9841_v24  ;;  %3486 = vmatpush.msra.mxu2 %v9273_v13 }
 0x380   :  { %6663 = vmatmul.msk.f32.gmra.mxu0 %vm127_vm0, %v9714_v61 }
 0x381   :  { %6678 = vmatmul.msk.f32.gmra.mxu3 %vm127_vm0, %v9818_v43  ;;  %3487 = vmatpush.msra.mxu2 %v7972_v22  ;;  %v9984_v43 = vld [vmem:[%s12268_s4 + $0xf0] sm:$0xff] }
 0x382   :  { %6694 = vmatmul.msk.f32.gmra.mxu2 %vm127_vm0, %v9960_v46 }
 0x383   :  { %v9974_v5 = vpop.f32.mrf.mxu1  ;;  %v1828_v31 = vpop.f32.mrf.mxu3  ;;  %3488 = vmatpush.msra.mxu2 %v9319_v52  ;;  %v7497_v52 = vunpack.i.l.bf16 %v9849_v35  ;;  %v10008_v35 = vld [vmem:[%s12268_s4 + $0xf8] sm:$0xff] }
 0x384   :  { %v1735_v15 = vpop.f32.mrf.mxu0  ;;  %v1829_v61 = vadd.f32 %v1828_v31, %v1729_v11  ;;  %v1976_v38 = vpop.f32.mrf.mxu2  ;;  %v7978_v31 = vld [vmem:[%s12264_s0 + $0xa0] sm:$0xff] }
 0x385   :  { %v3320_v1 = vsel %vm106_vm1, %v7493_v3, %v7497_v52  ;;  %v7973_v3 = vld [vmem:[%s12264_s0 + $0xa8] sm:$0xff]  ;;  %v10040_v16 = vpop.permute.xlu1 %7560 }
 0x386   :  { %v9977_v13 = vadd.f32 %v1976_v38, %v1829_v61  ;;  %3386 = vmatpush.msrb.mxu3 %v3320_v1  ;;  %v7562_v29 = vunpack.i.l.bf16 %v10040_v16  ;;  %v7563_v61 = vunpack.i.h.bf16 %v10040_v16 }
 0x387   :  { %6672 = vmatmul.msk.f32.gmra.mxu1 %vm127_vm0, %v9874_v59 }
 0x388   :  { %6664 = vmatmul.msk.f32.gmra.mxu0 %vm127_vm0, %v9742_v56  ;;  %3387 = vmatpush.msrb.mxu3 %v3318_v41 }
 0x389   :  { %6679 = vmatmul.msk.f32.gmra.mxu3 %vm127_vm0, %v9841_v24 }
 0x38a   :  { %6695 = vmatmul.msk.f32.gmra.mxu2 %vm127_vm0, %v9984_v43  ;;  %3388 = vmatpush.msrb.mxu3 %v3316_v34 }
 0x38b   :  { %v9999_v62 = vpop.f32.mrf.mxu1  ;;  %v1831_v36 = vpop.f32.mrf.mxu3 }
 0x38c   :  { %v1832_v56 = vadd.f32 %v1831_v36, %v1732_v50  ;;  %v1854_v23 = vpop.f32.mrf.mxu0  ;;  %v1979_v30 = vpop.f32.mrf.mxu2  ;;  %3389 = vmatpush.msrb.mxu3 %v3314_v10  ;;  %v7979_v36 = vld [vmem:[%s12264_s0 + $0x88] sm:$0xff] }
 0x38d   :  { %v1855_v50 = vadd.f32 %v1854_v23, %v9859_v49  ;;  %v10109_v23 = vpop.permute.xlu1 %7575 }
 0x38e   :  { %v10002_v24 = vadd.f32 %v1979_v30, %v1832_v56  ;;  %v7980_v30 = vld [vmem:[%s12264_s0 + $0x70] sm:$0xff] }
 0x38f   :  { %6689 = vmatmul.msk.f32.vlgmr.msra.gmra.mxu1 %vm127_vm0, %v6681_v40 }
 0x390   :  { %6685 = vmatmul.msk.f32.vlgmr.msra.gmra.mxu0 %vm127_vm0, %v6681_v40  ;;  %3456 = vmatpush.msra.mxu1 %v7973_v3  ;;  %v10038_v40 = vpop.permute.xlu0 %7540 }
 0x391   :  { %6680 = vmatmul.msk.f32.gmra.mxu3 %vm127_vm0, %v9874_v59  ;;  %3415 = vmatpush.msra.mxu0 %v7497_v52  ;;  %v10096_v52 = vld [vmem:[%s12265_s2 + $0x28] sm:$0xff] }
 0x392   :  { %6696 = vmatmul.msk.f32.gmra.mxu2 %vm127_vm0, %v10008_v35  ;;  %3457 = vmatpush.msra.mxu1 %v7974_v27 }
 0x393   :  { %3416 = vmatpush.msra.mxu0 %v7503_v33  ;;  %v10026_v4 = vpop.f32.mrf.mxu1  ;;  %v1834_v59 = vpop.f32.mrf.mxu3 }
 0x394   :  { %v1835_v42 = vadd.f32 %v1834_v59, %v1735_v15  ;;  %v1857_v11 = vpop.f32.mrf.mxu0  ;;  %v1982_v8 = vpop.f32.mrf.mxu2  ;;  %3458 = vmatpush.msra.mxu1 %v7975_v44  ;;  %v6698_v15 = vld [vmem:[%s12268_s4 + $0x108] sm:$0xff]  ;;  %v6699_v59 = vld [vmem:[%s12268_s4 + $0x110] sm:$0xff] }
 0x395   :  { %3417 = vmatpush.msra.mxu0 %v7512_v55  ;;  %v10101_v33 = vpop.permute.xlu2 %7550  ;;  %v1858_v1 = vadd.f32 %v1857_v11, %v9907_v21  ;;  %v10132_v21 = vld [vmem:[%s12265_s2 + $0x30] sm:$0xff]  ;;  %v10143_v27 = vpop.permute.xlu1 %3875 }
 0x396   :  { %v10042_v39 = vadd.f32 %v1982_v8, %v1835_v42  ;;  %3459 = vmatpush.msra.mxu1 %v7976_v18  ;;  %12404 = vst [vmem:[#allocation45_spill] sm:$0xff] %v10143_v27 }
 0x397   :  { %6690 = vmatmul.msk.f32.gmra.mxu1 %vm127_vm0, %v9960_v46  ;;  %3418 = vmatpush.msra.mxu0 %v7518_v14 }
 0x398   :  { %6686 = vmatmul.msk.f32.gmra.mxu0 %vm127_vm0, %v9960_v46  ;;  %v10107_v56 = vpop.permute.xlu0 %7555 }
 0x399   :  { %6701 = vmatmul.msk.f32.vlgmr.msra.gmra.mxu3 %vm127_vm0, %v10036_v63 }
 0x39a   :  { %6733 = vmatmul.msk.f32.vlgmr.msrb.gmra.mxu2 %vm127_vm0, %v10049_v58  ;;  %3514 = vmatpush.msra.mxu3 %v7977_v7 }
 0x39b   :  { %v10076_v45 = vpop.f32.mrf.mxu1  ;;  %v2002_v60 = vpop.f32.mrf.mxu3  ;;  %3661 = vmatpush.msrb.mxu2 %v7547_v17 }
 0x39c   :  { %v1860_v46 = vpop.f32.mrf.mxu0  ;;  %v2016_v49 = vadd.f32 %v2002_v60, %v1855_v50  ;;  %v2162_v22 = vpop.f32.mrf.mxu2  ;;  %3515 = vmatpush.msra.mxu3 %v7978_v31 }
 0x39d   :  { %3662 = vmatpush.msrb.mxu2 %v7548_v53  ;;  %v10137_v11 = vpop.permute.xlu2 %7565  ;;  %v1861_v34 = vadd.f32 %v1860_v46, %v9948_v25  ;;  %v10160_v25 = vld [vmem:[%s12265_s2 + $0x38] sm:$0xff] }
 0x39e   :  { %v10089_v38 = vadd.f32 %v2162_v22, %v2016_v49  ;;  %3516 = vmatpush.msra.mxu3 %v7979_v36 }
 0x39f   :  { %6691 = vmatmul.msk.f32.gmra.mxu1 %vm127_vm0, %v9984_v43  ;;  %3663 = vmatpush.msrb.mxu2 %v7562_v29 }
 0x3a0   :  { %6687 = vmatmul.msk.f32.gmra.mxu0 %vm127_vm0, %v9984_v43  ;;  %3517 = vmatpush.msra.mxu3 %v7980_v30  ;;  %v10141_v8 = vpop.permute.xlu0 %7570 }
 0x3a1   :  { %6702 = vmatmul.msk.f32.gmra.mxu3 %vm127_vm0, %v6698_v15  ;;  %3664 = vmatpush.msrb.mxu2 %v7563_v61  ;;  %v7573_v16 = vunpack.i.h.bf16 %v10141_v8 }
 0x3a2   :  { %6734 = vmatmul.msk.f32.gmra.mxu2 %vm127_vm0, %v10096_v52 }
 0x3a3   :  { %v10120_v43 = vpop.f32.mrf.mxu1  ;;  %v2005_v55 = vpop.f32.mrf.mxu3 }
 0x3a4   :  { %v1863_v41 = vpop.f32.mrf.mxu0  ;;  %v2019_v14 = vadd.f32 %v2005_v55, %v1858_v1  ;;  %v2165_v3 = vpop.f32.mrf.mxu2  ;;  %v1797_v55 = vadd.f32 %v9758_v28, %v9799_v6  ;;  %v7523_v6 = vunpack.i.h.bf16 %v9990_v20 }
 0x3a5   :  { %v1864_v46 = vadd.f32 %v1863_v41, %v9974_v5  ;;  %v3872_v1 = vpop.permute.xlu2 %3871  ;;  %v10183_v5 = vld [vmem:[%s12265_s2] sm:$0xff] }
 0x3a6   :  { %v10125_v42 = vadd.f32 %v2165_v3, %v2019_v14  ;;  %v2014_v28 = vadd.f32 %v9999_v62, %v1797_v55  ;;  %v7527_v62 = vunpack.i.l.bf16 %v9995_v12  ;;  %v10212_v55 = vld [vmem:[%s12265_s2 + $0x8] sm:$0xff] }
 0x3a7   :  { %6692 = vmatmul.msk.f32.gmra.mxu1 %vm127_vm0, %v10008_v35 }
 0x3a8   :  { %6688 = vmatmul.msk.f32.gmra.mxu0 %vm127_vm0, %v10008_v35  ;;  %v10151_v35 = vld [vmem:[%s12268_s4 + $0x118] sm:$0xff]  ;;  %v10173_v14 = vpop.permute.xlu0 %3873 }
 0x3a9   :  { %6703 = vmatmul.msk.f32.gmra.mxu3 %vm127_vm0, %v6699_v59  ;;  %v10187_v41 = vsel %vm677_vm4, %v3872_v1, %v10173_v14  ;;  %v7532_v1 = vunpack.i.l.bf16 %v9965_v32 }
 0x3aa   :  { %6735 = vmatmul.msk.f32.gmra.mxu2 %vm127_vm0, %v10132_v21  ;;  %12406 = vst [vmem:[#allocation16_spill] sm:$0xff] %v10187_v41 }
 0x3ab   :  { %v10146_v10 = vpop.f32.mrf.mxu1  ;;  %v2008_v44 = vpop.f32.mrf.mxu3 }
 0x3ac   :  { %v2022_v50 = vadd.f32 %v2008_v44, %v1861_v34  ;;  %v2168_v7 = vpop.f32.mrf.mxu2  ;;  %v7522_v34 = vunpack.i.l.bf16 %v9990_v20  ;;  %v1800_v20 = vadd.f32 %v9808_v2, %v9830_v48 }
 0x3ad   :  { %v2104_v18 = vpop.f32.mrf.mxu0 }
 0x3ae   :  { %v10153_v60 = vadd.f32 %v2168_v7, %v2022_v50  ;;  %v2174_v44 = vadd.f32 %v2104_v18, %v2014_v28  ;;  %v2017_v28 = vadd.f32 %v10026_v4, %v1800_v20 }
 0x3af   :  { %6709 = vmatmul.msk.f32.vlgmr.msrb.gmra.mxu1 %vm127_vm0, %v10036_v63 }
 0x3b0   :  { %6705 = vmatmul.msk.f32.vlgmr.msrb.gmra.mxu0 %vm127_vm0, %v10036_v63  ;;  %v10175_v63 = vpop.permute.xlu1 %3869  ;;  %v10233_v4 = vpop.permute.xlu0 %3867 }
 0x3b1   :  { %6704 = vmatmul.msk.f32.gmra.mxu3 %vm127_vm0, %v10151_v35  ;;  %12405 = vst [vmem:[#allocation15_spill] sm:$0xff] %v10175_v63 }
 0x3b2   :  { %6736 = vmatmul.msk.f32.gmra.mxu2 %vm127_vm0, %v10160_v25 }
 0x3b3   :  { %v2011_v22 = vpop.f32.mrf.mxu3 }
 0x3b4   :  { %v10169_v49 = vpop.f32.mrf.mxu1  ;;  %v2025_v31 = vadd.f32 %v2011_v22, %v1864_v46  ;;  %v2171_v30 = vpop.f32.mrf.mxu2 }
 0x3b5   :  { %v2107_v36 = vpop.f32.mrf.mxu0 }
 0x3b6   :  { %v10177_v3 = vadd.f32 %v2171_v30, %v2025_v31  ;;  %v7533_v30 = vunpack.i.h.bf16 %v9965_v32  ;;  %v3566_v32 = vsel %vm355_vm2, %v7523_v6, %v7547_v17 }
 0x3b7   :  { %6710 = vmatmul.msk.f32.gmra.mxu1 %vm127_vm0, %v6698_v15 }
 0x3b8   :  { %6706 = vmatmul.msk.f32.gmra.mxu0 %vm127_vm0, %v6698_v15  ;;  %v7528_v15 = vunpack.i.h.bf16 %v9995_v12  ;;  %v3565_v12 = vsel %vm355_vm2, %v7522_v34, %v7523_v6  ;;  %v10220_v2 = vpop.permute.xlu1 %3863  ;;  %3632 = vmatpush.msrb.mxu1 %v3566_v32  ;;  %v3561_v17 = vsel %vm355_vm2, %v7532_v1, %v7533_v30  ;;  %v2177_v6 = vadd.f32 %v2107_v36, %v2017_v28 }
 0x3b9   :  { %6737 = vmatmul.msk.f32.vlgmr.msrb.gmra.mxu3 %vm127_vm0, %v10049_v58  ;;  %12407 = vst [vmem:[#allocation19_spill] sm:$0xff] %v10220_v2  ;;  %3603 = vmatpush.msrb.mxu0 %v3565_v12  ;;  %v7543_v1 = vunpack.i.h.bf16 %v10038_v40  ;;  %v7542_v36 = vunpack.i.l.bf16 %v10038_v40  ;;  %v7572_v40 = vunpack.i.l.bf16 %v10141_v8  ;;  %v7553_v32 = vunpack.i.h.bf16 %v10101_v33  ;;  %v10288_v8 = vld [vmem:[%s12265_s2 + $0x18] sm:$0xff] }
 0x3ba   :  { %6749 = vmatmul.msk.f32.vlgmr.msra.gmra.mxu2 %vm127_vm0, %v10183_v5  ;;  %v3563_v48 = vsel %vm355_vm2, %v7527_v62, %v7528_v15  ;;  %v3564_v34 = vsel %vm355_vm2, %v7528_v15, %v7548_v53  ;;  %v7538_v53 = vunpack.i.h.bf16 %v10031_v19  ;;  %v7537_v15 = vunpack.i.l.bf16 %v10031_v19  ;;  %v10253_v19 = vld [vmem:[%s12265_s2 + $0x10] sm:$0xff] }
 0x3bb   :  { %3921 = vmatpush.msra.mxu2 %v10187_v41  ;;  %v2264_v7 = vpop.f32.mrf.mxu3  ;;  %3604 = vmatpush.msrb.mxu0 %v3563_v48  ;;  %v3724_v12 = vsel %vm516_vm3, %v7542_v36, %v7543_v1  ;;  %v7552_v28 = vunpack.i.l.bf16 %v10101_v33 }
 0x3bc   :  { %v10198_v50 = vpop.f32.mrf.mxu1  ;;  %v2334_v22 = vadd.f32 %v2264_v7, %v2174_v44  ;;  %v2424_v31 = vpop.f32.mrf.mxu2  ;;  %v3562_v44 = vsel %vm355_vm2, %v7533_v30, %v7562_v29  ;;  %3633 = vmatpush.msrb.mxu1 %v3564_v34  ;;  %v1803_v29 = vadd.f32 %v9845_v51, %v9861_v54  ;;  %v3559_v51 = vsel %vm355_vm2, %v7537_v15, %v7538_v53 }
 0x3bd   :  { %v2110_v46 = vpop.f32.mrf.mxu0  ;;  %3605 = vmatpush.msrb.mxu0 %v3561_v17  ;;  %v3560_v54 = vsel %vm355_vm2, %v7538_v53, %v7563_v61  ;;  %3762 = vmatpush.msrb.mxu3 %v3724_v12  ;;  %v7558_v34 = vunpack.i.h.bf16 %v10107_v56  ;;  %v7557_v17 = vunpack.i.l.bf16 %v10107_v56  ;;  %v3725_v53 = vsel %vm516_vm3, %v7543_v1, %v7572_v40 }
 0x3be   :  { %v10206_v18 = vadd.f32 %v2424_v31, %v2334_v22  ;;  %3634 = vmatpush.msrb.mxu1 %v3562_v44  ;;  %v2020_v20 = vadd.f32 %v10076_v45, %v1803_v29  ;;  %v3722_v56 = vsel %vm516_vm3, %v7552_v28, %v7553_v32  ;;  %v2023_v1 = vadd.f32 %v10120_v43, %v9914_v57 }
 0x3bf   :  { %6711 = vmatmul.msk.f32.gmra.mxu1 %vm127_vm0, %v6699_v59  ;;  %3606 = vmatpush.msrb.mxu0 %v3559_v51  ;;  %v3720_v36 = vsel %vm516_vm3, %v7557_v17, %v7558_v34  ;;  %v7567_v51 = vunpack.i.l.bf16 %v10137_v11  ;;  %v7578_v57 = vunpack.i.h.bf16 %v10109_v23 }
 0x3c0   :  { %6707 = vmatmul.msk.f32.gmra.mxu0 %vm127_vm0, %v6699_v59  ;;  %v10231_v59 = vpop.permute.xlu2 %3865  ;;  %v2180_v45 = vadd.f32 %v2110_v46, %v2020_v20  ;;  %3635 = vmatpush.msrb.mxu1 %v3560_v54  ;;  %v7577_v46 = vunpack.i.l.bf16 %v10109_v23  ;;  %v7568_v20 = vunpack.i.h.bf16 %v10137_v11  ;;  %v6757_v23 = vld [vmem:[%s12265_s2 + $0x40] sm:$0xff] }
 0x3c1   :  { %6738 = vmatmul.msk.f32.gmra.mxu3 %vm127_vm0, %v10096_v52  ;;  %v10319_v11 = vsel %vm677_vm4, %v10231_v59, %v10233_v4  ;;  %v2175_v59 = vadd.f32 %v10146_v10, %v9953_v37 }
 0x3c2   :  { %6750 = vmatmul.msk.f32.gmra.mxu2 %vm127_vm0, %v10212_v55  ;;  %3763 = vmatpush.msrb.mxu3 %v3722_v56  ;;  %12409 = vst [vmem:[#allocation22_spill] sm:$0xff] %v10319_v11  ;;  %v3718_v28 = vsel %vm516_vm3, %v7567_v51, %v7568_v20  ;;  %v2178_v56 = vadd.f32 %v10169_v49, %v9977_v13  ;;  %v10379_v13 = vld [vmem:[%s12265_s2 + $0x50] sm:$0xff] }
 0x3c3   :  { %v2267_v26 = vpop.f32.mrf.mxu3  ;;  %3922 = vmatpush.msra.mxu2 %v10319_v11  ;;  %v10386_v49 = vsel %vm677_vm4, %v10233_v4, %v10175_v63  ;;  %v2181_v51 = vadd.f32 %v10198_v50, %v10002_v24  ;;  %v10409_v50 = vld [vmem:[%s12265_s2 + $0x58] sm:$0xff] }
 0x3c4   :  { %v10238_v7 = vpop.f32.mrf.mxu1  ;;  %v2337_v22 = vadd.f32 %v2267_v26, %v2177_v6  ;;  %v2427_v31 = vpop.f32.mrf.mxu2  ;;  %3764 = vmatpush.msrb.mxu3 %v3720_v36  ;;  %12415 = vst [vmem:[#allocation39_spill] sm:$0xff] %v10386_v49 }
 0x3c5   :  { %v2113_v62 = vpop.f32.mrf.mxu0 }
 0x3c6   :  { %v10246_v30 = vadd.f32 %v2427_v31, %v2337_v22  ;;  %v10279_v22 = vpop.permute.xlu0 %3861  ;;  %v3723_v31 = vsel %vm516_vm3, %v7553_v32, %v7573_v16  ;;  %v2183_v29 = vadd.f32 %v2113_v62, %v2023_v1  ;;  %3765 = vmatpush.msrb.mxu3 %v3718_v28 }
 0x3c7   :  { %6712 = vmatmul.msk.f32.gmra.mxu1 %vm127_vm0, %v10151_v35 }
 0x3c8   :  { %6708 = vmatmul.msk.f32.gmra.mxu0 %vm127_vm0, %v10151_v35  ;;  %v10268_v35 = vpop.permute.xlu1 %3857  ;;  %v3860_v15 = vpop.permute.xlu2 %3859 }
 0x3c9   :  { %6739 = vmatmul.msk.f32.gmra.mxu3 %vm127_vm0, %v10132_v21  ;;  %12408 = vst [vmem:[#allocation23_spill] sm:$0xff] %v10268_v35 }
 0x3ca   :  { %6751 = vmatmul.msk.f32.gmra.mxu2 %vm127_vm0, %v10253_v19 }
 0x3cb   :  { %v2270_v48 = vpop.f32.mrf.mxu3 }
 0x3cc   :  { %v10273_v61 = vpop.f32.mrf.mxu1  ;;  %v2340_v6 = vadd.f32 %v2270_v48, %v2180_v45  ;;  %v2430_v26 = vpop.f32.mrf.mxu2  ;;  %v10328_v48 = vsel %vm677_vm4, %v3860_v15, %v10279_v22  ;;  %v10359_v15 = vsel %vm677_vm4, %v10173_v14, %v10143_v27 }
 0x3cd   :  { %v2293_v44 = vpop.f32.mrf.mxu0  ;;  %12410 = vst [vmem:[#allocation31_spill] sm:$0xff] %v10328_v48  ;;  %3923 = vmatpush.msra.mxu2 %v10328_v48 }
 0x3ce   :  { %v10281_v33 = vadd.f32 %v2430_v26, %v2340_v6  ;;  %v10330_v17 = vpop.permute.xlu0 %3855  ;;  %v2335_v6 = vadd.f32 %v2293_v44, %v2175_v59  ;;  %v10352_v44 = vld [vmem:[%s12265_s2 + $0x48] sm:$0xff]  ;;  %12413 = vst [vmem:[#allocation29_spill] sm:$0xff] %v10359_v15 }
 0x3cf   :  { %6745 = vmatmul.msk.f32.vlgmr.msra.gmra.mxu1 %vm127_vm0, %v10183_v5 }
 0x3d0   :  { %6741 = vmatmul.msk.f32.vlgmr.msra.gmra.mxu0 %vm127_vm0, %v10049_v58  ;;  %3820 = vmatpush.msra.mxu1 %v7572_v40  ;;  %v3721_v58 = vsel %vm516_vm3, %v7558_v34, %v7577_v46  ;;  %v10307_v32 = vpop.permute.xlu1 %7590  ;;  %v3854_v34 = vpop.permute.xlu2 %3853 }
 0x3d1   :  { %6740 = vmatmul.msk.f32.gmra.mxu3 %vm127_vm0, %v10160_v25  ;;  %3791 = vmatpush.msra.mxu0 %v3725_v53 }
 0x3d2   :  { %6752 = vmatmul.msk.f32.gmra.mxu2 %vm127_vm0, %v10288_v8  ;;  %3821 = vmatpush.msra.mxu1 %v7573_v16  ;;  %v3719_v16 = vsel %vm516_vm3, %v7568_v20, %v7578_v57 }
 0x3d3   :  { %3792 = vmatpush.msra.mxu0 %v3723_v31 }
 0x3d4   :  { %v10305_v43 = vpop.f32.mrf.mxu1  ;;  %v2273_v54 = vpop.f32.mrf.mxu3  ;;  %3822 = vmatpush.msra.mxu1 %v7577_v46 }
 0x3d5   :  { %v2343_v40 = vadd.f32 %v2273_v54, %v2183_v29  ;;  %v2296_v12 = vpop.f32.mrf.mxu0  ;;  %v2433_v45 = vpop.f32.mrf.mxu2  ;;  %3793 = vmatpush.msra.mxu0 %v3721_v58 }
 0x3d6   :  { %3823 = vmatpush.msra.mxu1 %v7578_v57  ;;  %v2338_v1 = vadd.f32 %v2296_v12, %v2178_v56  ;;  %v10397_v57 = vpop.permute.xlu0 %7585  ;;  %v12290_v56 = vunpack.i.l.bf16 %v10307_v32 }
 0x3d7   :  { %v10309_v62 = vadd.f32 %v2433_v45, %v2343_v40  ;;  %6746 = vmatmul.msk.f32.gmra.mxu1 %vm127_vm0, %v10212_v55  ;;  %3794 = vmatpush.msra.mxu0 %v3719_v16  ;;  %v2184_v16 = vadd.f32 %v10238_v7, %v10042_v39  ;;  %v7588_v39 = vunpack.i.h.bf16 %v10397_v57  ;;  %v12291_v7 = vunpack.i.l.bf16 %v10397_v57 }
 0x3d8   :  { %6742 = vmatmul.msk.f32.gmra.mxu0 %vm127_vm0, %v10096_v52  ;;  %v10339_v52 = vsel %vm677_vm4, %v3854_v34, %v10330_v17  ;;  %v10363_v31 = vpop.permute.xlu1 %7605 }
 0x3d9   :  { %6753 = vmatmul.msk.f32.vlgmr.msra.gmra.mxu3 %vm127_vm0, %v10183_v5  ;;  %12411 = vst [vmem:[#allocation17_spill] sm:$0xff] %v10339_v52  ;;  %3924 = vmatpush.msra.mxu2 %v10339_v52 }
 0x3da   :  { %6769 = vmatmul.msk.f32.vlgmr.msrb.gmra.mxu2 %vm127_vm0, %v6757_v23  ;;  %3950 = vmatpush.msra.mxu3 %v10359_v15 }
 0x3dc   :  { %v10342_v26 = vpop.f32.mrf.mxu1  ;;  %v2453_v46 = vpop.f32.mrf.mxu3  ;;  %3951 = vmatpush.msra.mxu3 %v10386_v49 }
 0x3dd   :  { %v2299_v53 = vpop.f32.mrf.mxu0  ;;  %v2495_v37 = vadd.f32 %v2453_v46, %v2335_v6  ;;  %v2613_v10 = vpop.f32.mrf.mxu2 }
 0x3de   :  { %v2341_v54 = vadd.f32 %v2299_v53, %v2181_v51 }
 0x3df   :  { %v10345_v5 = vadd.f32 %v2613_v10, %v2495_v37  ;;  %6747 = vmatmul.msk.f32.gmra.mxu1 %vm127_vm0, %v10253_v19  ;;  %v7593_v10 = vunpack.i.h.bf16 %v10307_v32 }
 0x3e0   :  { %6743 = vmatmul.msk.f32.gmra.mxu0 %vm127_vm0, %v10132_v21 }
 0x3e1   :  { %12412 = vst [vmem:[#allocation25_spill] sm:$0xff] %v10345_v5  ;;  %6754 = vmatmul.msk.f32.gmra.mxu3 %vm127_vm0, %v10212_v55  ;;  %v10388_v55 = vpop.permute.xlu2 %7580 }
 0x3e2   :  { %6770 = vmatmul.msk.f32.gmra.mxu2 %vm127_vm0, %v10352_v44  ;;  %v7582_v34 = vunpack.i.l.bf16 %v10388_v55 }
 0x3e4   :  { %v10370_v21 = vpop.f32.mrf.mxu1  ;;  %v2456_v36 = vpop.f32.mrf.mxu3 }
 0x3e5   :  { %v2302_v58 = vpop.f32.mrf.mxu0  ;;  %v2498_v14 = vadd.f32 %v2456_v36, %v2338_v1  ;;  %v2616_v29 = vpop.f32.mrf.mxu2  ;;  %v10442_v36 = vld [vmem:[%s12265_s2 + $0x60] sm:$0xff] }
 0x3e7   :  { %v10372_v20 = vadd.f32 %v2616_v29, %v2498_v14  ;;  %6748 = vmatmul.msk.f32.gmra.mxu1 %vm127_vm0, %v10288_v8  ;;  %v10453_v29 = vld [vmem:[%s12265_s2 + $0x80] sm:$0xff] }
 0x3e8   :  { %6744 = vmatmul.msk.f32.gmra.mxu0 %vm127_vm0, %v10160_v25  ;;  %v10399_v25 = vpop.permute.xlu1 %7620 }
 0x3e9   :  { %12414 = vst [vmem:[#allocation36_spill] sm:$0xff] %v10372_v20  ;;  %6755 = vmatmul.msk.f32.gmra.mxu3 %vm127_vm0, %v10253_v19  ;;  %v10415_v19 = vsel %vm677_vm4, %v10279_v22, %v10220_v2  ;;  %v10427_v59 = vpop.permute.xlu2 %7595  ;;  %v2344_v22 = vadd.f32 %v2302_v58, %v2184_v16  ;;  %v10444_v58 = vpop.permute.xlu0 %7600  ;;  %v2336_v16 = vadd.f32 %v10273_v61, %v10089_v38 }
 0x3ea   :  { %6771 = vmatmul.msk.f32.gmra.mxu2 %vm127_vm0, %v10379_v13  ;;  %12417 = vst [vmem:[#allocation20_spill] sm:$0xff] %v10415_v19  ;;  %3952 = vmatpush.msra.mxu3 %v10415_v19 }
 0x3ec   :  { %v10401_v4 = vpop.f32.mrf.mxu1  ;;  %v2459_v40 = vpop.f32.mrf.mxu3 }
 0x3ed   :  { %v2501_v12 = vadd.f32 %v2459_v40, %v2341_v54  ;;  %v2482_v45 = vpop.f32.mrf.mxu0  ;;  %v2619_v28 = vpop.f32.mrf.mxu2  ;;  %v12289_v54 = vunpack.i.h.bf16 %v10427_v59  ;;  %v7602_v40 = vunpack.i.l.bf16 %v10444_v58 }
 0x3ef   :  { %v10403_v24 = vadd.f32 %v2619_v28, %v2501_v12  ;;  %6765 = vmatmul.msk.f32.vlgmr.msrb.gmra.mxu1 %vm127_vm0, %v6757_v23  ;;  %v4041_v12 = vsel %vm838_vm5, %v12291_v7, %v7588_v39  ;;  %v10469_v28 = vsel %vm677_vm4, %v10330_v17, %v10268_v35  ;;  %v4037_v61 = vsel %vm838_vm5, %v12289_v54, %v7602_v40 }
 0x3f0   :  { %6761 = vmatmul.msk.f32.vlgmr.msrb.gmra.mxu0 %vm127_vm0, %v6757_v23  ;;  %v7583_v23 = vunpack.i.h.bf16 %v10388_v55  ;;  %v10437_v1 = vpop.permute.xlu1 %7635  ;;  %12419 = vst [vmem:[#allocation33_spill] sm:$0xff] %v10469_v28  ;;  %3953 = vmatpush.msra.mxu3 %v10469_v28  ;;  %v6840_v28 = vld [vmem:[%s12265_s2 + $0xf8] sm:$0xff] }
 0x3f1   :  { %12416 = vst [vmem:[#allocation48_spill] sm:$0xff] %v10403_v24  ;;  %6756 = vmatmul.msk.f32.gmra.mxu3 %vm127_vm0, %v10288_v8  ;;  %3979 = vmatpush.msrb.mxu0 %v10143_v27  ;;  %v12288_v17 = vunpack.i.l.bf16 %v10437_v1 }
 0x3f2   :  { %6772 = vmatmul.msk.f32.gmra.mxu2 %vm127_vm0, %v10409_v50  ;;  %v4043_v51 = vsel %vm838_vm5, %v7582_v34, %v7583_v23 }
 0x3f3   :  { %3980 = vmatpush.msrb.mxu0 %v10175_v63  ;;  %4109 = vmatpush.msrb.mxu2 %v4043_v51 }
 0x3f4   :  { %v10432_v8 = vpop.f32.mrf.mxu1  ;;  %v2462_v6 = vpop.f32.mrf.mxu3 }
 0x3f5   :  { %v2504_v46 = vadd.f32 %v2462_v6, %v2344_v22  ;;  %v2485_v53 = vpop.f32.mrf.mxu0  ;;  %v2622_v37 = vpop.f32.mrf.mxu2  ;;  %3981 = vmatpush.msrb.mxu0 %v10220_v2  ;;  %v2496_v22 = vadd.f32 %v2482_v45, %v2336_v16  ;;  %4110 = vmatpush.msrb.mxu2 %v4041_v12  ;;  %v10490_v45 = vld [vmem:[%s12265_s2 + $0x68] sm:$0xff]  ;;  %v12294_v12 = vunpack.i.h.bf16 %v10437_v1 }
 0x3f7   :  { %v10446_v14 = vadd.f32 %v2622_v37, %v2504_v46  ;;  %6766 = vmatmul.msk.f32.gmra.mxu1 %vm127_vm0, %v10352_v44  ;;  %3982 = vmatpush.msrb.mxu0 %v10268_v35 }
 0x3f8   :  { %6762 = vmatmul.msk.f32.gmra.mxu0 %vm127_vm0, %v10352_v44  ;;  %v4039_v44 = vsel %vm838_vm5, %v12290_v56, %v7593_v10 }
 0x3f9   :  { %12418 = vst [vmem:[#allocation26_spill] sm:$0xff] %v10446_v14  ;;  %6777 = vmatmul.msk.f32.vlgmr.msrb.gmra.mxu3 %vm127_vm0, %v10442_v36  ;;  %4111 = vmatpush.msrb.mxu2 %v4039_v44  ;;  %v10508_v44 = vpop.permute.xlu0 %7615 }
 0x3fa   :  { %6793 = vmatmul.msk.f32.vlgmr.msra.gmra.mxu2 %vm127_vm0, %v10453_v29  ;;  %4138 = vmatpush.msrb.mxu3 %v7583_v23  ;;  %v7611_v23 = vpop.permute.xlu2 %7610 }
 0x3fb   :  { %4112 = vmatpush.msrb.mxu2 %v4037_v61 }
 0x3fc   :  { %v10482_v6 = vpop.f32.mrf.mxu1  ;;  %v2642_v38 = vpop.f32.mrf.mxu3  ;;  %4139 = vmatpush.msrb.mxu3 %v7588_v39 }
 0x3fd   :  { %v2488_v46 = vpop.f32.mrf.mxu0  ;;  %v2656_v37 = vadd.f32 %v2642_v38, %v2496_v22  ;;  %v2802_v51 = vpop.f32.mrf.mxu2  ;;  %v10500_v22 = vld [vmem:[%s12265_s2 + $0x88] sm:$0xff]  ;;  %4297 = vmatpush.msra.mxu2 %v12288_v17 }
 0x3fe   :  { %v10502_v39 = vpop.permute.xlu1 %7650  ;;  %4140 = vmatpush.msrb.mxu3 %v7593_v10 }
 0x3ff   :  { %v10493_v16 = vadd.f32 %v2802_v51, %v2656_v37  ;;  %6767 = vmatmul.msk.f32.gmra.mxu1 %vm127_vm0, %v10379_v13  ;;  %v12293_v38 = vunpack.i.l.bf16 %v10502_v39  ;;  %v2339_v37 = vadd.f32 %v10305_v43, %v10125_v42  ;;  %v12292_v61 = vunpack.i.h.bf16 %v10502_v39  ;;  %4298 = vmatpush.msra.mxu2 %v12294_v12 }
 0x400   :  { %6763 = vmatmul.msk.f32.gmra.mxu0 %vm127_vm0, %v10379_v13  ;;  %v7597_v51 = vunpack.i.l.bf16 %v10427_v59  ;;  %4141 = vmatpush.msrb.mxu3 %v7602_v40  ;;  %v7603_v42 = vunpack.i.h.bf16 %v10444_v58  ;;  %v10536_v40 = vld [vmem:[%s12265_s2 + $0x90] sm:$0xff] }
 0x401   :  { %12420 = vst [vmem:[#allocation37_spill] sm:$0xff] %v10493_v16  ;;  %6778 = vmatmul.msk.f32.gmra.mxu3 %vm127_vm0, %v10490_v45  ;;  %v2499_v13 = vadd.f32 %v2485_v53, %v2339_v37  ;;  %4299 = vmatpush.msra.mxu2 %v12293_v38  ;;  %v6775_v53 = vld [vmem:[%s12265_s2 + $0x70] sm:$0xff]  ;;  %v12422_v37 = vunpack.i.l.bf16 %v10397_v57  ;;  %v10555_v55 = vpop.permute.xlu0 %7630 }
 0x402   :  { %6794 = vmatmul.msk.f32.gmra.mxu2 %vm127_vm0, %v10500_v22  ;;  %v4042_v58 = vsel %vm838_vm5, %v7597_v51, %v7582_v34 }
 0x403   :  { %4300 = vmatpush.msra.mxu2 %v12292_v61  ;;  %4080 = vmatpush.msrb.mxu1 %v4042_v58  ;;  %v7613_v61 = vunpack.i.h.bf16 %v7611_v23  ;;  %v12424_v58 = vunpack.i.l.bf16 %v10307_v32  ;;  %v10577_v32 = vld [vmem:[%s12265_s2 + $0x98] sm:$0xff] }
 0x404   :  { %v10521_v17 = vpop.f32.mrf.mxu1  ;;  %v2645_v54 = vpop.f32.mrf.mxu3 }
 0x405   :  { %v2491_v43 = vpop.f32.mrf.mxu0  ;;  %v2659_v56 = vadd.f32 %v2645_v54, %v2499_v13  ;;  %v2805_v7 = vpop.f32.mrf.mxu2  ;;  %v2342_v54 = vadd.f32 %v10342_v26, %v10153_v60  ;;  %v4040_v13 = vsel %vm838_vm5, %v7603_v42, %v12422_v37  ;;  %v12425_v42 = vunpack.i.h.bf16 %v10427_v59 }
 0x406   :  { %4081 = vmatpush.msrb.mxu1 %v4040_v13 }
 0x407   :  { %v10529_v10 = vadd.f32 %v2805_v7, %v2659_v56  ;;  %6768 = vmatmul.msk.f32.gmra.mxu1 %vm127_vm0, %v10409_v50  ;;  %v7612_v7 = vunpack.i.l.bf16 %v7611_v23  ;;  %v10545_v56 = vpop.permute.xlu2 %7625  ;;  %v10565_v23 = vld [vmem:[%s12265_s2 + $0x78] sm:$0xff] }
 0x408   :  { %6764 = vmatmul.msk.f32.gmra.mxu0 %vm127_vm0, %v10409_v50  ;;  %v2502_v50 = vadd.f32 %v2488_v46, %v2342_v54  ;;  %v4036_v46 = vsel %vm838_vm5, %v7613_v61, %v12425_v42 }
 0x409   :  { %12421 = vst [vmem:[#allocation41_spill] sm:$0xff] %v10529_v10  ;;  %6779 = vmatmul.msk.f32.gmra.mxu3 %vm127_vm0, %v6775_v53  ;;  %v4038_v57 = vsel %vm838_vm5, %v7612_v7, %v12424_v58  ;;  %v2345_v7 = vadd.f32 %v10370_v21, %v10177_v3  ;;  %v10600_v3 = vld [vmem:[%s12265_s2 + $0xa0] sm:$0xff]  ;;  %v2654_v21 = vadd.f32 %v10401_v4, %v10206_v18  ;;  %v7608_v58 = vunpack.i.h.bf16 %v10363_v31  ;;  %v10624_v4 = vld [vmem:[%s12265_s2 + $0xa8] sm:$0xff] }
 0x40a   :  { %6795 = vmatmul.msk.f32.gmra.mxu2 %vm127_vm0, %v10536_v40  ;;  %4082 = vmatpush.msrb.mxu1 %v4038_v57  ;;  %v7607_v57 = vunpack.i.l.bf16 %v10363_v31 }
 0x40c   :  { %v10557_v34 = vpop.f32.mrf.mxu1  ;;  %v2648_v51 = vpop.f32.mrf.mxu3  ;;  %4083 = vmatpush.msrb.mxu1 %v4036_v46  ;;  %v4201_v31 = vsel %vm999_vm6, %v7607_v57, %v7608_v58  ;;  %v7622_v57 = vunpack.i.l.bf16 %v10399_v25 }
 0x40d   :  { %12423 = vst [vmem:[#allocation18_spill] sm:$0xff] %v10557_v34  ;;  %v2662_v38 = vadd.f32 %v2648_v51, %v2502_v50  ;;  %v2744_v60 = vpop.f32.mrf.mxu0  ;;  %v2808_v26 = vpop.f32.mrf.mxu2 }
 0x40f   :  { %v10570_v54 = vadd.f32 %v2808_v26, %v2662_v38  ;;  %6785 = vmatmul.msk.f32.vlgmr.msra.gmra.mxu1 %vm127_vm0, %v10442_v36  ;;  %v10587_v59 = vpop.permute.xlu2 %7640  ;;  %v2505_v38 = vadd.f32 %v2491_v43, %v2345_v7  ;;  %v2814_v43 = vadd.f32 %v2744_v60, %v2654_v21  ;;  %v12431_v60 = vunpack.i.l.bf16 %v10437_v1 }
 0x410   :  { %6781 = vmatmul.msk.f32.vlgmr.msra.gmra.mxu0 %vm127_vm0, %v10442_v36  ;;  %v10591_v36 = vpop.permute.xlu0 %7645  ;;  %v2657_v21 = vadd.f32 %v10432_v8, %v10246_v30  ;;  %v7627_v30 = vunpack.i.l.bf16 %v10545_v56 }
 0x411   :  { %12426 = vst [vmem:[#allocation32_spill] sm:$0xff] %v10570_v54  ;;  %6780 = vmatmul.msk.f32.gmra.mxu3 %vm127_vm0, %v10565_v23  ;;  %4239 = vmatpush.msra.mxu0 %v4201_v31 }
 0x412   :  { %6796 = vmatmul.msk.f32.gmra.mxu2 %vm127_vm0, %v10577_v32 }
 0x414   :  { %v10589_v61 = vpop.f32.mrf.mxu1  ;;  %v2651_v37 = vpop.f32.mrf.mxu3 }
 0x415   :  { %12427 = vst [vmem:[#allocation47_spill] sm:$0xff] %v10589_v61  ;;  %v2665_v13 = vadd.f32 %v2651_v37, %v2505_v38  ;;  %v2747_v50 = vpop.f32.mrf.mxu0  ;;  %v2811_v51 = vpop.f32.mrf.mxu2  ;;  %v4202_v37 = vsel %vm999_vm6, %v7608_v58, %v12431_v60  ;;  %v7623_v58 = vunpack.i.h.bf16 %v10399_v25  ;;  %v7628_v60 = vunpack.i.h.bf16 %v10545_v56  ;;  %v10662_v25 = vld [vmem:[%s12265_s2 + $0xb0] sm:$0xff] }
 0x416   :  { %4268 = vmatpush.msra.mxu1 %v4202_v37  ;;  %v12434_v37 = vunpack.i.h.bf16 %v10437_v1 }
 0x417   :  { %v10593_v26 = vadd.f32 %v2811_v51, %v2665_v13  ;;  %6786 = vmatmul.msk.f32.gmra.mxu1 %vm127_vm0, %v10490_v45  ;;  %v10618_v18 = vpop.permute.xlu2 %7655  ;;  %v10633_v51 = vpop.permute.xlu1 %7665  ;;  %v4197_v56 = vsel %vm999_vm6, %v7622_v57, %v7623_v58  ;;  %v4195_v1 = vsel %vm999_vm6, %v7627_v30, %v7628_v60 }
 0x418   :  { %6782 = vmatmul.msk.f32.gmra.mxu0 %vm127_vm0, %v10490_v45  ;;  %v10631_v13 = vpop.permute.xlu0 %7660 }
 0x419   :  { %12428 = vst [vmem:[#allocation46_spill] sm:$0xff] %v10593_v26  ;;  %6797 = vmatmul.msk.f32.vlgmr.msra.gmra.mxu3 %vm127_vm0, %v10453_v29  ;;  %v7663_v30 = vunpack.i.h.bf16 %v10631_v13 }
 0x41a   :  { %6813 = vmatmul.msk.f32.vlgmr.msrb.gmra.mxu2 %vm127_vm0, %v10600_v3 }
 0x41c   :  { %v10612_v42 = vpop.f32.mrf.mxu1  ;;  %v2904_v46 = vpop.f32.mrf.mxu3 }
 0x41d   :  { %12429 = vst [vmem:[#allocation21_spill] sm:$0xff] %v10612_v42  ;;  %v2750_v7 = vpop.f32.mrf.mxu0  ;;  %v10614_v38 = vadd.f32 %v2904_v46, %v2814_v43  ;;  %v10616_v45 = vpop.f32.mrf.mxu2  ;;  %v7618_v43 = vunpack.i.h.bf16 %v10508_v44  ;;  %v2817_v46 = vadd.f32 %v2747_v50, %v2657_v21  ;;  %v12435_v50 = vunpack.i.l.bf16 %v10502_v39 }
 0x41f   :  { %12430 = vst [vmem:[#allocation27_spill] sm:$0xff] %v10614_v38  ;;  %6787 = vmatmul.msk.f32.gmra.mxu1 %vm127_vm0, %v6775_v53  ;;  %v4200_v11 = vsel %vm999_vm6, %v7618_v43, %v12434_v37  ;;  %v4198_v21 = vsel %vm999_vm6, %v7623_v58, %v12435_v50  ;;  %v7662_v58 = vunpack.i.l.bf16 %v10631_v13 }
 0x420   :  { %6783 = vmatmul.msk.f32.gmra.mxu0 %vm127_vm0, %v6775_v53  ;;  %v7617_v53 = vunpack.i.l.bf16 %v10508_v44  ;;  %4269 = vmatpush.msra.mxu1 %v4200_v11  ;;  %v7633_v11 = vunpack.i.h.bf16 %v10555_v55 }
 0x421   :  { %6798 = vmatmul.msk.f32.gmra.mxu3 %vm127_vm0, %v10500_v22 }
 0x422   :  { %6814 = vmatmul.msk.f32.gmra.mxu2 %vm127_vm0, %v10624_v4  ;;  %v4199_v49 = vsel %vm999_vm6, %v7617_v53, %v7618_v43  ;;  %v10671_v43 = vpop.permute.xlu2 %7670  ;;  %v2660_v53 = vadd.f32 %v10482_v6, %v10281_v33  ;;  %4270 = vmatpush.msra.mxu1 %v4198_v21  ;;  %v10687_v33 = vpop.permute.xlu1 %7680  ;;  %v4361_v13 = vsel %vm1160_vm7, %v7633_v11, %v7662_v58 }
 0x423   :  { %4240 = vmatpush.msra.mxu0 %v4199_v49  ;;  %v12436_v49 = vunpack.i.h.bf16 %v10502_v39  ;;  %v7643_v39 = vunpack.i.h.bf16 %v10587_v59 }
 0x424   :  { %v10647_v8 = vpop.f32.mrf.mxu1  ;;  %v2907_v31 = vpop.f32.mrf.mxu3  ;;  %v2820_v6 = vadd.f32 %v2750_v7, %v2660_v53  ;;  %v10705_v7 = vld [vmem:[%s12265_s2 + $0xb8] sm:$0xff]  ;;  %v2663_v53 = vadd.f32 %v10521_v17, %v10309_v62  ;;  %v7667_v62 = vunpack.i.l.bf16 %v10633_v51 }
 0x425   :  { %12432 = vst [vmem:[#allocation38_spill] sm:$0xff] %v10647_v8  ;;  %v2753_v12 = vpop.f32.mrf.mxu0  ;;  %v10649_v63 = vadd.f32 %v2907_v31, %v2817_v46  ;;  %v10651_v44 = vpop.f32.mrf.mxu2  ;;  %4241 = vmatpush.msra.mxu0 %v4197_v56  ;;  %v4196_v57 = vsel %vm999_vm6, %v7628_v60, %v12436_v49  ;;  %v7642_v60 = vunpack.i.l.bf16 %v10587_v59  ;;  %v7658_v49 = vunpack.i.h.bf16 %v10618_v18 }
 0x426   :  { %v10685_v46 = vpop.permute.xlu0 %7675  ;;  %4271 = vmatpush.msra.mxu1 %v4196_v57  ;;  %v2823_v17 = vadd.f32 %v2753_v12, %v2663_v53 }
 0x427   :  { %12433 = vst [vmem:[#allocation40_spill] sm:$0xff] %v10649_v63  ;;  %6788 = vmatmul.msk.f32.gmra.mxu1 %vm127_vm0, %v10565_v23  ;;  %4242 = vmatpush.msra.mxu0 %v4195_v1  ;;  %v4358_v21 = vsel %vm1160_vm7, %v7642_v60, %v7643_v39  ;;  %v4359_v1 = vsel %vm1160_vm7, %v7643_v39, %v7663_v30  ;;  %v7657_v39 = vunpack.i.l.bf16 %v10618_v18  ;;  %v7678_v60 = vunpack.i.h.bf16 %v10685_v46 }
 0x428   :  { %6784 = vmatmul.msk.f32.gmra.mxu0 %vm127_vm0, %v10565_v23  ;;  %v7632_v23 = vunpack.i.l.bf16 %v10555_v55 }
 0x429   :  { %6799 = vmatmul.msk.f32.gmra.mxu3 %vm127_vm0, %v10536_v40  ;;  %v4354_v19 = vsel %vm1160_vm7, %v7657_v39, %v7658_v49 }
 0x42a   :  { %6815 = vmatmul.msk.f32.gmra.mxu2 %vm127_vm0, %v10662_v25  ;;  %v4360_v59 = vsel %vm1160_vm7, %v7632_v23, %v7633_v11  ;;  %v7672_v11 = vunpack.i.l.bf16 %v10671_v43  ;;  %v7647_v23 = vunpack.i.l.bf16 %v10591_v36 }
 0x42b   :  { %4398 = vmatpush.msra.mxu3 %v4360_v59  ;;  %v10747_v59 = vpop.permute.xlu1 %7695 }
 0x42c   :  { %v10692_v31 = vpop.f32.mrf.mxu1  ;;  %v2910_v37 = vpop.f32.mrf.mxu3  ;;  %v7697_v12 = vunpack.i.l.bf16 %v10747_v59 }
 0x42d   :  { %12437 = vst [vmem:[#allocation28_spill] sm:$0xff] %v10692_v31  ;;  %v10694_v56 = vadd.f32 %v2910_v37, %v2820_v6  ;;  %v10696_v55 = vpop.f32.mrf.mxu0  ;;  %v10698_v50 = vpop.f32.mrf.mxu2  ;;  %4399 = vmatpush.msra.mxu3 %v4358_v21  ;;  %v7668_v37 = vunpack.i.h.bf16 %v10633_v51  ;;  %v12443_v51 = vunpack.i.h.bf16 %v10671_v43 }
 0x42e   :  { %12439 = vst [vmem:[#allocation43_spill] sm:$0xff] %v10696_v55  ;;  %v10724_v6 = vpop.permute.xlu2 %7685 }
 0x42f   :  { %12438 = vst [vmem:[#allocation34_spill] sm:$0xff] %v10694_v56  ;;  %6809 = vmatmul.msk.f32.vlgmr.msrb.gmra.mxu1 %vm127_vm0, %v10600_v3  ;;  %v7687_v18 = vunpack.i.l.bf16 %v10724_v6  ;;  %v4355_v48 = vsel %vm1160_vm7, %v7658_v49, %v7668_v37 }
 0x430   :  { %6801 = vmatmul.msk.f32.vlgmr.msrb.gmra.mxu0 %vm127_vm0, %v10453_v29  ;;  %v7648_v29 = vunpack.i.h.bf16 %v10591_v36  ;;  %4456 = vmatpush.msrb.mxu1 %v7662_v58  ;;  %v10741_v58 = vpop.permute.xlu0 %7690 }
 0x431   :  { %6800 = vmatmul.msk.f32.gmra.mxu3 %vm127_vm0, %v10577_v32  ;;  %4427 = vmatpush.msrb.mxu0 %v4361_v13  ;;  %v7693_v53 = vunpack.i.h.bf16 %v10741_v58 }
 0x432   :  { %6816 = vmatmul.msk.f32.gmra.mxu2 %vm127_vm0, %v10705_v7  ;;  %4457 = vmatpush.msrb.mxu1 %v7663_v30  ;;  %v6821_v30 = vld [vmem:[%s12265_s2 + $0xc0] sm:$0xff] }
 0x433   :  { %4428 = vmatpush.msrb.mxu0 %v4359_v1  ;;  %v4519_v1 = vsel %vm1321_vm8, %v7672_v11, %v12443_v51  ;;  %v12444_v11 = vunpack.i.l.bf16 %v10687_v33  ;;  %v4513_v49 = vsel %vm1321_vm8, %v7693_v53, %v7697_v12 }
 0x434   :  { %v10731_v13 = vpop.f32.mrf.mxu1  ;;  %v2913_v21 = vpop.f32.mrf.mxu3  ;;  %4557 = vmatpush.msrb.mxu2 %v4519_v1  ;;  %4458 = vmatpush.msrb.mxu1 %v7667_v62  ;;  %v7683_v1 = vunpack.i.h.bf16 %v10687_v33 }
 0x435   :  { %12440 = vst [vmem:[#allocation49_spill] sm:$0xff] %v10731_v13  ;;  %v10733_v57 = vadd.f32 %v2913_v21, %v2823_v17  ;;  %v10735_v36 = vpop.f32.mrf.mxu0  ;;  %v10737_v2 = vpop.f32.mrf.mxu2  ;;  %v4356_v17 = vsel %vm1160_vm7, %v7647_v23, %v7648_v29  ;;  %v4357_v21 = vsel %vm1160_vm7, %v7648_v29, %v7667_v62  ;;  %v4517_v51 = vsel %vm1321_vm8, %v7678_v60, %v12444_v11 }
 0x436   :  { %12442 = vst [vmem:[#allocation42_spill] sm:$0xff] %v10735_v36  ;;  %4400 = vmatpush.msra.mxu3 %v4356_v17  ;;  %4429 = vmatpush.msrb.mxu0 %v4357_v21  ;;  %v12445_v29 = vunpack.i.h.bf16 %v10724_v6 }
 0x437   :  { %12441 = vst [vmem:[#allocation35_spill] sm:$0xff] %v10733_v57  ;;  %6810 = vmatmul.msk.f32.gmra.mxu1 %vm127_vm0, %v10624_v4  ;;  %4558 = vmatpush.msrb.mxu2 %v4517_v51  ;;  %v12452_v51 = vunpack.i.l.bf16 %v10687_v33 }
 0x438   :  { %6802 = vmatmul.msk.f32.gmra.mxu0 %vm127_vm0, %v10500_v22  ;;  %4401 = vmatpush.msra.mxu3 %v4354_v19  ;;  %v4515_v22 = vsel %vm1321_vm8, %v7687_v18, %v12445_v29 }
 0x439   :  { %6817 = vmatmul.msk.f32.vlgmr.msrb.gmra.mxu3 %vm127_vm0, %v10600_v3  ;;  %4430 = vmatpush.msrb.mxu0 %v4355_v48  ;;  %v6822_v48 = vld [vmem:[%s12265_s2 + $0xc8] sm:$0xff]  ;;  %v4518_v29 = vsel %vm1321_vm8, %v12452_v51, %v7683_v1 }
 0x43a   :  { %6833 = vmatmul.msk.f32.vlgmr.msra.gmra.mxu2 %vm127_vm0, %v6821_v30  ;;  %4459 = vmatpush.msrb.mxu1 %v7668_v37 }
 0x43b   :  { %4559 = vmatpush.msrb.mxu2 %v4515_v22  ;;  %v7692_v22 = vunpack.i.l.bf16 %v10741_v58  ;;  %v10850_v58 = vld [vmem:[%s12265_s2 + $0x100] sm:$0xff] }
 0x43c   :  { %v10770_v23 = vpop.f32.mrf.mxu1  ;;  %v10772_v60 = vpop.f32.mrf.mxu3 }
 0x43d   :  { %12446 = vst [vmem:[#allocation44_spill] sm:$0xff] %v10770_v23  ;;  %v10777_v3 = vpop.f32.mrf.mxu0  ;;  %v10779_v39 = vpop.f32.mrf.mxu2  ;;  %4560 = vmatpush.msrb.mxu2 %v4513_v49 }
 0x43e   :  { %12447 = vst [vmem:[#allocation50_spill] sm:$0xff] %v10777_v3 }
 0x43f   :  { %6811 = vmatmul.msk.f32.gmra.mxu1 %vm127_vm0, %v10662_v25 }
 0x440   :  { %6803 = vmatmul.msk.f32.gmra.mxu0 %vm127_vm0, %v10536_v40  ;;  %v6823_v40 = vld [vmem:[%s12265_s2 + $0xd0] sm:$0xff] }
 0x441   :  { %6818 = vmatmul.msk.f32.gmra.mxu3 %vm127_vm0, %v10624_v4  ;;  %v7677_v4 = vunpack.i.l.bf16 %v10685_v46 }
 0x442   :  { %6834 = vmatmul.msk.f32.gmra.mxu2 %vm127_vm0, %v6822_v48 }
 0x444   :  { %v10791_v19 = vpop.f32.mrf.mxu1  ;;  %v10793_v62 = vpop.f32.mrf.mxu3 }
 0x445   :  { %12448 = vst [vmem:[#allocation51_spill] sm:$0xff] %v10791_v19  ;;  %v10795_v37 = vpop.f32.mrf.mxu0  ;;  %v10797_v18 = vpop.f32.mrf.mxu2 }
 0x446   :  { %12449 = vst [vmem:[#allocation52_spill] sm:$0xff] %v10795_v37 }
 0x447   :  { %6812 = vmatmul.msk.f32.gmra.mxu1 %vm127_vm0, %v10705_v7 }
 0x448   :  { %6804 = vmatmul.msk.f32.gmra.mxu0 %vm127_vm0, %v10577_v32  ;;  %v6824_v32 = vld [vmem:[%s12265_s2 + $0xd8] sm:$0xff] }
 0x449   :  { %6819 = vmatmul.msk.f32.gmra.mxu3 %vm127_vm0, %v10662_v25  ;;  %v12451_v25 = vunpack.i.h.bf16 %v10671_v43  ;;  %v7698_v43 = vunpack.i.h.bf16 %v10747_v59  ;;  %v6838_v59 = vld [vmem:[%s12265_s2 + $0xe8] sm:$0xff] }
 0x44a   :  { %6835 = vmatmul.msk.f32.gmra.mxu2 %vm127_vm0, %v6823_v40 }
 0x44b   :  { %v4520_v46 = vsel %vm1321_vm8, %v12451_v25, %v7677_v4 }
 0x44c   :  { %v10811_v53 = vpop.f32.mrf.mxu1  ;;  %v10813_v17 = vpop.f32.mrf.mxu3  ;;  %4586 = vmatpush.msrb.mxu3 %v4520_v46  ;;  %v4514_v46 = vsel %vm1321_vm8, %v7697_v12, %v7698_v43  ;;  %v6854_v12 = vld [vmem:[%s12265_s2 + $0x108] sm:$0xff] }
 0x44d   :  { %v10815_v21 = vpop.f32.mrf.mxu0  ;;  %v10817_v11 = vpop.f32.mrf.mxu2 }
 0x44e   :  { %12450 = vst [vmem:[#allocation53_spill] sm:$0xff] %v10815_v21  ;;  %4587 = vmatpush.msrb.mxu3 %v4518_v29 }
 0x44f   :  { %6829 = vmatmul.msk.f32.vlgmr.msra.gmra.mxu1 %vm127_vm0, %v6821_v30 }
 0x450   :  { %6825 = vmatmul.msk.f32.vlgmr.msra.gmra.mxu0 %vm127_vm0, %v6821_v30 }
 0x451   :  { %6820 = vmatmul.msk.f32.gmra.mxu3 %vm127_vm0, %v10705_v7  ;;  %4615 = vmatpush.msra.mxu0 %v7677_v4  ;;  %v6837_v7 = vld [vmem:[%s12265_s2 + $0xe0] sm:$0xff]  ;;  %v12453_v4 = vunpack.i.h.bf16 %v10724_v6 }
 0x452   :  { %6836 = vmatmul.msk.f32.gmra.mxu2 %vm127_vm0, %v6824_v32 }
 0x453   :  { %4616 = vmatpush.msra.mxu0 %v7683_v1  ;;  %v4516_v1 = vsel %vm1321_vm8, %v12453_v4, %v7692_v22 }
 0x454   :  { %v10835_v49 = vpop.f32.mrf.mxu1  ;;  %v10837_v30 = vpop.f32.mrf.mxu3  ;;  %4588 = vmatpush.msrb.mxu3 %v4516_v1 }
 0x455   :  { %v10839_v25 = vpop.f32.mrf.mxu0  ;;  %v10841_v33 = vpop.f32.mrf.mxu2  ;;  %4617 = vmatpush.msra.mxu0 %v7692_v22 }
 0x456   :  { %4589 = vmatpush.msrb.mxu3 %v4514_v46  ;;  %v6839_v46 = vld [vmem:[%s12265_s2 + $0xf0] sm:$0xff] }
 0x457   :  { %6830 = vmatmul.msk.f32.gmra.mxu1 %vm127_vm0, %v6822_v48  ;;  %4618 = vmatpush.msra.mxu0 %v7698_v43 }
 0x458   :  { %6826 = vmatmul.msk.f32.gmra.mxu0 %vm127_vm0, %v6822_v48 }
 0x459   :  { %6841 = vmatmul.msk.f32.vlgmr.msra.gmra.mxu3 %vm127_vm0, %v6837_v7 }
 0x45a   :  { %6857 = vmatmul.msk.f32.vlgmr.msrb.gmra.mxu2 %vm127_vm0, %v10850_v58 }
 0x45c   :  { %v10862_v51 = vpop.f32.mrf.mxu1  ;;  %v10864_v29 = vpop.f32.mrf.mxu3 }
 0x45d   :  { %12454 = vst [vmem:[#allocation54_spill] sm:$0xff] %v10864_v29  ;;  %v10866_v6 = vpop.f32.mrf.mxu0  ;;  %v10868_v22 = vpop.f32.mrf.mxu2 }
 0x45e   :  { %12455 = vst [vmem:[#allocation55_spill] sm:$0xff] %v10866_v6 }
 0x45f   :  { %12456 = vst [vmem:[#allocation56_spill] sm:$0xff] %v10868_v22  ;;  %6831 = vmatmul.msk.f32.gmra.mxu1 %vm127_vm0, %v6823_v40 }
 0x460   :  { %6827 = vmatmul.msk.f32.gmra.mxu0 %vm127_vm0, %v6823_v40  ;;  %v6855_v40 = vld [vmem:[%s12265_s2 + $0x110] sm:$0xff] }
 0x461   :  { %6842 = vmatmul.msk.f32.gmra.mxu3 %vm127_vm0, %v6838_v59 }
 0x462   :  { %6858 = vmatmul.msk.f32.gmra.mxu2 %vm127_vm0, %v6854_v12 }
 0x464   :  { %v10880_v48 = vpop.f32.mrf.mxu1  ;;  %v10882_v43 = vpop.f32.mrf.mxu3 }
 0x465   :  { %v10884_v4 = vpop.f32.mrf.mxu0  ;;  %v10886_v1 = vpop.f32.mrf.mxu2 }
 0x466   :  { %12457 = vst [vmem:[#allocation57_spill] sm:$0xff] %v10884_v4 }
 0x467   :  { %6832 = vmatmul.msk.f32.gmra.mxu1 %vm127_vm0, %v6824_v32 }
 0x468   :  { %6828 = vmatmul.msk.f32.gmra.mxu0 %vm127_vm0, %v6824_v32  ;;  %v6856_v32 = vld [vmem:[%s12265_s2 + $0x118] sm:$0xff] }
 0x469   :  { %6843 = vmatmul.msk.f32.gmra.mxu3 %vm127_vm0, %v6839_v46 }
 0x46a   :  { %6859 = vmatmul.msk.f32.gmra.mxu2 %vm127_vm0, %v6855_v40 }
 0x46c   :  { %v10898_v27 = vpop.f32.mrf.mxu1  ;;  %v10900_v15 = vpop.f32.mrf.mxu3 }
 0x46d   :  { %12458 = vst [vmem:[#allocation58_spill] sm:$0xff] %v10900_v15  ;;  %v10902_v41 = vpop.f32.mrf.mxu0  ;;  %v10904_v35 = vpop.f32.mrf.mxu2 }
 0x46e   :  { %12459 = vst [vmem:[#allocation59_spill] sm:$0xff] %v10904_v35 }
 0x46f   :  { %6849 = vmatmul.msk.f32.vlgmr.msrb.gmra.mxu1 %vm127_vm0, %v6837_v7 }
 0x470   :  { %6845 = vmatmul.msk.f32.vlgmr.msrb.gmra.mxu0 %vm127_vm0, %v6837_v7 }
 0x471   :  { %6844 = vmatmul.msk.f32.gmra.mxu3 %vm127_vm0, %v6840_v28 }
 0x472   :  { %6860 = vmatmul.msk.f32.gmra.mxu2 %vm127_vm0, %v6856_v32 }
 0x474   :  { %v10916_v52 = vpop.f32.mrf.mxu1  ;;  %v10918_v57 = vpop.f32.mrf.mxu3 }
 0x475   :  { %12460 = vst [vmem:[#allocation60_spill] sm:$0xff] %v10918_v57  ;;  %v10920_v37 = vpop.f32.mrf.mxu0  ;;  %v10922_v19 = vpop.f32.mrf.mxu2 }
 0x476   :  { %12461 = vst [vmem:[#allocation61_spill] sm:$0xff] %v10922_v19 }
 0x477   :  { %6850 = vmatmul.msk.f32.gmra.mxu1 %vm127_vm0, %v6838_v59 }
 0x478   :  { %6846 = vmatmul.msk.f32.gmra.mxu0 %vm127_vm0, %v6838_v59 }
 0x479   :  { %6861 = vmatmul.msk.f32.vlgmr.msrb.gmra.mxu3 %vm127_vm0, %v10850_v58 }
 0x47c   :  { %v10928_v7 = vpop.f32.mrf.mxu1  ;;  %v10930_v26 = vpop.f32.mrf.mxu3 }
 0x47d   :  { %v10932_v8 = vpop.f32.mrf.mxu0  ;;  %v10934_v14 = vpop.f32.mrf.mxu2 }
 0x47f   :  { %6851 = vmatmul.msk.f32.gmra.mxu1 %vm127_vm0, %v6839_v46 }
 0x480   :  { %6847 = vmatmul.msk.f32.gmra.mxu0 %vm127_vm0, %v6839_v46 }
 0x481   :  { %6862 = vmatmul.msk.f32.gmra.mxu3 %vm127_vm0, %v6854_v12 }
 0x484   :  { %v10939_v56 = vpop.f32.mrf.mxu1  ;;  %v3770_v59 = vpop.f32.mrf.mxu3 }
 0x485   :  { %v10941_v23 = vpop.f32.mrf.mxu0  ;;  %v3929_v54 = vpop.f32.mrf.mxu2 }
 0x487   :  { %6852 = vmatmul.msk.f32.gmra.mxu1 %vm127_vm0, %v6840_v28 }
 0x488   :  { %6848 = vmatmul.msk.f32.gmra.mxu0 %vm127_vm0, %v6840_v28 }
 0x489   :  { %6863 = vmatmul.msk.f32.gmra.mxu3 %vm127_vm0, %v6855_v40 }
 0x48c   :  { %v10946_v3 = vpop.f32.mrf.mxu1  ;;  %v3773_v38 = vpop.f32.mrf.mxu3 }
 0x48d   :  { %12462 = vst [vmem:[#allocation62_spill] sm:$0xff] %v10946_v3  ;;  %v10948_v42 = vpop.f32.mrf.mxu0  ;;  %v3932_v46 = vpop.f32.mrf.mxu2 }
 0x48e   :  { %12463 = vst [vmem:[#allocation63_spill] sm:$0xff] %v10948_v42 }
 0x490   :  { %6865 = vmatmul.msk.f32.vlgmr.msra.gmra.mxu0 %vm127_vm0, %v10850_v58 }
 0x491   :  { %6864 = vmatmul.msk.f32.gmra.mxu3 %vm127_vm0, %v6856_v32 }
 0x494   :  { %v10953_v24 = vpop.f32.mrf.mxu1  ;;  %v10955_v55 = vpop.f32.mrf.mxu3 }
 0x495   :  { %12464 = vst [vmem:[#allocation64_spill] sm:$0xff] %v10953_v24  ;;  %v10957_v31 = vpop.f32.mrf.mxu0  ;;  %v10959_v28 = vpop.f32.mrf.mxu2 }
 0x498   :  { %6866 = vmatmul.msk.f32.gmra.mxu0 %vm127_vm0, %v6854_v12 }
 0x49c   :  { %v10962_v16 = vpop.f32.mrf.mxu3  ;;  %v10968_v63 = vpop.f32.mrf.mxu1 }
 0x49d   :  { %12465 = vst [vmem:[#allocation65_spill] sm:$0xff] %v10962_v16  ;;  %v10964_v34 = vpop.f32.mrf.mxu0  ;;  %v10966_v5 = vpop.f32.mrf.mxu2 }
 0x49e   :  { %12466 = vst [vmem:[#allocation66_spill] sm:$0xff] %v10966_v5 }
 0x49f   :  { %12467 = vst [vmem:[#allocation67_spill] sm:$0xff] %v10968_v63 }
 0x4a0   :  { %6867 = vmatmul.msk.f32.gmra.mxu0 %vm127_vm0, %v6855_v40 }
 0x4a4   :  { %v10971_v58 = vpop.f32.mrf.mxu3  ;;  %v10977_v36 = vpop.f32.mrf.mxu1 }
 0x4a5   :  { %v10973_v13 = vpop.f32.mrf.mxu0  ;;  %v10975_v10 = vpop.f32.mrf.mxu2  ;;  %12468 = vst [vmem:[#allocation68_spill] sm:$0xff] %v10977_v36 }
 0x4a8   :  { %6868 = vmatmul.msk.f32.gmra.mxu0 %vm127_vm0, %v6856_v32 }
 0x4ac   :  { %v10980_v12 = vpop.f32.mrf.mxu3  ;;  %v4085_v47 = vpop.f32.mrf.mxu1 }
 0x4ad   :  { %v10982_v61 = vpop.f32.mrf.mxu0  ;;  %v10984_v20 = vpop.f32.mrf.mxu2 }
 0x4ae   :  { %12469 = vst [vmem:[#allocation69_spill] sm:$0xff] %v10982_v61 }
 0x4b4   :  { %v10986_v3 = vpop.f32.mrf.mxu3  ;;  %v4088_v19 = vpop.f32.mrf.mxu1 }
 0x4b5   :  { %12470 = vst [vmem:[#allocation70_spill] sm:$0xff] %v10986_v3  ;;  %v10988_v40 = vpop.f32.mrf.mxu0  ;;  %v10990_v22 = vpop.f32.mrf.mxu2 }
 0x4b6   :  { %12471 = vst [vmem:[#allocation71_spill] sm:$0xff] %v10988_v40 }
 0x4b7   :  { %12472 = vst [vmem:[#allocation72_spill] sm:$0xff] %v10990_v22 }
 0x4bc   :  { %v10992_v29 = vpop.f32.mrf.mxu3  ;;  %v4091_v4 = vpop.f32.mrf.mxu1 }
 0x4bd   :  { %12473 = vst [vmem:[#allocation73_spill] sm:$0xff] %v10992_v29  ;;  %v10994_v21 = vpop.f32.mrf.mxu0  ;;  %v10996_v36 = vpop.f32.mrf.mxu2 }
 0x4be   :  { %12474 = vst [vmem:[#allocation74_spill] sm:$0xff] %v10994_v21 }
 0x4bf   :  { %12475 = vst [vmem:[#allocation75_spill] sm:$0xff] %v10996_v36  ;;  %v3465_v36 = vadd.f32 %v10835_v49, %v10651_v44 }
 0x4c1   :  { %v3681_v21 = vadd.f32 %v10920_v37, %v3465_v36  ;;  %v3462_v37 = vadd.f32 %v10811_v53, %v10616_v45 }
 0x4c4   :  { %v10998_v32 = vpop.f32.mrf.mxu3  ;;  %v4094_v22 = vpop.f32.mrf.mxu1 }
 0x4c5   :  { %12476 = vst [vmem:[#allocation76_spill] sm:$0xff] %v10998_v32  ;;  %v11000_v57 = vpop.f32.mrf.mxu0  ;;  %v11002_v61 = vpop.f32.mrf.mxu2 }
 0x4c6   :  { %12477 = vst [vmem:[#allocation77_spill] sm:$0xff] %v11000_v57 }
 0x4c7   :  { %12478 = vst [vmem:[#allocation78_spill] sm:$0xff] %v11002_v61  ;;  %v3840_v61 = vadd.f32 %v3770_v59, %v3681_v21  ;;  %v3471_v21 = vadd.f32 %v10880_v48, %v10737_v2 }
 0x4c9   :  { %v3999_v6 = vadd.f32 %v3929_v54, %v3840_v61 }
 0x4cb   :  { %v4158_v0 = vadd.f32 %v4088_v19, %v3999_v6  ;;  %v11040_v6 = vpop.permute.xlu2 %4665 }
 0x4cc   :  { %v11004_v63 = vpop.f32.mrf.mxu3  ;;  %v11015_v57 = vpop.f32.mrf.mxu1 }
 0x4cd   :  { %12479 = vst [vmem:[#allocation79_spill] sm:$0xff] %v11004_v63  ;;  %v4244_v5 = vpop.f32.mrf.mxu0  ;;  %v11006_v35 = vpop.f32.mrf.mxu2 }
 0x4ce   :  { %12480 = vst [vmem:[#allocation80_spill] sm:$0xff] %v11006_v35  ;;  %v3468_v35 = vadd.f32 %v10862_v51, %v10698_v50  ;;  %v11024_v50 = vpop.permute.xlu1 %4655 }
 0x4cf   :  { %12483 = vst [vmem:[#allocation83_spill] sm:$0xff] %v11015_v57 }
 0x4d4   :  { %v11008_v16 = vpop.f32.mrf.mxu3  ;;  %v4276_v42 = vpop.f32.mrf.mxu1 }
 0x4d5   :  { %12481 = vst [vmem:[#allocation81_spill] sm:$0xff] %v11008_v16  ;;  %v4247_v29 = vpop.f32.mrf.mxu0  ;;  %v11010_v40 = vpop.f32.mrf.mxu2  ;;  %v3684_v16 = vadd.f32 %v10932_v8, %v3468_v35  ;;  %v3678_v35 = vadd.f32 %v10902_v41, %v3462_v37 }
 0x4d6   :  { %12482 = vst [vmem:[#allocation82_spill] sm:$0xff] %v11010_v40  ;;  %v4317_v40 = vadd.f32 %v4247_v29, %v4158_v0 }
 0x4d7   :  { %v3843_v3 = vadd.f32 %v3773_v38, %v3684_v16  ;;  %v3687_v16 = vadd.f32 %v10941_v23, %v3471_v21 }
 0x4d9   :  { %v4002_v59 = vadd.f32 %v3932_v46, %v3843_v3  ;;  %v3846_v61 = vadd.f32 %v10955_v55, %v3687_v16 }
 0x4db   :  { %v4161_v0 = vadd.f32 %v4091_v4, %v4002_v59  ;;  %v4005_v23 = vadd.f32 %v10959_v28, %v3846_v61 }
 0x4dc   :  { %v4403_v32 = vpop.f32.mrf.mxu3  ;;  %v4279_v51 = vpop.f32.mrf.mxu1 }
 0x4dd   :  { %v4250_v15 = vpop.f32.mrf.mxu0  ;;  %v4562_v63 = vpop.f32.mrf.mxu2 }
 0x4de   :  { %v4320_v38 = vadd.f32 %v4250_v15, %v4161_v0  ;;  %v4164_v15 = vadd.f32 %v4094_v22, %v4005_v23  ;;  %v3497_v0 = vadd.f32 %v10817_v11, %v10813_v17  ;;  %v3523_v11 = vadd.f32 %v10882_v43, %v10839_v25 }
 0x4e0   :  { %v3683_v25 = vadd.f32 %v10886_v1, %v3523_v11  ;;  %v12500_v11 = vld [vmem:[#allocation60_spill] sm:$0xff] }
 0x4e4   :  { %v4406_v24 = vpop.f32.mrf.mxu3 }
 0x4e5   :  { %v4253_v44 = vpop.f32.mrf.mxu0  ;;  %v4476_v49 = vadd.f32 %v4406_v24, %v4317_v40  ;;  %v4565_v36 = vpop.f32.mrf.mxu2  ;;  %v3837_v24 = vadd.f32 %v10930_v26, %v3678_v35 }
 0x4e6   :  { %v11037_v26 = vpop.permute.xlu0 %4660  ;;  %v4323_v4 = vadd.f32 %v4253_v44, %v4164_v15  ;;  %v4282_v44 = vpop.f32.mrf.mxu1  ;;  %v12485_v15 = vld [vmem:[#allocation63_spill] sm:$0xff] }
 0x4e7   :  { %v4635_v57 = vadd.f32 %v4565_v36, %v4476_v49  ;;  %v3996_v41 = vadd.f32 %v10934_v14, %v3837_v24  ;;  %v3494_v14 = vadd.f32 %v10797_v18, %v10793_v62  ;;  %v11050_v18 = vpop.permute.xlu2 %4650 }
 0x4e9   :  { %v4671_v54 = vadd.f32 %v11024_v50, %v4635_v57  ;;  %v4155_v55 = vadd.f32 %v4085_v47, %v3996_v41  ;;  %v3682_v47 = vadd.f32 %v10916_v52, %v3494_v14  ;;  %v12490_v14 = vld [vmem:[#allocation71_spill] sm:$0xff] }
 0x4eb   :  { %v4683_v45 = vmax.f32 %v4671_v54, 0.0  ;;  %v4314_v48 = vadd.f32 %v4244_v5, %v4155_v55  ;;  %v3841_v59 = vadd.f32 %v10957_v31, %v3682_v47  ;;  %v12493_v47 = vld [vmem:[#allocation72_spill] sm:$0xff] }
 0x4ec   :  { %v4409_v8 = vpop.f32.mrf.mxu3 }
 0x4ed   :  { %v4695_v2 = vmul.f32 %v4683_v45, %v8852_v9  ;;  %v4479_v3 = vadd.f32 %v4409_v8, %v4320_v38  ;;  %v11032_v19 = vpop.f32.mrf.mxu0  ;;  %v4568_v53 = vpop.f32.mrf.mxu2  ;;  %v4473_v28 = vadd.f32 %v4403_v32, %v4314_v48  ;;  %v4000_v16 = vadd.f32 %v10971_v58, %v3841_v59 }
 0x4ee   :  { %v11063_v8 = vpop.f32.mrf.mxu1 }
 0x4ef   :  { %v4638_v29 = vadd.f32 %v4568_v53, %v4479_v3  ;;  %4722 = vrot.lane.b32.xlu0 %v4695_v2, %s7990_s1  ;;  %v4632_v5 = vadd.f32 %v4562_v63, %v4473_v28  ;;  %v3685_v63 = vadd.f32 %v10928_v7, %v3497_v0  ;;  %v4159_v31 = vadd.f32 %v10975_v10, %v4000_v16  ;;  %v12495_v16 = vld [vmem:[#allocation66_spill] sm:$0xff] }
 0x4f0   :  { %v3500_v7 = vadd.f32 %v10841_v33, %v10837_v30 }
 0x4f1   :  { %v4674_v57 = vadd.f32 %v11037_v26, %v4638_v29  ;;  %v4668_v52 = vadd.f32 %v11050_v18, %v4632_v5  ;;  %v3844_v58 = vadd.f32 %v10964_v34, %v3685_v63  ;;  %v4318_v61 = vadd.f32 %v4276_v42, %v4159_v31  ;;  %v12484_v29 = vld [vmem:[#allocation64_spill] sm:$0xff]  ;;  %v12494_v5 = vld [vmem:[#allocation59_spill] sm:$0xff]  ;;  %v12497_v63 = vld [vmem:[#allocation78_spill] sm:$0xff] }
 0x4f2   :  { %v3491_v34 = vadd.f32 %v10779_v39, %v10772_v60  ;;  %v3688_v42 = vadd.f32 %v10939_v56, %v3500_v7  ;;  %v3842_v55 = vadd.f32 %v12484_v29, %v3683_v25  ;;  %v12486_v39 = vld [vmem:[#allocation70_spill] sm:$0xff] }
 0x4f3   :  { %v4686_v46 = vmax.f32 %v4674_v57, 0.0  ;;  %v4680_v38 = vmax.f32 %v4668_v52, 0.0  ;;  %v4003_v45 = vadd.f32 %v10980_v12, %v3844_v58  ;;  %v12498_v58 = vld [vmem:[#allocation83_spill] sm:$0xff]  ;;  %v12501_v7 = vld [vmem:[#allocation74_spill] sm:$0xff] }
 0x4f4   :  { %v4412_v40 = vpop.f32.mrf.mxu3  ;;  %v3679_v43 = vadd.f32 %v10898_v27, %v3491_v34  ;;  %v3847_v30 = vadd.f32 %v10973_v13, %v3688_v42  ;;  %v4001_v1 = vadd.f32 %v12490_v14, %v3842_v55  ;;  %v12491_v27 = vld [vmem:[#allocation65_spill] sm:$0xff]  ;;  %v12503_v25 = vld [vmem:[#allocation54_spill] sm:$0xff] }
 0x4f5   :  { %v4698_v49 = vmul.f32 %v4686_v46, %v8852_v9  ;;  %v4482_v36 = vadd.f32 %v4412_v40, %v4323_v4  ;;  %v4435_v37 = vpop.f32.mrf.mxu0  ;;  %v4571_v21 = vpop.f32.mrf.mxu2  ;;  %v4692_v10 = vmul.f32 %v4680_v38, %v8852_v9  ;;  %v4162_v12 = vadd.f32 %v10984_v20, %v4003_v45  ;;  %v12487_v20 = vld [vmem:[#allocation24_spill] sm:$0xff]  ;;  %v12488_v4 = vld [vmem:[#allocation55_spill] sm:$0xff]  ;;  %v12489_v46 = vld [vmem:[#allocation58_spill] sm:$0xff] }
 0x4f6   :  { %v4477_v17 = vadd.f32 %v4435_v37, %v4318_v61  ;;  %v3838_v60 = vadd.f32 %v12485_v15, %v3679_v43  ;;  %v4006_v56 = vadd.f32 %v12486_v39, %v3847_v30  ;;  %v3526_v40 = vadd.f32 %v12489_v46, %v12488_v4  ;;  %v4464_v13 = vpop.f32.mrf.mxu1  ;;  %v12492_v37 = vld [vmem:[#allocation76_spill] sm:$0xff]  ;;  %v12504_v30 = vld [vmem:[#allocation79_spill] sm:$0xff]  ;;  %v12505_v15 = vld [vmem:[#allocation61_spill] sm:$0xff] }
 0x4f7   :  { %v4641_v22 = vadd.f32 %v4571_v21, %v4482_v36  ;;  %4728 = vrot.lane.b32.xlu0 %v4698_v49, %s7990_s1  ;;  %v4321_v33 = vadd.f32 %v4279_v51, %v4162_v12  ;;  %v4160_v21 = vadd.f32 %v12492_v37, %v4001_v1  ;;  %v12508_v46 = vld [vmem:[#allocation80_spill] sm:$0xff]  ;;  %v12511_v37 = vld [vmem:[#allocation30_spill] sm:$0xff] }
 0x4f8   :  { %v3997_v49 = vadd.f32 %v12491_v27, %v3838_v60  ;;  %v12509_v27 = vld [vmem:[#allocation62_spill] sm:$0xff] }
 0x4f9   :  { %v4677_v35 = vadd.f32 %v11040_v6, %v4641_v22  ;;  %v4165_v22 = vadd.f32 %v12493_v47, %v4006_v56  ;;  %v4319_v31 = vadd.f32 %v12497_v63, %v4160_v21  ;;  %v12506_v56 = vld [vmem:[#allocation56_spill] sm:$0xff]  ;;  %v12512_v47 = vld [vmem:[#allocation69_spill] sm:$0xff] }
 0x4fb   :  { %v4689_v62 = vmax.f32 %v4677_v35, 0.0  ;;  %v3686_v35 = vadd.f32 %v12494_v5, %v3526_v40  ;;  %v4324_v0 = vadd.f32 %v4282_v44, %v4165_v22 }
 0x4fc   :  { %v11052_v32 = vpop.f32.mrf.mxu3 }
 0x4fd   :  { %v4701_v54 = vmul.f32 %v4689_v62, %v8852_v9  ;;  %v4438_v24 = vpop.f32.mrf.mxu0  ;;  %v4156_v62 = vadd.f32 %v12495_v16, %v3997_v49  ;;  %v12510_v49 = vld [vmem:[#allocation77_spill] sm:$0xff] }
 0x4fe   :  { %v4480_v57 = vadd.f32 %v4438_v24, %v4321_v33 }
 0x4ff   :  { %4734 = vrot.lane.b32.xlu0 %v4701_v54, %s7990_s1  ;;  %v12496_v54 = vld [vmem:[#allocation67_spill] sm:$0xff]  ;;  %v4315_v61 = vadd.f32 %v12498_v58, %v4156_v62  ;;  %v12514_v62 = vld [vmem:[#allocation73_spill] sm:$0xff] }
 0x500   :  { %v3845_v24 = vadd.f32 %v12496_v54, %v3686_v35 }
 0x501   :  { %v4474_v42 = vadd.f32 %v11032_v19, %v4315_v61  ;;  %v12516_v61 = vld [vmem:[#allocation75_spill] sm:$0xff] }
 0x503   :  { %v4633_v29 = vadd.f32 %v11052_v32, %v4474_v42 }
 0x504   :  { %v4594_v2 = vpop.f32.mrf.mxu3 }
 0x505   :  { %v4441_v3 = vpop.f32.mrf.mxu0  ;;  %v4636_v53 = vadd.f32 %v4594_v2, %v4477_v17  ;;  %v12499_v17 = vld [vmem:[#allocation57_spill] sm:$0xff]  ;;  %v4669_v1 = vadd.f32 %v11050_v18, %v4633_v29 }
 0x506   :  { %v4483_v38 = vadd.f32 %v4441_v3, %v4324_v0  ;;  %v3529_v2 = vadd.f32 %v12500_v11, %v12499_v17 }
 0x507   :  { %v4672_v41 = vadd.f32 %v11024_v50, %v4636_v53  ;;  %4716 = vrot.lane.b32.xlu0 %v4692_v10, %s7990_s1  ;;  %v4004_v10 = vadd.f32 %v12501_v7, %v3845_v24  ;;  %v4478_v53 = vadd.f32 %v4464_v13, %v4319_v31  ;;  %v4681_v16 = vmax.f32 %v4669_v1, 0.0  ;;  %v12515_v24 = vld [vmem:[#allocation82_spill] sm:$0xff] }
 0x508   :  { %v3689_v60 = vadd.f32 %v12505_v15, %v3529_v2 }
 0x509   :  { %v4684_v23 = vmax.f32 %v4672_v41, 0.0  ;;  %v12502_v41 = vld [vmem:[#allocation53_spill] sm:$0xff]  ;;  %v4163_v3 = vadd.f32 %v12504_v30, %v4004_v10  ;;  %v4693_v58 = vmul.f32 %v4681_v16, %v12487_v20 }
 0x50a   :  { %v3520_v43 = vadd.f32 %v12503_v25, %v12502_v41 }
 0x50b   :  { %v4696_v48 = vmul.f32 %v4684_v23, %v12487_v20  ;;  %v4467_v23 = vpop.f32.mrf.mxu1  ;;  %v4322_v40 = vadd.f32 %v12508_v46, %v4163_v3 }
 0x50c   :  { %v4597_v28 = vpop.f32.mrf.mxu3 }
 0x50d   :  { %v4639_v51 = vadd.f32 %v4597_v28, %v4480_v57  ;;  %v4620_v36 = vpop.f32.mrf.mxu0  ;;  %4724 = vrot.lane.b32.xlu1 %v4696_v48, %s7990_s1  ;;  %v3680_v57 = vadd.f32 %v12506_v56, %v3520_v43  ;;  %v12507_v48 = vld [vmem:[#allocation68_spill] sm:$0xff] }
 0x50e   :  { %v3848_v4 = vadd.f32 %v12507_v48, %v3689_v60 }
 0x50f   :  { %v4675_v59 = vadd.f32 %v11037_v26, %v4639_v51  ;;  %v3839_v32 = vadd.f32 %v12509_v27, %v3680_v57  ;;  %v4481_v51 = vadd.f32 %v4467_v23, %v4322_v40 }
 0x510   :  { %v4007_v13 = vadd.f32 %v12510_v49, %v3848_v4 }
 0x511   :  { %v4687_v52 = vmax.f32 %v4675_v59, 0.0  ;;  %v3998_v22 = vadd.f32 %v12512_v47, %v3839_v32  ;;  %v12513_v59 = vld [vmem:[#allocation81_spill] sm:$0xff] }
 0x512   :  { %v4166_v5 = vadd.f32 %v12513_v59, %v4007_v13 }
 0x513   :  { %v4699_v45 = vmul.f32 %v4687_v52, %v12487_v20  ;;  %v4157_v0 = vadd.f32 %v12514_v62, %v3998_v22  ;;  %v4470_v54 = vpop.f32.mrf.mxu1 }
 0x514   :  { %v4600_v34 = vpop.f32.mrf.mxu3  ;;  %v4325_v63 = vadd.f32 %v12515_v24, %v4166_v5 }
 0x515   :  { %v4642_v44 = vadd.f32 %v4600_v34, %v4483_v38  ;;  %v4623_v12 = vpop.f32.mrf.mxu0  ;;  %4730 = vrot.lane.b32.xlu1 %v4699_v45, %s7990_s1  ;;  %v4316_v38 = vadd.f32 %v12516_v61, %v4157_v0 }
 0x516   :  { %v4637_v33 = vadd.f32 %v4623_v12, %v4478_v53  ;;  %v4484_v45 = vadd.f32 %v4470_v54, %v4325_v63 }
 0x517   :  { %v4678_v55 = vadd.f32 %v11040_v6, %v4642_v44  ;;  %v4475_v2 = vadd.f32 %v11063_v8, %v4316_v38  ;;  %v11280_v38 = vld [vmem:[%s12268_s4 + $0x8] sm:$0xff] }
 0x518   :  { %v4673_v39 = vadd.f32 %v11024_v50, %v4637_v33 }
 0x519   :  { %v4690_v19 = vmax.f32 %v4678_v55, 0.0 }
 0x51a   :  { %v4685_v14 = vmax.f32 %v4673_v39, 0.0 }
 0x51b   :  { %v4702_v28 = vmul.f32 %v4690_v19, %v12487_v20 }
 0x51c   :  { %v4697_v21 = vmul.f32 %v4685_v14, %v12511_v37 }
 0x51d   :  { %v4626_v50 = vpop.f32.mrf.mxu0  ;;  %4736 = vrot.lane.b32.xlu1 %v4702_v28, %s7990_s1 }
 0x51e   :  { %v4640_v35 = vadd.f32 %v4626_v50, %v4481_v51  ;;  %4726 = vrot.lane.b32.xlu2 %v4697_v21, %s7990_s1 }
 0x520   :  { %v4676_v52 = vadd.f32 %v11037_v26, %v4640_v35  ;;  %v4634_v26 = vadd.f32 %v4620_v36, %v4475_v2  ;;  %v6159_v2 = vld [vmem:[%s12269_s5] sm:$0xff] }
 0x522   :  { %v4688_v31 = vmax.f32 %v4676_v52, 0.0  ;;  %v4670_v34 = vadd.f32 %v11050_v18, %v4634_v26 }
 0x524   :  { %v4700_v17 = vmul.f32 %v4688_v31, %v12511_v37  ;;  %v4682_v44 = vmax.f32 %v4670_v34, 0.0 }
 0x525   :  { %v4629_v11 = vpop.f32.mrf.mxu0  ;;  %4718 = vrot.lane.b32.xlu1 %v4693_v58, %s7990_s1  ;;  %v11264_v58 = vld [vmem:[%s12268_s4] sm:$0xff] }
 0x526   :  { %v4643_v7 = vadd.f32 %v4629_v11, %v4484_v45  ;;  %4732 = vrot.lane.b32.xlu2 %v4700_v17, %s7990_s1  ;;  %v4694_v12 = vmul.f32 %v4682_v44, %v12511_v37  ;;  %v11293_v45 = vld [vmem:[%s12268_s4 + $0x10] sm:$0xff] }
 0x528   :  { %v4679_v10 = vadd.f32 %v11040_v6, %v4643_v7  ;;  %v11310_v7 = vld [vmem:[%s12268_s4 + $0x18] sm:$0xff] }
 0x52a   :  { %v4691_v53 = vmax.f32 %v4679_v10, 0.0 }
 0x52c   :  { %v4703_v42 = vmul.f32 %v4691_v53, %v12511_v37 }
 0x52e   :  { %4738 = vrot.lane.b32.xlu2 %v4703_v42, %s7990_s1 }
 0x536   :  { %4720 = vrot.lane.b32.xlu2 %v4694_v12, %s7990_s1 }
 0x561   :  { %v4723_v41 = vpop.permute.xlu0 %4722 }
 0x562   :  { %4763 = vst.msk [vmem:[#allocation2 + $0x18] sm:$0xff] %vm1577_vm9, %v4723_v41 }
 0x569   :  { %v4729_v8 = vpop.permute.xlu0 %4728  ;;  %v4775_v3 = vld [vmem:[#allocation2 + $0x18] sm:$0xff] }
 0x56a   :  { %4766 = vst.msk [vmem:[#allocation2 + $0x30] sm:$0xff] %vm1577_vm9, %v4729_v8 }
 0x571   :  { %v4735_v36 = vpop.permute.xlu0 %4734  ;;  %v4778_v43 = vld [vmem:[#allocation2 + $0x30] sm:$0xff] }
 0x572   :  { %4769 = vst.msk [vmem:[#allocation2 + $0x48] sm:$0xff] %vm1577_vm9, %v4735_v36 }
 0x578   :  { %v4727_v6 = vpop.permute.xlu2 %4726 }
 0x579   :  { %v4717_v18 = vpop.permute.xlu0 %4716  ;;  %v11139_v25 = vld [vmem:[#allocation2 + $0x48] sm:$0xff] }
 0x57a   :  { %4760 = vst.msk [vmem:[#allocation2] sm:$0xff] %vm1577_vm9, %v4717_v18  ;;  %4971 = vmatpush.msrb.mxu0 %v11139_v25  ;;  %v11144_v30 = vpack.i.bf16 %v4778_v43, %v11139_v25 }
 0x57c   :  { %4972 = vmatpush.msrb.mxu0 %v4778_v43 }
 0x57e   :  { %4973 = vmatpush.msrb.mxu0 %v4775_v3 }
 0x57f   :  { %v4725_v33 = vpop.permute.xlu1 %4724 }
 0x580   :  { %v11147_v23 = vsel %vm1556_vm11, %v4723_v41, %v4725_v33  ;;  %v4743_v29 = vsel %vm1556_vm11, %v4725_v33, %v4727_v6  ;;  %v4733_v60 = vpop.permute.xlu2 %4732 }
 0x581   :  { %v4772_v55 = vld [vmem:[#allocation2] sm:$0xff]  ;;  %4765 = vst.msk [vmem:[#allocation2 + $0x28] sm:$0xff] %vm1580_vm12, %v4743_v29  ;;  %v7734_v21 = vpack.i.bf16 %v11147_v23, %v4775_v3 }
 0x582   :  { %4974 = vmatpush.msrb.mxu0 %v4772_v55  ;;  %v11151_v15 = vpack.i.bf16 %v4772_v55, %v4775_v3 }
 0x583   :  { %6885 = vmatmul.msk.f32.vlgmr.msrb.gmra.mxu0 %vm127_vm0, %v11264_v58 }
 0x587   :  { %v4731_v39 = vpop.permute.xlu1 %4730 }
 0x588   :  { %v11154_v19 = vsel %vm1556_vm11, %v4729_v8, %v4731_v39  ;;  %v4745_v56 = vsel %vm1556_vm11, %v4731_v39, %v4733_v60  ;;  %v11157_v57 = vld [vmem:[#allocation2 + $0x28] sm:$0xff]  ;;  %v4739_v4 = vpop.permute.xlu2 %4738 }
 0x589   :  { %4768 = vst.msk [vmem:[#allocation2 + $0x40] sm:$0xff] %vm1580_vm12, %v4745_v56  ;;  %v11162_v48 = vpack.i.bf16 %v11157_v57, %v11147_v23  ;;  %v7729_v22 = vpack.i.bf16 %v11154_v19, %v4778_v43  ;;  %v7759_v52 = vpack.i.bf16 %v4772_v55, %v11157_v57  ;;  %v7824_v24 = vpack.i.bf16 %v11139_v25, %v11157_v57 }
 0x58b   :  { %7700 = vrot.lane.b32.xlu2 %v11162_v48, %s7981_s25  ;;  %6886 = vmatmul.msk.f32.gmra.mxu0 %vm127_vm0, %v11280_v38 }
 0x58f   :  { %v4737_v46 = vpop.permute.xlu1 %4736 }
 0x590   :  { %v11167_v40 = vsel %vm1556_vm11, %v4735_v36, %v4737_v46  ;;  %v4747_v14 = vsel %vm1556_vm11, %v4737_v46, %v4739_v4  ;;  %v11170_v1 = vld [vmem:[#allocation2 + $0x40] sm:$0xff]  ;;  %v4721_v27 = vpop.permute.xlu2 %4720  ;;  %v6161_v36 = vld [vmem:[%s12269_s5 + $0x10] sm:$0xff] }
 0x591   :  { %4771 = vst.msk [vmem:[#allocation2 + $0x58] sm:$0xff] %vm1580_vm12, %v4747_v14  ;;  %v11175_v28 = vpack.i.bf16 %v11170_v1, %v11154_v19  ;;  %v7739_v16 = vpack.i.bf16 %v11167_v40, %v11139_v25  ;;  %v11324_v25 = vld [vmem:[%s12269_s5 + $0x8] sm:$0xff]  ;;  %v6869_v14 = vld [vmem:[%s12268_s4 + $0x20] sm:$0xff] }
 0x593   :  { %7725 = vrot.lane.b32.xlu2 %v11151_v15, %s7981_s25  ;;  %7705 = vrot.lane.b32.xlu1 %v11175_v28, %s7981_s25 }
 0x594   :  { %6887 = vmatmul.msk.f32.gmra.mxu0 %vm127_vm0, %v11293_v45 }
 0x597   :  { %v4719_v32 = vpop.permute.xlu1 %4718 }
 0x598   :  { %v11182_v49 = vsel %vm1556_vm11, %v4717_v18, %v4719_v32  ;;  %v4741_v13 = vsel %vm1556_vm11, %v4719_v32, %v4721_v27  ;;  %v11185_v51 = vld [vmem:[#allocation2 + $0x58] sm:$0xff] }
 0x599   :  { %4762 = vst.msk [vmem:[#allocation2 + $0x10] sm:$0xff] %vm1580_vm12, %v4741_v13  ;;  %v11191_v50 = vpack.i.bf16 %v11185_v51, %v11167_v40  ;;  %v7774_v59 = vpack.i.bf16 %v4778_v43, %v11185_v51  ;;  %v7779_v35 = vpack.i.bf16 %v11170_v1, %v11185_v51  ;;  %v7744_v0 = vpack.i.bf16 %v11182_v49, %v4772_v55 }
 0x59b   :  { %7735 = vrot.lane.b32.xlu2 %v7734_v21, %s7982_s18  ;;  %7720 = vrot.lane.b32.xlu1 %v11144_v30, %s7981_s25 }
 0x59c   :  { %7710 = vrot.lane.b32.xlu0 %v11191_v50, %s7981_s25  ;;  %6888 = vmatmul.msk.f32.gmra.mxu0 %vm127_vm0, %v11310_v7 }
 0x5a0   :  { %v11198_v47 = vld [vmem:[#allocation2 + $0x10] sm:$0xff] }
 0x5a1   :  { %v11204_v5 = vpack.i.bf16 %v11198_v47, %v11182_v49  ;;  %v7784_v62 = vpack.i.bf16 %v11198_v47, %v11157_v57  ;;  %v7849_v54 = vpack.i.bf16 %v11198_v47, %v11167_v40 }
 0x5a3   :  { %7730 = vrot.lane.b32.xlu1 %v7729_v22, %s7982_s18  ;;  %7775 = vrot.lane.b32.xlu2 %v7774_v59, %s7983_s19 }
 0x5a4   :  { %7715 = vrot.lane.b32.xlu0 %v11204_v5, %s7981_s25 }
 0x5ab   :  { %7755 = vrot.lane.b32.xlu1 %v7734_v21, %s7983_s19  ;;  %7780 = vrot.lane.b32.xlu2 %v7779_v35, %s7982_s18 }
 0x5ac   :  { %7740 = vrot.lane.b32.xlu0 %v7739_v16, %s7982_s18 }
 0x5b3   :  { %7765 = vrot.lane.b32.xlu1 %v7739_v16, %s7983_s19  ;;  %7785 = vrot.lane.b32.xlu2 %v7784_v62, %s7982_s18 }
 0x5b4   :  { %7745 = vrot.lane.b32.xlu0 %v7744_v0, %s7982_s18 }
 0x5bb   :  { %7795 = vrot.lane.b32.xlu2 %v11162_v48, %s7984_s20  ;;  %7770 = vrot.lane.b32.xlu1 %v11204_v5, %s7983_s19 }
 0x5bc   :  { %7750 = vrot.lane.b32.xlu0 %v11175_v28, %s7983_s19 }
 0x5c3   :  { %7815 = vrot.lane.b32.xlu2 %v11151_v15, %s7984_s20  ;;  %7790 = vrot.lane.b32.xlu1 %v11175_v28, %s7984_s20 }
 0x5c4   :  { %7760 = vrot.lane.b32.xlu0 %v7759_v52, %s7983_s19 }
 0x5cb   :  { %7820 = vrot.lane.b32.xlu2 %v7729_v22, %s7986_s22  ;;  %7810 = vrot.lane.b32.xlu1 %v11144_v30, %s7984_s20 }
 0x5cc   :  { %7800 = vrot.lane.b32.xlu0 %v11191_v50, %s7984_s20 }
 0x5d3   :  { %7830 = vrot.lane.b32.xlu2 %v7734_v21, %s7986_s22  ;;  %7845 = vrot.lane.b32.xlu1 %v7739_v16, %s7986_s22 }
 0x5d4   :  { %7805 = vrot.lane.b32.xlu0 %v11204_v5, %s7984_s20 }
 0x5db   :  { %7860 = vrot.lane.b32.xlu2 %v7734_v21, %s7985_s21  ;;  %7850 = vrot.lane.b32.xlu1 %v7849_v54, %s7985_s21 }
 0x5dc   :  { %7825 = vrot.lane.b32.xlu0 %v7824_v24, %s7985_s21 }
 0x5e3   :  { %7895 = vrot.lane.b32.xlu2 %v7774_v59, %s7987_s12  ;;  %7855 = vrot.lane.b32.xlu1 %v7744_v0, %s7986_s22 }
 0x5e4   :  { %7835 = vrot.lane.b32.xlu0 %v7779_v35, %s7985_s21 }
 0x5e5   :  { %v11254_v63 = vpop.permute.xlu2 %7700 }
 0x5e6   :  { %v7703_v43 = vunpack.i.h.bf16 %v11254_v63 }
 0x5eb   :  { %7900 = vrot.lane.b32.xlu2 %v7779_v35, %s7986_s22  ;;  %7875 = vrot.lane.b32.xlu1 %v7734_v21, %s7987_s12 }
 0x5ec   :  { %7840 = vrot.lane.b32.xlu0 %v7729_v22, %s7985_s21 }
 0x5ed   :  { %v11259_v31 = vpop.permute.xlu2 %7725 }
 0x5ee   :  { %v7727_v3 = vunpack.i.l.bf16 %v11259_v31  ;;  %v7728_v56 = vunpack.i.h.bf16 %v11259_v31 }
 0x5f3   :  { %7905 = vrot.lane.b32.xlu2 %v7784_v62, %s7986_s22  ;;  %7885 = vrot.lane.b32.xlu1 %v7739_v16, %s7987_s12 }
 0x5f4   :  { %7865 = vrot.lane.b32.xlu0 %v7744_v0, %s7985_s21 }
 0x5f5   :  { %v11271_v61 = vpop.permute.xlu2 %7735 }
 0x5fb   :  { %7915 = vrot.lane.b32.xlu2 %v11162_v48, %s7988_s11  ;;  %7890 = vrot.lane.b32.xlu1 %v11204_v5, %s7987_s12 }
 0x5fc   :  { %7870 = vrot.lane.b32.xlu0 %v11175_v28, %s7987_s12 }
 0x5fd   :  { %v11295_v17 = vpop.permute.xlu2 %7775 }
 0x603   :  { %7935 = vrot.lane.b32.xlu2 %v11151_v15, %s7988_s11  ;;  %7910 = vrot.lane.b32.xlu1 %v11175_v28, %s7988_s11 }
 0x604   :  { %7880 = vrot.lane.b32.xlu0 %v7759_v52, %s7987_s12 }
 0x605   :  { %v7706_v11 = vpop.permute.xlu1 %7705  ;;  %v11314_v10 = vpop.permute.xlu2 %7780 }
 0x606   :  { %v7708_v12 = vunpack.i.h.bf16 %v7706_v11  ;;  %v7707_v41 = vunpack.i.l.bf16 %v7706_v11  ;;  %v7782_v21 = vunpack.i.l.bf16 %v11314_v10  ;;  %v7783_v16 = vunpack.i.h.bf16 %v11314_v10 }
 0x608   :  { %v4833_v29 = vsel %vm106_vm1, %v7707_v41, %v7708_v12 }
 0x60b   :  { %6165 = vperm.xlu2 %7248, %v6159_v2   ;;  %7930 = vrot.lane.b32.xlu1 %v11144_v30, %s7988_s11  ;;  %v7702_v30 = vunpack.i.l.bf16 %v11254_v63 }
 0x60c   :  { %7920 = vrot.lane.b32.xlu0 %v11191_v50, %s7988_s11 }
 0x60d   :  { %v7721_v26 = vpop.permute.xlu1 %7720  ;;  %v4830_v60 = vsel %vm106_vm1, %v7727_v3, %v7702_v30  ;;  %v4831_v39 = vsel %vm106_vm1, %v7702_v30, %v7703_v43  ;;  %v11337_v46 = vpop.permute.xlu2 %7785  ;;  %v6872_v3 = vld [vmem:[%s12268_s4 + $0x38] sm:$0xff] }
 0x60e   :  { %v7711_v53 = vpop.permute.xlu0 %7710  ;;  %v7722_v34 = vunpack.i.l.bf16 %v7721_v26  ;;  %v7723_v8 = vunpack.i.h.bf16 %v7721_v26  ;;  %v7787_v62 = vunpack.i.l.bf16 %v11337_v46  ;;  %v7788_v63 = vunpack.i.h.bf16 %v11337_v46  ;;  %v6871_v26 = vld [vmem:[%s12268_s4 + $0x30] sm:$0xff] }
 0x60f   :  { %v7713_v42 = vunpack.i.h.bf16 %v7711_v53  ;;  %v7712_v44 = vunpack.i.l.bf16 %v7711_v53  ;;  %v7777_v53 = vunpack.i.l.bf16 %v11295_v17 }
 0x610   :  { %v4832_v33 = vsel %vm106_vm1, %v7723_v8, %v7707_v41  ;;  %v11395_v41 = vld [vmem:[%s12268_s4 + $0x40] sm:$0xff] }
 0x611   :  { %4930 = vmatpush.msra.mxu3 %v7713_v42  ;;  %v4834_v6 = vsel %vm106_vm1, %v7722_v34, %v7712_v44  ;;  %v4835_v18 = vsel %vm106_vm1, %v7712_v44, %v7713_v42 }
 0x612   :  { %4872 = vmatpush.msra.mxu1 %v4834_v6  ;;  %4901 = vmatpush.msra.mxu2 %v4835_v18 }
 0x613   :  { %4931 = vmatpush.msra.mxu3 %v7708_v12  ;;  %6175 = vperm.xlu2 %7248, %v6161_v36  }
 0x614   :  { %2997 = vperm.xlu1 %7247, %v11324_v25   ;;  %7925 = vrot.lane.b32.xlu0 %v11204_v5, %s7988_s11 }
 0x615   :  { %4873 = vmatpush.msra.mxu1 %v4832_v33  ;;  %4902 = vmatpush.msra.mxu2 %v4833_v29  ;;  %v7731_v55 = vpop.permute.xlu1 %7730 }
 0x616   :  { %4932 = vmatpush.msra.mxu3 %v7703_v43  ;;  %v7716_v15 = vpop.permute.xlu0 %7715  ;;  %v7733_v5 = vunpack.i.h.bf16 %v7731_v55  ;;  %v7732_v35 = vunpack.i.l.bf16 %v7731_v55  ;;  %v11414_v55 = vld [vmem:[%s12268_s4 + $0x48] sm:$0xff] }
 0x617   :  { %v7718_v48 = vunpack.i.h.bf16 %v7716_v15  ;;  %v7717_v4 = vunpack.i.l.bf16 %v7716_v15  ;;  %4874 = vmatpush.msra.mxu1 %v4830_v60  ;;  %4903 = vmatpush.msra.mxu2 %v4831_v39 }
 0x618   :  { %v5079_v0 = vsel %vm355_vm2, %v7733_v5, %v7783_v16 }
 0x619   :  { %4933 = vmatpush.msra.mxu3 %v7718_v48  ;;  %v4828_v28 = vsel %vm106_vm1, %v7728_v56, %v7717_v4  ;;  %v4829_v27 = vsel %vm106_vm1, %v7717_v4, %v7718_v48 }
 0x61a   :  { %4875 = vmatpush.msra.mxu1 %v4828_v28  ;;  %4904 = vmatpush.msra.mxu2 %v4829_v27 }
 0x61b   :  { %6881 = vmatmul.msk.f32.vlgmr.msra.gmra.mxu3 %vm127_vm0, %v6869_v14  ;;  %6873 = vmatmul.msk.f32.vlgmr.msra.gmra.mxu1 %vm127_vm0, %v6869_v14 }
 0x61c   :  { %6877 = vmatmul.msk.f32.vlgmr.msra.gmra.mxu2 %vm127_vm0, %v6869_v14  ;;  %5000 = vmatpush.msrb.mxu1 %v11167_v40  ;;  %v6870_v40 = vld [vmem:[%s12268_s4 + $0x28] sm:$0xff] }
 0x61d   :  { %5029 = vmatpush.msrb.mxu2 %v11185_v51  ;;  %3002 = vperm.xlu1 %7247, %v6161_v36   ;;  %v11349_v32 = vpop.permute.xlu1 %7755  ;;  %v7778_v36 = vunpack.i.h.bf16 %v11295_v17 }
 0x61e   :  { %2992 = vperm.xlu0 %7246, %v6159_v2   ;;  %5001 = vmatpush.msrb.mxu1 %v11154_v19  ;;  %v7741_v13 = vpop.permute.xlu0 %7740  ;;  %v11361_v19 = vpop.permute.xlu2 %7795  ;;  %v7758_v18 = vunpack.i.h.bf16 %v11349_v32 }
 0x61f   :  { %5030 = vmatpush.msrb.mxu2 %v11170_v1  ;;  %v7743_v50 = vunpack.i.h.bf16 %v7741_v13  ;;  %v7742_v22 = vunpack.i.l.bf16 %v7741_v13  ;;  %v7737_v1 = vunpack.i.l.bf16 %v11271_v61 }
 0x620   :  { %5002 = vmatpush.msrb.mxu1 %v11147_v23  ;;  %v6162_v23 = vld [vmem:[%s12269_s5 + $0x18] sm:$0xff] }
 0x621   :  { %5031 = vmatpush.msrb.mxu2 %v11157_v57  ;;  %v5080_v51 = vsel %vm355_vm2, %v7742_v22, %v7743_v50  ;;  %v5081_v59 = vsel %vm355_vm2, %v7743_v50, %v7782_v21  ;;  %v7738_v57 = vunpack.i.h.bf16 %v11271_v61 }
 0x622   :  { %5003 = vmatpush.msrb.mxu1 %v11182_v49  ;;  %5118 = vmatpush.msrb.mxu3 %v5080_v51 }
 0x623   :  { %5032 = vmatpush.msrb.mxu2 %v11198_v47  ;;  %6882 = vmatmul.msk.f32.gmra.mxu3 %vm127_vm0, %v6870_v40  ;;  %v5078_v47 = vsel %vm355_vm2, %v7732_v35, %v7733_v5  ;;  %v5076_v11 = vsel %vm355_vm2, %v7737_v1, %v7738_v57  ;;  %v5077_v2 = vsel %vm355_vm2, %v7738_v57, %v7787_v62  ;;  %v7798_v1 = vunpack.i.h.bf16 %v11361_v19 }
 0x624   :  { %5147 = vmatpush.msra.mxu0 %v5081_v59  ;;  %5176 = vmatpush.msra.mxu1 %v7782_v21 }
 0x625   :  { %6874 = vmatmul.msk.f32.gmra.mxu1 %vm127_vm0, %v6870_v40  ;;  %6878 = vmatmul.msk.f32.gmra.mxu2 %vm127_vm0, %v6870_v40  ;;  %v7766_v49 = vpop.permute.xlu1 %7765 }
 0x626   :  { %6180 = vperm.xlu1 %7247, %v6162_v23   ;;  %6170 = vperm.xlu0 %7246, %v11324_v25   ;;  %v7746_v52 = vpop.permute.xlu0 %7745  ;;  %v7768_v54 = vunpack.i.h.bf16 %v7766_v49  ;;  %v7767_v24 = vunpack.i.l.bf16 %v7766_v49  ;;  %v11390_v12 = vpop.permute.xlu2 %7815  ;;  %v7757_v25 = vunpack.i.l.bf16 %v11349_v32  ;;  %v11430_v32 = vld [vmem:[%s12268_s4 + $0x50] sm:$0xff]  ;;  %v11451_v49 = vld [vmem:[%s12268_s4 + $0x58] sm:$0xff] }
 0x627   :  { %5119 = vmatpush.msrb.mxu3 %v5078_v47  ;;  %5148 = vmatpush.msra.mxu0 %v5079_v0  ;;  %v7748_v31 = vunpack.i.h.bf16 %v7746_v52  ;;  %v7747_v61 = vunpack.i.l.bf16 %v7746_v52 }
 0x628   :  { %5177 = vmatpush.msra.mxu1 %v7783_v16  ;;  %v5239_v10 = vsel %vm516_vm3, %v7767_v24, %v7768_v54  ;;  %v5240_v44 = vsel %vm516_vm3, %v7768_v54, %v7777_v53  ;;  %v5235_v29 = vsel %vm516_vm3, %v7757_v25, %v7758_v18  ;;  %v7797_v16 = vunpack.i.l.bf16 %v11361_v19 }
 0x629   :  { %5120 = vmatpush.msrb.mxu3 %v5076_v11  ;;  %5149 = vmatpush.msra.mxu0 %v5077_v2  ;;  %v5074_v34 = vsel %vm355_vm2, %v7747_v61, %v7748_v31  ;;  %v5075_v42 = vsel %vm355_vm2, %v7748_v31, %v7788_v63  ;;  %v7818_v54 = vunpack.i.h.bf16 %v11390_v12  ;;  %v6913_v2 = vld [vmem:[%s12268_s4 + $0x60] sm:$0xff] }
 0x62a   :  { %5178 = vmatpush.msra.mxu1 %v7787_v62  ;;  %5277 = vmatpush.msra.mxu2 %v5239_v10  ;;  %v5395_v31 = vsel %vm677_vm4, %v7797_v16, %v7798_v1 }
 0x62b   :  { %6883 = vmatmul.msk.f32.gmra.mxu3 %vm127_vm0, %v6871_v26  ;;  %5150 = vmatpush.msra.mxu0 %v5075_v42 }
 0x62c   :  { %5179 = vmatpush.msra.mxu1 %v7788_v63  ;;  %5121 = vmatpush.msrb.mxu3 %v5074_v34 }
 0x62d   :  { %6875 = vmatmul.msk.f32.gmra.mxu1 %vm127_vm0, %v6871_v26  ;;  %6879 = vmatmul.msk.f32.gmra.mxu2 %vm127_vm0, %v6871_v26  ;;  %v7771_v8 = vpop.permute.xlu1 %7770 }
 0x62e   :  { %5306 = vmatpush.msra.mxu3 %v5240_v44  ;;  %5335 = vmatpush.msrb.mxu0 %v7777_v53  ;;  %v7751_v6 = vpop.permute.xlu0 %7750  ;;  %v11418_v60 = vpop.permute.xlu2 %7820  ;;  %v7773_v56 = vunpack.i.h.bf16 %v7771_v8  ;;  %v7772_v48 = vunpack.i.l.bf16 %v7771_v8 }
 0x62f   :  { %3007 = vperm.xlu0 %7246, %v6162_v23   ;;  %v7753_v43 = vunpack.i.h.bf16 %v7751_v6  ;;  %v7752_v30 = vunpack.i.l.bf16 %v7751_v6  ;;  %6905 = vmatmul.msk.f32.vlgmr.msra.gmra.mxu0 %vm127_vm0, %v11395_v41  ;;  %v7823_v25 = vunpack.i.h.bf16 %v11418_v60 }
 0x630   :  { %v5234_v27 = vsel %vm516_vm3, %v7772_v48, %v7773_v56 }
 0x631   :  { %5336 = vmatpush.msrb.mxu0 %v7753_v43  ;;  %v5237_v17 = vsel %vm516_vm3, %v7778_v36, %v7752_v30  ;;  %v5238_v33 = vsel %vm516_vm3, %v7752_v30, %v7753_v43  ;;  %v7822_v43 = vunpack.i.l.bf16 %v11418_v60 }
 0x632   :  { %5278 = vmatpush.msra.mxu2 %v5237_v17  ;;  %5307 = vmatpush.msra.mxu3 %v5238_v33  ;;  %v6915_v33 = vld [vmem:[%s12268_s4 + $0x70] sm:$0xff] }
 0x633   :  { %6884 = vmatmul.msk.f32.gmra.mxu3 %vm127_vm0, %v6872_v3 }
 0x634   :  { %5279 = vmatpush.msra.mxu2 %v5235_v29 }
 0x635   :  { %6876 = vmatmul.msk.f32.gmra.mxu1 %vm127_vm0, %v6872_v3  ;;  %6880 = vmatmul.msk.f32.gmra.mxu2 %vm127_vm0, %v6872_v3  ;;  %v7791_v15 = vpop.permute.xlu1 %7790 }
 0x636   :  { %v7761_v39 = vpop.permute.xlu0 %7760  ;;  %v11438_v59 = vpop.permute.xlu2 %7830  ;;  %v7793_v5 = vunpack.i.h.bf16 %v7791_v15  ;;  %v7792_v35 = vunpack.i.l.bf16 %v7791_v15 }
 0x637   :  { %v7763_v4 = vunpack.i.h.bf16 %v7761_v39  ;;  %v7762_v46 = vunpack.i.l.bf16 %v7761_v39  ;;  %6906 = vmatmul.msk.f32.gmra.mxu0 %vm127_vm0, %v11414_v55  ;;  %v7833_v3 = vunpack.i.h.bf16 %v11438_v59  ;;  %v7832_v17 = vunpack.i.l.bf16 %v11438_v59 }
 0x638   :  { %v5397_v19 = vsel %vm677_vm4, %v7792_v35, %v7793_v5 }
 0x639   :  { %5337 = vmatpush.msrb.mxu0 %v7762_v46  ;;  %v5233_v14 = vsel %vm516_vm3, %v7763_v4, %v7772_v48  ;;  %v5236_v28 = vsel %vm516_vm3, %v7758_v18, %v7762_v46  ;;  %v5714_v4 = vsel %vm999_vm6, %v7822_v43, %v7823_v25 }
 0x63a   :  { %5280 = vmatpush.msra.mxu2 %v5233_v14  ;;  %5308 = vmatpush.msra.mxu3 %v5236_v28 }
 0x63b   :  { %6901 = vmatmul.msk.f32.vlgmr.msrb.gmra.mxu3 %vm127_vm0, %v11395_v41  ;;  %5338 = vmatpush.msrb.mxu0 %v7773_v56 }
 0x63c   :  { %5309 = vmatpush.msra.mxu3 %v5234_v27  ;;  %v5712_v27 = vsel %vm999_vm6, %v7832_v17, %v7833_v3 }
 0x63d   :  { %6889 = vmatmul.msk.f32.vlgmr.msrb.gmra.mxu1 %vm127_vm0, %v11264_v58  ;;  %6893 = vmatmul.msk.f32.vlgmr.msrb.gmra.mxu2 %vm127_vm0, %v11264_v58  ;;  %v7811_v13 = vpop.permute.xlu1 %7810  ;;  %v7817_v58 = vunpack.i.l.bf16 %v11390_v12 }
 0x63e   :  { %v7801_v21 = vpop.permute.xlu0 %7800  ;;  %v7812_v50 = vunpack.i.l.bf16 %v7811_v13  ;;  %v7813_v51 = vunpack.i.h.bf16 %v7811_v13  ;;  %v11467_v11 = vpop.permute.xlu2 %7860 }
 0x63f   :  { %v7803_v22 = vunpack.i.h.bf16 %v7801_v21  ;;  %v7802_v40 = vunpack.i.l.bf16 %v7801_v21  ;;  %6907 = vmatmul.msk.f32.gmra.mxu0 %vm127_vm0, %v11430_v32  ;;  %v5394_v52 = vsel %vm677_vm4, %v7817_v58, %v7797_v16  ;;  %v7863_v13 = vunpack.i.h.bf16 %v11467_v11 }
 0x640   :  { %v5396_v62 = vsel %vm677_vm4, %v7813_v51, %v7792_v35  ;;  %v7862_v21 = vunpack.i.l.bf16 %v11467_v11 }
 0x641   :  { %5494 = vmatpush.msrb.mxu3 %v7803_v22  ;;  %v5398_v23 = vsel %vm677_vm4, %v7812_v50, %v7802_v40  ;;  %v5399_v57 = vsel %vm677_vm4, %v7802_v40, %v7803_v22 }
 0x642   :  { %5436 = vmatpush.msrb.mxu1 %v5398_v23  ;;  %5465 = vmatpush.msrb.mxu2 %v5399_v57  ;;  %v5553_v35 = vsel %vm838_vm5, %v7862_v21, %v7863_v13  ;;  %v12520_v21 = vld [vmem:[#allocation41_spill] sm:$0xff] }
 0x643   :  { %6902 = vmatmul.msk.f32.gmra.mxu3 %vm127_vm0, %v11414_v55 }
 0x644   :  { %5495 = vmatpush.msrb.mxu3 %v7793_v5  ;;  %5437 = vmatpush.msrb.mxu1 %v5396_v62  ;;  %v6916_v5 = vld [vmem:[%s12268_s4 + $0x78] sm:$0xff] }
 0x645   :  { %6890 = vmatmul.msk.f32.gmra.mxu1 %vm127_vm0, %v11280_v38  ;;  %6894 = vmatmul.msk.f32.gmra.mxu2 %vm127_vm0, %v11280_v38  ;;  %v11458_v47 = vpop.permute.xlu1 %7845 }
 0x646   :  { %5466 = vmatpush.msrb.mxu2 %v5397_v19  ;;  %5496 = vmatpush.msrb.mxu3 %v7798_v1  ;;  %v7806_v0 = vpop.permute.xlu0 %7805  ;;  %v11488_v44 = vpop.permute.xlu2 %7895  ;;  %v7848_v36 = vunpack.i.h.bf16 %v11458_v47  ;;  %v7847_v6 = vunpack.i.l.bf16 %v11458_v47 }
 0x647   :  { %v7808_v24 = vunpack.i.h.bf16 %v7806_v0  ;;  %v7807_v63 = vunpack.i.l.bf16 %v7806_v0  ;;  %5438 = vmatpush.msrb.mxu1 %v5394_v52  ;;  %6908 = vmatmul.msk.f32.gmra.mxu0 %vm127_vm0, %v11451_v49 }
 0x648   :  { %5467 = vmatpush.msrb.mxu2 %v5395_v31 }
 0x649   :  { %5497 = vmatpush.msrb.mxu3 %v7808_v24  ;;  %v5392_v38 = vsel %vm677_vm4, %v7818_v54, %v7807_v63  ;;  %v5393_v61 = vsel %vm677_vm4, %v7807_v63, %v7808_v24  ;;  %v11563_v63 = vld [vmem:[%s12268_s4 + $0xa0] sm:$0xff] }
 0x64a   :  { %5439 = vmatpush.msrb.mxu1 %v5392_v38  ;;  %5468 = vmatpush.msrb.mxu2 %v5393_v61 }
 0x64b   :  { %6903 = vmatmul.msk.f32.gmra.mxu3 %vm127_vm0, %v11430_v32 }
 0x64d   :  { %6891 = vmatmul.msk.f32.gmra.mxu1 %vm127_vm0, %v11293_v45  ;;  %6895 = vmatmul.msk.f32.gmra.mxu2 %vm127_vm0, %v11293_v45  ;;  %v11478_v26 = vpop.permute.xlu1 %7850  ;;  %v6914_v45 = vld [vmem:[%s12268_s4 + $0x68] sm:$0xff] }
 0x64e   :  { %v11480_v10 = vpop.permute.xlu0 %7825  ;;  %v7852_v53 = vunpack.i.l.bf16 %v11478_v26  ;;  %v11519_v15 = vpop.permute.xlu2 %7900  ;;  %v7853_v40 = vunpack.i.h.bf16 %v11478_v26  ;;  %v11583_v26 = vld [vmem:[%s12268_s4 + $0xa8] sm:$0xff] }
 0x64f   :  { %v7828_v34 = vunpack.i.h.bf16 %v11480_v10  ;;  %6925 = vmatmul.msk.f32.vlgmr.msrb.gmra.mxu0 %vm127_vm0, %v6913_v2  ;;  %v7827_v28 = vunpack.i.l.bf16 %v11480_v10  ;;  %v7902_v58 = vunpack.i.l.bf16 %v11519_v15 }
 0x651   :  { %v5557_v42 = vsel %vm838_vm5, %v7828_v34, %v7852_v53  ;;  %v5554_v23 = vsel %vm838_vm5, %v7863_v13, %v7827_v28  ;;  %v5717_v54 = vsel %vm999_vm6, %v7848_v36, %v7902_v58  ;;  %v11635_v13 = vld [vmem:[%s12268_s4 + $0xb8] sm:$0xff] }
 0x652   :  { %5595 = vmatpush.msra.mxu0 %v5557_v42 }
 0x653   :  { %6904 = vmatmul.msk.f32.gmra.mxu3 %vm127_vm0, %v11451_v49 }
 0x655   :  { %6892 = vmatmul.msk.f32.gmra.mxu1 %vm127_vm0, %v11310_v7  ;;  %6896 = vmatmul.msk.f32.gmra.mxu2 %vm127_vm0, %v11310_v7  ;;  %v11497_v12 = vpop.permute.xlu1 %7855  ;;  %v5716_v7 = vsel %vm999_vm6, %v7847_v6, %v7848_v36  ;;  %v7898_v36 = vunpack.i.h.bf16 %v11488_v44 }
 0x656   :  { %v7836_v8 = vpop.permute.xlu0 %7835  ;;  %v7858_v56 = vunpack.i.h.bf16 %v11497_v12  ;;  %v7857_v48 = vunpack.i.l.bf16 %v11497_v12  ;;  %v11550_v19 = vpop.permute.xlu2 %7905 }
 0x657   :  { %v7837_v18 = vunpack.i.l.bf16 %v7836_v8  ;;  %6926 = vmatmul.msk.f32.gmra.mxu0 %vm127_vm0, %v6914_v45  ;;  %v7838_v39 = vunpack.i.h.bf16 %v7836_v8  ;;  %v7907_v24 = vunpack.i.l.bf16 %v11550_v19  ;;  %v7908_v61 = vunpack.i.h.bf16 %v11550_v19 }
 0x658   :  { %v5710_v51 = vsel %vm999_vm6, %v7857_v48, %v7858_v56  ;;  %v12517_v48 = vld [vmem:[#allocation36_spill] sm:$0xff] }
 0x659   :  { %v5558_v30 = vsel %vm838_vm5, %v7852_v53, %v7837_v18  ;;  %v5713_v11 = vsel %vm999_vm6, %v7833_v3, %v7907_v24 }
 0x65b   :  { %6921 = vmatmul.msk.f32.vlgmr.msra.gmra.mxu3 %vm127_vm0, %v6913_v2 }
 0x65c   :  { %5754 = vmatpush.msra.mxu3 %v5716_v7 }
 0x65d   :  { %6909 = vmatmul.msk.f32.vlgmr.msra.gmra.mxu1 %vm127_vm0, %v11395_v41  ;;  %6917 = vmatmul.msk.f32.vlgmr.msra.gmra.mxu2 %vm127_vm0, %v6913_v2  ;;  %v11517_v29 = vpop.permute.xlu1 %7875  ;;  %v5711_v2 = vsel %vm999_vm6, %v7858_v56, %v7908_v61 }
 0x65e   :  { %5624 = vmatpush.msra.mxu1 %v5558_v30  ;;  %5653 = vmatpush.msra.mxu2 %v7837_v18  ;;  %v7841_v46 = vpop.permute.xlu0 %7840  ;;  %v7878_v6 = vunpack.i.h.bf16 %v11517_v29  ;;  %v7877_v43 = vunpack.i.l.bf16 %v11517_v29  ;;  %v6930_v29 = vld [vmem:[%s12268_s4 + $0x88] sm:$0xff] }
 0x65f   :  { %5755 = vmatpush.msra.mxu3 %v5714_v4  ;;  %v7843_v41 = vunpack.i.h.bf16 %v7841_v46  ;;  %v7842_v14 = vunpack.i.l.bf16 %v7841_v46  ;;  %6927 = vmatmul.msk.f32.gmra.mxu0 %vm127_vm0, %v6915_v33  ;;  %v12518_v4 = vld [vmem:[#allocation47_spill] sm:$0xff] }
 0x660   :  { %5654 = vmatpush.msra.mxu2 %v7838_v39  ;;  %v2818_v46 = vadd.f32 %v12518_v4, %v12517_v48 }
 0x661   :  { %5756 = vmatpush.msra.mxu3 %v5712_v27  ;;  %v5555_v50 = vsel %vm838_vm5, %v7842_v14, %v7843_v41  ;;  %v5556_v22 = vsel %vm838_vm5, %v7843_v41, %v7838_v39  ;;  %v5871_v39 = vsel %vm1160_vm7, %v7877_v43, %v7878_v6  ;;  %v11628_v14 = vpop.f32.mrf.mxu0  ;;  %v12537_v43 = vld [vmem:[#allocation50_spill] sm:$0xff] }
 0x662   :  { %5655 = vmatpush.msra.mxu2 %v7827_v28  ;;  %5596 = vmatpush.msra.mxu0 %v5555_v50  ;;  %v12519_v28 = vld [vmem:[#allocation42_spill] sm:$0xff]  ;;  %v12521_v50 = vld [vmem:[#allocation49_spill] sm:$0xff] }
 0x663   :  { %5757 = vmatpush.msra.mxu3 %v5710_v51  ;;  %5625 = vmatpush.msra.mxu1 %v5556_v22  ;;  %v2978_v27 = vadd.f32 %v12519_v28, %v2818_v46  ;;  %v2979_v22 = vadd.f32 %v12521_v50, %v12520_v21 }
 0x664   :  { %5656 = vmatpush.msra.mxu2 %v7853_v40  ;;  %6922 = vmatmul.msk.f32.gmra.mxu3 %vm127_vm0, %v6914_v45 }
 0x665   :  { %6910 = vmatmul.msk.f32.gmra.mxu1 %vm127_vm0, %v11414_v55  ;;  %6918 = vmatmul.msk.f32.gmra.mxu2 %vm127_vm0, %v6914_v45  ;;  %v11546_v57 = vpop.permute.xlu1 %7885  ;;  %v7903_v55 = vunpack.i.h.bf16 %v11519_v15  ;;  %v6929_v45 = vld [vmem:[%s12268_s4 + $0x80] sm:$0xff] }
 0x666   :  { %5597 = vmatpush.msra.mxu0 %v5553_v35  ;;  %5626 = vmatpush.msra.mxu1 %v5554_v23  ;;  %v7866_v1 = vpop.permute.xlu0 %7865  ;;  %v7888_v34 = vunpack.i.h.bf16 %v11546_v57 }
 0x667   :  { %v7868_v16 = vunpack.i.h.bf16 %v7866_v1  ;;  %v7867_v62 = vunpack.i.l.bf16 %v7866_v1  ;;  %6928 = vmatmul.msk.f32.gmra.mxu0 %vm127_vm0, %v6916_v5  ;;  %v5715_v47 = vsel %vm999_vm6, %v7823_v25, %v7903_v55  ;;  %v11607_v25 = vld [vmem:[%s12268_s4 + $0xb0] sm:$0xff] }
 0x669   :  { %v5551_v0 = vsel %vm838_vm5, %v7867_v62, %v7868_v16  ;;  %v5552_v52 = vsel %vm838_vm5, %v7868_v16, %v7853_v40  ;;  %v6931_v16 = vld [vmem:[%s12268_s4 + $0x90] sm:$0xff] }
 0x66a   :  { %5598 = vmatpush.msra.mxu0 %v5551_v0  ;;  %5627 = vmatpush.msra.mxu1 %v5552_v52  ;;  %v12526_v0 = vld [vmem:[#allocation25_spill] sm:$0xff]  ;;  %v12527_v52 = vld [vmem:[#allocation18_spill] sm:$0xff] }
 0x66c   :  { %5783 = vmatpush.msrb.mxu0 %v5717_v54  ;;  %6923 = vmatmul.msk.f32.gmra.mxu3 %vm127_vm0, %v6915_v33  ;;  %v2815_v54 = vadd.f32 %v12527_v52, %v12526_v0 }
 0x66d   :  { %6911 = vmatmul.msk.f32.gmra.mxu1 %vm127_vm0, %v11430_v32  ;;  %6919 = vmatmul.msk.f32.gmra.mxu2 %vm127_vm0, %v6915_v33  ;;  %v7891_v31 = vpop.permute.xlu1 %7890  ;;  %v7897_v32 = vunpack.i.l.bf16 %v11488_v44 }
 0x66e   :  { %5784 = vmatpush.msrb.mxu0 %v5715_v47  ;;  %v7871_v38 = vpop.permute.xlu0 %7870  ;;  %v7893_v42 = vunpack.i.h.bf16 %v7891_v31  ;;  %v7892_v7 = vunpack.i.l.bf16 %v7891_v31  ;;  %v11666_v47 = vpop.f32.mrf.mxu0  ;;  %v12528_v31 = vld [vmem:[#allocation37_spill] sm:$0xff] }
 0x66f   :  { %6949 = vmatmul.msk.f32.vlgmr.msra.gmra.mxu0 %vm127_vm0, %v11563_v63  ;;  %v7873_v60 = vunpack.i.h.bf16 %v7871_v38  ;;  %v7872_v12 = vunpack.i.l.bf16 %v7871_v38  ;;  %v5876_v8 = vsel %vm1160_vm7, %v7888_v34, %v7897_v32  ;;  %v12529_v38 = vld [vmem:[#allocation28_spill] sm:$0xff] }
 0x670   :  { %5785 = vmatpush.msrb.mxu0 %v5713_v11  ;;  %v5870_v56 = vsel %vm1160_vm7, %v7892_v7, %v7893_v42  ;;  %v12530_v11 = vld [vmem:[#allocation43_spill] sm:$0xff] }
 0x671   :  { %v5874_v30 = vsel %vm1160_vm7, %v7872_v12, %v7873_v60  ;;  %v5873_v33 = vsel %vm1160_vm7, %v7898_v36, %v7872_v12 }
 0x672   :  { %5786 = vmatpush.msrb.mxu0 %v5711_v2  ;;  %v11674_v2 = vld [vmem:[%s12268_s4 + $0xc0] sm:$0xff] }
 0x674   :  { %5971 = vmatpush.msra.mxu0 %v7897_v32  ;;  %6924 = vmatmul.msk.f32.gmra.mxu3 %vm127_vm0, %v6916_v5  ;;  %v2975_v32 = vadd.f32 %v12530_v11, %v2815_v54 }
 0x675   :  { %6912 = vmatmul.msk.f32.gmra.mxu1 %vm127_vm0, %v11451_v49  ;;  %6920 = vmatmul.msk.f32.gmra.mxu2 %vm127_vm0, %v6916_v5  ;;  %v11588_v59 = vpop.permute.xlu1 %7910  ;;  %v7887_v49 = vunpack.i.l.bf16 %v11546_v57  ;;  %v12522_v5 = vld [vmem:[#allocation40_spill] sm:$0xff] }
 0x676   :  { %5972 = vmatpush.msra.mxu0 %v7873_v60  ;;  %v7881_v10 = vpop.permute.xlu0 %7880  ;;  %v12531_v60 = vld [vmem:[#allocation48_spill] sm:$0xff]  ;;  %v7912_v0 = vunpack.i.l.bf16 %v11588_v59 }
 0x677   :  { %v7882_v53 = vunpack.i.l.bf16 %v7881_v10  ;;  %6950 = vmatmul.msk.f32.gmra.mxu0 %vm127_vm0, %v11583_v26  ;;  %v5875_v44 = vsel %vm1160_vm7, %v7887_v49, %v7888_v34  ;;  %v7883_v17 = vunpack.i.h.bf16 %v7881_v10  ;;  %v12532_v10 = vld [vmem:[#allocation21_spill] sm:$0xff]  ;;  %v11678_v34 = vpop.permute.xlu2 %7915 }
 0x679   :  { %5973 = vmatpush.msra.mxu0 %v7882_v53  ;;  %v5872_v15 = vsel %vm1160_vm7, %v7878_v6, %v7882_v53  ;;  %v5869_v41 = vsel %vm1160_vm7, %v7883_v17, %v7892_v7  ;;  %v2821_v53 = vadd.f32 %v12532_v10, %v12531_v60  ;;  %v6932_v6 = vld [vmem:[%s12268_s4 + $0x98] sm:$0xff]  ;;  %v11753_v60 = vld [vmem:[%s12268_s4 + $0xd0] sm:$0xff] }
 0x67b   :  { %5974 = vmatpush.msra.mxu0 %v7893_v42  ;;  %v2981_v7 = vadd.f32 %v12537_v43, %v2821_v53 }
 0x67c   :  { %6941 = vmatmul.msk.f32.vlgmr.msrb.gmra.mxu3 %vm127_vm0, %v6929_v45 }
 0x67d   :  { %5942 = vmatpush.msrb.mxu3 %v5876_v8  ;;  %6933 = vmatmul.msk.f32.vlgmr.msrb.gmra.mxu1 %vm127_vm0, %v6929_v45  ;;  %v11602_v18 = vpop.permute.xlu1 %7930 }
 0x67e   :  { %6937 = vmatmul.msk.f32.vlgmr.msrb.gmra.mxu2 %vm127_vm0, %v6929_v45  ;;  %5812 = vmatpush.msrb.mxu1 %v7902_v58  ;;  %v11613_v3 = vpop.permute.xlu0 %7920  ;;  %v12533_v45 = vld [vmem:[#allocation27_spill] sm:$0xff] }
 0x67f   :  { %5913 = vmatpush.msrb.mxu2 %v5875_v44  ;;  %5943 = vmatpush.msrb.mxu3 %v5874_v30  ;;  %v12538_v44 = vld [vmem:[#allocation32_spill] sm:$0xff] }
 0x680   :  { %5813 = vmatpush.msrb.mxu1 %v7903_v55  ;;  %6951 = vmatmul.msk.f32.gmra.mxu0 %vm127_vm0, %v11607_v25  ;;  %v12539_v30 = vld [vmem:[#allocation44_spill] sm:$0xff] }
 0x681   :  { %5914 = vmatpush.msrb.mxu2 %v5873_v33  ;;  %5944 = vmatpush.msrb.mxu3 %v5872_v15  ;;  %v2982_v17 = vadd.f32 %v12539_v30, %v12538_v44  ;;  %v11774_v44 = vld [vmem:[%s12268_s4 + $0xd8] sm:$0xff] }
 0x682   :  { %5814 = vmatpush.msrb.mxu1 %v7907_v24 }
 0x683   :  { %5915 = vmatpush.msrb.mxu2 %v5871_v39  ;;  %5945 = vmatpush.msrb.mxu3 %v5870_v56  ;;  %v12540_v39 = vld [vmem:[#allocation34_spill] sm:$0xff] }
 0x684   :  { %5815 = vmatpush.msrb.mxu1 %v7908_v61  ;;  %6942 = vmatmul.msk.f32.gmra.mxu3 %vm127_vm0, %v6930_v29  ;;  %v2976_v61 = vadd.f32 %v12529_v38, %v12528_v31 }
 0x685   :  { %5916 = vmatpush.msrb.mxu2 %v5869_v41  ;;  %6934 = vmatmul.msk.f32.gmra.mxu1 %vm127_vm0, %v6930_v29 }
 0x686   :  { %6938 = vmatmul.msk.f32.gmra.mxu2 %vm127_vm0, %v6930_v29  ;;  %v11640_v40 = vpop.permute.xlu0 %7925  ;;  %v2998_v51 = vpop.permute.xlu1 %2997 }
 0x687   :  { %v11643_v35 = vadd.f32 %v2998_v51, %v12522_v5  ;;  %v11645_v23 = vadd.f32 %v2998_v51, %v2978_v27  ;;  %v11647_v57 = vadd.f32 %v2998_v51, %v2979_v22  ;;  %v11715_v27 = vld [vmem:[%s12268_s4 + $0xc8] sm:$0xff]  ;;  %v11723_v22 = vpop.f32.mrf.mxu0  ;;  %v7922_v51 = vunpack.i.l.bf16 %v11613_v3 }
 0x688   :  { %6952 = vmatmul.msk.f32.gmra.mxu0 %vm127_vm0, %v11635_v13  ;;  %v7932_v5 = vunpack.i.l.bf16 %v11602_v18  ;;  %v7928_v10 = vunpack.i.h.bf16 %v11640_v40 }
 0x689   :  { %12523 = vst [vmem:[#allocation64_spill] sm:$0xff] %v11643_v35  ;;  %v3025_v58 = vmul.f32 %v11643_v35, %v8852_v9  ;;  %v3026_v1 = vmul.f32 %v11645_v23, %v12487_v20  ;;  %v3027_v62 = vmul.f32 %v11647_v57, %v12511_v37 }
 0x68a   :  { %12524 = vst [vmem:[#allocation63_spill] sm:$0xff] %v11645_v23 }
 0x68b   :  { %12525 = vst [vmem:[#allocation70_spill] sm:$0xff] %v11647_v57  ;;  %v3039_v19 = vadd.f32 %v3026_v1, %v3025_v58  ;;  %v3040_v55 = vsel %vm127_vm0, %v3027_v62, 0.0  ;;  %v7923_v62 = vunpack.i.h.bf16 %v11613_v3  ;;  %v7918_v3 = vunpack.i.h.bf16 %v11678_v34 }
 0x68c   :  { %6943 = vmatmul.msk.f32.gmra.mxu3 %vm127_vm0, %v6931_v16 }
 0x68d   :  { %6935 = vmatmul.msk.f32.gmra.mxu1 %vm127_vm0, %v6931_v16  ;;  %v3041_v24 = vadd.f32 %v3040_v55, %v3039_v19  ;;  %v7933_v19 = vunpack.i.h.bf16 %v11602_v18  ;;  %v7913_v55 = vunpack.i.h.bf16 %v11588_v59  ;;  %v7917_v18 = vunpack.i.l.bf16 %v11678_v34 }
 0x68e   :  { %6939 = vmatmul.msk.f32.gmra.mxu2 %vm127_vm0, %v6931_v16  ;;  %v7936_v16 = vpop.permute.xlu2 %7935  ;;  %v6035_v59 = vsel %vm1321_vm8, %v7922_v51, %v7923_v62 }
 0x68f   :  { %3042 = vadd.xlane.f32.xlu0 %v3041_v24  ;;  %v3003_v36 = vpop.permute.xlu1 %3002  ;;  %v7937_v54 = vunpack.i.l.bf16 %v7936_v16  ;;  %v6034_v24 = vsel %vm1321_vm8, %v7932_v5, %v7922_v51  ;;  %v6032_v11 = vsel %vm1321_vm8, %v7933_v19, %v7912_v0  ;;  %v7938_v34 = vunpack.i.h.bf16 %v7936_v16  ;;  %v6979_v16 = vld [vmem:[%s12268_s4 + $0xf0] sm:$0xff] }
 0x690   :  { %v2993_v42 = vpop.permute.xlu0 %2992  ;;  %6969 = vmatmul.msk.f32.vlgmr.msrb.gmra.mxu0 %vm127_vm0, %v11674_v2  ;;  %v11702_v56 = vadd.f32 %v3003_v36, %v12540_v39  ;;  %v11704_v48 = vadd.f32 %v3003_v36, %v2981_v7  ;;  %v11707_v4 = vadd.f32 %v3003_v36, %v2982_v17 }
 0x691   :  { %v11683_v49 = vadd.f32 %v2993_v42, %v12533_v45  ;;  %v11685_v12 = vadd.f32 %v2993_v42, %v2975_v32  ;;  %v11687_v8 = vadd.f32 %v2993_v42, %v2976_v61  ;;  %v7927_v61 = vunpack.i.l.bf16 %v11640_v40 }
 0x692   :  { %12541 = vst [vmem:[#allocation71_spill] sm:$0xff] %v11702_v56  ;;  %v3028_v21 = vmul.f32 %v11702_v56, %v8852_v9  ;;  %v3029_v50 = vmul.f32 %v11704_v48, %v12487_v20  ;;  %v3030_v58 = vmul.f32 %v11707_v4, %v12511_v37  ;;  %v6030_v42 = vsel %vm1321_vm8, %v7937_v54, %v7917_v18  ;;  %v12547_v56 = vld [vmem:[#allocation38_spill] sm:$0xff] }
 0x693   :  { %12534 = vst [vmem:[#allocation24_spill] sm:$0xff] %v11683_v49  ;;  %v3022_v33 = vmul.f32 %v11683_v49, %v8852_v9  ;;  %v3023_v15 = vmul.f32 %v11685_v12, %v12487_v20  ;;  %v3024_v29 = vmul.f32 %v11687_v8, %v12511_v37  ;;  %v6031_v45 = vsel %vm1321_vm8, %v7917_v18, %v7918_v3 }
 0x694   :  { %12535 = vst [vmem:[#allocation55_spill] sm:$0xff] %v11685_v12  ;;  %6944 = vmatmul.msk.f32.gmra.mxu3 %vm127_vm0, %v6932_v6  ;;  %v3044_v52 = vadd.f32 %v3029_v50, %v3028_v21  ;;  %v3045_v31 = vsel %vm127_vm0, %v3030_v58, 0.0  ;;  %v6028_v40 = vsel %vm1321_vm8, %v7938_v34, %v7927_v61  ;;  %v6029_v43 = vsel %vm1321_vm8, %v7927_v61, %v7928_v10 }
 0x695   :  { %12536 = vst [vmem:[#allocation58_spill] sm:$0xff] %v11687_v8  ;;  %6936 = vmatmul.msk.f32.gmra.mxu1 %vm127_vm0, %v6932_v6  ;;  %v3034_v46 = vadd.f32 %v3023_v15, %v3022_v33  ;;  %v3035_v41 = vsel %vm127_vm0, %v3024_v29, 0.0  ;;  %v6977_v15 = vld [vmem:[%s12268_s4 + $0xe0] sm:$0xff] }
 0x696   :  { %12542 = vst [vmem:[#allocation65_spill] sm:$0xff] %v11704_v48  ;;  %6940 = vmatmul.msk.f32.gmra.mxu2 %vm127_vm0, %v6932_v6  ;;  %v3046_v53 = vadd.f32 %v3045_v31, %v3044_v52  ;;  %v11761_v6 = vpop.f32.mrf.mxu0  ;;  %v12546_v48 = vld [vmem:[#allocation26_spill] sm:$0xff] }
 0x697   :  { %12543 = vst [vmem:[#allocation76_spill] sm:$0xff] %v11707_v4  ;;  %v3036_v28 = vadd.f32 %v3035_v41, %v3034_v46  ;;  %v6978_v41 = vld [vmem:[%s12268_s4 + $0xe8] sm:$0xff]  ;;  %v2824_v8 = vadd.f32 %v12547_v56, %v12546_v48 }
 0x698   :  { %6970 = vmatmul.msk.f32.gmra.mxu0 %vm127_vm0, %v11715_v27  ;;  %v11729_v1 = vpop.f32.mrf.mxu1 }
 0x699   :  { %3037 = vadd.xlane.f32.xlu2 %v3036_v28  ;;  %v4977_v51 = vadd.f32 %v11628_v14, %v11729_v1 }
 0x69c   :  { %6965 = vmatmul.msk.f32.vlgmr.msra.gmra.mxu3 %vm127_vm0, %v11674_v2 }
 0x69d   :  { %6130 = vmatpush.msra.mxu3 %v7923_v62  ;;  %6953 = vmatmul.msk.f32.vlgmr.msra.gmra.mxu1 %vm127_vm0, %v11563_v63 }
 0x69e   :  { %6957 = vmatmul.msk.f32.vlgmr.msra.gmra.mxu2 %vm127_vm0, %v11563_v63  ;;  %6072 = vmatpush.msra.mxu1 %v6034_v24  ;;  %v11746_v38 = vpop.f32.mrf.mxu3  ;;  %v6033_v63 = vsel %vm1321_vm8, %v7912_v0, %v7913_v55  ;;  %v6980_v24 = vld [vmem:[%s12268_s4 + $0xf8] sm:$0xff] }
 0x69f   :  { %6101 = vmatpush.msra.mxu2 %v6035_v59  ;;  %6131 = vmatpush.msra.mxu3 %v7913_v55  ;;  %v4906_v32 = vpop.f32.mrf.mxu2 }
 0x6a0   :  { %6073 = vmatpush.msra.mxu1 %v6032_v11  ;;  %6971 = vmatmul.msk.f32.gmra.mxu0 %vm127_vm0, %v11753_v60 }
 0x6a1   :  { %6102 = vmatpush.msra.mxu2 %v6033_v63  ;;  %6132 = vmatpush.msra.mxu3 %v7918_v3 }
 0x6a2   :  { %6074 = vmatpush.msra.mxu1 %v6030_v42  ;;  %3047 = vadd.xlane.f32.xlu2 %v3046_v53  ;;  %v4880_v36 = vpop.f32.mrf.mxu1 }
 0x6a3   :  { %6103 = vmatpush.msra.mxu2 %v6031_v45  ;;  %6133 = vmatpush.msra.mxu3 %v7928_v10 }
 0x6a4   :  { %6075 = vmatpush.msra.mxu1 %v6028_v40  ;;  %6966 = vmatmul.msk.f32.gmra.mxu3 %vm127_vm0, %v11715_v27 }
 0x6a5   :  { %6104 = vmatpush.msra.mxu2 %v6029_v43  ;;  %6954 = vmatmul.msk.f32.gmra.mxu1 %vm127_vm0, %v11583_v26  ;;  %v6993_v43 = vld [vmem:[%s12268_s4 + $0x100] sm:$0xff] }
 0x6a6   :  { %6958 = vmatmul.msk.f32.gmra.mxu2 %vm127_vm0, %v11583_v26  ;;  %v4938_v7 = vpop.f32.mrf.mxu3 }
 0x6a8   :  { %v4909_v30 = vpop.f32.mrf.mxu2  ;;  %6972 = vmatmul.msk.f32.gmra.mxu0 %vm127_vm0, %v11774_v44 }
 0x6aa   :  { %v4883_v17 = vpop.f32.mrf.mxu1 }
 0x6ac   :  { %6967 = vmatmul.msk.f32.gmra.mxu3 %vm127_vm0, %v11753_v60  ;;  %v5152_v33 = vpop.f32.mrf.mxu0 }
 0x6ad   :  { %6955 = vmatmul.msk.f32.gmra.mxu1 %vm127_vm0, %v11607_v25 }
 0x6ae   :  { %6959 = vmatmul.msk.f32.gmra.mxu2 %vm127_vm0, %v11607_v25  ;;  %v4941_v26 = vpop.f32.mrf.mxu3 }
 0x6b0   :  { %v4912_v29 = vpop.f32.mrf.mxu2  ;;  %6989 = vmatmul.msk.f32.vlgmr.msra.gmra.mxu0 %vm127_vm0, %v6977_v15 }
 0x6b2   :  { %v4886_v39 = vpop.f32.mrf.mxu1 }
 0x6b3   :  { %v4986_v42 = vadd.f32 %v11761_v6, %v4886_v39 }
 0x6b4   :  { %6968 = vmatmul.msk.f32.gmra.mxu3 %vm127_vm0, %v11774_v44  ;;  %v5155_v25 = vpop.f32.mrf.mxu0 }
 0x6b5   :  { %6956 = vmatmul.msk.f32.gmra.mxu1 %vm127_vm0, %v11635_v13 }
 0x6b6   :  { %6960 = vmatmul.msk.f32.gmra.mxu2 %vm127_vm0, %v11635_v13  ;;  %v4944_v46 = vpop.f32.mrf.mxu3 }
 0x6b8   :  { %v4915_v28 = vpop.f32.mrf.mxu2  ;;  %6990 = vmatmul.msk.f32.gmra.mxu0 %vm127_vm0, %v6978_v41 }
 0x6ba   :  { %v5005_v21 = vpop.f32.mrf.mxu1 }
 0x6bb   :  { %v5006_v50 = vadd.f32 %v5005_v21, %v4906_v32 }
 0x6bc   :  { %6985 = vmatmul.msk.f32.vlgmr.msrb.gmra.mxu3 %vm127_vm0, %v6977_v15  ;;  %v5158_v19 = vpop.f32.mrf.mxu0 }
 0x6bd   :  { %v5194_v5 = vadd.f32 %v5152_v33, %v5006_v50  ;;  %6973 = vmatmul.msk.f32.vlgmr.msrb.gmra.mxu1 %vm127_vm0, %v11674_v2  ;;  %v4980_v2 = vadd.f32 %v11666_v47, %v4880_v36  ;;  %v4983_v47 = vadd.f32 %v11723_v22, %v4883_v17 }
 0x6be   :  { %6981 = vmatmul.msk.f32.vlgmr.msrb.gmra.mxu2 %vm127_vm0, %v6977_v15  ;;  %v5123_v13 = vpop.f32.mrf.mxu3 }
 0x6bf   :  { %v5193_v58 = vadd.f32 %v5123_v13, %v4977_v51 }
 0x6c0   :  { %v5034_v62 = vpop.f32.mrf.mxu2  ;;  %6991 = vmatmul.msk.f32.gmra.mxu0 %vm127_vm0, %v6979_v16 }
 0x6c1   :  { %v5035_v55 = vadd.f32 %v5034_v62, %v11746_v38 }
 0x6c2   :  { %v5008_v0 = vpop.f32.mrf.mxu1 }
 0x6c3   :  { %v5009_v14 = vadd.f32 %v5008_v0, %v4909_v30 }
 0x6c4   :  { %6986 = vmatmul.msk.f32.gmra.mxu3 %vm127_vm0, %v6978_v41  ;;  %v5161_v59 = vpop.f32.mrf.mxu0 }
 0x6c5   :  { %v5197_v1 = vadd.f32 %v5155_v25, %v5009_v14  ;;  %6974 = vmatmul.msk.f32.gmra.mxu1 %vm127_vm0, %v11715_v27  ;;  %v6996_v14 = vld [vmem:[%s12268_s4 + $0x118] sm:$0xff] }
 0x6c6   :  { %6982 = vmatmul.msk.f32.gmra.mxu2 %vm127_vm0, %v6978_v41  ;;  %v5126_v52 = vpop.f32.mrf.mxu3 }
 0x6c7   :  { %v5196_v54 = vadd.f32 %v5126_v52, %v4980_v2 }
 0x6c8   :  { %v5037_v31 = vpop.f32.mrf.mxu2  ;;  %6992 = vmatmul.msk.f32.gmra.mxu0 %vm127_vm0, %v6980_v24 }
 0x6c9   :  { %v5038_v3 = vadd.f32 %v5037_v31, %v4938_v7 }
 0x6ca   :  { %v5011_v18 = vpop.f32.mrf.mxu1 }
 0x6cb   :  { %v5012_v38 = vadd.f32 %v5011_v18, %v4912_v29  ;;  %v6994_v29 = vld [vmem:[%s12268_s4 + $0x108] sm:$0xff] }
 0x6cc   :  { %6987 = vmatmul.msk.f32.gmra.mxu3 %vm127_vm0, %v6979_v16  ;;  %v5340_v34 = vpop.f32.mrf.mxu0 }
 0x6cd   :  { %v5200_v27 = vadd.f32 %v5158_v19, %v5012_v38  ;;  %6975 = vmatmul.msk.f32.gmra.mxu1 %vm127_vm0, %v11753_v60 }
 0x6ce   :  { %6983 = vmatmul.msk.f32.gmra.mxu2 %vm127_vm0, %v6979_v16  ;;  %v5129_v61 = vpop.f32.mrf.mxu3 }
 0x6cf   :  { %v5199_v11 = vadd.f32 %v5129_v61, %v4983_v47 }
 0x6d0   :  { %v5040_v32 = vpop.f32.mrf.mxu2 }
 0x6d1   :  { %v5041_v10 = vadd.f32 %v5040_v32, %v4941_v26 }
 0x6d2   :  { %v5014_v63 = vpop.f32.mrf.mxu1 }
 0x6d3   :  { %v5015_v53 = vadd.f32 %v5014_v63, %v4915_v28 }
 0x6d4   :  { %6988 = vmatmul.msk.f32.gmra.mxu3 %vm127_vm0, %v6980_v24 }
 0x6d5   :  { %v5203_v45 = vadd.f32 %v5161_v59, %v5015_v53  ;;  %6976 = vmatmul.msk.f32.gmra.mxu1 %vm127_vm0, %v11774_v44  ;;  %v5343_v44 = vpop.f32.mrf.mxu0 }
 0x6d6   :  { %6984 = vmatmul.msk.f32.gmra.mxu2 %vm127_vm0, %v6980_v24  ;;  %v5132_v22 = vpop.f32.mrf.mxu3 }
 0x6d7   :  { %v5202_v60 = vadd.f32 %v5132_v22, %v4986_v42 }
 0x6d8   :  { %v5043_v36 = vpop.f32.mrf.mxu2 }
 0x6d9   :  { %v5044_v40 = vadd.f32 %v5043_v36, %v4944_v46 }
 0x6da   :  { %v5181_v7 = vpop.f32.mrf.mxu1 }
 0x6db   :  { %v5195_v30 = vadd.f32 %v5181_v7, %v5035_v55 }
 0x6dc   :  { %7005 = vmatmul.msk.f32.vlgmr.msra.gmra.mxu3 %vm127_vm0, %v6993_v43 }
 0x6dd   :  { %v5354_v17 = vadd.f32 %v5340_v34, %v5195_v30  ;;  %6997 = vmatmul.msk.f32.vlgmr.msra.gmra.mxu1 %vm127_vm0, %v6993_v43  ;;  %v5346_v50 = vpop.f32.mrf.mxu0 }
 0x6de   :  { %7001 = vmatmul.msk.f32.vlgmr.msra.gmra.mxu2 %vm127_vm0, %v6993_v43  ;;  %v5311_v6 = vpop.f32.mrf.mxu3 }
 0x6df   :  { %v5353_v33 = vadd.f32 %v5311_v6, %v5194_v5  ;;  %v6995_v5 = vld [vmem:[%s12268_s4 + $0x110] sm:$0xff] }
 0x6e0   :  { %v5282_v26 = vpop.f32.mrf.mxu2 }
 0x6e1   :  { %v5352_v15 = vadd.f32 %v5282_v26, %v5193_v58 }
 0x6e2   :  { %v5184_v39 = vpop.f32.mrf.mxu1 }
 0x6e3   :  { %v5198_v46 = vadd.f32 %v5184_v39, %v5038_v3 }
 0x6e4   :  { %7006 = vmatmul.msk.f32.gmra.mxu3 %vm127_vm0, %v6994_v29 }
 0x6e5   :  { %v5357_v25 = vadd.f32 %v5343_v44, %v5198_v46  ;;  %6998 = vmatmul.msk.f32.gmra.mxu1 %vm127_vm0, %v6994_v29 }
 0x6e6   :  { %7002 = vmatmul.msk.f32.gmra.mxu2 %vm127_vm0, %v6994_v29 }
 0x6e7   :  { %v5314_v41 = vpop.f32.mrf.mxu3 }
 0x6e8   :  { %v5356_v28 = vadd.f32 %v5314_v41, %v5197_v1  ;;  %v5285_v21 = vpop.f32.mrf.mxu2  ;;  %v5349_v1 = vpop.f32.mrf.mxu0 }
 0x6e9   :  { %v5355_v51 = vadd.f32 %v5285_v21, %v5196_v54 }
 0x6ea   :  { %v5187_v13 = vpop.f32.mrf.mxu1 }
 0x6eb   :  { %v5201_v58 = vadd.f32 %v5187_v13, %v5041_v10 }
 0x6ec   :  { %7007 = vmatmul.msk.f32.gmra.mxu3 %vm127_vm0, %v6995_v5 }
 0x6ed   :  { %v5360_v16 = vadd.f32 %v5346_v50, %v5201_v58  ;;  %6999 = vmatmul.msk.f32.gmra.mxu1 %vm127_vm0, %v6995_v5 }
 0x6ee   :  { %7003 = vmatmul.msk.f32.gmra.mxu2 %vm127_vm0, %v6995_v5 }
 0x6ef   :  { %v5317_v62 = vpop.f32.mrf.mxu3 }
 0x6f0   :  { %v5359_v19 = vadd.f32 %v5317_v62, %v5200_v27  ;;  %v5288_v55 = vpop.f32.mrf.mxu2  ;;  %v5600_v63 = vpop.f32.mrf.mxu0 }
 0x6f1   :  { %v5358_v0 = vadd.f32 %v5288_v55, %v5199_v11 }
 0x6f2   :  { %v5190_v2 = vpop.f32.mrf.mxu1 }
 0x6f3   :  { %v5204_v52 = vadd.f32 %v5190_v2, %v5044_v40 }
 0x6f4   :  { %7008 = vmatmul.msk.f32.gmra.mxu3 %vm127_vm0, %v6996_v14 }
 0x6f5   :  { %v5363_v54 = vadd.f32 %v5349_v1, %v5204_v52  ;;  %7000 = vmatmul.msk.f32.gmra.mxu1 %vm127_vm0, %v6996_v14 }
 0x6f6   :  { %7004 = vmatmul.msk.f32.gmra.mxu2 %vm127_vm0, %v6996_v14 }
 0x6f7   :  { %v5320_v24 = vpop.f32.mrf.mxu3 }
 0x6f8   :  { %v5362_v31 = vadd.f32 %v5320_v24, %v5203_v45  ;;  %v5291_v3 = vpop.f32.mrf.mxu2  ;;  %v5603_v45 = vpop.f32.mrf.mxu0 }
 0x6f9   :  { %v5361_v18 = vadd.f32 %v5291_v3, %v5202_v60 }
 0x6fa   :  { %v5441_v59 = vpop.f32.mrf.mxu1 }
 0x6fb   :  { %v5511_v38 = vadd.f32 %v5441_v59, %v5352_v15 }
 0x6ff   :  { %v5499_v47 = vpop.f32.mrf.mxu3 }
 0x700   :  { %v5513_v27 = vadd.f32 %v5499_v47, %v5354_v17  ;;  %v11866_v26 = vpop.f32.mrf.mxu0 }
 0x701   :  { %v5470_v61 = vpop.f32.mrf.mxu2 }
 0x702   :  { %v5512_v11 = vadd.f32 %v5470_v61, %v5353_v33  ;;  %v5444_v32 = vpop.f32.mrf.mxu1 }
 0x703   :  { %v5514_v10 = vadd.f32 %v5444_v32, %v5355_v51  ;;  %v11894_v32 = vpop.permute.xlu0 %6170 }
 0x705   :  { %v5673_v12 = vadd.f32 %v5603_v45, %v5514_v10 }
 0x707   :  { %v5502_v53 = vpop.f32.mrf.mxu3 }
 0x708   :  { %v11852_v34 = vadd.f32 %v5502_v53, %v5357_v25 }
 0x709   :  { %v5473_v42 = vpop.f32.mrf.mxu2 }
 0x70a   :  { %v11854_v22 = vadd.f32 %v5473_v42, %v5356_v28  ;;  %v5447_v36 = vpop.f32.mrf.mxu1  ;;  %v11870_v28 = vpop.f32.mrf.mxu0  ;;  %v5670_v42 = vadd.f32 %v5600_v63, %v5511_v38 }
 0x70b   :  { %v11856_v40 = vadd.f32 %v5447_v36, %v5358_v0 }
 0x70f   :  { %v5505_v60 = vpop.f32.mrf.mxu3 }
 0x710   :  { %v11858_v43 = vadd.f32 %v5505_v60, %v5360_v16 }
 0x711   :  { %v5476_v7 = vpop.f32.mrf.mxu2 }
 0x712   :  { %v11860_v30 = vadd.f32 %v5476_v7, %v5359_v19  ;;  %v5450_v17 = vpop.f32.mrf.mxu1  ;;  %v5788_v5 = vpop.f32.mrf.mxu0 }
 0x713   :  { %v11862_v6 = vadd.f32 %v5450_v17, %v5361_v18 }
 0x717   :  { %v5508_v44 = vpop.f32.mrf.mxu3 }
 0x718   :  { %v11864_v33 = vadd.f32 %v5508_v44, %v5363_v54 }
 0x719   :  { %v5479_v15 = vpop.f32.mrf.mxu2 }
 0x71a   :  { %v11868_v29 = vadd.f32 %v5479_v15, %v5362_v31  ;;  %v5629_v39 = vpop.f32.mrf.mxu1  ;;  %v5791_v62 = vpop.f32.mrf.mxu0 }
 0x71b   :  { %v5671_v7 = vadd.f32 %v5629_v39, %v5512_v11  ;;  %v12549_v11 = vld [vmem:[#allocation51_spill] sm:$0xff] }
 0x71d   :  { %v5830_v23 = vadd.f32 %v5788_v5, %v5671_v7 }
 0x71f   :  { %v5759_v46 = vpop.f32.mrf.mxu3 }
 0x720   :  { %v5829_v17 = vadd.f32 %v5759_v46, %v5670_v42  ;;  %v12550_v46 = vld [vmem:[#allocation52_spill] sm:$0xff] }
 0x721   :  { %v5658_v25 = vpop.f32.mrf.mxu2 }
 0x722   :  { %v5632_v41 = vpop.f32.mrf.mxu1  ;;  %v11884_v2 = vpop.f32.mrf.mxu0  ;;  %v5672_v36 = vadd.f32 %v5658_v25, %v5513_v27  ;;  %v12548_v25 = vld [vmem:[#allocation46_spill] sm:$0xff] }
 0x723   :  { %v2985_v39 = vadd.f32 %v12549_v11, %v12548_v25  ;;  %v5674_v5 = vadd.f32 %v5632_v41, %v11854_v22 }
 0x725   :  { %v5833_v22 = vadd.f32 %v5791_v62, %v5674_v5  ;;  %v5676_v62 = vadd.f32 %v11866_v26, %v11856_v40 }
 0x727   :  { %v5762_v21 = vpop.f32.mrf.mxu3 }
 0x729   :  { %v5661_v50 = vpop.f32.mrf.mxu2 }
 0x72a   :  { %v11872_v51 = vpop.f32.mrf.mxu1  ;;  %v11886_v3 = vpop.f32.mrf.mxu0  ;;  %v5675_v38 = vadd.f32 %v5661_v50, %v11852_v34  ;;  %v12551_v34 = vld [vmem:[#allocation35_spill] sm:$0xff] }
 0x72b   :  { %12544 = vst [vmem:[#allocation72_spill] sm:$0xff] %v11886_v3 }
 0x72f   :  { %v11874_v13 = vpop.f32.mrf.mxu3 }
 0x731   :  { %v11876_v58 = vpop.f32.mrf.mxu2 }
 0x732   :  { %v11878_v16 = vpop.f32.mrf.mxu1  ;;  %v5976_v61 = vpop.f32.mrf.mxu0 }
 0x737   :  { %v11880_v19 = vpop.f32.mrf.mxu3 }
 0x739   :  { %v11882_v55 = vpop.f32.mrf.mxu2 }
 0x73a   :  { %v5817_v0 = vpop.f32.mrf.mxu1  ;;  %v5979_v49 = vpop.f32.mrf.mxu0 }
 0x73b   :  { %v5831_v44 = vadd.f32 %v5817_v0, %v5672_v36  ;;  %v2984_v0 = vadd.f32 %v12550_v46, %v2824_v8 }
 0x73d   :  { %v5990_v35 = vadd.f32 %v5976_v61, %v5831_v44 }
 0x73f   :  { %v5947_v14 = vpop.f32.mrf.mxu3 }
 0x740   :  { %v5989_v27 = vadd.f32 %v5947_v14, %v5830_v23 }
 0x741   :  { %v5918_v1 = vpop.f32.mrf.mxu2 }
 0x742   :  { %v5820_v52 = vpop.f32.mrf.mxu1  ;;  %v5988_v57 = vadd.f32 %v5918_v1, %v5829_v17  ;;  %v6166_v1 = vpop.permute.xlu2 %6165 }
 0x743   :  { %v5834_v42 = vadd.f32 %v5820_v52, %v5675_v38  ;;  %v5835_v38 = vadd.f32 %v11874_v13, %v5676_v62 }
 0x747   :  { %v5950_v54 = vpop.f32.mrf.mxu3 }
 0x748   :  { %v5992_v7 = vadd.f32 %v5950_v54, %v5833_v22 }
 0x749   :  { %v5921_v24 = vpop.f32.mrf.mxu2 }
 0x74a   :  { %v5823_v31 = vpop.f32.mrf.mxu1 }
 0x74f   :  { %v11888_v18 = vpop.f32.mrf.mxu3 }
 0x751   :  { %v11890_v59 = vpop.f32.mrf.mxu2 }
 0x752   :  { %v11892_v47 = vpop.f32.mrf.mxu1 }
 0x753   :  { %12545 = vst [vmem:[#allocation59_spill] sm:$0xff] %v11892_v47  ;;  %v3008_v47 = vpop.permute.xlu0 %3007 }
 0x754   :  { %v11912_v23 = vadd.f32 %v3008_v47, %v12551_v34  ;;  %v11916_v50 = vadd.f32 %v3008_v47, %v2985_v39  ;;  %v5994_v39 = vadd.f32 %v11890_v59, %v5835_v38  ;;  %v6176_v34 = vpop.permute.xlu2 %6175 }
 0x756   :  { %v3033_v36 = vmul.f32 %v11916_v50, %v12511_v37 }
 0x757   :  { %v11896_v53 = vpop.f32.mrf.mxu3 }
 0x758   :  { %v3050_v46 = vsel %vm127_vm0, %v3033_v36, 0.0 }
 0x759   :  { %v11898_v60 = vpop.f32.mrf.mxu2 }
 0x75a   :  { %v6077_v15 = vpop.f32.mrf.mxu1 }
 0x75b   :  { %v6147_v4 = vadd.f32 %v6077_v15, %v5988_v57  ;;  %v5832_v57 = vadd.f32 %v5762_v21, %v5673_v12  ;;  %v5677_v15 = vadd.f32 %v11872_v51, %v11860_v30 }
 0x75d   :  { %v11907_v56 = vadd.f32 %v6166_v1, %v6147_v4  ;;  %v5991_v8 = vadd.f32 %v5921_v24, %v5832_v57  ;;  %v5993_v4 = vadd.f32 %v5979_v49, %v5834_v42  ;;  %v5836_v13 = vadd.f32 %v11884_v2, %v5677_v15  ;;  %v6181_v15 = vpop.permute.xlu1 %6180 }
 0x75e   :  { %v5681_v57 = vadd.f32 %v11882_v55, %v11864_v33 }
 0x75f   :  { %v6135_v3 = vpop.f32.mrf.mxu3  ;;  %v6195_v41 = vmul.f32 %v11907_v56, %v8852_v9 }
 0x760   :  { %v6149_v63 = vadd.f32 %v6135_v3, %v5990_v35  ;;  %v11914_v35 = vadd.f32 %v3008_v47, %v2984_v0  ;;  %v3031_v3 = vmul.f32 %v11912_v23, %v8852_v9  ;;  %v5678_v47 = vadd.f32 %v11876_v58, %v11858_v43 }
 0x761   :  { %v6106_v61 = vpop.f32.mrf.mxu2 }
 0x762   :  { %v11909_v48 = vadd.f32 %v6166_v1, %v6149_v63  ;;  %v6148_v10 = vadd.f32 %v6106_v61, %v5989_v27  ;;  %v6080_v45 = vpop.f32.mrf.mxu1  ;;  %v3032_v24 = vmul.f32 %v11914_v35, %v12487_v20  ;;  %v5837_v27 = vadd.f32 %v5823_v31, %v5678_v47  ;;  %v5982_v63 = vpop.f32.mrf.mxu0 }
 0x763   :  { %v6150_v52 = vadd.f32 %v6080_v45, %v5991_v8  ;;  %v5995_v61 = vadd.f32 %v11888_v18, %v5836_v13  ;;  %v5680_v8 = vadd.f32 %v11878_v16, %v11868_v29  ;;  %v12553_v29 = vld [vmem:[#allocation72_spill] sm:$0xff] }
 0x764   :  { %v11918_v14 = vadd.f32 %v6166_v1, %v6148_v10  ;;  %v6197_v12 = vmul.f32 %v11909_v48, %v12511_v37  ;;  %v3049_v51 = vadd.f32 %v3032_v24, %v3031_v3  ;;  %v5996_v0 = vadd.f32 %v5982_v63, %v5837_v27 }
 0x765   :  { %v11941_v26 = vadd.f32 %v11894_v32, %v6150_v52  ;;  %v5839_v16 = vadd.f32 %v12553_v29, %v5680_v8 }
 0x766   :  { %v6196_v21 = vmul.f32 %v11918_v14, %v12487_v20  ;;  %v6208_v40 = vsel %vm127_vm0, %v6197_v12, 0.0  ;;  %v3051_v45 = vadd.f32 %v3050_v46, %v3049_v51  ;;  %v12552_v12 = vld [vmem:[#allocation59_spill] sm:$0xff]  ;;  %v3038_v46 = vpop.xlane.xlu2 %3037 }
 0x767   :  { %v6138_v49 = vpop.f32.mrf.mxu3  ;;  %v6198_v1 = vmul.f32 %v11941_v26, %v8852_v9 }
 0x768   :  { %v6152_v17 = vadd.f32 %v6138_v49, %v5993_v4  ;;  %v6207_v44 = vadd.f32 %v6196_v21, %v6195_v41  ;;  %v5840_v4 = vadd.f32 %v12552_v12, %v5681_v57 }
 0x769   :  { %v6109_v25 = vpop.f32.mrf.mxu2 }
 0x76a   :  { %v11944_v43 = vadd.f32 %v11894_v32, %v6152_v17  ;;  %v6151_v58 = vadd.f32 %v6109_v25, %v5992_v7  ;;  %v6083_v54 = vpop.f32.mrf.mxu1  ;;  %v6209_v11 = vadd.f32 %v6208_v40, %v6207_v44  ;;  %v5985_v21 = vpop.f32.mrf.mxu0 }
 0x76b   :  { %v6153_v59 = vadd.f32 %v6083_v54, %v5994_v39  ;;  %v5999_v62 = vadd.f32 %v5985_v21, %v5840_v4 }
 0x76c   :  { %v11948_v30 = vadd.f32 %v11894_v32, %v6151_v58  ;;  %6210 = vadd.xlane.f32.xlu1 %v6209_v11  ;;  %v6200_v31 = vmul.f32 %v11944_v43, %v12511_v37  ;;  %v5679_v32 = vadd.f32 %v11870_v28, %v11862_v6 }
 0x76d   :  { %v11968_v28 = vadd.f32 %v6176_v34, %v6153_v59  ;;  %v3058_v59 = vld [vmem:[%s12270_s6] sm:$0xff] }
 0x76e   :  { %v6199_v5 = vmul.f32 %v11948_v30, %v12487_v20  ;;  %v5838_v22 = vadd.f32 %v11880_v19, %v5679_v32  ;;  %v6213_v6 = vsel %vm127_vm0, %v6200_v31, 0.0 }
 0x76f   :  { %v6141_v2 = vpop.f32.mrf.mxu3  ;;  %v6201_v47 = vmul.f32 %v11968_v28, %v8852_v9 }
 0x770   :  { %v6155_v42 = vadd.f32 %v6141_v2, %v5996_v0  ;;  %v6212_v10 = vadd.f32 %v6199_v5, %v6198_v1  ;;  %v5997_v3 = vadd.f32 %v11898_v60, %v5838_v22  ;;  %v5998_v60 = vadd.f32 %v11896_v53, %v5839_v16  ;;  %v3043_v0 = vpop.xlane.xlu0 %3042  ;;  %v3048_v1 = vpop.xlane.xlu2 %3047 }
 0x771   :  { %v6112_v41 = vpop.f32.mrf.mxu2  ;;  %v3054_v5 = vmul.f32 0.00390625, %v3038_v46  ;;  %v3055_v32 = vmul.f32 0.00390625, %v3043_v0  ;;  %v3056_v57 = vmul.f32 0.00390625, %v3048_v1  ;;  %v3085_v1 = vld [vmem:[%s12272_s8 + $0x10] sm:$0xff] }
 0x772   :  { %v11970_v33 = vadd.f32 %v6176_v34, %v6155_v42  ;;  %v6154_v55 = vadd.f32 %v6112_v41, %v5995_v61  ;;  %v6214_v18 = vadd.f32 %v6213_v6, %v6212_v10  ;;  %v6086_v52 = vpop.f32.mrf.mxu1 }
 0x773   :  { %v6156_v36 = vadd.f32 %v6086_v52, %v5997_v3  ;;  %v3062_v2 = vmul.f32 %v3058_v59, %v3054_v5  ;;  %v3084_v5 = vld [vmem:[%s12272_s8 + $0x8] sm:$0xff] }
 0x774   :  { %v11973_v24 = vadd.f32 %v6176_v34, %v6154_v55  ;;  %6215 = vadd.xlane.f32.xlu2 %v6214_v18  ;;  %3052 = vadd.xlane.f32.xlu1 %v3051_v45  ;;  %v6203_v19 = vmul.f32 %v11970_v33, %v12511_v37  ;;  %v3061_v45 = vld [vmem:[%s12270_s6 + $0x18] sm:$0xff] }
 0x775   :  { %v11984_v63 = vadd.f32 %v6181_v15, %v6156_v36  ;;  %v3067_v10 = vsel %vm3066_vm13, %v3062_v2, 0.0 }
 0x776   :  { %v6202_v49 = vmul.f32 %v11973_v24, %v12487_v20  ;;  %v6218_v27 = vsel %vm127_vm0, %v6203_v19, 0.0 }
 0x777   :  { %v6144_v7 = vpop.f32.mrf.mxu3  ;;  %v6204_v53 = vmul.f32 %v11984_v63, %v8852_v9  ;;  %v3059_v9 = vld [vmem:[%s12270_s6 + $0x8] sm:$0xff] }
 0x778   :  { %v6158_v17 = vadd.f32 %v6144_v7, %v5999_v62  ;;  %v6217_v44 = vadd.f32 %v6202_v49, %v6201_v47  ;;  %v3063_v61 = vmul.f32 %v3059_v9, %v3055_v32 }
 0x779   :  { %v6115_v38 = vpop.f32.mrf.mxu2 }
 0x77a   :  { %v11986_v25 = vadd.f32 %v6181_v15, %v6158_v17  ;;  %v6157_v40 = vadd.f32 %v6115_v38, %v5998_v60  ;;  %v6219_v58 = vadd.f32 %v6218_v27, %v6217_v44  ;;  %v3068_v8 = vsel %vm3066_vm13, %v3063_v61, 0.0 }
 0x77b   :  { %v3069_v4 = vadd.f32 %v3068_v8, %v3067_v10  ;;  %v3086_v8 = vld [vmem:[%s12272_s8 + $0x18] sm:$0xff] }
 0x77c   :  { %v11988_v54 = vadd.f32 %v6181_v15, %v6157_v40  ;;  %6220 = vadd.xlane.f32.xlu0 %v6219_v58  ;;  %v6206_v11 = vmul.f32 %v11986_v25, %v12511_v37  ;;  %v3080_v58 = vld [vmem:[%s12271_s7] sm:$0x1] }
 0x77e   :  { %v6205_v39 = vmul.f32 %v11988_v54, %v12487_v20  ;;  %v6223_v13 = vsel %vm127_vm0, %v6206_v11, 0.0  ;;  %v3060_v20 = vld [vmem:[%s12270_s6 + $0x10] sm:$0xff] }
 0x77f   :  { %v3064_v42 = vmul.f32 %v3060_v20, %v3056_v57 }
 0x780   :  { %v6222_v51 = vadd.f32 %v6205_v39, %v6204_v53 }
 0x781   :  { %v3070_v22 = vsel %vm3066_vm13, %v3064_v42, 0.0 }
 0x782   :  { %v6224_v31 = vadd.f32 %v6223_v13, %v6222_v51  ;;  %v3071_v6 = vadd.f32 %v3070_v22, %v3069_v4  ;;  %v6252_v4 = vld [vmem:[%s12271_s7] sm:$0x1] }
 0x784   :  { %6225 = vadd.xlane.f32.xlu2 %v6224_v31 }
 0x7df   :  { %v6211_v37 = vpop.xlane.xlu1 %6210 }
 0x7e0   :  { %v6227_v16 = vmul.f32 0.00390625, %v6211_v37 }
 0x7e2   :  { %v6235_v36 = vmul.f32 %v6227_v16, %v3058_v59  ;;  %v3083_v59 = vld [vmem:[%s12272_s8] sm:$0xff] }
 0x7e4   :  { %v6239_v38 = vsel %vm3066_vm13, %v6235_v36, 0.0  ;;  %v3106_v36 = vld [vmem:[%s12273_s9 + $0x10] sm:$0xff] }
 0x7e7   :  { %v3053_v34 = vpop.xlane.xlu1 %3052  ;;  %v6216_v55 = vpop.xlane.xlu2 %6215 }
 0x7e8   :  { %v3057_v12 = vmul.f32 0.00390625, %v3053_v34  ;;  %v6228_v52 = vmul.f32 0.00390625, %v6216_v55 }
 0x7ea   :  { %v3065_v41 = vmul.f32 %v3061_v45, %v3057_v12  ;;  %v6236_v47 = vmul.f32 %v6228_v52, %v3059_v9 }
 0x7ec   :  { %v3072_v18 = vsel %vm3066_vm13, %v3065_v41, 0.0  ;;  %v6240_v17 = vsel %vm3066_vm13, %v6236_v47, 0.0 }
 0x7ed   :  { %v3073_v21 = vadd.f32 %v3072_v18, %v3071_v6  ;;  %v6241_v11 = vadd.f32 %v6240_v17, %v6239_v38 }
 0x7ef   :  { %v3074_v3 = vrot.slane %v3073_v21, 4  ;;  %v6221_v29 = vpop.xlane.xlu0 %6220 }
 0x7f0   :  { %v6229_v19 = vmul.f32 0.00390625, %v6221_v29 }
 0x7f1   :  { %v3075_v62 = vadd.f32 %v3074_v3, %v3073_v21 }
 0x7f2   :  { %v6237_v7 = vmul.f32 %v6229_v19, %v3060_v20 }
 0x7f3   :  { %v3076_v49 = vrot.slane %v3075_v62, 2 }
 0x7f4   :  { %v6242_v27 = vsel %vm3066_vm13, %v6237_v7, 0.0  ;;  %v3105_v7 = vld [vmem:[%s12273_s9 + $0x8] sm:$0xff] }
 0x7f5   :  { %v3077_v60 = vadd.f32 %v3076_v49, %v3075_v62  ;;  %v6243_v51 = vadd.f32 %v6242_v27, %v6241_v11 }
 0x7f7   :  { %v3078_v44 = vrot.slane %v3077_v60, 1  ;;  %v6226_v15 = vpop.xlane.xlu2 %6225 }
 0x7f8   :  { %v6230_v40 = vmul.f32 0.00390625, %v6226_v15 }
 0x7f9   :  { %v3079_v53 = vadd.f32 %v3078_v44, %v3077_v60  ;;  %v3104_v60 = vld [vmem:[%s12273_s9] sm:$0xff] }
 0x7fa   :  { %v6238_v39 = vmul.f32 %v6230_v40, %v3061_v45 }
 0x7fb   :  { %v3081_v13 = vadd.f32 %v3080_v58, %v3079_v53 }
 0x7fc   :  { %v6244_v31 = vsel %vm3066_vm13, %v6238_v39, 0.0  ;;  %v3107_v39 = vld [vmem:[%s12273_s9 + $0x18] sm:$0xff] }
 0x7fd   :  { %v6245_v46 = vadd.f32 %v6244_v31, %v6243_v51  ;;  %v3082_v0 = vmax.f32 %v3081_v13, 0.0 }
 0x7ff   :  { %v6246_v37 = vrot.slane %v6245_v46, 4  ;;  %v3087_v32 = vperm.slane %v3082_v0, 0 }
 0x801   :  { %v6247_v57 = vadd.f32 %v6246_v37, %v6245_v46  ;;  %v3090_v9 = vmul.f32 %v3087_v32, %v3085_v1  ;;  %v3089_v20 = vmul.f32 %v3087_v32, %v3084_v5  ;;  %v3088_v2 = vmul.f32 %v3087_v32, %v3083_v59 }
 0x802   :  { %v3091_v12 = vmul.f32 %v3087_v32, %v3086_v8 }
 0x803   :  { %v6248_v61 = vrot.slane %v6247_v57, 2  ;;  %v3098_v42 = vsel %vm3066_vm13, %v3090_v9, 0.0  ;;  %v3095_v10 = vsel %vm3066_vm13, %v3089_v20, 0.0  ;;  %v3092_v45 = vsel %vm3066_vm13, %v3088_v2, 0.0 }
 0x804   :  { %3099 = vadd.xlane.f32.xlu2 %v3098_v42  ;;  %3096 = vadd.xlane.f32.xlu1 %v3095_v10  ;;  %v3101_v55 = vsel %vm3066_vm13, %v3091_v12, 0.0 }
 0x805   :  { %v6249_v34 = vadd.f32 %v6248_v61, %v6247_v57  ;;  %3093 = vadd.xlane.f32.xlu0 %v3092_v45 }
 0x807   :  { %v6250_v22 = vrot.slane %v6249_v34, 1 }
 0x809   :  { %v6251_v41 = vadd.f32 %v6250_v22, %v6249_v34 }
 0x80b   :  { %v6253_v6 = vadd.f32 %v6252_v4, %v6251_v41 }
 0x80d   :  { %3102 = vadd.xlane.f32.xlu0 %v3101_v55  ;;  %v6254_v18 = vmax.f32 %v6253_v6, 0.0 }
 0x80f   :  { %v6259_v21 = vperm.slane %v6254_v18, 0 }
 0x811   :  { %v6261_v52 = vmul.f32 %v6259_v21, %v3084_v5  ;;  %v6260_v3 = vmul.f32 %v6259_v21, %v3083_v59  ;;  %v6262_v29 = vmul.f32 %v6259_v21, %v3085_v1  ;;  %v6263_v47 = vmul.f32 %v6259_v21, %v3086_v8 }
 0x813   :  { %v6267_v16 = vsel %vm3066_vm13, %v6261_v52, 0.0  ;;  %v6264_v19 = vsel %vm3066_vm13, %v6260_v3, 0.0  ;;  %v6270_v62 = vsel %vm3066_vm13, %v6262_v29, 0.0  ;;  %v6273_v49 = vsel %vm3066_vm13, %v6263_v47, 0.0 }
 0x814   :  { %6268 = vadd.xlane.f32.xlu2 %v6267_v16  ;;  %6265 = vadd.xlane.f32.xlu1 %v6264_v19 }
 0x815   :  { %6271 = vadd.xlane.f32.xlu0 %v6270_v62 }
 0x81c   :  { %6274 = vadd.xlane.f32.xlu1 %v6273_v49 }
 0x877   :  { %v3100_v17 = vpop.xlane.xlu2 %3099  ;;  %v3097_v44 = vpop.xlane.xlu1 %3096 }
 0x878   :  { %v3110_v15 = vadd.f32 %v3106_v36, %v3100_v17  ;;  %v3109_v38 = vadd.f32 %v3105_v7, %v3097_v44  ;;  %v3094_v27 = vpop.xlane.xlu0 %3093 }
 0x879   :  { %v3108_v40 = vadd.f32 %v3104_v60, %v3094_v27 }
 0x87a   :  { %v6715_v58 = vmul.f32 -1.442695, %v3110_v15  ;;  %v6714_v11 = vmul.f32 -1.442695, %v3109_v38 }
 0x87b   :  { %v6713_v53 = vmul.f32 -1.442695, %v3108_v40 }
 0x87c   :  { %7939 = vpow2.f32 %v6715_v58 }
 0x87d   :  { %7941 = vpow2.f32 %v6714_v11 }
 0x87e   :  { %7943 = vpow2.f32 %v6713_v53 }
 0x880   :  { %v3103_v51 = vpop.xlane.xlu0 %3102 }
 0x881   :  { %v3111_v13 = vadd.f32 %v3107_v39, %v3103_v51 }
 0x882   :  { %v7940_v31 = vpop.eup %7939 }
 0x883   :  { %v7942_v46 = vpop.eup %7941  ;;  %v3126_v0 = vadd.f32 1.0, %v7940_v31  ;;  %v6716_v59 = vmul.f32 -1.442695, %v3111_v13 }
 0x884   :  { %v7944_v1 = vpop.eup %7943  ;;  %v12055_v5 = vadd.f32 1.0, %v7942_v46 }
 0x885   :  { %7945 = vrcp.f32 %v3126_v0  ;;  %v12057_v37 = vadd.f32 1.0, %v7944_v1  ;;  %v3167_v61 = vand.u32 2147483647, %v3126_v0  ;;  %v3169_v34 = vand.u32 2147483648, %v3126_v0 }
 0x886   :  { %7947 = vrcp.f32 %v12055_v5  ;;  %vm3163_vm14 = vweird.f32 %v3126_v0  ;;  %v3152_v12 = vand.u32 2147483647, %v12055_v5  ;;  %vm3148_vm1 = vweird.f32 %v12055_v5 }
 0x887   :  { %7949 = vrcp.f32 %v12057_v37  ;;  %v6269_v32 = vpop.xlane.xlu2 %6268  ;;  %v6266_v57 = vpop.xlane.xlu1 %6265  ;;  %vm12062_vm15 = vcmp.eq.f32.partialorder %v3167_v61, 8.507059e+37  ;;  %v3154_v21 = vand.u32 2147483648, %v12055_v5  ;;  %vm3133_vm2 = vweird.f32 %v12057_v37 }
 0x888   :  { %7951 = vpow2.f32 %v6716_v59  ;;  %v6281_v9 = vadd.f32 %v6269_v32, %v3105_v7  ;;  %v6280_v20 = vadd.f32 %v6266_v57, %v3104_v60  ;;  %v6272_v2 = vpop.xlane.xlu0 %6271  ;;  %v3170_v29 = vor.u32 1.1754944e-38, %v3169_v34 }
 0x889   :  { %v6282_v42 = vadd.f32 %v6272_v2, %v3106_v36  ;;  %vm12073_vm3 = vcmp.eq.f32.partialorder %v3152_v12, 8.507059e+37  ;;  %v3139_v36 = vand.u32 2147483648, %v12057_v37  ;;  %v3137_v15 = vand.u32 2147483647, %v12057_v37 }
 0x88a   :  { %v7010_v10 = vmul.f32 -1.442695, %v6281_v9  ;;  %v7009_v45 = vmul.f32 -1.442695, %v6280_v20  ;;  %v3155_v51 = vor.u32 1.1754944e-38, %v3154_v21 }
 0x88b   :  { %v7946_v8 = vpop.eup %7945  ;;  %v7011_v22 = vmul.f32 -1.442695, %v6282_v42  ;;  %v3140_v13 = vor.u32 1.1754944e-38, %v3139_v36  ;;  %vm3138_vm10 = vcmp.eq.f32.partialorder %v3137_v15, 8.507059e+37 }
 0x88c   :  { %v7948_v4 = vpop.eup %7947  ;;  %7953 = vpow2.f32 %v7010_v10  ;;  %v3159_v41 = vmul.f32 %v7946_v8, %v3126_v0  ;;  %vm3164_vm4 = vweird.f32 %v7946_v8 }
 0x88d   :  { %v7950_v55 = vpop.eup %7949  ;;  %7955 = vpow2.f32 %v7009_v45  ;;  %v3144_v18 = vmul.f32 %v7948_v4, %v12055_v5  ;;  %vm3149_vm5 = vweird.f32 %v7948_v4  ;;  %vm3165_vm7 = vmor %vm3163_vm14, %vm3164_vm4 }
 0x88e   :  { %v7952_v52 = vpop.eup %7951  ;;  %7957 = vpow2.f32 %v7011_v22  ;;  %v3160_v3 = vsub.f32 1.0, %v3159_v41  ;;  %v3129_v16 = vmul.f32 %v7950_v55, %v12057_v37  ;;  %vm3134_vm6 = vweird.f32 %v7950_v55  ;;  %vm3150_vm8 = vmor %vm3148_vm1, %vm3149_vm5  ;;  %v12561_v22 = vld [vmem:[#allocation55_spill] sm:$0xff] }
 0x88f   :  { %v12071_v19 = vadd.f32 1.0, %v7952_v52  ;;  %v6275_v62 = vpop.xlane.xlu1 %6274  ;;  %v3145_v47 = vsub.f32 1.0, %v3144_v18  ;;  %vm3135_vm9 = vmor %vm3133_vm2, %vm3134_vm6 }
 0x890   :  { %v6283_v7 = vadd.f32 %v6275_v62, %v3107_v39  ;;  %v3161_v60 = vmul.f32 %v7946_v8, %v3160_v3  ;;  %v3130_v17 = vsub.f32 1.0, %v3129_v16 }
 0x891   :  { %7959 = vrcp.f32 %v12071_v19  ;;  %v3146_v44 = vmul.f32 %v7948_v4, %v3145_v47  ;;  %v3182_v61 = vand.u32 2147483647, %v12071_v19  ;;  %v3184_v37 = vand.u32 2147483648, %v12071_v19 }
 0x892   :  { %v7954_v38 = vpop.eup %7953  ;;  %v7012_v27 = vmul.f32 -1.442695, %v6283_v7  ;;  %v3162_v40 = vadd.f32 %v7946_v8, %v3161_v60  ;;  %v3131_v58 = vmul.f32 %v7950_v55, %v3130_v17  ;;  %vm3178_vm11 = vweird.f32 %v12071_v19 }
 0x893   :  { %v7956_v11 = vpop.eup %7955  ;;  %v12080_v53 = vadd.f32 1.0, %v7954_v38  ;;  %v3147_v39 = vadd.f32 %v7948_v4, %v3146_v44  ;;  %vm12106_vm12 = vcmp.eq.f32.partialorder %v3182_v61, 8.507059e+37  ;;  %v3185_v41 = vor.u32 1.1754944e-38, %v3184_v37 }
 0x894   :  { %v7958_v31 = vpop.eup %7957  ;;  %v12083_v46 = vadd.f32 1.0, %v7956_v11  ;;  %7961 = vpow2.f32 %v7012_v27  ;;  %v3166_v1 = vsel %vm3165_vm7, %v7946_v8, %v3162_v40  ;;  %v3132_v59 = vadd.f32 %v7950_v55, %v3131_v58 }
 0x895   :  { %7963 = vrcp.f32 %v12080_v53  ;;  %v12089_v32 = vadd.f32 1.0, %v7958_v31  ;;  %v3171_v0 = vsel %vm12062_vm15, %v3170_v29, %v3166_v1  ;;  %v3151_v57 = vsel %vm3150_vm8, %v7948_v4, %v3147_v39 }
 0x896   :  { %7965 = vrcp.f32 %v12083_v46  ;;  %3200 = vperm.xlu1 %7247, %v3171_v0   ;;  %v3156_v5 = vsel %vm12073_vm3, %v3155_v51, %v3151_v57  ;;  %v3136_v9 = vsel %vm3135_vm9, %v7950_v55, %v3132_v59  ;;  %vm6320_vm14 = vweird.f32 %v12080_v53 }
 0x897   :  { %v7960_v20 = vpop.eup %7959  ;;  %7967 = vrcp.f32 %v12089_v32  ;;  %3195 = vperm.xlu0 %7246, %v3156_v5   ;;  %v3141_v2 = vsel %vm3138_vm10, %v3140_v13, %v3136_v9  ;;  %v6324_v18 = vand.u32 2147483647, %v12080_v53  ;;  %v6326_v29 = vand.u32 2147483648, %v12080_v53 }
 0x898   :  { %3190 = vperm.xlu2 %7248, %v3141_v2   ;;  %v3174_v42 = vmul.f32 %v7960_v20, %v12071_v19  ;;  %vm3179_vm13 = vweird.f32 %v7960_v20  ;;  %vm6305_vm1 = vweird.f32 %v12083_v46  ;;  %v6309_v47 = vand.u32 2147483647, %v12083_v46 }
 0x899   :  { %vm3180_vm15 = vmor %vm3178_vm11, %vm3179_vm13  ;;  %v6311_v49 = vand.u32 2147483648, %v12083_v46  ;;  %v6341_v15 = vand.u32 2147483648, %v12089_v32  ;;  %v6339_v27 = vand.u32 2147483647, %v12089_v32  ;;  %vm6325_vm6 = vcmp.eq.f32.partialorder %v6324_v18, 8.507059e+37  ;;  %v12564_v18 = vld [vmem:[#allocation14_spill] sm:$0xff] }
 0x89a   :  { %v7962_v10 = vpop.eup %7961  ;;  %v3175_v45 = vsub.f32 1.0, %v3174_v42  ;;  %v6327_v58 = vor.u32 1.1754944e-38, %v6326_v29  ;;  %vm6335_vm7 = vweird.f32 %v12089_v32  ;;  %vm6310_vm9 = vcmp.eq.f32.partialorder %v6309_v47, 8.507059e+37 }
 0x89b   :  { %v7964_v34 = vpop.eup %7963  ;;  %v12103_v8 = vadd.f32 1.0, %v7962_v10  ;;  %v6312_v51 = vor.u32 1.1754944e-38, %v6311_v49  ;;  %vm6340_vm11 = vcmp.eq.f32.partialorder %v6339_v27, 8.507059e+37 }
 0x89c   :  { %v7966_v12 = vpop.eup %7965  ;;  %v3176_v4 = vmul.f32 %v7960_v20, %v3175_v45  ;;  %v6316_v6 = vmul.f32 %v7964_v34, %v12080_v53  ;;  %vm6321_vm2 = vweird.f32 %v7964_v34  ;;  %v6342_v53 = vor.u32 1.1754944e-38, %v6341_v15  ;;  %v12560_v45 = vld [vmem:[#allocation24_spill] sm:$0xff]  ;;  %v12568_v15 = vld [vmem:[#allocation23_spill] sm:$0xff] }
 0x89d   :  { %v7968_v55 = vpop.eup %7967  ;;  %7969 = vrcp.f32 %v12103_v8  ;;  %v6301_v21 = vmul.f32 %v7966_v12, %v12083_v46  ;;  %vm6306_vm3 = vweird.f32 %v7966_v12  ;;  %vm6322_vm5 = vmor %vm6320_vm14, %vm6321_vm2  ;;  %v6356_v46 = vand.u32 2147483648, %v12103_v8 }
 0x89e   :  { %v3177_v52 = vadd.f32 %v7960_v20, %v3176_v4  ;;  %v6317_v3 = vsub.f32 1.0, %v6316_v6  ;;  %v6331_v16 = vmul.f32 %v7968_v55, %v12089_v32  ;;  %vm6336_vm4 = vweird.f32 %v7968_v55  ;;  %vm6307_vm8 = vmor %vm6305_vm1, %vm6306_vm3  ;;  %v12562_v4 = vld [vmem:[#allocation58_spill] sm:$0xff]  ;;  %v12563_v6 = vld [vmem:[#allocation13_spill] sm:$0xff] }
 0x89f   :  { %v6302_v62 = vsub.f32 1.0, %v6301_v21  ;;  %vm6337_vm10 = vmor %vm6335_vm7, %vm6336_vm4  ;;  %vm6350_vm13 = vweird.f32 %v12103_v8  ;;  %v6357_v61 = vor.u32 1.1754944e-38, %v6356_v46  ;;  %v12574_v46 = vld [vmem:[#allocation10_spill] sm:$0xff] }
 0x8a0   :  { %v3181_v36 = vsel %vm3180_vm15, %v7960_v20, %v3177_v52  ;;  %v6318_v7 = vmul.f32 %v7964_v34, %v6317_v3  ;;  %v6332_v60 = vsub.f32 1.0, %v6331_v16  ;;  %v6354_v20 = vand.u32 2147483647, %v12103_v8  ;;  %v12565_v52 = vld [vmem:[#allocation8_spill] sm:$0xff] }
 0x8a1   :  { %v3186_v17 = vsel %vm12106_vm12, %v3185_v41, %v3181_v36  ;;  %v6303_v44 = vmul.f32 %v7966_v12, %v6302_v62 }
 0x8a2   :  { %3205 = vperm.xlu0 %7246, %v3186_v17   ;;  %v6319_v19 = vadd.f32 %v7964_v34, %v6318_v7  ;;  %v6333_v38 = vmul.f32 %v7968_v55, %v6332_v60  ;;  %vm6355_vm15 = vcmp.eq.f32.partialorder %v6354_v20, 8.507059e+37  ;;  %v12566_v7 = vld [vmem:[#allocation17_spill] sm:$0xff]  ;;  %v12575_v20 = vld [vmem:[#allocation4_spill] sm:$0xff] }
 0x8a3   :  { %v7970_v40 = vpop.eup %7969  ;;  %v6304_v11 = vadd.f32 %v7966_v12, %v6303_v44  ;;  %v12567_v17 = vld [vmem:[#allocation33_spill] sm:$0xff] }
 0x8a4   :  { %v6323_v39 = vsel %vm6322_vm5, %v7964_v34, %v6319_v19  ;;  %v6334_v13 = vadd.f32 %v7968_v55, %v6333_v38  ;;  %v6346_v31 = vmul.f32 %v7970_v40, %v12103_v8  ;;  %vm6351_vm12 = vweird.f32 %v7970_v40 }
 0x8a5   :  { %v6328_v1 = vsel %vm6325_vm6, %v6327_v58, %v6323_v39  ;;  %v6308_v59 = vsel %vm6307_vm8, %v7966_v12, %v6304_v11  ;;  %vm6352_vm14 = vmor %vm6350_vm13, %vm6351_vm12  ;;  %v12571_v39 = vld [vmem:[#allocation76_spill] sm:$0xff] }
 0x8a6   :  { %6367 = vperm.xlu1 %7247, %v6328_v1   ;;  %v6313_v0 = vsel %vm6310_vm9, %v6312_v51, %v6308_v59  ;;  %v6338_v57 = vsel %vm6337_vm10, %v7968_v55, %v6334_v13  ;;  %v6347_v5 = vsub.f32 1.0, %v6346_v31 }
 0x8a7   :  { %6362 = vperm.xlu2 %7248, %v6313_v0   ;;  %v6343_v32 = vsel %vm6340_vm11, %v6342_v53, %v6338_v57  ;;  %v12572_v0 = vld [vmem:[#allocation64_spill] sm:$0xff] }
 0x8a8   :  { %v6348_v9 = vmul.f32 %v7970_v40, %v6347_v5  ;;  %v12573_v5 = vld [vmem:[#allocation9_spill] sm:$0xff] }
 0x8aa   :  { %6372 = vperm.xlu0 %7246, %v6343_v32   ;;  %v6349_v2 = vadd.f32 %v7970_v40, %v6348_v9 }
 0x8ac   :  { %v6353_v42 = vsel %vm6352_vm14, %v7970_v40, %v6349_v2 }
 0x8ad   :  { %v6358_v37 = vsel %vm6355_vm15, %v6357_v61, %v6353_v42  ;;  %v12576_v61 = vld [vmem:[#allocation63_spill] sm:$0xff] }
 0x8af   :  { %6377 = vperm.xlu2 %7248, %v6358_v37   ;;  %v12577_v37 = vld [vmem:[#allocation16_spill] sm:$0xff] }
 0x8f2   :  { %v3191_v10 = vpop.permute.xlu2 %3190 }
 0x8f3   :  { %v3208_v34 = vmul.f32 %v3191_v10, %v12560_v45  ;;  %v3209_v12 = vmul.f32 %v3191_v10, %v12561_v22  ;;  %v3210_v41 = vmul.f32 %v3191_v10, %v12562_v4  ;;  %v12578_v45 = vld [vmem:[#allocation29_spill] sm:$0xff] }
 0x8f4   :  { %v12579_v22 = vld [vmem:[#allocation45_spill] sm:$0xff] }
 0x8f5   :  { %v3220_v55 = vadd.f32 %v3208_v34, %v12563_v6  ;;  %v3221_v21 = vadd.f32 %v3209_v12, %v12564_v18  ;;  %v3222_v3 = vadd.f32 %v3210_v41, %v12565_v52  ;;  %v12580_v12 = vld [vmem:[#allocation70_spill] sm:$0xff]  ;;  %v12581_v6 = vld [vmem:[#allocation11_spill] sm:$0xff] }
 0x8f7   :  { %v3232_v8 = vmax.f32 %v3220_v55, 0.0  ;;  %v3233_v29 = vmax.f32 %v3221_v21, 0.0  ;;  %v3234_v16 = vmax.f32 %v3222_v3, 0.0  ;;  %v12582_v21 = vld [vmem:[#allocation12_spill] sm:$0xff] }
 0x8f9   :  { %3244 = vst [vmem:[%s12274_s10] sm:$0xff] %v3232_v8  ;;  %v12583_v8 = vld [vmem:[#allocation5_spill] sm:$0xff] }
 0x8fa   :  { %3245 = vst [vmem:[%s12274_s10 + $0x8] sm:$0xff] %v3233_v29 }
 0x8fb   :  { %3246 = vst.msk [vmem:[%s12274_s10 + $0x10] sm:$0xff] %vm127_vm0, %v3234_v16 }
 0x901   :  { %v6363_v62 = vpop.permute.xlu2 %6362 }
 0x902   :  { %v6380_v47 = vmul.f32 %v6363_v62, %v11907_v56  ;;  %v6381_v49 = vmul.f32 %v6363_v62, %v11918_v14  ;;  %v6382_v36 = vmul.f32 %v6363_v62, %v11909_v48  ;;  %v12569_v56 = vld [vmem:[#allocation71_spill] sm:$0xff]  ;;  %v12570_v14 = vld [vmem:[#allocation65_spill] sm:$0xff] }
 0x904   :  { %v6392_v60 = vadd.f32 %v6380_v47, %v12566_v7  ;;  %v6393_v44 = vadd.f32 %v6381_v49, %v12567_v17  ;;  %v6394_v19 = vadd.f32 %v6382_v36, %v12568_v15 }
 0x906   :  { %v6404_v38 = vmax.f32 %v6392_v60, 0.0  ;;  %v6405_v27 = vmax.f32 %v6393_v44, 0.0  ;;  %v6406_v40 = vmax.f32 %v6394_v19, 0.0  ;;  %v12584_v44 = vld [vmem:[#allocation6_spill] sm:$0xff]  ;;  %v12585_v19 = vld [vmem:[#allocation7_spill] sm:$0xff] }
 0x908   :  { %7013 = vst [vmem:[%s12274_s10 + $0x60] sm:$0xff] %v6404_v38  ;;  %v3201_v58 = vpop.permute.xlu1 %3200 }
 0x909   :  { %7014 = vst [vmem:[%s12274_s10 + $0x68] sm:$0xff] %v6405_v27  ;;  %v3214_v48 = vmul.f32 %v3201_v58, %v12569_v56  ;;  %v3215_v11 = vmul.f32 %v3201_v58, %v12570_v14  ;;  %v3216_v51 = vmul.f32 %v3201_v58, %v12571_v39  ;;  %v6378_v13 = vpop.permute.xlu2 %6377  ;;  %v3196_v31 = vpop.permute.xlu0 %3195  ;;  %v12586_v27 = vld [vmem:[#allocation3_spill] sm:$0xff] }
 0x90a   :  { %7015 = vst.msk [vmem:[%s12274_s10 + $0x70] sm:$0xff] %vm127_vm0, %v6406_v40  ;;  %v6389_v1 = vmul.f32 %v6378_v13, %v11984_v63  ;;  %v6390_v59 = vmul.f32 %v6378_v13, %v11988_v54  ;;  %v6391_v53 = vmul.f32 %v6378_v13, %v11986_v25  ;;  %v3211_v57 = vmul.f32 %v3196_v31, %v12572_v0 }
 0x90b   :  { %v3226_v32 = vadd.f32 %v3214_v48, %v12573_v5  ;;  %v3227_v9 = vadd.f32 %v3215_v11, %v12574_v46  ;;  %v3228_v2 = vadd.f32 %v3216_v51, %v12575_v20  ;;  %v3212_v42 = vmul.f32 %v3196_v31, %v12576_v61  ;;  %v12587_v11 = vld [vmem:[#allocation31_spill] sm:$0xff]  ;;  %v12588_v51 = vld [vmem:[#allocation20_spill] sm:$0xff]  ;;  %v12590_v5 = vld [vmem:[#allocation22_spill] sm:$0xff] }
 0x90c   :  { %v6401_v10 = vadd.f32 %v6389_v1, %v12577_v37  ;;  %v6402_v34 = vadd.f32 %v6390_v59, %v12578_v45  ;;  %v6403_v63 = vadd.f32 %v6391_v53, %v12579_v22  ;;  %v3213_v54 = vmul.f32 %v3196_v31, %v12580_v12  ;;  %v12589_v31 = vld [vmem:[#allocation19_spill] sm:$0xff] }
 0x90d   :  { %v3238_v4 = vmax.f32 %v3226_v32, 0.0  ;;  %v3239_v25 = vmax.f32 %v3227_v9, 0.0  ;;  %v3240_v41 = vmax.f32 %v3228_v2, 0.0  ;;  %v3223_v55 = vadd.f32 %v3211_v57, %v12581_v6  ;;  %v12591_v46 = vld [vmem:[#allocation39_spill] sm:$0xff] }
 0x90e   :  { %v6413_v18 = vmax.f32 %v6401_v10, 0.0  ;;  %v3224_v52 = vadd.f32 %v3212_v42, %v12582_v21  ;;  %v6414_v3 = vmax.f32 %v6402_v34, 0.0  ;;  %v3225_v29 = vadd.f32 %v3213_v54, %v12583_v8  ;;  %v12592_v20 = vld [vmem:[#allocation15_spill] sm:$0xff] }
 0x90f   :  { %3250 = vst [vmem:[%s12274_s10 + $0x30] sm:$0xff] %v3238_v4  ;;  %v6415_v16 = vmax.f32 %v6403_v63, 0.0  ;;  %v3235_v62 = vmax.f32 %v3223_v55, 0.0 }
 0x910   :  { %3251 = vst [vmem:[%s12274_s10 + $0x38] sm:$0xff] %v3239_v25  ;;  %v3236_v47 = vmax.f32 %v3224_v52, 0.0  ;;  %v3237_v49 = vmax.f32 %v3225_v29, 0.0 }
 0x911   :  { %3252 = vst.msk [vmem:[%s12274_s10 + $0x40] sm:$0xff] %vm127_vm0, %v3240_v41 }
 0x912   :  { %7022 = vst [vmem:[%s12274_s10 + $0xa8] sm:$0xff] %v6413_v18 }
 0x913   :  { %7023 = vst [vmem:[%s12274_s10 + $0xb0] sm:$0xff] %v6414_v3 }
 0x914   :  { %7024 = vst.msk [vmem:[%s12274_s10 + $0xb8] sm:$0xff] %vm127_vm0, %v6415_v16  ;;  %v3206_v36 = vpop.permute.xlu0 %3205 }
 0x915   :  { %3247 = vst [vmem:[%s12274_s10 + $0x18] sm:$0xff] %v3235_v62  ;;  %v3217_v7 = vmul.f32 %v3206_v36, %v11912_v23  ;;  %v3218_v60 = vmul.f32 %v3206_v36, %v11914_v35  ;;  %v3219_v17 = vmul.f32 %v3206_v36, %v11916_v50 }
 0x916   :  { %3248 = vst [vmem:[%s12274_s10 + $0x20] sm:$0xff] %v3236_v47 }
 0x917   :  { %3249 = vst.msk [vmem:[%s12274_s10 + $0x28] sm:$0xff] %vm127_vm0, %v3237_v49  ;;  %v3229_v15 = vadd.f32 %v3217_v7, %v12584_v44  ;;  %v3230_v38 = vadd.f32 %v3218_v60, %v12585_v19  ;;  %v3231_v40 = vadd.f32 %v3219_v17, %v12586_v27 }
 0x918   :  { %v6368_v23 = vpop.permute.xlu1 %6367 }
 0x919   :  { %v3241_v58 = vmax.f32 %v3229_v15, 0.0  ;;  %v3242_v35 = vmax.f32 %v3230_v38, 0.0  ;;  %v3243_v56 = vmax.f32 %v3231_v40, 0.0  ;;  %v6383_v50 = vmul.f32 %v6368_v23, %v11941_v26 }
 0x91a   :  { %v6384_v48 = vmul.f32 %v6368_v23, %v11948_v30  ;;  %v6385_v14 = vmul.f32 %v6368_v23, %v11944_v43 }
 0x91b   :  { %3253 = vst [vmem:[%s12274_s10 + $0x48] sm:$0xff] %v3241_v58  ;;  %v6395_v39 = vadd.f32 %v6383_v50, %v12587_v11 }
 0x91c   :  { %3254 = vst [vmem:[%s12274_s10 + $0x50] sm:$0xff] %v3242_v35  ;;  %v6396_v13 = vadd.f32 %v6384_v48, %v12588_v51  ;;  %v6397_v1 = vadd.f32 %v6385_v14, %v12589_v31  ;;  %v6373_v59 = vpop.permute.xlu0 %6372 }
 0x91d   :  { %3255 = vst.msk [vmem:[%s12274_s10 + $0x58] sm:$0xff] %vm127_vm0, %v3243_v56  ;;  %v6407_v26 = vmax.f32 %v6395_v39, 0.0  ;;  %v6386_v43 = vmul.f32 %v6373_v59, %v11968_v28  ;;  %v6387_v30 = vmul.f32 %v6373_v59, %v11973_v24  ;;  %v6388_v53 = vmul.f32 %v6373_v59, %v11970_v33 }
 0x91e   :  { %v6408_v0 = vmax.f32 %v6396_v13, 0.0  ;;  %v6409_v57 = vmax.f32 %v6397_v1, 0.0 }
 0x91f   :  { %7016 = vst [vmem:[%s12274_s10 + $0x78] sm:$0xff] %v6407_v26  ;;  %v6398_v32 = vadd.f32 %v6386_v43, %v12590_v5  ;;  %v6399_v9 = vadd.f32 %v6387_v30, %v12591_v46  ;;  %v6400_v2 = vadd.f32 %v6388_v53, %v12592_v20 }
 0x920   :  { %7017 = vst [vmem:[%s12274_s10 + $0x80] sm:$0xff] %v6408_v0 }
 0x921   :  { %7018 = vst.msk [vmem:[%s12274_s10 + $0x88] sm:$0xff] %vm127_vm0, %v6409_v57  ;;  %v6410_v28 = vmax.f32 %v6398_v32, 0.0  ;;  %v6411_v33 = vmax.f32 %v6399_v9, 0.0  ;;  %v6412_v24 = vmax.f32 %v6400_v2, 0.0 }
 0x923   :  { %7019 = vst [vmem:[%s12274_s10 + $0x90] sm:$0xff] %v6410_v28 }
 0x924   :  { %7020 = vst [vmem:[%s12274_s10 + $0x98] sm:$0xff] %v6411_v33 }
 0x925   :  { %7021 = vst.msk [vmem:[%s12274_s10 + $0xa0] sm:$0xff] %vm127_vm0, %v6412_v24 }

</bundles_post_ra>
